<compile_context>
chip_gen: v7x
topology: tpu7x:2x2x1
jax: 0.10.0
libtpu: 0.0.40
codegen_flags: <defaults>
</compile_context>

<pallas_src>
import functools

import jax
import jax.numpy as jnp
from jax import lax
from jax.experimental import pallas as pl
from jax.experimental.pallas import tpu as pltpu


# --------------------------------------------------------------------------
# Fused kernel: one grid step per (batch element, transformer block)
# --------------------------------------------------------------------------
def _layernorm(x, w, b, eps=1e-6):
    mu = jnp.mean(x, axis=-1, keepdims=True)
    var = jnp.mean(jnp.square(x - mu), axis=-1, keepdims=True)
    return (x - mu) * lax.rsqrt(var + eps) * w + b


def _fused_backbone_kernel(patches_ref, pw_ref, pb_ref,
                           ln1w_ref, ln1b_ref, wqkv_ref, bqkv_ref,
                           wproj_ref, bproj_ref, ln2w_ref, ln2b_ref,
                           fc1w_ref, fc1b_ref, fc2w_ref, fc2b_ref,
                           *out_and_scratch, num_heads, tap_ids):
    f32 = jnp.float32
    bf16 = jnp.bfloat16

    n_taps = len(tap_ids)
    out_refs = out_and_scratch[:n_taps]
    x_scr = out_and_scratch[n_taps]          # (N, D) f32, persists across the depth axis

    d = pl.program_id(1)

    # ---- patch_embed at the first depth step of each batch element -------------
    @pl.when(d == 0)
    def _():
        x_scr[...] = (jnp.dot(patches_ref[0].astype(bf16), pw_ref[...],
                              preferred_element_type=f32) + pb_ref[...])

    x = x_scr[...]                            # (N, D) f32
    N, D = x.shape
    H = num_heads
    hd = D // H

    # ---- multi-head self-attention (pre-norm) ----------------------------------
    y = _layernorm(x, ln1w_ref[0], ln1b_ref[0])                       # (N, D) f32
    # ONE fused QKV matmul (scale already folded into the Q columns at prep time).
    qkv = jnp.dot(y.astype(bf16), wqkv_ref[0],
                  preferred_element_type=f32) + bqkv_ref[0]            # (N, 3D) f32

    head_outs = []
    for h in range(H):                        # static loop; H tiny (score/PV matmuls
        q_h = qkv[:, h * hd:(h + 1) * hd]     # are inherently per-head at hd=D/H)
        k_h = qkv[:, D + h * hd:D + (h + 1) * hd]
        v_h = qkv[:, 2 * D + h * hd:2 * D + (h + 1) * hd]
        s = jnp.dot(q_h.astype(bf16), k_h.T.astype(bf16),
                    preferred_element_type=f32)                        # (N, N)
        s = s - jnp.max(s, axis=-1, keepdims=True)
        p = jnp.exp(s)
        denom = jnp.sum(p, axis=-1, keepdims=True)                     # (N, 1)
        o_h = jnp.dot(p.astype(bf16), v_h.astype(bf16),
                      preferred_element_type=f32)                      # (N, hd)
        # normalize after the PV matmul; approx reciprocal runs on the EUP slot
        head_outs.append(o_h * pl.reciprocal(denom, approx=True))
    attn_cat = jnp.concatenate(head_outs, axis=-1)                     # (N, D) concat(heads)
    # ONE fused output projection (K = D) instead of per-head K = hd matmuls + sum.
    attn = jnp.dot(attn_cat.astype(bf16), wproj_ref[0],
                   preferred_element_type=f32) + bproj_ref[0]
    x = x + attn

    # ---- MLP (pre-norm) ----------------------------------------------------------
    y2 = _layernorm(x, ln2w_ref[0], ln2b_ref[0])
    h1 = jnp.dot(y2.astype(bf16), fc1w_ref[0],
                 preferred_element_type=f32) + fc1b_ref[0]
    # TODO(synk): timm ViT default is exact erf GELU; tanh approximation used here.
    h1 = jax.nn.gelu(h1, approximate=True)
    x = x + jnp.dot(h1.astype(bf16), fc2w_ref[0],
                    preferred_element_type=f32) + fc2b_ref[0]

    x_scr[...] = x                             # carry to the next depth step

    # ---- taps: lane-dense (D, N) stores; the tap output block index is constant
    # across d, so the buffer is only written back to HBM once per batch element.
    for t, tid in enumerate(tap_ids):
        @pl.when(d == tid)
        def _(t=t):
            out_refs[t][0] = jnp.transpose(x).astype(out_refs[t].dtype)


def fused_vit_forward(patches, prep, *, num_heads, tap_ids):
    """patches: (B, N, P).  Returns a tuple of (B, D, N) tap activations."""
    B, N, P = patches.shape
    D = prep["patch_w"].shape[1]
    Dh = prep["fc1_w"].shape[-1]
    H = num_heads
    hd = D // H
    n_layers = max(tap_ids) + 1   # blocks after the last tap do not affect any output

    args = (patches,
            prep["patch_w"], prep["patch_b"],
            prep["ln1_w"], prep["ln1_b"],
            prep["wqkv"], prep["bqkv"],
            prep["wproj"], prep["bproj"],
            prep["ln2_w"], prep["ln2_b"],
            prep["fc1_w"], prep["fc1_b"],
            prep["fc2_w"], prep["fc2_b"])

    def resident(a):   # small tensors kept VMEM-resident (constant block index)
        nd = a.ndim
        return pl.BlockSpec(a.shape, lambda b, d, _nd=nd: (0,) * _nd)

    def per_layer(a):  # per-depth weight slice, streamed (auto double-buffered) over d
        nd = a.ndim
        return pl.BlockSpec((1,) + a.shape[1:],
                            lambda b, d, _nd=nd: (d,) + (0,) * (_nd - 1))

    in_specs = [pl.BlockSpec((1, N, P), lambda b, d: (b, 0, 0)),
                resident(prep["patch_w"]), resident(prep["patch_b"])]
    in_specs += [per_layer(a) for a in args[3:]]

    # Lane-dense outputs: (B, D, N) with N on lanes; wrapper just reshapes to (B,D,14,14).
    out_specs = tuple(pl.BlockSpec((1, D, N), lambda b, d: (b, 0, 0)) for _ in tap_ids)
    out_shape = tuple(jax.ShapeDtypeStruct((B, D, N), jnp.float32) for _ in tap_ids)

    flops = 2 * B * (N * P * D
                     + n_layers * (N * D * 3 * D          # qkv
                                   + 2 * H * N * N * hd   # scores + PV
                                   + N * D * D            # out proj
                                   + 2 * N * D * Dh))     # mlp
    transcendentals = B * n_layers * (H * N * N + N * Dh)
    bytes_accessed = int(sum(int(a.nbytes) for a in args)
                         + B * len(tap_ids) * N * D * 4)

    return pl.pallas_call(
        functools.partial(_fused_backbone_kernel,
                          num_heads=num_heads, tap_ids=tuple(tap_ids)),
        out_shape=out_shape,
        grid_spec=pltpu.PrefetchScalarGridSpec(
            num_scalar_prefetch=0,
            grid=(B, n_layers),
            in_specs=in_specs,
            out_specs=out_specs,
            scratch_shapes=[pltpu.VMEM((N, D), jnp.float32)]),
        compiler_params=pltpu.CompilerParams(
            dimension_semantics=("parallel", "arbitrary"),
            vmem_limit_bytes=32 * 1024 * 1024),
        cost_estimate=pl.CostEstimate(flops=flops,
                                      transcendentals=transcendentals,
                                      bytes_accessed=bytes_accessed),
    )(*args)


# --------------------------------------------------------------------------
# Parameter init (deterministic, synthetic, PyTorch-like layout)
# --------------------------------------------------------------------------
def init_params(key, *, in_chans=3, patch_size=2, embed_dim=32, depth=12,
                num_heads=4, mlp_ratio=4):
    P = patch_size * patch_size * in_chans
    Dh = embed_dim * mlp_ratio
    keys = jax.random.split(key, 1 + depth)

    def nrm(k, shape):
        return 0.02 * jax.random.normal(k, shape, dtype=jnp.float32)

    params = {
        "patch_size": patch_size,
        "embed_dim": embed_dim,
        "num_heads": num_heads,
        "patch_w": nrm(keys[0], (P, embed_dim)),
        "patch_b": jnp.zeros((embed_dim,), jnp.float32),
        "blocks": [],
    }
    for d in range(depth):
        bk = jax.random.split(keys[1 + d], 4)
        params["blocks"].append({
            "ln1_w": jnp.ones((embed_dim,), jnp.float32),
            "ln1_b": jnp.zeros((embed_dim,), jnp.float32),
            "qkv_w": nrm(bk[0], (embed_dim, 3 * embed_dim)),
            "qkv_b": jnp.zeros((3 * embed_dim,), jnp.float32),
            "proj_w": nrm(bk[1], (embed_dim, embed_dim)),
            "proj_b": jnp.zeros((embed_dim,), jnp.float32),
            "ln2_w": jnp.ones((embed_dim,), jnp.float32),
            "ln2_b": jnp.zeros((embed_dim,), jnp.float32),
            "fc1_w": nrm(bk[2], (embed_dim, Dh)),
            "fc1_b": jnp.zeros((Dh,), jnp.float32),
            "fc2_w": nrm(bk[3], (Dh, embed_dim)),
            "fc2_b": jnp.zeros((embed_dim,), jnp.float32),
        })
    return params


def _prepare_params(params):
    """One-time host transform: stack per-block weights over depth, fold the attention
    scale into the Q columns, and cast matmul weights to bf16 (MXU-native)."""
    D = params["embed_dim"]
    H = params["num_heads"]
    hd = D // H
    blocks = params["blocks"]
    depth = len(blocks)
    scale = float(hd) ** -0.5

    def stack(name):
        return jnp.stack([b[name] for b in blocks])           # (depth, ...)

    qkv_w = stack("qkv_w")                                     # (depth, D, 3D)
    qkv_b = stack("qkv_b")                                     # (depth, 3D)
    qkv_w = qkv_w.at[:, :, :D].multiply(scale)                 # fold hd**-0.5 into Q
    qkv_b = qkv_b.at[:, :D].multiply(scale)

    Dh = blocks[0]["fc1_w"].shape[1]
    prep = {
        "patch_w": params["patch_w"].astype(jnp.bfloat16),     # (P, D)
        "patch_b": params["patch_b"].reshape(1, D),
        "ln1_w": stack("ln1_w").reshape(depth, 1, D),
        "ln1_b": stack("ln1_b").reshape(depth, 1, D),
        "wqkv": qkv_w.astype(jnp.bfloat16),                    # (depth, D, 3D)
        "bqkv": qkv_b.reshape(depth, 1, 3 * D),
        "wproj": stack("proj_w").astype(jnp.bfloat16),         # (depth, D, D)
        "bproj": stack("proj_b").reshape(depth, 1, D),
        "ln2_w": stack("ln2_w").reshape(depth, 1, D),
        "ln2_b": stack("ln2_b").reshape(depth, 1, D),
        "fc1_w": stack("fc1_w").astype(jnp.bfloat16),          # (depth, D, Dh)
        "fc1_b": stack("fc1_b").reshape(depth, 1, Dh),
        "fc2_w": stack("fc2_w").astype(jnp.bfloat16),          # (depth, Dh, D)
        "fc2_b": stack("fc2_b").reshape(depth, 1, D),
    }
    return prep


# --------------------------------------------------------------------------
# BackboneBase wrapper
# --------------------------------------------------------------------------
def _backbone_forward(prep, tensors, *, patch_size, num_heads, tap_ids):
    B, C, Himg, Wimg = tensors.shape
    gh, gw = Himg // patch_size, Wimg // patch_size

    # body.patch_embed: conv(stride=patch) == patchify + matmul (matmul is in-kernel)
    patches = tensors.reshape(B, C, gh, patch_size, gw, patch_size)
    patches = patches.transpose(0, 2, 4, 3, 5, 1)              # (B, gh, gw, p, p, C)
    patches = patches.reshape(B, gh * gw, patch_size * patch_size * C)

    taps = fused_vit_forward(patches, prep, num_heads=num_heads, tap_ids=tap_ids)

    out = {}
    for tid, t in zip(tap_ids, taps):
        D = t.shape[1]
        # kernel already emitted (B, D, N); only the free reshape remains
        out[f"Block_{tid}"] = t.reshape(B, D, gh, gw)
    return out


class BackboneBase:
    """JAX/Pallas port of ThreeFormer BackboneBase (ViT feature extractor)."""

    def __init__(self, params, blocks):
        self.params = params
        self.blocks = list(blocks)
        # mirrors the torch module (synthetic embed_dim instead of 768)
        self.block_map = {"Block_9": params["embed_dim"],
                          "Block_11": params["embed_dim"]}
        self.num_channels = [self.block_map[b] for b in self.blocks]

        self._tap_ids = tuple(sorted(int(b.split("_")[1]) for b in self.blocks))
        self._prep = _prepare_params(params)
        self._fwd = jax.jit(functools.partial(
            _backbone_forward,
            patch_size=params["patch_size"],
            num_heads=params["num_heads"],
            tap_ids=self._tap_ids))

    def forward(self, tensors):
        # body.pos_drop / body.patch_drop / body.norm_pre: identity at inference.
        return self._fwd(self._prep, tensors)


if __name__ == "__main__":
    key = jax.random.PRNGKey(0)
    pkey, xkey = jax.random.split(key)

    params = init_params(pkey, in_chans=3, patch_size=2, embed_dim=32,
                         depth=12, num_heads=4, mlp_ratio=4)
    x = jax.random.normal(xkey, (2, 3, 28, 28), dtype=jnp.float32)  # NCHW

    backbone = BackboneBase(params, blocks=["Block_9", "Block_11"])
    out = backbone.forward(x)
    out = jax.block_until_ready(out)

    assert set(out.keys()) == {"Block_9", "Block_11"}
    for v in out.values():
        assert v.shape == (2, 32, 14, 14)
        assert jnp.all(jnp.isfinite(v))
    print("KERNEL_OK")
</pallas_src>

<mosaic_0001>
module attributes {stable_mosaic.version = 11 : i64} {
  func.func @_fused_backbone_kernel(%arg0: i32, %arg1: i32, %arg2: memref<1x196x12xf32, #tpu.memory_space<vmem>>, %arg3: memref<12x32xbf16, #tpu.memory_space<vmem>>, %arg4: memref<1x32xf32, #tpu.memory_space<vmem>>, %arg5: memref<1x1x32xf32, #tpu.memory_space<vmem>>, %arg6: memref<1x1x32xf32, #tpu.memory_space<vmem>>, %arg7: memref<1x32x96xbf16, #tpu.memory_space<vmem>>, %arg8: memref<1x1x96xf32, #tpu.memory_space<vmem>>, %arg9: memref<1x32x32xbf16, #tpu.memory_space<vmem>>, %arg10: memref<1x1x32xf32, #tpu.memory_space<vmem>>, %arg11: memref<1x1x32xf32, #tpu.memory_space<vmem>>, %arg12: memref<1x1x32xf32, #tpu.memory_space<vmem>>, %arg13: memref<1x32x128xbf16, #tpu.memory_space<vmem>>, %arg14: memref<1x1x128xf32, #tpu.memory_space<vmem>>, %arg15: memref<1x128x32xbf16, #tpu.memory_space<vmem>>, %arg16: memref<1x1x32xf32, #tpu.memory_space<vmem>>, %arg17: memref<1x32x196xf32, #tpu.memory_space<vmem>>, %arg18: memref<1x32x196xf32, #tpu.memory_space<vmem>>, %arg19: memref<196x32xf32, #tpu.memory_space<vmem>>) attributes {dimension_semantics = [#tpu.dimension_semantics<parallel>, #tpu.dimension_semantics<arbitrary>], iteration_bounds = array<i64: 2, 12>, scalar_prefetch = 0 : i64, scratch_operands = 1 : i64, tpu.core_type = #tpu.core_type<tc>, window_params = [{transform_indices = @transform_0, window_bounds = array<i64: 1, 196, 12>}, {pipeline_mode = #tpu.pipeline_mode<synchronous>, transform_indices = @transform_1, window_bounds = array<i64: 12, 32>}, {pipeline_mode = #tpu.pipeline_mode<synchronous>, transform_indices = @transform_2, window_bounds = array<i64: 1, 32>}, {transform_indices = @transform_3, window_bounds = array<i64: 1, 1, 32>}, {transform_indices = @transform_4, window_bounds = array<i64: 1, 1, 32>}, {transform_indices = @transform_5, window_bounds = array<i64: 1, 32, 96>}, {transform_indices = @transform_6, window_bounds = array<i64: 1, 1, 96>}, {transform_indices = @transform_7, window_bounds = array<i64: 1, 32, 32>}, {transform_indices = @transform_8, window_bounds = array<i64: 1, 1, 32>}, {transform_indices = @transform_9, window_bounds = array<i64: 1, 1, 32>}, {transform_indices = @transform_10, window_bounds = array<i64: 1, 1, 32>}, {transform_indices = @transform_11, window_bounds = array<i64: 1, 32, 128>}, {transform_indices = @transform_12, window_bounds = array<i64: 1, 1, 128>}, {transform_indices = @transform_13, window_bounds = array<i64: 1, 128, 32>}, {transform_indices = @transform_14, window_bounds = array<i64: 1, 1, 32>}, {transform_indices = @transform_15, window_bounds = array<i64: 1, 32, 196>}, {transform_indices = @transform_16, window_bounds = array<i64: 1, 32, 196>}]} {
    %c0_i32 = arith.constant 0 : i32
    %0 = arith.cmpi eq, %arg1, %c0_i32 : i32
    %1 = arith.extui %0 : i1 to i32
    %c0_i32_0 = arith.constant 0 : i32
    %2 = arith.cmpi ne, %1, %c0_i32_0 : i32
    scf.if %2 {
      %c0_75 = arith.constant 0 : index
      %c0_76 = arith.constant 0 : index
      %c0_77 = arith.constant 0 : index
      %191 = vector.load %arg2[%c0_75, %c0_76, %c0_77] : memref<1x196x12xf32, #tpu.memory_space<vmem>>, vector<1x196x12xf32>
      %192 = vector.shape_cast %191 : vector<1x196x12xf32> to vector<196x12xf32>
      %193 = arith.truncf %192 : vector<196x12xf32> to vector<196x12xbf16>
      %c0_78 = arith.constant 0 : index
      %c0_79 = arith.constant 0 : index
      %194 = vector.load %arg3[%c0_78, %c0_79] : memref<12x32xbf16, #tpu.memory_space<vmem>>, vector<12x32xbf16>
      %cst_80 = arith.constant dense<0.000000e+00> : vector<196x32xf32>
      %195 = tpu.matmul %193, %194, %cst_80 {dimension_numbers = #tpu.dot_dimension_numbers<[1], [0], [0], [1], [0, 0, 1, 1], [], []>} : vector<196x12xbf16>, vector<12x32xbf16>, vector<196x32xf32> -> vector<196x32xf32>
      %c0_81 = arith.constant 0 : index
      %c0_82 = arith.constant 0 : index
      %196 = vector.load %arg4[%c0_81, %c0_82] : memref<1x32xf32, #tpu.memory_space<vmem>>, vector<1x32xf32>
      %197 = vector.broadcast %196 : vector<1x32xf32> to vector<196x32xf32>
      %198 = arith.addf %195, %197 : vector<196x32xf32>
      %c0_83 = arith.constant 0 : index
      %c0_84 = arith.constant 0 : index
      %199 = vector.load %arg19[%c0_83, %c0_84] : memref<196x32xf32, #tpu.memory_space<vmem>>, vector<196x32xf32>
      tpu.vector_store %arg19[%c0_83, %c0_84], %198 {strides = array<i32>} : memref<196x32xf32, #tpu.memory_space<vmem>>, vector<196x32xf32>,
    } else {
    }
    %c0 = arith.constant 0 : index
    %c0_1 = arith.constant 0 : index
    %3 = vector.load %arg19[%c0, %c0_1] : memref<196x32xf32, #tpu.memory_space<vmem>>, vector<196x32xf32>
    %c0_2 = arith.constant 0 : index
    %c0_3 = arith.constant 0 : index
    %c0_4 = arith.constant 0 : index
    %4 = vector.load %arg5[%c0_2, %c0_3, %c0_4] : memref<1x1x32xf32, #tpu.memory_space<vmem>>, vector<1x1x32xf32>
    %5 = vector.shape_cast %4 : vector<1x1x32xf32> to vector<1x32xf32>
    %c0_5 = arith.constant 0 : index
    %c0_6 = arith.constant 0 : index
    %c0_7 = arith.constant 0 : index
    %6 = vector.load %arg6[%c0_5, %c0_6, %c0_7] : memref<1x1x32xf32, #tpu.memory_space<vmem>>, vector<1x1x32xf32>
    %7 = vector.shape_cast %6 : vector<1x1x32xf32> to vector<1x32xf32>
    %cst = arith.constant dense<0.000000e+00> : vector<196xf32>
    %8 = vector.multi_reduction <add>, %3, %cst [1] : vector<196x32xf32> to vector<196xf32>
    %9 = vector.shape_cast %8 : vector<196xf32> to vector<196x1xf32>
    %cst_8 = arith.constant 3.200000e+01 : f32
    %10 = vector.broadcast %cst_8 : f32 to vector<196x1xf32>
    %11 = arith.divf %9, %10 : vector<196x1xf32>
    %12 = vector.broadcast %11 : vector<196x1xf32> to vector<196x32xf32>
    %13 = arith.subf %3, %12 : vector<196x32xf32>
    %14 = arith.mulf %13, %13 : vector<196x32xf32>
    %cst_9 = arith.constant dense<0.000000e+00> : vector<196xf32>
    %15 = vector.multi_reduction <add>, %14, %cst_9 [1] : vector<196x32xf32> to vector<196xf32>
    %16 = vector.shape_cast %15 : vector<196xf32> to vector<196x1xf32>
    %cst_10 = arith.constant 3.200000e+01 : f32
    %17 = vector.broadcast %cst_10 : f32 to vector<196x1xf32>
    %18 = arith.divf %16, %17 : vector<196x1xf32>
    %19 = vector.broadcast %11 : vector<196x1xf32> to vector<196x32xf32>
    %20 = arith.subf %3, %19 : vector<196x32xf32>
    %cst_11 = arith.constant 9.99999997E-7 : f32
    %21 = vector.broadcast %cst_11 : f32 to vector<196x1xf32>
    %22 = arith.addf %18, %21 : vector<196x1xf32>
    %23 = math.rsqrt %22 : vector<196x1xf32>
    %24 = vector.broadcast %23 : vector<196x1xf32> to vector<196x32xf32>
    %25 = arith.mulf %20, %24 : vector<196x32xf32>
    %26 = vector.broadcast %5 : vector<1x32xf32> to vector<196x32xf32>
    %27 = arith.mulf %25, %26 : vector<196x32xf32>
    %28 = vector.broadcast %7 : vector<1x32xf32> to vector<196x32xf32>
    %29 = arith.addf %27, %28 : vector<196x32xf32>
    %30 = arith.truncf %29 : vector<196x32xf32> to vector<196x32xbf16>
    %c0_12 = arith.constant 0 : index
    %c0_13 = arith.constant 0 : index
    %c0_14 = arith.constant 0 : index
    %31 = vector.load %arg7[%c0_12, %c0_13, %c0_14] : memref<1x32x96xbf16, #tpu.memory_space<vmem>>, vector<1x32x96xbf16>
    %32 = vector.shape_cast %31 : vector<1x32x96xbf16> to vector<32x96xbf16>
    %cst_15 = arith.constant dense<0.000000e+00> : vector<196x96xf32>
    %33 = tpu.matmul %30, %32, %cst_15 {dimension_numbers = #tpu.dot_dimension_numbers<[1], [0], [0], [1], [0, 0, 1, 1], [], []>} : vector<196x32xbf16>, vector<32x96xbf16>, vector<196x96xf32> -> vector<196x96xf32>
    %c0_16 = arith.constant 0 : index
    %c0_17 = arith.constant 0 : index
    %c0_18 = arith.constant 0 : index
    %34 = vector.load %arg8[%c0_16, %c0_17, %c0_18] : memref<1x1x96xf32, #tpu.memory_space<vmem>>, vector<1x1x96xf32>
    %35 = vector.shape_cast %34 : vector<1x1x96xf32> to vector<1x96xf32>
    %36 = vector.broadcast %35 : vector<1x96xf32> to vector<196x96xf32>
    %37 = arith.addf %33, %36 : vector<196x96xf32>
    %38 = vector.extract_strided_slice %37 {offsets = [0, 0], sizes = [196, 8], strides = [1, 1]} : vector<196x96xf32> to vector<196x8xf32>
    %39 = vector.extract_strided_slice %37 {offsets = [0, 32], sizes = [196, 8], strides = [1, 1]} : vector<196x96xf32> to vector<196x8xf32>
    %40 = vector.extract_strided_slice %37 {offsets = [0, 64], sizes = [196, 8], strides = [1, 1]} : vector<196x96xf32> to vector<196x8xf32>
    %41 = arith.truncf %38 : vector<196x8xf32> to vector<196x8xbf16>
    %42 = tpu.transpose %39, [1, 0] : vector<196x8xf32> -> vector<8x196xf32>
    %43 = arith.truncf %42 : vector<8x196xf32> to vector<8x196xbf16>
    %cst_19 = arith.constant dense<0.000000e+00> : vector<196x196xf32>
    %44 = tpu.matmul %41, %43, %cst_19 {dimension_numbers = #tpu.dot_dimension_numbers<[1], [0], [0], [1], [0, 0, 1, 1], [], []>} : vector<196x8xbf16>, vector<8x196xbf16>, vector<196x196xf32> -> vector<196x196xf32>
    %cst_20 = arith.constant dense<0xFF800000> : vector<196xf32>
    %45 = vector.multi_reduction <maximumf>, %44, %cst_20 [1] : vector<196x196xf32> to vector<196xf32>
    %46 = vector.shape_cast %45 : vector<196xf32> to vector<196x1xf32>
    %47 = vector.broadcast %46 : vector<196x1xf32> to vector<196x196xf32>
    %48 = arith.subf %44, %47 : vector<196x196xf32>
    %49 = math.exp %48 : vector<196x196xf32>
    %cst_21 = arith.constant dense<0.000000e+00> : vector<196xf32>
    %50 = vector.multi_reduction <add>, %49, %cst_21 [1] : vector<196x196xf32> to vector<196xf32>
    %51 = vector.shape_cast %50 : vector<196xf32> to vector<196x1xf32>
    %52 = arith.truncf %49 : vector<196x196xf32> to vector<196x196xbf16>
    %53 = arith.truncf %40 : vector<196x8xf32> to vector<196x8xbf16>
    %cst_22 = arith.constant dense<0.000000e+00> : vector<196x8xf32>
    %54 = tpu.matmul %52, %53, %cst_22 {dimension_numbers = #tpu.dot_dimension_numbers<[1], [0], [0], [1], [0, 0, 1, 1], [], []>} : vector<196x196xbf16>, vector<196x8xbf16>, vector<196x8xf32> -> vector<196x8xf32>
    %55 = tpu.reciprocal %51 {approx = true} : vector<196x1xf32> -> vector<196x1xf32>
    %56 = vector.broadcast %55 : vector<196x1xf32> to vector<196x8xf32>
    %57 = arith.mulf %54, %56 : vector<196x8xf32>
    %58 = vector.extract_strided_slice %37 {offsets = [0, 8], sizes = [196, 8], strides = [1, 1]} : vector<196x96xf32> to vector<196x8xf32>
    %59 = vector.extract_strided_slice %37 {offsets = [0, 40], sizes = [196, 8], strides = [1, 1]} : vector<196x96xf32> to vector<196x8xf32>
    %60 = vector.extract_strided_slice %37 {offsets = [0, 72], sizes = [196, 8], strides = [1, 1]} : vector<196x96xf32> to vector<196x8xf32>
    %61 = arith.truncf %58 : vector<196x8xf32> to vector<196x8xbf16>
    %62 = tpu.transpose %59, [1, 0] : vector<196x8xf32> -> vector<8x196xf32>
    %63 = arith.truncf %62 : vector<8x196xf32> to vector<8x196xbf16>
    %cst_23 = arith.constant dense<0.000000e+00> : vector<196x196xf32>
    %64 = tpu.matmul %61, %63, %cst_23 {dimension_numbers = #tpu.dot_dimension_numbers<[1], [0], [0], [1], [0, 0, 1, 1], [], []>} : vector<196x8xbf16>, vector<8x196xbf16>, vector<196x196xf32> -> vector<196x196xf32>
    %cst_24 = arith.constant dense<0xFF800000> : vector<196xf32>
    %65 = vector.multi_reduction <maximumf>, %64, %cst_24 [1] : vector<196x196xf32> to vector<196xf32>
    %66 = vector.shape_cast %65 : vector<196xf32> to vector<196x1xf32>
    %67 = vector.broadcast %66 : vector<196x1xf32> to vector<196x196xf32>
    %68 = arith.subf %64, %67 : vector<196x196xf32>
    %69 = math.exp %68 : vector<196x196xf32>
    %cst_25 = arith.constant dense<0.000000e+00> : vector<196xf32>
    %70 = vector.multi_reduction <add>, %69, %cst_25 [1] : vector<196x196xf32> to vector<196xf32>
    %71 = vector.shape_cast %70 : vector<196xf32> to vector<196x1xf32>
    %72 = arith.truncf %69 : vector<196x196xf32> to vector<196x196xbf16>
    %73 = arith.truncf %60 : vector<196x8xf32> to vector<196x8xbf16>
    %cst_26 = arith.constant dense<0.000000e+00> : vector<196x8xf32>
    %74 = tpu.matmul %72, %73, %cst_26 {dimension_numbers = #tpu.dot_dimension_numbers<[1], [0], [0], [1], [0, 0, 1, 1], [], []>} : vector<196x196xbf16>, vector<196x8xbf16>, vector<196x8xf32> -> vector<196x8xf32>
    %75 = tpu.reciprocal %71 {approx = true} : vector<196x1xf32> -> vector<196x1xf32>
    %76 = vector.broadcast %75 : vector<196x1xf32> to vector<196x8xf32>
    %77 = arith.mulf %74, %76 : vector<196x8xf32>
    %78 = vector.extract_strided_slice %37 {offsets = [0, 16], sizes = [196, 8], strides = [1, 1]} : vector<196x96xf32> to vector<196x8xf32>
    %79 = vector.extract_strided_slice %37 {offsets = [0, 48], sizes = [196, 8], strides = [1, 1]} : vector<196x96xf32> to vector<196x8xf32>
    %80 = vector.extract_strided_slice %37 {offsets = [0, 80], sizes = [196, 8], strides = [1, 1]} : vector<196x96xf32> to vector<196x8xf32>
    %81 = arith.truncf %78 : vector<196x8xf32> to vector<196x8xbf16>
    %82 = tpu.transpose %79, [1, 0] : vector<196x8xf32> -> vector<8x196xf32>
    %83 = arith.truncf %82 : vector<8x196xf32> to vector<8x196xbf16>
    %cst_27 = arith.constant dense<0.000000e+00> : vector<196x196xf32>
    %84 = tpu.matmul %81, %83, %cst_27 {dimension_numbers = #tpu.dot_dimension_numbers<[1], [0], [0], [1], [0, 0, 1, 1], [], []>} : vector<196x8xbf16>, vector<8x196xbf16>, vector<196x196xf32> -> vector<196x196xf32>
    %cst_28 = arith.constant dense<0xFF800000> : vector<196xf32>
    %85 = vector.multi_reduction <maximumf>, %84, %cst_28 [1] : vector<196x196xf32> to vector<196xf32>
    %86 = vector.shape_cast %85 : vector<196xf32> to vector<196x1xf32>
    %87 = vector.broadcast %86 : vector<196x1xf32> to vector<196x196xf32>
    %88 = arith.subf %84, %87 : vector<196x196xf32>
    %89 = math.exp %88 : vector<196x196xf32>
    %cst_29 = arith.constant dense<0.000000e+00> : vector<196xf32>
    %90 = vector.multi_reduction <add>, %89, %cst_29 [1] : vector<196x196xf32> to vector<196xf32>
    %91 = vector.shape_cast %90 : vector<196xf32> to vector<196x1xf32>
    %92 = arith.truncf %89 : vector<196x196xf32> to vector<196x196xbf16>
    %93 = arith.truncf %80 : vector<196x8xf32> to vector<196x8xbf16>
    %cst_30 = arith.constant dense<0.000000e+00> : vector<196x8xf32>
    %94 = tpu.matmul %92, %93, %cst_30 {dimension_numbers = #tpu.dot_dimension_numbers<[1], [0], [0], [1], [0, 0, 1, 1], [], []>} : vector<196x196xbf16>, vector<196x8xbf16>, vector<196x8xf32> -> vector<196x8xf32>
    %95 = tpu.reciprocal %91 {approx = true} : vector<196x1xf32> -> vector<196x1xf32>
    %96 = vector.broadcast %95 : vector<196x1xf32> to vector<196x8xf32>
    %97 = arith.mulf %94, %96 : vector<196x8xf32>
    %98 = vector.extract_strided_slice %37 {offsets = [0, 24], sizes = [196, 8], strides = [1, 1]} : vector<196x96xf32> to vector<196x8xf32>
    %99 = vector.extract_strided_slice %37 {offsets = [0, 56], sizes = [196, 8], strides = [1, 1]} : vector<196x96xf32> to vector<196x8xf32>
    %100 = vector.extract_strided_slice %37 {offsets = [0, 88], sizes = [196, 8], strides = [1, 1]} : vector<196x96xf32> to vector<196x8xf32>
    %101 = arith.truncf %98 : vector<196x8xf32> to vector<196x8xbf16>
    %102 = tpu.transpose %99, [1, 0] : vector<196x8xf32> -> vector<8x196xf32>
    %103 = arith.truncf %102 : vector<8x196xf32> to vector<8x196xbf16>
    %cst_31 = arith.constant dense<0.000000e+00> : vector<196x196xf32>
    %104 = tpu.matmul %101, %103, %cst_31 {dimension_numbers = #tpu.dot_dimension_numbers<[1], [0], [0], [1], [0, 0, 1, 1], [], []>} : vector<196x8xbf16>, vector<8x196xbf16>, vector<196x196xf32> -> vector<196x196xf32>
    %cst_32 = arith.constant dense<0xFF800000> : vector<196xf32>
    %105 = vector.multi_reduction <maximumf>, %104, %cst_32 [1] : vector<196x196xf32> to vector<196xf32>
    %106 = vector.shape_cast %105 : vector<196xf32> to vector<196x1xf32>
    %107 = vector.broadcast %106 : vector<196x1xf32> to vector<196x196xf32>
    %108 = arith.subf %104, %107 : vector<196x196xf32>
    %109 = math.exp %108 : vector<196x196xf32>
    %cst_33 = arith.constant dense<0.000000e+00> : vector<196xf32>
    %110 = vector.multi_reduction <add>, %109, %cst_33 [1] : vector<196x196xf32> to vector<196xf32>
    %111 = vector.shape_cast %110 : vector<196xf32> to vector<196x1xf32>
    %112 = arith.truncf %109 : vector<196x196xf32> to vector<196x196xbf16>
    %113 = arith.truncf %100 : vector<196x8xf32> to vector<196x8xbf16>
    %cst_34 = arith.constant dense<0.000000e+00> : vector<196x8xf32>
    %114 = tpu.matmul %112, %113, %cst_34 {dimension_numbers = #tpu.dot_dimension_numbers<[1], [0], [0], [1], [0, 0, 1, 1], [], []>} : vector<196x196xbf16>, vector<196x8xbf16>, vector<196x8xf32> -> vector<196x8xf32>
    %115 = tpu.reciprocal %111 {approx = true} : vector<196x1xf32> -> vector<196x1xf32>
    %116 = vector.broadcast %115 : vector<196x1xf32> to vector<196x8xf32>
    %117 = arith.mulf %114, %116 : vector<196x8xf32>
    %118 = tpu.concatenate %57, %77, %97, %117 in 1 : vector<196x8xf32>, vector<196x8xf32>, vector<196x8xf32>, vector<196x8xf32> -> vector<196x32xf32>
    %119 = arith.truncf %118 : vector<196x32xf32> to vector<196x32xbf16>
    %c0_35 = arith.constant 0 : index
    %c0_36 = arith.constant 0 : index
    %c0_37 = arith.constant 0 : index
    %120 = vector.load %arg9[%c0_35, %c0_36, %c0_37] : memref<1x32x32xbf16, #tpu.memory_space<vmem>>, vector<1x32x32xbf16>
    %121 = vector.shape_cast %120 : vector<1x32x32xbf16> to vector<32x32xbf16>
    %cst_38 = arith.constant dense<0.000000e+00> : vector<196x32xf32>
    %122 = tpu.matmul %119, %121, %cst_38 {dimension_numbers = #tpu.dot_dimension_numbers<[1], [0], [0], [1], [0, 0, 1, 1], [], []>} : vector<196x32xbf16>, vector<32x32xbf16>, vector<196x32xf32> -> vector<196x32xf32>
    %c0_39 = arith.constant 0 : index
    %c0_40 = arith.constant 0 : index
    %c0_41 = arith.constant 0 : index
    %123 = vector.load %arg10[%c0_39, %c0_40, %c0_41] : memref<1x1x32xf32, #tpu.memory_space<vmem>>, vector<1x1x32xf32>
    %124 = vector.shape_cast %123 : vector<1x1x32xf32> to vector<1x32xf32>
    %125 = vector.broadcast %124 : vector<1x32xf32> to vector<196x32xf32>
    %126 = arith.addf %122, %125 : vector<196x32xf32>
    %127 = arith.addf %3, %126 : vector<196x32xf32>
    %c0_42 = arith.constant 0 : index
    %c0_43 = arith.constant 0 : index
    %c0_44 = arith.constant 0 : index
    %128 = vector.load %arg11[%c0_42, %c0_43, %c0_44] : memref<1x1x32xf32, #tpu.memory_space<vmem>>, vector<1x1x32xf32>
    %129 = vector.shape_cast %128 : vector<1x1x32xf32> to vector<1x32xf32>
    %c0_45 = arith.constant 0 : index
    %c0_46 = arith.constant 0 : index
    %c0_47 = arith.constant 0 : index
    %130 = vector.load %arg12[%c0_45, %c0_46, %c0_47] : memref<1x1x32xf32, #tpu.memory_space<vmem>>, vector<1x1x32xf32>
    %131 = vector.shape_cast %130 : vector<1x1x32xf32> to vector<1x32xf32>
    %cst_48 = arith.constant dense<0.000000e+00> : vector<196xf32>
    %132 = vector.multi_reduction <add>, %127, %cst_48 [1] : vector<196x32xf32> to vector<196xf32>
    %133 = vector.shape_cast %132 : vector<196xf32> to vector<196x1xf32>
    %cst_49 = arith.constant 3.200000e+01 : f32
    %134 = vector.broadcast %cst_49 : f32 to vector<196x1xf32>
    %135 = arith.divf %133, %134 : vector<196x1xf32>
    %136 = vector.broadcast %135 : vector<196x1xf32> to vector<196x32xf32>
    %137 = arith.subf %127, %136 : vector<196x32xf32>
    %138 = arith.mulf %137, %137 : vector<196x32xf32>
    %cst_50 = arith.constant dense<0.000000e+00> : vector<196xf32>
    %139 = vector.multi_reduction <add>, %138, %cst_50 [1] : vector<196x32xf32> to vector<196xf32>
    %140 = vector.shape_cast %139 : vector<196xf32> to vector<196x1xf32>
    %cst_51 = arith.constant 3.200000e+01 : f32
    %141 = vector.broadcast %cst_51 : f32 to vector<196x1xf32>
    %142 = arith.divf %140, %141 : vector<196x1xf32>
    %143 = vector.broadcast %135 : vector<196x1xf32> to vector<196x32xf32>
    %144 = arith.subf %127, %143 : vector<196x32xf32>
    %cst_52 = arith.constant 9.99999997E-7 : f32
    %145 = vector.broadcast %cst_52 : f32 to vector<196x1xf32>
    %146 = arith.addf %142, %145 : vector<196x1xf32>
    %147 = math.rsqrt %146 : vector<196x1xf32>
    %148 = vector.broadcast %147 : vector<196x1xf32> to vector<196x32xf32>
    %149 = arith.mulf %144, %148 : vector<196x32xf32>
    %150 = vector.broadcast %129 : vector<1x32xf32> to vector<196x32xf32>
    %151 = arith.mulf %149, %150 : vector<196x32xf32>
    %152 = vector.broadcast %131 : vector<1x32xf32> to vector<196x32xf32>
    %153 = arith.addf %151, %152 : vector<196x32xf32>
    %154 = arith.truncf %153 : vector<196x32xf32> to vector<196x32xbf16>
    %c0_53 = arith.constant 0 : index
    %c0_54 = arith.constant 0 : index
    %c0_55 = arith.constant 0 : index
    %155 = vector.load %arg13[%c0_53, %c0_54, %c0_55] : memref<1x32x128xbf16, #tpu.memory_space<vmem>>, vector<1x32x128xbf16>
    %156 = vector.shape_cast %155 : vector<1x32x128xbf16> to vector<32x128xbf16>
    %cst_56 = arith.constant dense<0.000000e+00> : vector<196x128xf32>
    %157 = tpu.matmul %154, %156, %cst_56 {dimension_numbers = #tpu.dot_dimension_numbers<[1], [0], [0], [1], [0, 0, 1, 1], [], []>} : vector<196x32xbf16>, vector<32x128xbf16>, vector<196x128xf32> -> vector<196x128xf32>
    %c0_57 = arith.constant 0 : index
    %c0_58 = arith.constant 0 : index
    %c0_59 = arith.constant 0 : index
    %158 = vector.load %arg14[%c0_57, %c0_58, %c0_59] : memref<1x1x128xf32, #tpu.memory_space<vmem>>, vector<1x1x128xf32>
    %159 = vector.shape_cast %158 : vector<1x1x128xf32> to vector<1x128xf32>
    %160 = vector.broadcast %159 : vector<1x128xf32> to vector<196x128xf32>
    %161 = arith.addf %157, %160 : vector<196x128xf32>
    %162 = arith.mulf %161, %161 : vector<196x128xf32>
    %163 = arith.mulf %161, %162 : vector<196x128xf32>
    %cst_60 = arith.constant 4.471500e-02 : f32
    %164 = vector.broadcast %cst_60 : f32 to vector<196x128xf32>
    %165 = arith.mulf %164, %163 : vector<196x128xf32>
    %166 = arith.addf %161, %165 : vector<196x128xf32>
    %cst_61 = arith.constant 0.797884583 : f32
    %167 = vector.broadcast %cst_61 : f32 to vector<196x128xf32>
    %168 = arith.mulf %167, %166 : vector<196x128xf32>
    %169 = math.tanh %168 : vector<196x128xf32>
    %cst_62 = arith.constant 1.000000e+00 : f32
    %170 = vector.broadcast %cst_62 : f32 to vector<196x128xf32>
    %171 = arith.addf %170, %169 : vector<196x128xf32>
    %cst_63 = arith.constant 5.000000e-01 : f32
    %172 = vector.broadcast %cst_63 : f32 to vector<196x128xf32>
    %173 = arith.mulf %172, %171 : vector<196x128xf32>
    %174 = arith.mulf %161, %173 : vector<196x128xf32>
    %175 = arith.truncf %174 : vector<196x128xf32> to vector<196x128xbf16>
    %c0_64 = arith.constant 0 : index
    %c0_65 = arith.constant 0 : index
    %c0_66 = arith.constant 0 : index
    %176 = vector.load %arg15[%c0_64, %c0_65, %c0_66] : memref<1x128x32xbf16, #tpu.memory_space<vmem>>, vector<1x128x32xbf16>
    %177 = vector.shape_cast %176 : vector<1x128x32xbf16> to vector<128x32xbf16>
    %cst_67 = arith.constant dense<0.000000e+00> : vector<196x32xf32>
    %178 = tpu.matmul %175, %177, %cst_67 {dimension_numbers = #tpu.dot_dimension_numbers<[1], [0], [0], [1], [0, 0, 1, 1], [], []>} : vector<196x128xbf16>, vector<128x32xbf16>, vector<196x32xf32> -> vector<196x32xf32>
    %179 = arith.addf %127, %178 : vector<196x32xf32>
    %c0_68 = arith.constant 0 : index
    %c0_69 = arith.constant 0 : index
    %c0_70 = arith.constant 0 : index
    %180 = vector.load %arg16[%c0_68, %c0_69, %c0_70] : memref<1x1x32xf32, #tpu.memory_space<vmem>>, vector<1x1x32xf32>
    %181 = vector.shape_cast %180 : vector<1x1x32xf32> to vector<1x32xf32>
    %182 = vector.broadcast %181 : vector<1x32xf32> to vector<196x32xf32>
    %183 = arith.addf %179, %182 : vector<196x32xf32>
    %c0_71 = arith.constant 0 : index
    %c0_72 = arith.constant 0 : index
    %184 = vector.load %arg19[%c0_71, %c0_72] : memref<196x32xf32, #tpu.memory_space<vmem>>, vector<196x32xf32>
    tpu.vector_store %arg19[%c0_71, %c0_72], %183 {strides = array<i32>} : memref<196x32xf32, #tpu.memory_space<vmem>>, vector<196x32xf32>,
    %c9_i32 = arith.constant 9 : i32
    %185 = arith.cmpi eq, %arg1, %c9_i32 : i32
    %186 = arith.extui %185 : i1 to i32
    %c0_i32_73 = arith.constant 0 : i32
    %187 = arith.cmpi ne, %186, %c0_i32_73 : i32
    scf.if %187 {
      %191 = tpu.transpose %183, [1, 0] : vector<196x32xf32> -> vector<32x196xf32>
      %c0_75 = arith.constant 0 : index
      %c0_76 = arith.constant 0 : index
      %c0_77 = arith.constant 0 : index
      %192 = vector.load %arg17[%c0_75, %c0_76, %c0_77] : memref<1x32x196xf32, #tpu.memory_space<vmem>>, vector<1x32x196xf32>
      %193 = vector.shape_cast %192 : vector<1x32x196xf32> to vector<32x196xf32>
      %194 = vector.shape_cast %191 : vector<32x196xf32> to vector<1x32x196xf32>
      tpu.vector_store %arg17[%c0_75, %c0_76, %c0_77], %194 {strides = array<i32>} : memref<1x32x196xf32, #tpu.memory_space<vmem>>, vector<1x32x196xf32>,
    } else {
    }
    %c11_i32 = arith.constant 11 : i32
    %188 = arith.cmpi eq, %arg1, %c11_i32 : i32
    %189 = arith.extui %188 : i1 to i32
    %c0_i32_74 = arith.constant 0 : i32
    %190 = arith.cmpi ne, %189, %c0_i32_74 : i32
    scf.if %190 {
      %191 = tpu.transpose %183, [1, 0] : vector<196x32xf32> -> vector<32x196xf32>
      %c0_75 = arith.constant 0 : index
      %c0_76 = arith.constant 0 : index
      %c0_77 = arith.constant 0 : index
      %192 = vector.load %arg18[%c0_75, %c0_76, %c0_77] : memref<1x32x196xf32, #tpu.memory_space<vmem>>, vector<1x32x196xf32>
      %193 = vector.shape_cast %192 : vector<1x32x196xf32> to vector<32x196xf32>
      %194 = vector.shape_cast %191 : vector<32x196xf32> to vector<1x32x196xf32>
      tpu.vector_store %arg18[%c0_75, %c0_76, %c0_77], %194 {strides = array<i32>} : memref<1x32x196xf32, #tpu.memory_space<vmem>>, vector<1x32x196xf32>,
    } else {
    }
    return
  }
  func.func @transform_0(%arg0: i32, %arg1: i32) -> (i32, i32, i32) {
    %c0_i32 = arith.constant 0 : i32
    %c0_i32_0 = arith.constant 0 : i32
    %c0_i32_1 = arith.constant 0 : i32
    return %arg0, %c0_i32, %c0_i32_0 : i32, i32, i32
  }
  func.func @transform_1(%arg0: i32, %arg1: i32) -> (i32, i32) {
    %c0_i32 = arith.constant 0 : i32
    %c0_i32_0 = arith.constant 0 : i32
    %c0_i32_1 = arith.constant 0 : i32
    return %c0_i32, %c0_i32_0 : i32, i32
  }
  func.func @transform_2(%arg0: i32, %arg1: i32) -> (i32, i32) {
    %c0_i32 = arith.constant 0 : i32
    %c0_i32_0 = arith.constant 0 : i32
    %c0_i32_1 = arith.constant 0 : i32
    return %c0_i32, %c0_i32_0 : i32, i32
  }
  func.func @transform_3(%arg0: i32, %arg1: i32) -> (i32, i32, i32) {
    %c0_i32 = arith.constant 0 : i32
    %c0_i32_0 = arith.constant 0 : i32
    %c0_i32_1 = arith.constant 0 : i32
    return %arg1, %c0_i32, %c0_i32_0 : i32, i32, i32
  }
  func.func @transform_4(%arg0: i32, %arg1: i32) -> (i32, i32, i32) {
    %c0_i32 = arith.constant 0 : i32
    %c0_i32_0 = arith.constant 0 : i32
    %c0_i32_1 = arith.constant 0 : i32
    return %arg1, %c0_i32, %c0_i32_0 : i32, i32, i32
  }
  func.func @transform_5(%arg0: i32, %arg1: i32) -> (i32, i32, i32) {
    %c0_i32 = arith.constant 0 : i32
    %c0_i32_0 = arith.constant 0 : i32
    %c0_i32_1 = arith.constant 0 : i32
    return %arg1, %c0_i32, %c0_i32_0 : i32, i32, i32
  }
  func.func @transform_6(%arg0: i32, %arg1: i32) -> (i32, i32, i32) {
    %c0_i32 = arith.constant 0 : i32
    %c0_i32_0 = arith.constant 0 : i32
    %c0_i32_1 = arith.constant 0 : i32
    return %arg1, %c0_i32, %c0_i32_0 : i32, i32, i32
  }
  func.func @transform_7(%arg0: i32, %arg1: i32) -> (i32, i32, i32) {
    %c0_i32 = arith.constant 0 : i32
    %c0_i32_0 = arith.constant 0 : i32
    %c0_i32_1 = arith.constant 0 : i32
    return %arg1, %c0_i32, %c0_i32_0 : i32, i32, i32
  }
  func.func @transform_8(%arg0: i32, %arg1: i32) -> (i32, i32, i32) {
    %c0_i32 = arith.constant 0 : i32
    %c0_i32_0 = arith.constant 0 : i32
    %c0_i32_1 = arith.constant 0 : i32
    return %arg1, %c0_i32, %c0_i32_0 : i32, i32, i32
  }
  func.func @transform_9(%arg0: i32, %arg1: i32) -> (i32, i32, i32) {
    %c0_i32 = arith.constant 0 : i32
    %c0_i32_0 = arith.constant 0 : i32
    %c0_i32_1 = arith.constant 0 : i32
    return %arg1, %c0_i32, %c0_i32_0 : i32, i32, i32
  }
  func.func @transform_10(%arg0: i32, %arg1: i32) -> (i32, i32, i32) {
    %c0_i32 = arith.constant 0 : i32
    %c0_i32_0 = arith.constant 0 : i32
    %c0_i32_1 = arith.constant 0 : i32
    return %arg1, %c0_i32, %c0_i32_0 : i32, i32, i32
  }
  func.func @transform_11(%arg0: i32, %arg1: i32) -> (i32, i32, i32) {
    %c0_i32 = arith.constant 0 : i32
    %c0_i32_0 = arith.constant 0 : i32
    %c0_i32_1 = arith.constant 0 : i32
    return %arg1, %c0_i32, %c0_i32_0 : i32, i32, i32
  }
  func.func @transform_12(%arg0: i32, %arg1: i32) -> (i32, i32, i32) {
    %c0_i32 = arith.constant 0 : i32
    %c0_i32_0 = arith.constant 0 : i32
    %c0_i32_1 = arith.constant 0 : i32
    return %arg1, %c0_i32, %c0_i32_0 : i32, i32, i32
  }
  func.func @transform_13(%arg0: i32, %arg1: i32) -> (i32, i32, i32) {
    %c0_i32 = arith.constant 0 : i32
    %c0_i32_0 = arith.constant 0 : i32
    %c0_i32_1 = arith.constant 0 : i32
    return %arg1, %c0_i32, %c0_i32_0 : i32, i32, i32
  }
  func.func @transform_14(%arg0: i32, %arg1: i32) -> (i32, i32, i32) {
    %c0_i32 = arith.constant 0 : i32
    %c0_i32_0 = arith.constant 0 : i32
    %c0_i32_1 = arith.constant 0 : i32
    return %arg1, %c0_i32, %c0_i32_0 : i32, i32, i32
  }
  func.func @transform_15(%arg0: i32, %arg1: i32) -> (i32, i32, i32) {
    %c0_i32 = arith.constant 0 : i32
    %c0_i32_0 = arith.constant 0 : i32
    %c0_i32_1 = arith.constant 0 : i32
    return %arg0, %c0_i32, %c0_i32_0 : i32, i32, i32
  }
  func.func @transform_16(%arg0: i32, %arg1: i32) -> (i32, i32, i32) {
    %c0_i32 = arith.constant 0 : i32
    %c0_i32_0 = arith.constant 0 : i32
    %c0_i32_1 = arith.constant 0 : i32
    return %arg0, %c0_i32, %c0_i32_0 : i32, i32, i32
  }
}

</mosaic_0001>

<bundles_post_ra>
// kernel: _backbone_forward.1
= control target key start
LH: loop header
LB: loop body
LE: loop exit
PB: predicated region body
PF: predicated region fallthrough
CT: control target
= control target key end

     0   :  { %s9834_s21 = smov 0   ;;  %s9836_s22 = smov 0   ;;  %s15253_s0 = inlined_call_operand.vmem [shape: f32[2,196,12], index: 0, kind: input, shape index: {}]   ;;  %s15254_s1 = inlined_call_operand.vmem [shape: bf16[12,32], index: 1, kind: input, shape index: {}]   ;;  %s15255_s2 = inlined_call_operand.vmem [shape: f32[1,32], index: 2, kind: input, shape index: {}]   ;;  %s15256_s3 = inlined_call_operand.vmem [shape: f32[12,1,32], index: 3, kind: input, shape index: {}]   ;;  %s15257_s4 = inlined_call_operand.vmem [shape: f32[12,1,32], index: 4, kind: input, shape index: {}]   ;;  %s15258_s5 = inlined_call_operand.vmem [shape: bf16[12,32,96], index: 5, kind: input, shape index: {}]   ;;  %s15259_s6 = inlined_call_operand.vmem [shape: f32[12,1,96], index: 6, kind: input, shape index: {}]   ;;  %s15260_s7 = inlined_call_operand.vmem [shape: bf16[12,32,32], index: 7, kind: input, shape index: {}]   ;;  %s15261_s8 = inlined_call_operand.vmem [shape: f32[12,1,32], index: 8, kind: input, shape index: {}]   ;;  %s15262_s9 = inlined_call_operand.vmem [shape: f32[12,1,32], index: 9, kind: input, shape index: {}]   ;;  %s15263_s10 = inlined_call_operand.vmem [shape: f32[12,1,32], index: 10, kind: input, shape index: {}]   ;;  %s15264_s11 = inlined_call_operand.vmem [shape: bf16[12,32,128], index: 11, kind: input, shape index: {}]   ;;  %s15265_s12 = inlined_call_operand.vmem [shape: f32[12,1,128], index: 12, kind: input, shape index: {}]   ;;  %s15266_s13 = inlined_call_operand.vmem [shape: bf16[12,128,32], index: 13, kind: input, shape index: {}]   ;;  %s15267_s14 = inlined_call_operand.vmem [shape: f32[12,1,32], index: 14, kind: input, shape index: {}]   ;;  %s15268_s15 = inlined_call_operand.vmem [shape: f32[2,32,196], index: 15, kind: output, shape index: {0}]   ;;  %s15269_s16 = inlined_call_operand.vmem [shape: f32[2,32,196], index: 16, kind: output, shape index: {1}]  }
   0x1   :  { %15564 = sst [smem:[#allocation208_spill]] %s15253_s0  ;;  %s9838_s23 = smov 0  }
   0x2   :  { %15565 = sst [smem:[#allocation209_spill]] %s15254_s1  ;;  %s9840_s24 = smov 0  }
   0x3   :  { %15566 = sst [smem:[#allocation210_spill]] %s15255_s2  ;;  %s9842_s25 = smov 0  }
   0x4   :  { %15567 = sst [smem:[#allocation211_spill]] %s15257_s4 }
   0x5   :  { %15568 = sst [smem:[#allocation212_spill]] %s15258_s5 }
   0x6   :  { %15569 = sst [smem:[#allocation213_spill]] %s15260_s7 }
   0x7   :  { %15570 = sst [smem:[#allocation214_spill]] %s15264_s11 }
   0x8   :  { %15571 = sst [smem:[#allocation215_spill]] %s15268_s15 }
   0x9   :  { %15572 = sst [smem:[#allocation216_spill]] %s15269_s16 }
   0xa LB: > { %15573 = sst [smem:[#allocation3_spill]] %s9712_s21  ;;  %s36_s26 = sadd.s32 1, %s9720_s23  ;;  %s9728_s25 = sphi %s9842_s25, %s27_s25   ;;  %s9724_s24 = sphi %s9840_s24, %s16484_s24   ;;  %s9720_s23 = sphi %s9838_s23, %s16483_s23   ;;  %s9716_s22 = sphi %s9836_s22, %s16482_s22   ;;  %s9712_s21 = sphi %s9834_s21, %s16481_s21  }
   0xb   : > { %15574 = sst [smem:[#allocation4_spill]] %s9720_s23  ;;  %s39_s27 = sadd.s32 1, %s9724_s24 }
   0xc   : > { %15575 = sst [smem:[#allocation5_spill]] %s9724_s24  ;;  %p37_p0 = scmp.ge.s32.totalorder %s36_s26, 12 }
   0xd   : > { %15576 = sst [smem:[#allocation6_spill]] %s9728_s25  ;;  %p7837_p1 = scmp.ge.s32.totalorder %s9728_s25, 1 }
   0xe   : > { %p581_p2 = scmp.lt.s32.totalorder %s9728_s25, 25  ;;  %s16486_s26 = smov (%p37_p0, %s36_s26), 0 }
   0xf   : > { %15577 = sst [smem:[#allocation7_spill]] %s16486_s26  ;;  %s16488_s27 = smov (!%p37_p0, %s39_s27), %s9724_s24 }
  0x10   : > { %p582_p3 = pnand %p7837_p1, %p581_p2  ;;  %p41_p4 = scmp.ge.s32.totalorder %s16488_s27, 2 }
  0x12   : > { %s16490_s27 = smov (%p41_p4, %s16488_s27), 0  ;;  %585 = sbr.rel (%p582_p3) target bundleno = 4679 (0x1247), region = 80 }
  0x13   : > { %15578 = sst [smem:[#allocation8_spill]] %s16490_s27 }
  0x19   : > { %p680_p5 = scmp.lt.s32.totalorder %s9716_s22, 1  ;;  %p685_p6 = scmp.lt.s32.totalorder %s9712_s21, 11 }
  0x1a   : > { %s15580_s23 = sld [smem:[#allocation208_spill]]  ;;  %s15581_s5 = sld [smem:[#allocation212_spill]] }
  0x1b   : > { %s16492_s22 = smov (!%p680_p5, %s9716_s22), 1  ;;  %s15582_s7 = sld [smem:[#allocation213_spill]] }
  0x1c   : > { %s9868_s28 = scalar_select %p685_p6, %s9712_s21, 11 }
  0x1d   : > { %s8418_s29 = smul.u32 200, %s16492_s22  ;;  %s8044_s30 = sshll.u32 %s16492_s22, 6 }
  0x1e   : > { %s8040_s2 = sshll.u32 %s9868_s28, 4  ;;  %s15583_s11 = sld [smem:[#allocation214_spill]] }
  0x1f   : > { %s720_s0 = scalar_lea.vmem %s15265_s12, %s9868_s28  ;;  %s15586_s17 = sld [smem:[#allocation3_spill]] }
  0x20   : > { %s9881_s25 = scalar_lea.vmem %s15580_s23, %s8418_s29  ;;  %s9887_s16 = scalar_lea.vmem %s15581_s5, %s8040_s2 }
  0x21   : > { %s9896_s19 = scalar_lea.vmem %s15582_s7, %s8040_s2  ;;  %s8043_s7 = sshll.u32 %s9868_s28, 6 }
  0x22   : > { %s728_s23 = scalar_lea.vmem %s15267_s14, %s9868_s28  ;;  %s9927_s29 = scalar_lea.vmem %s15266_s13, %s8043_s7 }
  0x23   : > { %s15584_s5 = sld [smem:[#allocation215_spill]] }
  0x24   : > { %s9913_s22 = scalar_lea.vmem %s15583_s11, %s8040_s2  ;;  %s15585_s11 = sld [smem:[#allocation216_spill]] }
  0x25   : > { %p7851_p7 = scmp.ne.s32.totalorder %s15586_s17, 0 }
  0x26   : > { %vm836_vm0 = vcmask (!%p7851_p7), 1045504   ;;  %v9730_v0 = vmov (!%p7851_p7), 0.0   ;;  %v744_v2 = vld [vmem:[%s9881_s25] sm:$0xff] (!%p7851_p7)  ;;  %v745_v3 = vld [vmem:[%s9881_s25 + $0x8] sm:$0xff] (!%p7851_p7)  ;;  %vm9731_vm1 = vmmov (!%p7851_p7), 0   ;;  %v758_v4 = vld [vmem:[%s9881_s25 + $0x70] sm:$0xff] (!%p7851_p7) }
  0x27   : > { %743 = sbr.rel (%p7851_p7) target bundleno = 317 (0x13d), region = 84  ;;  %8126 = vmatprep.subr.bf16.mxu0 (!%p7851_p7), %v9730_v0  ;;  %8416 = vmatprep.subr.bf16.mxu1 (!%p7851_p7), %v9730_v0  ;;  %v759_v5 = vld [vmem:[%s9881_s25 + $0x78] sm:$0xff] (!%p7851_p7)  ;;  %v769_v7 = vpack.c.bf16 (!%p7851_p7), %v745_v3, %v744_v2  ;;  %vm796_vm2 = vcmask (!%p7851_p7), 97280   ;;  %v746_v9 = vld [vmem:[%s9881_s25 + $0x10] sm:$0xff] (!%p7851_p7)  ;;  %v760_v11 = vld [vmem:[%s9881_s25 + $0x80] sm:$0xff] (!%p7851_p7)  ;;  %s15588_s20 = sld [smem:[#allocation210_spill]] (!%p7851_p7) }
  0x28   : > { %8128 = vmatprep.mubr.msk.bf16.mxu0 (!%p7851_p7), %vm9731_vm1, %v9730_v0  ;;  %8156 = vmatprep.mubr.msk.bf16.mxu1 (!%p7851_p7), %vm9731_vm1, %v9730_v0  ;;  %v776_v8 = vpack.c.bf16 (!%p7851_p7), %v759_v5, %v758_v4  ;;  %v747_v10 = vld [vmem:[%s9881_s25 + $0x18] sm:$0xff] (!%p7851_p7)  ;;  %v761_v12 = vld [vmem:[%s9881_s25 + $0x88] sm:$0xff] (!%p7851_p7)  ;;  %v748_v15 = vld [vmem:[%s9881_s25 + $0x20] sm:$0xff] (!%p7851_p7)  ;;  %vm976_vm3 = vcmask (!%p7851_p7), 261120   ;;  %vm1001_vm4 = vcmask (!%p7851_p7), 257024  }
  0x29   : > { %s9932_s4 = scalar_lea.vmem %s15584_s5, %s8044_s30  ;;  %s15587_s5 = sld [smem:[#allocation209_spill]] (!%p7851_p7)  ;;  %v770_v13 = vpack.c.bf16 (!%p7851_p7), %v747_v10, %v746_v9  ;;  %v777_v14 = vpack.c.bf16 (!%p7851_p7), %v761_v12, %v760_v11  ;;  %v749_v16 = vld [vmem:[%s9881_s25 + $0x28] sm:$0xff] (!%p7851_p7)  ;;  %v762_v17 = vld [vmem:[%s9881_s25 + $0x90] sm:$0xff] (!%p7851_p7)  ;;  %v763_v18 = vld [vmem:[%s9881_s25 + $0x98] sm:$0xff] (!%p7851_p7) }
  0x2a   : > { %s9937_s18 = scalar_lea.vmem %s15585_s11, %s8044_s30  ;;  %v771_v19 = vpack.c.bf16 (!%p7851_p7), %v749_v16, %v748_v15  ;;  %v778_v20 = vpack.c.bf16 (!%p7851_p7), %v763_v18, %v762_v17  ;;  %v750_v21 = vld [vmem:[%s9881_s25 + $0x30] sm:$0xff] (!%p7851_p7)  ;;  %v751_v22 = vld [vmem:[%s9881_s25 + $0x38] sm:$0xff] (!%p7851_p7)  ;;  %v764_v23 = vld [vmem:[%s9881_s25 + $0xa0] sm:$0xff] (!%p7851_p7) }
  0x2b   : > { %v765_v24 = vld [vmem:[%s9881_s25 + $0xa8] sm:$0xff] (!%p7851_p7)  ;;  %v772_v25 = vpack.c.bf16 (!%p7851_p7), %v751_v22, %v750_v21  ;;  %v752_v27 = vld [vmem:[%s9881_s25 + $0x40] sm:$0xff] (!%p7851_p7)  ;;  %v766_v29 = vld [vmem:[%s9881_s25 + $0xb0] sm:$0xff] (!%p7851_p7) }
  0x2c   : > { %v779_v26 = vpack.c.bf16 (!%p7851_p7), %v765_v24, %v764_v23  ;;  %v753_v28 = vld [vmem:[%s9881_s25 + $0x48] sm:$0xff] (!%p7851_p7)  ;;  %v767_v30 = vld [vmem:[%s9881_s25 + $0xb8] sm:$0xff] (!%p7851_p7)  ;;  %v754_v33 = vld [vmem:[%s9881_s25 + $0x50] sm:$0xff] (!%p7851_p7) }
  0x2d   : > { %v773_v31 = vpack.c.bf16 (!%p7851_p7), %v753_v28, %v752_v27  ;;  %v780_v32 = vpack.c.bf16 (!%p7851_p7), %v767_v30, %v766_v29  ;;  %v755_v34 = vld [vmem:[%s9881_s25 + $0x58] sm:$0xff] (!%p7851_p7)  ;;  %v768_v35 = vld [vmem:[%s9881_s25 + $0xc0] sm:$0xf] (!%p7851_p7)  ;;  %v757_v39 = vld [vmem:[%s9881_s25 + $0x68] sm:$0xff] (!%p7851_p7) }
  0x2e   : > { %v774_v36 = vpack.c.bf16 %v755_v34, %v754_v33  ;;  %v781_v37 = vpack.c.bf16 %v768_v35, %v768_v35  ;;  %v756_v38 = vld [vmem:[%s9881_s25 + $0x60] sm:$0xff] }
  0x2f   : > { %v8480_v1 = vld [vmem:[%s15587_s5] sm:$0x3f]   ;;  %v775_v40 = vpack.c.bf16 %v757_v39, %v756_v38 }
  0x30   : > { %v838_v6 = vsel %vm836_vm0, %v8480_v1, 0  ;;  %v10012_v41 = vld [vmem:[%s15588_s20] ss:$0 sm:$0xff] }
  0x31   : > { %8127 = vmatpush3.bf16.msra.mxu0 %v838_v6  ;;  %8417 = vmatpush3.bf16.msra.mxu1 %v838_v6 }
  0x34   : > { %8129 = vmatmul.mubr.msk.bf16.vlgmr.msra.gmra.mrb[0].mxu0 %vm796_vm2, %v769_v7  ;;  %8157 = vmatmul.mubr.msk.bf16.vlgmr.msra.gmra.mrb[0].mxu1 %vm796_vm2, %v776_v8 }
  0x35   : > { %8132 = vmatprep.mubr.msk.bf16.mxu0 %vm9731_vm1, %v9730_v0  ;;  %8160 = vmatprep.mubr.msk.bf16.mxu1 %vm9731_vm1, %v9730_v0 }
  0x3c   : > { %8133 = vmatmul.mubr.msk.bf16.gmra.mrb[4].mxu0 %vm796_vm2, %v770_v13  ;;  %8161 = vmatmul.mubr.msk.bf16.gmra.mrb[4].mxu1 %vm796_vm2, %v777_v14 }
  0x3d   : > { %8136 = vmatprep.mubr.msk.bf16.mxu0 %vm9731_vm1, %v9730_v0  ;;  %8164 = vmatprep.mubr.msk.bf16.mxu1 %vm9731_vm1, %v9730_v0 }
  0x44   : > { %8137 = vmatmul.mubr.msk.bf16.gmra.mrb[8].mxu0 %vm796_vm2, %v771_v19  ;;  %8165 = vmatmul.mubr.msk.bf16.gmra.mrb[8].mxu1 %vm796_vm2, %v778_v20 }
  0x45   : > { %8140 = vmatprep.mubr.msk.bf16.mxu0 %vm9731_vm1, %v9730_v0  ;;  %8168 = vmatprep.mubr.msk.bf16.mxu1 %vm9731_vm1, %v9730_v0 }
  0x4c   : > { %8141 = vmatmul.mubr.msk.bf16.gmra.mrb[12].mxu0 %vm796_vm2, %v772_v25  ;;  %8169 = vmatmul.mubr.msk.bf16.gmra.mrb[12].mxu1 %vm796_vm2, %v779_v26 }
  0x4d   : > { %8144 = vmatprep.mubr.msk.bf16.mxu0 %vm9731_vm1, %v9730_v0  ;;  %8172 = vmatprep.mubr.msk.bf16.mxu1 %vm9731_vm1, %v9730_v0 }
  0x54   : > { %8145 = vmatmul.mubr.msk.bf16.gmra.mrb[16].mxu0 %vm796_vm2, %v773_v31  ;;  %8173 = vmatmul.mubr.msk.bf16.gmra.mrb[16].mxu1 %vm796_vm2, %v780_v32 }
  0x55   : > { %8148 = vmatprep.mubr.msk.bf16.mxu0 %vm9731_vm1, %v9730_v0  ;;  %8176 = vmatprep.mubr.msk.bf16.mxu1 %vm9731_vm1, %v9730_v0 }
  0x5c   : > { %8149 = vmatmul.mubr.msk.bf16.gmra.mrb[20].mxu0 %vm796_vm2, %v774_v36  ;;  %8177 = vmatmul.mubr.msk.bf16.gmra.mrb[20].mxu1 %vm796_vm2, %v781_v37 }
  0x5d   : > { %8152 = vmatprep.mubr.msk.bf16.mxu0 %vm9731_vm1, %v9730_v0 }
  0x64   : > { %8153 = vmatmul.mubr.msk.bf16.gmra.mrb[24].mxu0 %vm796_vm2, %v775_v40 }
 0x107   : > { %v874_v42 = vpop.f32.mrb[0].mxu0  ;;  %v930_v43 = vpop.f32.mrb[0].mxu1 }
 0x108   : > { %v875_v44 = vadd.f32 %v10012_v41, %v874_v42  ;;  %v8130_v45 = vpop.f32.mrb[1].mxu0  ;;  %v931_v46 = vadd.f32 %v10012_v41, %v930_v43  ;;  %v8158_v47 = vpop.f32.mrb[1].mxu1 }
 0x109   : > { %v877_v48 = vpop.f32.mrb[2].mxu0  ;;  %v933_v49 = vpop.f32.mrb[2].mxu1 }
 0x10a   : > { %977 = vst.msk [vmem:[#allocation2] sm:$0xff] %vm976_vm3, %v875_v44  ;;  %v878_v50 = vadd.f32 %v10012_v41, %v877_v48  ;;  %v8131_v51 = vpop.f32.mrb[3].mxu0  ;;  %991 = vst.msk [vmem:[#allocation2 + $0x70] sm:$0xff] %vm976_vm3, %v931_v46  ;;  %v934_v52 = vadd.f32 %v10012_v41, %v933_v49  ;;  %v8159_v53 = vpop.f32.mrb[3].mxu1 }
 0x10c   : > { %978 = vst.msk [vmem:[#allocation2 + $0x8] sm:$0xff] %vm976_vm3, %v878_v50  ;;  %992 = vst.msk [vmem:[#allocation2 + $0x78] sm:$0xff] %vm976_vm3, %v934_v52 }
 0x10f   : > { %v882_v54 = vpop.f32.mrb[4].mxu0  ;;  %v938_v55 = vpop.f32.mrb[4].mxu1 }
 0x110   : > { %v883_v56 = vadd.f32 %v10012_v41, %v882_v54  ;;  %v8134_v57 = vpop.f32.mrb[5].mxu0  ;;  %v939_v58 = vadd.f32 %v10012_v41, %v938_v55  ;;  %v8162_v59 = vpop.f32.mrb[5].mxu1 }
 0x111   : > { %v885_v60 = vpop.f32.mrb[6].mxu0  ;;  %v941_v61 = vpop.f32.mrb[6].mxu1 }
 0x112   : > { %979 = vst.msk [vmem:[#allocation2 + $0x10] sm:$0xff] %vm976_vm3, %v883_v56  ;;  %v886_v62 = vadd.f32 %v10012_v41, %v885_v60  ;;  %v8135_v63 = vpop.f32.mrb[7].mxu0  ;;  %993 = vst.msk [vmem:[#allocation2 + $0x80] sm:$0xff] %vm976_vm3, %v939_v58  ;;  %v942_v0 = vadd.f32 %v10012_v41, %v941_v61  ;;  %v8163_v1 = vpop.f32.mrb[7].mxu1 }
 0x114   : > { %980 = vst.msk [vmem:[#allocation2 + $0x18] sm:$0xff] %vm976_vm3, %v886_v62  ;;  %994 = vst.msk [vmem:[#allocation2 + $0x88] sm:$0xff] %vm976_vm3, %v942_v0 }
 0x117   : > { %v890_v2 = vpop.f32.mrb[8].mxu0  ;;  %v946_v3 = vpop.f32.mrb[8].mxu1 }
 0x118   : > { %v891_v4 = vadd.f32 %v10012_v41, %v890_v2  ;;  %v8138_v5 = vpop.f32.mrb[9].mxu0  ;;  %v947_v6 = vadd.f32 %v10012_v41, %v946_v3  ;;  %v8166_v7 = vpop.f32.mrb[9].mxu1 }
 0x119   : > { %v893_v8 = vpop.f32.mrb[10].mxu0  ;;  %v949_v9 = vpop.f32.mrb[10].mxu1 }
 0x11a   : > { %981 = vst.msk [vmem:[#allocation2 + $0x20] sm:$0xff] %vm976_vm3, %v891_v4  ;;  %v894_v10 = vadd.f32 %v10012_v41, %v893_v8  ;;  %v8139_v11 = vpop.f32.mrb[11].mxu0  ;;  %995 = vst.msk [vmem:[#allocation2 + $0x90] sm:$0xff] %vm976_vm3, %v947_v6  ;;  %v950_v12 = vadd.f32 %v10012_v41, %v949_v9  ;;  %v8167_v13 = vpop.f32.mrb[11].mxu1 }
 0x11c   : > { %982 = vst.msk [vmem:[#allocation2 + $0x28] sm:$0xff] %vm976_vm3, %v894_v10  ;;  %996 = vst.msk [vmem:[#allocation2 + $0x98] sm:$0xff] %vm976_vm3, %v950_v12 }
 0x11f   : > { %v898_v14 = vpop.f32.mrb[12].mxu0  ;;  %v954_v15 = vpop.f32.mrb[12].mxu1 }
 0x120   : > { %v899_v16 = vadd.f32 %v10012_v41, %v898_v14  ;;  %v8142_v17 = vpop.f32.mrb[13].mxu0  ;;  %v955_v18 = vadd.f32 %v10012_v41, %v954_v15  ;;  %v8170_v19 = vpop.f32.mrb[13].mxu1 }
 0x121   : > { %v901_v20 = vpop.f32.mrb[14].mxu0  ;;  %v957_v21 = vpop.f32.mrb[14].mxu1 }
 0x122   : > { %983 = vst.msk [vmem:[#allocation2 + $0x30] sm:$0xff] %vm976_vm3, %v899_v16  ;;  %v902_v22 = vadd.f32 %v10012_v41, %v901_v20  ;;  %v8143_v23 = vpop.f32.mrb[15].mxu0  ;;  %997 = vst.msk [vmem:[#allocation2 + $0xa0] sm:$0xff] %vm976_vm3, %v955_v18  ;;  %v958_v24 = vadd.f32 %v10012_v41, %v957_v21  ;;  %v8171_v25 = vpop.f32.mrb[15].mxu1 }
 0x124   : > { %984 = vst.msk [vmem:[#allocation2 + $0x38] sm:$0xff] %vm976_vm3, %v902_v22  ;;  %998 = vst.msk [vmem:[#allocation2 + $0xa8] sm:$0xff] %vm976_vm3, %v958_v24 }
 0x127   : > { %v906_v26 = vpop.f32.mrb[16].mxu0  ;;  %v962_v27 = vpop.f32.mrb[16].mxu1 }
 0x128   : > { %v907_v28 = vadd.f32 %v10012_v41, %v906_v26  ;;  %v8146_v29 = vpop.f32.mrb[17].mxu0  ;;  %v963_v30 = vadd.f32 %v10012_v41, %v962_v27  ;;  %v8174_v31 = vpop.f32.mrb[17].mxu1 }
 0x129   : > { %v909_v32 = vpop.f32.mrb[18].mxu0  ;;  %v965_v33 = vpop.f32.mrb[18].mxu1 }
 0x12a   : > { %985 = vst.msk [vmem:[#allocation2 + $0x40] sm:$0xff] %vm976_vm3, %v907_v28  ;;  %v910_v34 = vadd.f32 %v10012_v41, %v909_v32  ;;  %v8147_v35 = vpop.f32.mrb[19].mxu0  ;;  %999 = vst.msk [vmem:[#allocation2 + $0xb0] sm:$0xff] %vm976_vm3, %v963_v30  ;;  %v966_v36 = vadd.f32 %v10012_v41, %v965_v33  ;;  %v8175_v37 = vpop.f32.mrb[19].mxu1 }
 0x12c   : > { %986 = vst.msk [vmem:[#allocation2 + $0x48] sm:$0xff] %vm976_vm3, %v910_v34  ;;  %1000 = vst.msk [vmem:[#allocation2 + $0xb8] sm:$0xff] %vm976_vm3, %v966_v36 }
 0x12f   : > { %v914_v38 = vpop.f32.mrb[20].mxu0  ;;  %v970_v39 = vpop.f32.mrb[20].mxu1 }
 0x130   : > { %v915_v40 = vadd.f32 %v10012_v41, %v914_v38  ;;  %v8150_v42 = vpop.f32.mrb[21].mxu0  ;;  %v971_v43 = vadd.f32 %v10012_v41, %v970_v39  ;;  %v8178_v44 = vpop.f32.mrb[21].mxu1 }
 0x131   : > { %v917_v45 = vpop.f32.mrb[22].mxu0  ;;  %v973_v46 = vpop.f32.mrb[22].mxu1 }
 0x132   : > { %987 = vst.msk [vmem:[#allocation2 + $0x50] sm:$0xff] %vm976_vm3, %v915_v40  ;;  %v918_v47 = vadd.f32 %v10012_v41, %v917_v45  ;;  %v8151_v48 = vpop.f32.mrb[23].mxu0  ;;  %v8179_v49 = vpop.f32.mrb[23].mxu1 }
 0x133   : > { %1002 = vst.msk [vmem:[#allocation2 + $0xc0] sm:$0xf] %vm1001_vm4, %v971_v43 }
 0x134   : > { %988 = vst.msk [vmem:[#allocation2 + $0x58] sm:$0xff] %vm976_vm3, %v918_v47 }
 0x137   : > { %v922_v50 = vpop.f32.mrb[24].mxu0 }
 0x138   : > { %v923_v51 = vadd.f32 %v10012_v41, %v922_v50  ;;  %v8154_v52 = vpop.f32.mrb[25].mxu0 }
 0x139   : > { %v925_v53 = vpop.f32.mrb[26].mxu0 }
 0x13a   : > { %989 = vst.msk [vmem:[#allocation2 + $0x60] sm:$0xff] %vm976_vm3, %v923_v51  ;;  %v926_v54 = vadd.f32 %v10012_v41, %v925_v53  ;;  %v8155_v55 = vpop.f32.mrb[27].mxu0 }
 0x13c   : > { %990 = vst.msk [vmem:[#allocation2 + $0x68] sm:$0xff] %vm976_vm3, %v926_v54 }
 0x13d PF: > { %v10063_v56 = vld [vmem:[#allocation2 + $0x10] sm:$0xff]  ;;  %vm1030_vm5 = vcmask 261120   ;;  %v10065_v57 = vld [vmem:[#allocation2] sm:$0xff]  ;;  %v10067_v58 = vld [vmem:[#allocation2 + $0x18] sm:$0xff]  ;;  %vm1103_vm6 = vcmask 257024   ;;  %vm9733_vm7 = vmmov 0   ;;  %s15589_s24 = scalar_lea.vmem %s15256_s3, %s9868_s28  ;;  %s15592_s7 = scalar_lea.vmem %s15259_s6, %s9868_s28 }
 0x13e   : > { %v1037_v59 = vsel %vm1030_vm5, %v10063_v56, 0.0  ;;  %v1031_v60 = vsel %vm1030_vm5, %v10065_v57, 0.0  ;;  %v10073_v61 = vld [vmem:[#allocation2 + $0x8] sm:$0xff]  ;;  %v1040_v41 = vsel %vm1030_vm5, %v10067_v58, 0.0  ;;  %v10081_v0 = vld [vmem:[#allocation2 + $0x20] sm:$0xff]  ;;  %v10083_v1 = vld [vmem:[#allocation2 + $0x38] sm:$0xff] }
 0x13f   : > { %1038 = vadd.xlane.f32.xlu1 %v1037_v59  ;;  %1032 = vadd.xlane.f32.xlu0 %v1031_v60  ;;  %v1034_v62 = vsel %vm1030_vm5, %v10073_v61, 0.0  ;;  %v10079_v63 = vld [vmem:[#allocation2 + $0x28] sm:$0xff]  ;;  %v10087_v3 = vld [vmem:[#allocation2 + $0x30] sm:$0xff]  ;;  %v10089_v4 = vld [vmem:[#allocation2 + $0x40] sm:$0xff]  ;;  %v1043_v6 = vsel %vm1030_vm5, %v10081_v0, 0.0  ;;  %v1052_v7 = vsel %vm1030_vm5, %v10083_v1, 0.0 }
 0x140   : > { %v10085_v2 = vld [vmem:[#allocation2 + $0x48] sm:$0xff]  ;;  %v1046_v5 = vsel %vm1030_vm5, %v10079_v63, 0.0  ;;  %v1049_v9 = vsel %vm1030_vm5, %v10087_v3, 0.0  ;;  %v1055_v10 = vsel %vm1030_vm5, %v10089_v4, 0.0  ;;  %v10103_v11 = vld [vmem:[#allocation2 + $0x58] sm:$0xff]  ;;  %v10105_v12 = vld [vmem:[#allocation2 + $0x50] sm:$0xff] }
 0x141   : > { %v1058_v8 = vsel %vm1030_vm5, %v10085_v2, 0.0  ;;  %v1064_v13 = vsel %vm1030_vm5, %v10103_v11, 0.0  ;;  %v1061_v14 = vsel %vm1030_vm5, %v10105_v12, 0.0  ;;  %v10113_v16 = vld [vmem:[#allocation2 + $0x60] sm:$0xff]  ;;  %v10119_v19 = vld [vmem:[#allocation2 + $0x78] sm:$0xff]  ;;  %v10121_v20 = vld [vmem:[#allocation2 + $0x70] sm:$0xff] }
 0x142   : > { %v1067_v18 = vsel %vm1030_vm5, %v10113_v16, 0.0  ;;  %v1076_v21 = vsel %vm1030_vm5, %v10119_v19, 0.0  ;;  %v1073_v22 = vsel %vm1030_vm5, %v10121_v20, 0.0  ;;  %v10127_v23 = vld [vmem:[#allocation2 + $0x88] sm:$0xff]  ;;  %v10129_v24 = vld [vmem:[#allocation2 + $0x80] sm:$0xff]  ;;  %v10135_v27 = vld [vmem:[#allocation2 + $0x98] sm:$0xff] }
 0x143   : > { %1041 = vadd.xlane.f32.xlu1 %v1040_v41  ;;  %1035 = vadd.xlane.f32.xlu0 %v1034_v62  ;;  %v10111_v15 = vld [vmem:[#allocation2 + $0x68] sm:$0xff]  ;;  %v1082_v25 = vsel %vm1030_vm5, %v10127_v23, 0.0  ;;  %v1079_v26 = vsel %vm1030_vm5, %v10129_v24, 0.0  ;;  %v10137_v28 = vld [vmem:[#allocation2 + $0x90] sm:$0xff]  ;;  %v1088_v29 = vsel %vm1030_vm5, %v10135_v27, 0.0  ;;  %v10145_v32 = vld [vmem:[#allocation2 + $0xa0] sm:$0xff] }
 0x144   : > { %v1070_v17 = vsel %vm1030_vm5, %v10111_v15, 0.0  ;;  %v1085_v30 = vsel %vm1030_vm5, %v10137_v28, 0.0  ;;  %v10143_v31 = vld [vmem:[#allocation2 + $0xa8] sm:$0xff]  ;;  %v1091_v34 = vsel %vm1030_vm5, %v10145_v32, 0.0  ;;  %v10151_v35 = vld [vmem:[#allocation2 + $0xb8] sm:$0xff]  ;;  %v10153_v36 = vld [vmem:[#allocation2 + $0xb0] sm:$0xff] }
 0x145   : > { %v1094_v33 = vsel %vm1030_vm5, %v10143_v31, 0.0  ;;  %v1100_v37 = vsel %vm1030_vm5, %v10151_v35, 0.0  ;;  %v1097_v38 = vsel %vm1030_vm5, %v10153_v36, 0.0  ;;  %v10159_v39 = vld [vmem:[#allocation2 + $0xc0] sm:$0xf]  ;;  %s15590_s21 = sld [smem:[#allocation211_spill]] }
 0x146   : > { %v1104_v40 = vsel %vm1103_vm6, %v10159_v39, 0.0  ;;  %s9734_s27 = smov 80   ;;  %s9735_s5 = smov 96   ;;  %vm1850_vm8 = vcmask 1043456   ;;  %vm1810_vm9 = vcmask 64512   ;;  %vm2488_vm10 = vcmask 1041408  }
 0x147   : > { %1047 = vadd.xlane.f32.xlu1 %v1046_v5  ;;  %1044 = vadd.xlane.f32.xlu0 %v1043_v6  ;;  %s9736_s11 = smov 88   ;;  %s9737_s30 = smov 120   ;;  %vm2018_vm11 = vcmask 556032   ;;  %vm2116_vm12 = vcmask 551936   ;;  %vm6054_vm13 = vcmask 130048   ;;  %vm6080_vm14 = vcmask 195584  }
 0x148   : > { %s9738_s20 = smov 72   ;;  %s9740_s25 = smov 112  }
 0x149   : > { %s9743_s26 = smov 56   ;;  %s9744_s1 = smov 48  }
 0x14a   : > { %s9747_s15 = smov 8  }
 0x14b   : > { %1053 = vadd.xlane.f32.xlu1 %v1052_v7  ;;  %1050 = vadd.xlane.f32.xlu0 %v1049_v9  ;;  %s15591_s2 = scalar_lea.vmem %s15590_s21, %s9868_s28  ;;  %s9745_s21 = smov 40  }
 0x14f   : > { %1059 = vadd.xlane.f32.xlu1 %v1058_v8  ;;  %1056 = vadd.xlane.f32.xlu0 %v1055_v10 }
 0x153   : > { %1065 = vadd.xlane.f32.xlu1 %v1064_v13  ;;  %1062 = vadd.xlane.f32.xlu0 %v1061_v14 }
 0x157   : > { %1071 = vadd.xlane.f32.xlu1 %v1070_v17  ;;  %1068 = vadd.xlane.f32.xlu0 %v1067_v18 }
 0x15b   : > { %1077 = vadd.xlane.f32.xlu1 %v1076_v21  ;;  %1074 = vadd.xlane.f32.xlu0 %v1073_v22 }
 0x15f   : > { %1083 = vadd.xlane.f32.xlu1 %v1082_v25  ;;  %1080 = vadd.xlane.f32.xlu0 %v1079_v26 }
 0x163   : > { %1089 = vadd.xlane.f32.xlu1 %v1088_v29  ;;  %1086 = vadd.xlane.f32.xlu0 %v1085_v30 }
 0x167   : > { %1095 = vadd.xlane.f32.xlu1 %v1094_v33  ;;  %1092 = vadd.xlane.f32.xlu0 %v1091_v34 }
 0x16b   : > { %1101 = vadd.xlane.f32.xlu1 %v1100_v37  ;;  %1098 = vadd.xlane.f32.xlu0 %v1097_v38 }
 0x16f   : > { %1105 = vadd.xlane.f32.xlu0 %v1104_v40 }
 0x1cc   : > { %v1039_v42 = vpop.xlane.xlu1 %1038  ;;  %v1033_v43 = vpop.xlane.xlu0 %1032 }
 0x1cd   : > { %v1110_v44 = vmul.f32 0.03125, %v1039_v42  ;;  %v1108_v45 = vmul.f32 0.03125, %v1033_v43 }
 0x1cf   : > { %v10164_v46 = vsub.f32 %v10063_v56, %v1110_v44  ;;  %v10167_v47 = vsub.f32 %v10065_v57, %v1108_v45 }
 0x1d0   : > { %v1042_v48 = vpop.xlane.xlu1 %1041  ;;  %v1036_v49 = vpop.xlane.xlu0 %1035 }
 0x1d1   : > { %v1111_v50 = vmul.f32 0.03125, %v1042_v48  ;;  %v1109_v51 = vmul.f32 0.03125, %v1036_v49  ;;  %v1158_v52 = vmul.f32 %v10167_v47, %v10167_v47  ;;  %v1160_v53 = vmul.f32 %v10164_v46, %v10164_v46 }
 0x1d3   : > { %v10174_v54 = vsub.f32 %v10067_v58, %v1111_v50  ;;  %v10177_v55 = vsub.f32 %v10073_v61, %v1109_v51  ;;  %v1183_v56 = vsel %vm1030_vm5, %v1158_v52, 0.0  ;;  %v1189_v60 = vsel %vm1030_vm5, %v1160_v53, 0.0 }
 0x1d4   : > { %v1048_v57 = vpop.xlane.xlu1 %1047  ;;  %1184 = vadd.xlane.f32.xlu0 %v1183_v56  ;;  %v1045_v59 = vpop.xlane.xlu0 %1044 }
 0x1d5   : > { %v1113_v41 = vmul.f32 0.03125, %v1048_v57  ;;  %v1112_v62 = vmul.f32 0.03125, %v1045_v59  ;;  %v1159_v5 = vmul.f32 %v10177_v55, %v10177_v55  ;;  %v1161_v6 = vmul.f32 %v10174_v54, %v10174_v54 }
 0x1d7   : > { %v10186_v58 = vsub.f32 %v10079_v63, %v1113_v41  ;;  %v10189_v61 = vsub.f32 %v10081_v0, %v1112_v62  ;;  %v1186_v7 = vsel %vm1030_vm5, %v1159_v5, 0.0  ;;  %v1192_v9 = vsel %vm1030_vm5, %v1161_v6, 0.0 }
 0x1d8   : > { %v1054_v8 = vpop.xlane.xlu1 %1053  ;;  %1190 = vadd.xlane.f32.xlu0 %v1189_v60  ;;  %1187 = vadd.xlane.f32.xlu1 %v1186_v7  ;;  %v1051_v10 = vpop.xlane.xlu0 %1050 }
 0x1d9   : > { %v1115_v13 = vmul.f32 0.03125, %v1054_v8  ;;  %v1162_v14 = vmul.f32 %v10189_v61, %v10189_v61  ;;  %v1114_v17 = vmul.f32 0.03125, %v1051_v10  ;;  %v1163_v63 = vmul.f32 %v10186_v58, %v10186_v58 }
 0x1db   : > { %v10198_v18 = vsub.f32 %v10083_v1, %v1115_v13  ;;  %v1195_v0 = vsel %vm1030_vm5, %v1162_v14, 0.0  ;;  %v10202_v21 = vsub.f32 %v10087_v3, %v1114_v17  ;;  %v1198_v25 = vsel %vm1030_vm5, %v1163_v63, 0.0 }
 0x1dc   : > { %v1060_v22 = vpop.xlane.xlu1 %1059  ;;  %1193 = vadd.xlane.f32.xlu1 %v1192_v9  ;;  %1196 = vadd.xlane.f32.xlu0 %v1195_v0  ;;  %v1057_v26 = vpop.xlane.xlu0 %1056 }
 0x1dd   : > { %v1117_v29 = vmul.f32 0.03125, %v1060_v22  ;;  %v1165_v30 = vmul.f32 %v10198_v18, %v10198_v18  ;;  %v1116_v33 = vmul.f32 0.03125, %v1057_v26  ;;  %v1164_v1 = vmul.f32 %v10202_v21, %v10202_v21 }
 0x1df   : > { %v10210_v34 = vsub.f32 %v10085_v2, %v1117_v29  ;;  %v1204_v3 = vsel %vm1030_vm5, %v1165_v30, 0.0  ;;  %v10214_v37 = vsub.f32 %v10089_v4, %v1116_v33  ;;  %v1201_v40 = vsel %vm1030_vm5, %v1164_v1, 0.0 }
 0x1e0   : > { %v1066_v38 = vpop.xlane.xlu1 %1065  ;;  %1199 = vadd.xlane.f32.xlu1 %v1198_v25  ;;  %1205 = vadd.xlane.f32.xlu0 %v1204_v3  ;;  %v1063_v42 = vpop.xlane.xlu0 %1062 }
 0x1e1   : > { %v1119_v43 = vmul.f32 0.03125, %v1066_v38  ;;  %v1167_v44 = vmul.f32 %v10210_v34, %v10210_v34  ;;  %v1118_v45 = vmul.f32 0.03125, %v1063_v42  ;;  %v1166_v2 = vmul.f32 %v10214_v37, %v10214_v37 }
 0x1e3   : > { %v10222_v48 = vsub.f32 %v10103_v11, %v1119_v43  ;;  %v1210_v4 = vsel %vm1030_vm5, %v1167_v44, 0.0  ;;  %v10226_v49 = vsub.f32 %v10105_v12, %v1118_v45  ;;  %v1207_v51 = vsel %vm1030_vm5, %v1166_v2, 0.0 }
 0x1e4   : > { %v1072_v50 = vpop.xlane.xlu1 %1071  ;;  %1211 = vadd.xlane.f32.xlu0 %v1210_v4  ;;  %1202 = vadd.xlane.f32.xlu1 %v1201_v40  ;;  %v1069_v52 = vpop.xlane.xlu0 %1068 }
 0x1e5   : > { %v1121_v53 = vmul.f32 0.03125, %v1072_v50  ;;  %v1169_v56 = vmul.f32 %v10222_v48, %v10222_v48  ;;  %v1120_v57 = vmul.f32 0.03125, %v1069_v52  ;;  %v1168_v11 = vmul.f32 %v10226_v49, %v10226_v49 }
 0x1e7   : > { %v10234_v59 = vsub.f32 %v10111_v15, %v1121_v53  ;;  %v1216_v12 = vsel %vm1030_vm5, %v1169_v56, 0.0  ;;  %v10238_v60 = vsub.f32 %v10113_v16, %v1120_v57  ;;  %v1213_v62 = vsel %vm1030_vm5, %v1168_v11, 0.0 }
 0x1e8   : > { %v1078_v41 = vpop.xlane.xlu1 %1077  ;;  %1217 = vadd.xlane.f32.xlu0 %v1216_v12  ;;  %1208 = vadd.xlane.f32.xlu1 %v1207_v51  ;;  %v1075_v5 = vpop.xlane.xlu0 %1074  ;;  %v8901_v51 = vld [vmem:[%s9887_s16] sm:$0xff]   ;;  %v15274_v56 = vmov 0.0  }
 0x1e9   : > { %v1123_v6 = vmul.f32 0.03125, %v1078_v41  ;;  %v1171_v7 = vmul.f32 %v10234_v59, %v10234_v59  ;;  %v1122_v8 = vmul.f32 0.03125, %v1075_v5  ;;  %v1170_v15 = vmul.f32 %v10238_v60, %v10238_v60  ;;  %8180 = vmatprep.subr.bf16.mxu0 %v15274_v56  ;;  %8184 = vmatprep.mubr.msk.bf16.mxu0 %vm9733_vm7, %v15274_v56 }
 0x1ea   : > { %8181 = vmatpush3.bf16.msra.mxu0 %v8901_v51 }
 0x1eb   : > { %v10246_v9 = vsub.f32 %v10119_v19, %v1123_v6  ;;  %v1222_v16 = vsel %vm1030_vm5, %v1171_v7, 0.0  ;;  %v10250_v10 = vsub.f32 %v10121_v20, %v1122_v8  ;;  %v1219_v14 = vsel %vm1030_vm5, %v1170_v15, 0.0  ;;  %8182 = vmatprep.subr.bf16.mxu0 %v15274_v56 }
 0x1ec   : > { %v1084_v13 = vpop.xlane.xlu1 %1083  ;;  %1223 = vadd.xlane.f32.xlu0 %v1222_v16  ;;  %1214 = vadd.xlane.f32.xlu1 %v1213_v62  ;;  %v1081_v17 = vpop.xlane.xlu0 %1080 }
 0x1ed   : > { %v1125_v63 = vmul.f32 0.03125, %v1084_v13  ;;  %v1173_v0 = vmul.f32 %v10246_v9, %v10246_v9  ;;  %v1124_v22 = vmul.f32 0.03125, %v1081_v17  ;;  %v1172_v19 = vmul.f32 %v10250_v10, %v10250_v10 }
 0x1ef   : > { %v10258_v25 = vsub.f32 %v10127_v23, %v1125_v63  ;;  %v1228_v20 = vsel %vm1030_vm5, %v1173_v0, 0.0  ;;  %v10262_v26 = vsub.f32 %v10129_v24, %v1124_v22  ;;  %v1225_v30 = vsel %vm1030_vm5, %v1172_v19, 0.0 }
 0x1f0   : > { %v1090_v29 = vpop.xlane.xlu1 %1089  ;;  %1229 = vadd.xlane.f32.xlu0 %v1228_v20  ;;  %1220 = vadd.xlane.f32.xlu1 %v1219_v14  ;;  %v1087_v33 = vpop.xlane.xlu0 %1086 }
 0x1f1   : > { %v1127_v1 = vmul.f32 0.03125, %v1090_v29  ;;  %v1175_v3 = vmul.f32 %v10258_v25, %v10258_v25  ;;  %v1126_v38 = vmul.f32 0.03125, %v1087_v33  ;;  %v1174_v23 = vmul.f32 %v10262_v26, %v10262_v26 }
 0x1f3   : > { %v10270_v40 = vsub.f32 %v10135_v27, %v1127_v1  ;;  %v1234_v24 = vsel %vm1030_vm5, %v1175_v3, 0.0  ;;  %v10274_v42 = vsub.f32 %v10137_v28, %v1126_v38  ;;  %v1231_v44 = vsel %vm1030_vm5, %v1174_v23, 0.0 }
 0x1f4   : > { %v1096_v43 = vpop.xlane.xlu1 %1095  ;;  %1235 = vadd.xlane.f32.xlu0 %v1234_v24  ;;  %1226 = vadd.xlane.f32.xlu1 %v1225_v30  ;;  %v1093_v45 = vpop.xlane.xlu0 %1092 }
 0x1f5   : > { %v1129_v2 = vmul.f32 0.03125, %v1096_v43  ;;  %v1177_v4 = vmul.f32 %v10270_v40, %v10270_v40  ;;  %v1128_v50 = vmul.f32 0.03125, %v1093_v45  ;;  %v1176_v27 = vmul.f32 %v10274_v42, %v10274_v42 }
 0x1f7   : > { %v10283_v52 = vsub.f32 %v10143_v31, %v1129_v2  ;;  %v1240_v28 = vsel %vm1030_vm5, %v1177_v4, 0.0  ;;  %v10287_v53 = vsub.f32 %v10145_v32, %v1128_v50  ;;  %v1237_v11 = vsel %vm1030_vm5, %v1176_v27, 0.0  ;;  %v8902_v32 = vld [vmem:[%s9887_s16 + $0x8] sm:$0xff]   ;;  %s9739_s16 = smov 64  }
 0x1f8   : > { %v1102_v57 = vpop.xlane.xlu1 %1101  ;;  %1241 = vadd.xlane.f32.xlu0 %v1240_v28  ;;  %1232 = vadd.xlane.f32.xlu1 %v1231_v44  ;;  %v1099_v12 = vpop.xlane.xlu0 %1098 }
 0x1f9   : > { %v1131_v41 = vmul.f32 0.03125, %v1102_v57  ;;  %v1179_v62 = vmul.f32 %v10283_v52, %v10283_v52  ;;  %v1130_v31 = vmul.f32 0.03125, %v1099_v12  ;;  %v1178_v5 = vmul.f32 %v10287_v53, %v10287_v53  ;;  %8183 = vmatpush3.bf16.msra.mxu0 %v8902_v32 }
 0x1fb   : > { %v10298_v6 = vsub.f32 %v10151_v35, %v1131_v41  ;;  %v1246_v7 = vsel %vm1030_vm5, %v1179_v62, 0.0  ;;  %v10302_v8 = vsub.f32 %v10153_v36, %v1130_v31  ;;  %v1243_v13 = vsel %vm1030_vm5, %v1178_v5, 0.0  ;;  %v10325_v62 = vld [vmem:[%s15589_s24] ss:$0 sm:$0xff]  ;;  %s9742_s24 = smov 104  }
 0x1fc   : > { %1247 = vadd.xlane.f32.xlu0 %v1246_v7  ;;  %1238 = vadd.xlane.f32.xlu1 %v1237_v11  ;;  %v1106_v15 = vpop.xlane.xlu0 %1105 }
 0x1fd   : > { %v1181_v16 = vmul.f32 %v10298_v6, %v10298_v6  ;;  %v1132_v14 = vmul.f32 0.03125, %v1106_v15  ;;  %v1180_v17 = vmul.f32 %v10302_v8, %v10302_v8 }
 0x1ff   : > { %v1252_v35 = vsel %vm1030_vm5, %v1181_v16, 0.0  ;;  %v10313_v36 = vsub.f32 %v10159_v39, %v1132_v14  ;;  %v1249_v63 = vsel %vm1030_vm5, %v1180_v17, 0.0 }
 0x200   : > { %1253 = vadd.xlane.f32.xlu0 %v1252_v35  ;;  %1244 = vadd.xlane.f32.xlu1 %v1243_v13 }
 0x201   : > { %v1182_v0 = vmul.f32 %v10313_v36, %v10313_v36 }
 0x203   : > { %v1255_v22 = vsel %vm1103_vm6, %v1182_v0, 0.0 }
 0x204   : > { %1250 = vadd.xlane.f32.xlu1 %v1249_v63 }
 0x208   : > { %1256 = vadd.xlane.f32.xlu1 %v1255_v22 }
 0x261   : > { %v1185_v19 = vpop.xlane.xlu0 %1184 }
 0x262   : > { %v1258_v20 = vmul.f32 0.03125, %v1185_v19 }
 0x264   : > { %v1283_v29 = vadd.f32 1e-06, %v1258_v20 }
 0x265   : > { %v1188_v30 = vpop.xlane.xlu1 %1187  ;;  %v1191_v33 = vpop.xlane.xlu0 %1190 }
 0x266   : > { %8915 = vrsqrt.f32 %v1283_v29  ;;  %v1259_v1 = vmul.f32 0.03125, %v1188_v30  ;;  %v1260_v39 = vmul.f32 0.03125, %v1191_v33 }
 0x268   : > { %v1284_v3 = vadd.f32 1e-06, %v1259_v1  ;;  %v1285_v38 = vadd.f32 1e-06, %v1260_v39 }
 0x269   : > { %v1194_v23 = vpop.xlane.xlu1 %1193  ;;  %v1197_v24 = vpop.xlane.xlu0 %1196 }
 0x26a   : > { %8917 = vrsqrt.f32 %v1284_v3  ;;  %v1261_v43 = vmul.f32 0.03125, %v1194_v23  ;;  %v1262_v45 = vmul.f32 0.03125, %v1197_v24 }
 0x26b   : > { %8919 = vrsqrt.f32 %v1285_v38 }
 0x26c   : > { %v1286_v44 = vadd.f32 1e-06, %v1261_v43  ;;  %v1287_v51 = vadd.f32 1e-06, %v1262_v45 }
 0x26d   : > { %v1200_v2 = vpop.xlane.xlu1 %1199  ;;  %v1206_v4 = vpop.xlane.xlu0 %1205 }
 0x26e   : > { %8921 = vrsqrt.f32 %v1286_v44  ;;  %v1263_v50 = vmul.f32 0.03125, %v1200_v2  ;;  %v1265_v5 = vmul.f32 0.03125, %v1206_v4 }
 0x270   : > { %v8916_v27 = vpop.eup %8915  ;;  %v1288_v28 = vadd.f32 1e-06, %v1263_v50  ;;  %v1290_v63 = vadd.f32 1e-06, %v1265_v5 }
 0x271   : > { %v1203_v57 = vpop.xlane.xlu1 %1202  ;;  %v1212_v11 = vpop.xlane.xlu0 %1211  ;;  %v1333_v12 = vmul.f32 %v8916_v27, %v10167_v47  ;;  %v10334_v47 = vld [vmem:[%s15591_s2] ss:$0 sm:$0xff]  ;;  %s9746_s2 = smov 16  }
 0x272   : > { %8923 = vrsqrt.f32 %v1288_v28  ;;  %v1264_v41 = vmul.f32 0.03125, %v1203_v57  ;;  %v1267_v3 = vmul.f32 0.03125, %v1212_v11 }
 0x273   : > { %8925 = vrsqrt.f32 %v1287_v51  ;;  %v1364_v16 = vmul.f32 %v10325_v62, %v1333_v12 }
 0x274   : > { %v8918_v31 = vpop.eup %8917  ;;  %v1289_v14 = vadd.f32 1e-06, %v1264_v41  ;;  %v1292_v45 = vadd.f32 1e-06, %v1267_v3 }
 0x275   : > { %v1209_v32 = vpop.xlane.xlu1 %1208  ;;  %v1218_v7 = vpop.xlane.xlu0 %1217  ;;  %v1334_v15 = vmul.f32 %v8918_v31, %v10177_v55  ;;  %v1395_v19 = vadd.f32 %v10334_v47, %v1364_v16 }
 0x276   : > { %v8920_v13 = vpop.eup %8919  ;;  %8927 = vrsqrt.f32 %v1289_v14  ;;  %v1266_v30 = vmul.f32 0.03125, %v1209_v32  ;;  %v1269_v41 = vmul.f32 0.03125, %v1218_v7 }
 0x277   : > { %v1365_v17 = vmul.f32 %v10325_v62, %v1334_v15  ;;  %v1335_v20 = vmul.f32 %v8920_v13, %v10164_v46  ;;  %8929 = vrsqrt.f32 %v1290_v63 }
 0x278   : > { %v8922_v35 = vpop.eup %8921  ;;  %v1291_v44 = vadd.f32 1e-06, %v1266_v30  ;;  %v1294_v7 = vadd.f32 1e-06, %v1269_v41 }
 0x279   : > { %v1215_v0 = vpop.xlane.xlu1 %1214  ;;  %v1224_v22 = vpop.xlane.xlu0 %1223  ;;  %v1396_v55 = vadd.f32 %v10334_v47, %v1365_v17  ;;  %v1336_v29 = vmul.f32 %v8922_v35, %v10174_v54  ;;  %v1366_v24 = vmul.f32 %v10325_v62, %v1335_v20 }
 0x27a   : > { %v1268_v2 = vmul.f32 0.03125, %v1215_v0  ;;  %8931 = vrsqrt.f32 %v1291_v44 }
 0x27b   : > { %v1420_v33 = vpack.c.bf16 %v1396_v55, %v1395_v19  ;;  %v1367_v1 = vmul.f32 %v10325_v62, %v1336_v29  ;;  %v1397_v27 = vadd.f32 %v10334_v47, %v1366_v24  ;;  %8933 = vrsqrt.f32 %v1292_v45 }
 0x27c   : > { %v8924_v39 = vpop.eup %8923  ;;  %v1293_v5 = vadd.f32 1e-06, %v1268_v2 }
 0x27d   : > { %v1221_v38 = vpop.xlane.xlu1 %1220  ;;  %8185 = vmatmul.mubr.msk.bf16.vlgmr.msra.gmra.mrb[0].mxu0 %vm1030_vm5, %v1420_v33  ;;  %v10343_v23 = vpop.xlane.xlu0 %1229  ;;  %v1398_v46 = vadd.f32 %v10334_v47, %v1367_v1  ;;  %v1338_v54 = vmul.f32 %v8924_v39, %v10186_v58  ;;  %v1271_v1 = vmul.f32 0.03125, %v1224_v22 }
 0x27e   : > { %v8926_v43 = vpop.eup %8925  ;;  %8188 = vmatprep.mubr.msk.bf16.mxu0 %vm9733_vm7, %v15274_v56  ;;  %v1270_v0 = vmul.f32 0.03125, %v1221_v38 }
 0x27f   : > { %v1337_v51 = vmul.f32 %v8926_v43, %v10189_v61  ;;  %v1421_v57 = vpack.c.bf16 %v1398_v46, %v1397_v27  ;;  %v1369_v11 = vmul.f32 %v10325_v62, %v1338_v54  ;;  %v1296_v22 = vadd.f32 1e-06, %v1271_v1 }
 0x280   : > { %v8928_v12 = vpop.eup %8927  ;;  %v1295_v44 = vadd.f32 1e-06, %v1270_v0 }
 0x281   : > { %v1227_v4 = vpop.xlane.xlu1 %1226  ;;  %v1236_v50 = vpop.xlane.xlu0 %1235  ;;  %v1368_v15 = vmul.f32 %v10325_v62, %v1337_v51  ;;  %v1400_v61 = vadd.f32 %v10334_v47, %v1369_v11  ;;  %v1339_v17 = vmul.f32 %v8928_v12, %v10202_v21 }
 0x282   : > { %v1275_v28 = vmul.f32 0.03125, %v1236_v50  ;;  %v8930_v16 = vpop.eup %8929  ;;  %v1272_v51 = vmul.f32 0.03125, %v1227_v4 }
 0x283   : > { %v1399_v20 = vadd.f32 %v10334_v47, %v1368_v15  ;;  %v1340_v29 = vmul.f32 %v8930_v16, %v10198_v18  ;;  %v1370_v3 = vmul.f32 %v10325_v62, %v1339_v17  ;;  %v1273_v15 = vmul.f32 0.03125, %v10343_v23 }
 0x284   : > { %v1300_v31 = vadd.f32 1e-06, %v1275_v28  ;;  %v8932_v21 = vpop.eup %8931 }
 0x285   : > { %v1233_v32 = vpop.xlane.xlu1 %1232  ;;  %8189 = vmatmul.mubr.msk.bf16.gmra.mrb[4].mxu0 %vm1030_vm5, %v1421_v57  ;;  %v1242_v58 = vpop.xlane.xlu0 %1241  ;;  %v1422_v39 = vpack.c.bf16 %v1400_v61, %v1399_v20  ;;  %v1371_v54 = vmul.f32 %v10325_v62, %v1340_v29  ;;  %v1401_v50 = vadd.f32 %v10334_v47, %v1370_v3  ;;  %v1341_v27 = vmul.f32 %v8932_v21, %v10214_v37 }
 0x286   : > { %v1274_v13 = vmul.f32 0.03125, %v1233_v32  ;;  %v1277_v14 = vmul.f32 0.03125, %v1242_v58  ;;  %8192 = vmatprep.mubr.msk.bf16.mxu0 %vm9733_vm7, %v15274_v56  ;;  %8935 = vrsqrt.f32 %v1300_v31  ;;  %v8934_v18 = vpop.eup %8933 }
 0x287   : > { %8937 = vrsqrt.f32 %v1293_v5  ;;  %v1402_v41 = vadd.f32 %v10334_v47, %v1371_v54  ;;  %v1342_v31 = vmul.f32 %v8934_v18, %v10210_v34  ;;  %v1372_v37 = vmul.f32 %v10325_v62, %v1341_v27 }
 0x288   : > { %v1299_v35 = vadd.f32 1e-06, %v1274_v13  ;;  %v1302_v63 = vadd.f32 1e-06, %v1277_v14  ;;  %v1297_v13 = vadd.f32 1e-06, %v1272_v51 }
 0x289   : > { %v1239_v19 = vpop.xlane.xlu1 %1238  ;;  %v1248_v55 = vpop.xlane.xlu0 %1247  ;;  %v1423_v16 = vpack.c.bf16 %v1402_v41, %v1401_v50  ;;  %v1373_v34 = vmul.f32 %v10325_v62, %v1342_v31 }
 0x28a   : > { %8939 = vrsqrt.f32 %v1299_v35  ;;  %v1276_v30 = vmul.f32 0.03125, %v1239_v19  ;;  %v1279_v33 = vmul.f32 0.03125, %v1248_v55  ;;  %v1403_v19 = vadd.f32 %v10334_v47, %v1372_v37 }
 0x28b   : > { %8941 = vrsqrt.f32 %v1302_v63 }
 0x28c   : > { %8943 = vrsqrt.f32 %v1294_v7  ;;  %v1301_v24 = vadd.f32 1e-06, %v1276_v30  ;;  %v1304_v43 = vadd.f32 1e-06, %v1279_v33  ;;  %v1298_v30 = vadd.f32 1e-06, %v1273_v15 }
 0x28d   : > { %v1245_v38 = vpop.xlane.xlu1 %1244  ;;  %8193 = vmatmul.mubr.msk.bf16.gmra.mrb[8].mxu0 %vm1030_vm5, %v1422_v39  ;;  %v1254_v46 = vpop.xlane.xlu0 %1253  ;;  %v1404_v39 = vadd.f32 %v10334_v47, %v1373_v34 }
 0x28e   : > { %8945 = vrsqrt.f32 %v1301_v24  ;;  %v1278_v45 = vmul.f32 0.03125, %v1245_v38  ;;  %v1281_v2 = vmul.f32 0.03125, %v1254_v46  ;;  %8196 = vmatprep.mubr.msk.bf16.mxu0 %vm9733_vm7, %v15274_v56 }
 0x28f   : > { %8947 = vrsqrt.f32 %v1304_v43 }
 0x290   : > { %v1303_v28 = vadd.f32 1e-06, %v1278_v45  ;;  %v1306_v57 = vadd.f32 1e-06, %v1281_v2  ;;  %v8936_v11 = vpop.eup %8935  ;;  %8949 = vrsqrt.f32 %v1295_v44  ;;  %v1424_v44 = vpack.c.bf16 %v1404_v39, %v1403_v19 }
 0x291   : > { %v1251_v12 = vpop.xlane.xlu1 %1250  ;;  %v1350_v32 = vmul.f32 %v8936_v11, %v10258_v25  ;;  %v8938_v58 = vpop.eup %8937 }
 0x292   : > { %8951 = vrsqrt.f32 %v1303_v28  ;;  %v1280_v5 = vmul.f32 0.03125, %v1251_v12  ;;  %v1343_v55 = vmul.f32 %v8938_v58, %v10226_v49 }
 0x293   : > { %8953 = vrsqrt.f32 %v1306_v57  ;;  %v1381_v61 = vmul.f32 %v10325_v62, %v1350_v32 }
 0x294   : > { %v8940_v4 = vpop.eup %8939  ;;  %8955 = vrsqrt.f32 %v1296_v22  ;;  %v1305_v14 = vadd.f32 1e-06, %v1280_v5  ;;  %v1374_v38 = vmul.f32 %v10325_v62, %v1343_v55 }
 0x295   : > { %v8942_v17 = vpop.eup %8941  ;;  %v1257_v7 = vpop.xlane.xlu1 %1256  ;;  %8197 = vmatmul.mubr.msk.bf16.gmra.mrb[12].mxu0 %vm1030_vm5, %v1423_v16  ;;  %v1349_v25 = vmul.f32 %v8940_v4, %v10262_v26  ;;  %v10380_v63 = vadd.f32 %v10334_v47, %v1381_v61 }
 0x296   : > { %v8944_v35 = vpop.eup %8943  ;;  %8957 = vrsqrt.f32 %v1305_v14  ;;  %v1282_v23 = vmul.f32 0.03125, %v1257_v7  ;;  %8200 = vmatprep.mubr.msk.bf16.mxu0 %vm9733_vm7, %v15274_v56  ;;  %v1352_v0 = vmul.f32 %v8942_v17, %v10270_v40  ;;  %v1405_v51 = vadd.f32 %v10334_v47, %v1374_v38 }
 0x297   : > { %v1380_v20 = vmul.f32 %v10325_v62, %v1349_v25  ;;  %8959 = vrsqrt.f32 %v1297_v13  ;;  %v1344_v3 = vmul.f32 %v8944_v35, %v10222_v48 }
 0x298   : > { %v8946_v29 = vpop.eup %8945  ;;  %v1307_v26 = vadd.f32 1e-06, %v1282_v23  ;;  %v1383_v33 = vmul.f32 %v10325_v62, %v1352_v0 }
 0x299   : > { %v8948_v1 = vpop.eup %8947  ;;  %v10390_v21 = vadd.f32 %v10334_v47, %v1380_v20  ;;  %v1351_v40 = vmul.f32 %v8946_v29, %v10274_v42  ;;  %v1375_v42 = vmul.f32 %v10325_v62, %v1344_v3 }
 0x29a   : > { %8961 = vrsqrt.f32 %v1307_v26  ;;  %v1414_v49 = vadd.f32 %v10334_v47, %v1383_v33  ;;  %v1354_v24 = vmul.f32 %v8948_v1, %v10283_v52  ;;  %v8950_v43 = vpop.eup %8949 }
 0x29b   : > { %v1428_v46 = vpack.c.bf16 %v10380_v63, %v10390_v21  ;;  %v1382_v54 = vmul.f32 %v10325_v62, %v1351_v40  ;;  %8963 = vrsqrt.f32 %v1298_v30  ;;  %v1345_v28 = vmul.f32 %v8950_v43, %v10238_v60 }
 0x29c   : > { %v8952_v48 = vpop.eup %8951  ;;  %v1385_v18 = vmul.f32 %v10325_v62, %v1354_v24 }
 0x29d   : > { %v8954_v45 = vpop.eup %8953  ;;  %8201 = vmatmul.mubr.msk.bf16.gmra.mrb[16].mxu0 %vm1030_vm5, %v1424_v44  ;;  %v1413_v52 = vadd.f32 %v10334_v47, %v1382_v54  ;;  %v1353_v2 = vmul.f32 %v8952_v48, %v10287_v53  ;;  %v1406_v53 = vadd.f32 %v10334_v47, %v1375_v42  ;;  %v1376_v60 = vmul.f32 %v10325_v62, %v1345_v28 }
 0x29e   : > { %v8956_v22 = vpop.eup %8955  ;;  %8204 = vmatprep.mubr.msk.bf16.mxu0 %vm9733_vm7, %v15274_v56  ;;  %v1416_v50 = vadd.f32 %v10334_v47, %v1385_v18  ;;  %v1356_v27 = vmul.f32 %v8954_v45, %v10298_v6 }
 0x29f   : > { %v1429_v57 = vpack.c.bf16 %v1414_v49, %v1413_v52  ;;  %v1384_v11 = vmul.f32 %v10325_v62, %v1353_v2  ;;  %v1346_v31 = vmul.f32 %v8956_v22, %v10234_v59  ;;  %v1425_v15 = vpack.c.bf16 %v1406_v53, %v1405_v51 }
 0x2a0   : > { %v8958_v12 = vpop.eup %8957  ;;  %v1387_v41 = vmul.f32 %v10325_v62, %v1356_v27 }
 0x2a1   : > { %v1415_v5 = vadd.f32 %v10334_v47, %v1384_v11  ;;  %v1355_v32 = vmul.f32 %v8958_v12, %v10302_v8  ;;  %v8960_v58 = vpop.eup %8959  ;;  %v1377_v13 = vmul.f32 %v10325_v62, %v1346_v31  ;;  %v1407_v8 = vadd.f32 %v10334_v47, %v1376_v60 }
 0x2a2   : > { %v1418_v6 = vadd.f32 %v10334_v47, %v1387_v41  ;;  %v1347_v17 = vmul.f32 %v8960_v58, %v10250_v10 }
 0x2a3   : > { %v1430_v16 = vpack.c.bf16 %v1416_v50, %v1415_v5  ;;  %v1386_v37 = vmul.f32 %v10325_v62, %v1355_v32  ;;  %v1408_v25 = vadd.f32 %v10334_v47, %v1377_v13 }
 0x2a4   : > { %v8962_v4 = vpop.eup %8961 }
 0x2a5   : > { %8205 = vmatmul.mubr.msk.bf16.gmra.mrb[20].mxu0 %vm1030_vm5, %v1425_v15  ;;  %v1417_v59 = vadd.f32 %v10334_v47, %v1386_v37  ;;  %v1357_v14 = vmul.f32 %v8962_v4, %v10313_v36  ;;  %v8964_v61 = vpop.eup %8963  ;;  %v1426_v63 = vpack.c.bf16 %v1408_v25, %v1407_v8  ;;  %v1378_v36 = vmul.f32 %v10325_v62, %v1347_v17 }
 0x2a6   : > { %8208 = vmatprep.mubr.msk.bf16.mxu0 %vm9733_vm7, %v15274_v56  ;;  %v1348_v35 = vmul.f32 %v8964_v61, %v10246_v9 }
 0x2a7   : > { %v1431_v7 = vpack.c.bf16 %v1418_v6, %v1417_v59  ;;  %v1388_v34 = vmul.f32 %v10325_v62, %v1357_v14  ;;  %v1409_v10 = vadd.f32 %v10334_v47, %v1378_v36 }
 0x2a8   : > { %v1379_v0 = vmul.f32 %v10325_v62, %v1348_v35  ;;  %v10459_v62 = vld [vmem:[%s15592_s7] ss:$0 sm:$0xff] }
 0x2a9   : > { %v1419_v23 = vadd.f32 %v10334_v47, %v1388_v34 }
 0x2aa   : > { %v1410_v19 = vadd.f32 %v10334_v47, %v1379_v0 }
 0x2ab   : > { %v1432_v9 = vpack.c.bf16 %v1419_v23, %v1419_v23 }
 0x2ac   : > { %v1427_v55 = vpack.c.bf16 %v1410_v19, %v1409_v10 }
 0x2ad   : > { %8209 = vmatmul.mubr.msk.bf16.gmra.mrb[24].mxu0 %vm1030_vm5, %v1426_v63 }
 0x2ae   : > { %8212 = vmatprep.mubr.msk.bf16.mxu0 %vm9733_vm7, %v15274_v56 }
 0x2b5   : > { %8213 = vmatmul.mubr.msk.bf16.gmra.mrb[28].mxu0 %vm1030_vm5, %v1427_v55 }
 0x2b6   : > { %8216 = vmatprep.mubr.msk.bf16.mxu0 %vm9733_vm7, %v15274_v56 }
 0x2bd   : > { %8217 = vmatmul.mubr.msk.bf16.gmra.mrb[32].mxu0 %vm1030_vm5, %v1428_v46 }
 0x2be   : > { %8220 = vmatprep.mubr.msk.bf16.mxu0 %vm9733_vm7, %v15274_v56 }
 0x2c5   : > { %8221 = vmatmul.mubr.msk.bf16.gmra.mrb[36].mxu0 %vm1030_vm5, %v1429_v57 }
 0x2c6   : > { %8224 = vmatprep.mubr.msk.bf16.mxu0 %vm9733_vm7, %v15274_v56 }
 0x2cd   : > { %8225 = vmatmul.mubr.msk.bf16.gmra.mrb[40].mxu0 %vm1030_vm5, %v1430_v16 }
 0x2ce   : > { %8228 = vmatprep.mubr.msk.bf16.mxu0 %vm9733_vm7, %v15274_v56 }
 0x2d5   : > { %8229 = vmatmul.mubr.msk.bf16.gmra.mrb[44].mxu0 %vm1030_vm5, %v1431_v7 }
 0x2d6   : > { %8232 = vmatprep.mubr.msk.bf16.mxu0 %vm9733_vm7, %v15274_v56 }
 0x2dd   : > { %8233 = vmatmul.mubr.msk.bf16.gmra.mrb[48].mxu0 %vm1030_vm5, %v1432_v9 }
 0x350   : > { %v1529_v47 = vpop.f32.mrb[0].mxu0 }
 0x351   : > { %v8186_v20 = vpop.f32.mrb[1].mxu0  ;;  %v1530_v30 = vadd.f32 %v10459_v62, %v1529_v47 }
 0x352   : > { %v1532_v29 = vpop.f32.mrb[2].mxu0 }
 0x353   : > { %v1533_v26 = vadd.f32 %v10459_v62, %v1532_v29  ;;  %v8187_v33 = vpop.f32.mrb[3].mxu0 }
 0x355   : > { %v10463_v1 = vpack.c.bf16 %v1533_v26, %v1530_v30  ;;  %v8491_v39 = vpack.i.bf16 %v1533_v26, %v1530_v30 }
 0x357   : > { %15593 = vst [vmem:[#allocation9_spill] sm:$0xff] %v10463_v1  ;;  %8492 = vrot.lane.b32.xlu1 %v8491_v39, %s9734_s27  ;;  %8482 = vrot.lane.b32.xlu0 %v8491_v39, %s9735_s5 }
 0x358   : > { %v1537_v3 = vpop.f32.mrb[4].mxu0 }
 0x359   : > { %v8190_v21 = vpop.f32.mrb[5].mxu0  ;;  %v1538_v49 = vadd.f32 %v10459_v62, %v1537_v3 }
 0x35a   : > { %v1540_v40 = vpop.f32.mrb[6].mxu0 }
 0x35b   : > { %v1541_v24 = vadd.f32 %v10459_v62, %v1540_v40  ;;  %8487 = vrot.lane.b32.xlu0 %v8491_v39, %s9736_s11  ;;  %2819 = vrot.lane.b32.xlu1 %v10463_v1, %s9737_s30  ;;  %v8191_v43 = vpop.f32.mrb[7].mxu0 }
 0x35d   : > { %v10472_v44 = vpack.c.bf16 %v1541_v24, %v1538_v49  ;;  %v8501_v38 = vpack.i.bf16 %v1541_v24, %v1538_v49 }
 0x35f   : > { %8497 = vrot.lane.b32.xlu0 %v8491_v39, %s9738_s20  ;;  %2411 = vrot.lane.b32.xlu1 %v10463_v1, %s9739_s16 }
 0x360   : > { %v1545_v46 = vpop.f32.mrb[8].mxu0 }
 0x361   : > { %v8194_v54 = vpop.f32.mrb[9].mxu0  ;;  %v1546_v18 = vadd.f32 %v10459_v62, %v1545_v46 }
 0x362   : > { %v1548_v48 = vpop.f32.mrb[10].mxu0 }
 0x363   : > { %v1549_v45 = vadd.f32 %v10459_v62, %v1548_v48  ;;  %3836 = vrot.lane.b32.xlu0 %v10463_v1, %s9740_s25  ;;  %8502 = vrot.lane.b32.xlu1 %v8501_v38, %s9735_s5  ;;  %v8195_v42 = vpop.f32.mrb[11].mxu0 }
 0x365   : > { %v10482_v52 = vpack.c.bf16 %v1549_v45, %v1546_v18  ;;  %v8526_v2 = vpack.i.bf16 %v1549_v45, %v1546_v18 }
 0x367   : > { %15594 = vst [vmem:[#allocation10_spill] sm:$0xff] %v10482_v52  ;;  %8517 = vrot.lane.b32.xlu0 %v8501_v38, %s9738_s20  ;;  %8507 = vrot.lane.b32.xlu1 %v8501_v38, %s9736_s11 }
 0x368   : > { %v1553_v22 = vpop.f32.mrb[12].mxu0 }
 0x369   : > { %v8198_v50 = vpop.f32.mrb[13].mxu0  ;;  %v1554_v51 = vadd.f32 %v10459_v62, %v1553_v22 }
 0x36a   : > { %v1556_v27 = vpop.f32.mrb[14].mxu0 }
 0x36b   : > { %v1557_v28 = vadd.f32 %v10459_v62, %v1556_v27  ;;  %8512 = vrot.lane.b32.xlu1 %v8501_v38, %s9734_s27  ;;  %2821 = vrot.lane.b32.xlu0 %v10472_v44, %s9737_s30  ;;  %v8199_v57 = vpop.f32.mrb[15].mxu0 }
 0x36d   : > { %v10491_v11 = vpack.c.bf16 %v1557_v28, %v1554_v51  ;;  %v8541_v12 = vpack.i.bf16 %v1557_v28, %v1554_v51 }
 0x36f   : > { %3838 = vrot.lane.b32.xlu1 %v10472_v44, %s9740_s25  ;;  %2413 = vrot.lane.b32.xlu0 %v10472_v44, %s9739_s16 }
 0x370   : > { %v1561_v41 = vpop.f32.mrb[16].mxu0 }
 0x371   : > { %v8202_v53 = vpop.f32.mrb[17].mxu0  ;;  %v1562_v5 = vadd.f32 %v10459_v62, %v1561_v41 }
 0x372   : > { %v1564_v31 = vpop.f32.mrb[18].mxu0 }
 0x373   : > { %v1565_v32 = vadd.f32 %v10459_v62, %v1564_v31  ;;  %8527 = vrot.lane.b32.xlu0 %v8526_v2, %s9736_s11  ;;  %8522 = vrot.lane.b32.xlu1 %v8526_v2, %s9735_s5  ;;  %v8203_v58 = vpop.f32.mrb[19].mxu0 }
 0x375   : > { %v10501_v6 = vpack.c.bf16 %v1565_v32, %v1562_v5 }
 0x377   : > { %8537 = vrot.lane.b32.xlu0 %v8526_v2, %s9738_s20  ;;  %8532 = vrot.lane.b32.xlu1 %v8526_v2, %s9734_s27 }
 0x378   : > { %v1569_v15 = vpop.f32.mrb[20].mxu0 }
 0x379   : > { %v8206_v60 = vpop.f32.mrb[21].mxu0  ;;  %v1570_v37 = vadd.f32 %v10459_v62, %v1569_v15 }
 0x37a   : > { %v1572_v16 = vpop.f32.mrb[22].mxu0 }
 0x37b   : > { %v1573_v4 = vadd.f32 %v10459_v62, %v1572_v16  ;;  %3840 = vrot.lane.b32.xlu0 %v10482_v52, %s9740_s25  ;;  %2823 = vrot.lane.b32.xlu1 %v10482_v52, %s9737_s30  ;;  %v8207_v13 = vpop.f32.mrb[23].mxu0 }
 0x37d   : > { %v10511_v59 = vpack.c.bf16 %v1573_v4, %v1570_v37 }
 0x37f   : > { %15595 = vst [vmem:[#allocation11_spill] sm:$0xff] %v10511_v59  ;;  %2415 = vrot.lane.b32.xlu0 %v10482_v52, %s9739_s16  ;;  %8542 = vrot.lane.b32.xlu1 %v8541_v12, %s9735_s5 }
 0x380   : > { %v1577_v14 = vpop.f32.mrb[24].mxu0 }
 0x381   : > { %v8210_v61 = vpop.f32.mrb[25].mxu0  ;;  %v1578_v17 = vadd.f32 %v10459_v62, %v1577_v14 }
 0x382   : > { %v1580_v8 = vpop.f32.mrb[26].mxu0 }
 0x383   : > { %v1581_v7 = vadd.f32 %v10459_v62, %v1580_v8  ;;  %8547 = vrot.lane.b32.xlu0 %v8541_v12, %s9736_s11  ;;  %8552 = vrot.lane.b32.xlu1 %v8541_v12, %s9734_s27  ;;  %v8211_v34 = vpop.f32.mrb[27].mxu0 }
 0x385   : > { %v10520_v25 = vpack.c.bf16 %v1581_v7, %v1578_v17 }
 0x387   : > { %15596 = vst [vmem:[#allocation12_spill] sm:$0xff] %v10520_v25  ;;  %8557 = vrot.lane.b32.xlu0 %v8541_v12, %s9738_s20  ;;  %2825 = vrot.lane.b32.xlu1 %v10491_v11, %s9737_s30 }
 0x388   : > { %v1585_v35 = vpop.f32.mrb[28].mxu0 }
 0x389   : > { %v8214_v23 = vpop.f32.mrb[29].mxu0  ;;  %v1586_v36 = vadd.f32 %v10459_v62, %v1585_v35 }
 0x38a   : > { %v1588_v63 = vpop.f32.mrb[30].mxu0 }
 0x38b   : > { %v1589_v0 = vadd.f32 %v10459_v62, %v1588_v63  ;;  %3842 = vrot.lane.b32.xlu0 %v10491_v11, %s9740_s25  ;;  %2417 = vrot.lane.b32.xlu1 %v10491_v11, %s9739_s16  ;;  %v8215_v10 = vpop.f32.mrb[31].mxu0 }
 0x38d   : > { %v10531_v19 = vpack.c.bf16 %v1589_v0, %v1586_v36 }
 0x38f   : > { %15597 = vst [vmem:[#allocation13_spill] sm:$0xff] %v10531_v19  ;;  %3844 = vrot.lane.b32.xlu1 %v10501_v6, %s9740_s25  ;;  %2827 = vrot.lane.b32.xlu0 %v10501_v6, %s9737_s30 }
 0x390   : > { %v1593_v55 = vpop.f32.mrb[32].mxu0 }
 0x391   : > { %v1594_v9 = vadd.f32 %v10459_v62, %v1593_v55  ;;  %v8218_v47 = vpop.f32.mrb[33].mxu0 }
 0x392   : > { %v1596_v20 = vpop.f32.mrb[34].mxu0 }
 0x393   : > { %v1597_v29 = vadd.f32 %v10459_v62, %v1596_v20  ;;  %2419 = vrot.lane.b32.xlu1 %v10501_v6, %s9739_s16  ;;  %3846 = vrot.lane.b32.xlu0 %v10511_v59, %s9740_s25  ;;  %v8219_v30 = vpop.f32.mrb[35].mxu0  ;;  %v8571_v26 = vpack.i.bf16 %v1562_v5, %v1594_v9 }
 0x395   : > { %v10543_v33 = vpack.c.bf16 %v1597_v29, %v1594_v9  ;;  %v8581_v39 = vpack.i.bf16 %v1565_v32, %v1597_v29 }
 0x397   : > { %15598 = vst [vmem:[#allocation14_spill] sm:$0xff] %v10543_v33  ;;  %2421 = vrot.lane.b32.xlu0 %v10511_v59, %s9739_s16  ;;  %2829 = vrot.lane.b32.xlu1 %v10511_v59, %s9737_s30 }
 0x398   : > { %v1601_v3 = vpop.f32.mrb[36].mxu0 }
 0x399   : > { %v1602_v21 = vadd.f32 %v10459_v62, %v1601_v3  ;;  %v8222_v40 = vpop.f32.mrb[37].mxu0 }
 0x39a   : > { %v1604_v49 = vpop.f32.mrb[38].mxu0 }
 0x39b   : > { %v1605_v24 = vadd.f32 %v10459_v62, %v1604_v49  ;;  %3848 = vrot.lane.b32.xlu0 %v10520_v25, %s9740_s25  ;;  %2831 = vrot.lane.b32.xlu1 %v10520_v25, %s9737_s30  ;;  %v8223_v43 = vpop.f32.mrb[39].mxu0  ;;  %v8611_v38 = vpack.i.bf16 %v1570_v37, %v1602_v21 }
 0x39d   : > { %v10555_v46 = vpack.c.bf16 %v1605_v24, %v1602_v21  ;;  %v8621_v54 = vpack.i.bf16 %v1573_v4, %v1605_v24 }
 0x39f   : > { %15599 = vst [vmem:[#allocation15_spill] sm:$0xff] %v10555_v46  ;;  %2423 = vrot.lane.b32.xlu0 %v10520_v25, %s9739_s16  ;;  %3850 = vrot.lane.b32.xlu1 %v10531_v19, %s9740_s25 }
 0x3a0   : > { %v1609_v48 = vpop.f32.mrb[40].mxu0 }
 0x3a1   : > { %v1610_v18 = vadd.f32 %v10459_v62, %v1609_v48  ;;  %v8226_v45 = vpop.f32.mrb[41].mxu0 }
 0x3a2   : > { %v1612_v42 = vpop.f32.mrb[42].mxu0 }
 0x3a3   : > { %v1613_v2 = vadd.f32 %v10459_v62, %v1612_v42  ;;  %2833 = vrot.lane.b32.xlu0 %v10531_v19, %s9737_s30  ;;  %8572 = vrot.lane.b32.xlu1 %v8571_v26, %s9734_s27  ;;  %v8227_v22 = vpop.f32.mrb[43].mxu0  ;;  %v10566_v50 = vpack.i.bf16 %v1578_v17, %v1610_v18 }
 0x3a5   : > { %v10568_v27 = vpack.c.bf16 %v1613_v2, %v1610_v18  ;;  %v8661_v51 = vpack.i.bf16 %v1581_v7, %v1613_v2 }
 0x3a7   : > { %15600 = vst [vmem:[#allocation16_spill] sm:$0xff] %v10568_v27  ;;  %2425 = vrot.lane.b32.xlu0 %v10531_v19, %s9739_s16  ;;  %8582 = vrot.lane.b32.xlu1 %v8581_v39, %s9735_s5 }
 0x3a8   : > { %v1617_v28 = vpop.f32.mrb[44].mxu0 }
 0x3a9   : > { %v1618_v57 = vadd.f32 %v10459_v62, %v1617_v28  ;;  %v8230_v12 = vpop.f32.mrb[45].mxu0 }
 0x3aa   : > { %v1620_v41 = vpop.f32.mrb[46].mxu0 }
 0x3ab   : > { %v1621_v53 = vadd.f32 %v10459_v62, %v1620_v41  ;;  %8562 = vrot.lane.b32.xlu0 %v8571_v26, %s9735_s5  ;;  %2835 = vrot.lane.b32.xlu1 %v10543_v33, %s9737_s30  ;;  %v8231_v31 = vpop.f32.mrb[47].mxu0  ;;  %v10578_v5 = vpack.i.bf16 %v1586_v36, %v1618_v57 }
 0x3ad   : > { %v10580_v32 = vpack.c.bf16 %v1621_v53, %v1618_v57  ;;  %v10582_v58 = vpack.i.bf16 %v1589_v0, %v1621_v53 }
 0x3af   : > { %15601 = vst [vmem:[#allocation17_spill] sm:$0xff] %v10580_v32  ;;  %8567 = vrot.lane.b32.xlu0 %v8571_v26, %s9736_s11  ;;  %8612 = vrot.lane.b32.xlu1 %v8611_v38, %s9734_s27 }
 0x3b0   : > { %v1625_v15 = vpop.f32.mrb[48].mxu0 }
 0x3b1   : > { %v8234_v60 = vpop.f32.mrb[49].mxu0  ;;  %v1626_v55 = vadd.f32 %v10459_v62, %v1625_v15 }
 0x3b2   : > { %v1628_v16 = vpop.f32.mrb[50].mxu0 }
 0x3b3   : > { %8577 = vrot.lane.b32.xlu0 %v8571_v26, %s9738_s20  ;;  %8617 = vrot.lane.b32.xlu1 %v8611_v38, %s9738_s20  ;;  %v8235_v37 = vpop.f32.mrb[51].mxu0  ;;  %v10657_v20 = vpack.c.bf16 %v1626_v55, %v1626_v55 }
 0x3b5   : > { %15606 = vst [vmem:[#allocation22_spill] sm:$0xff] %v10657_v20 }
 0x3b7   : > { %8587 = vrot.lane.b32.xlu0 %v8581_v39, %s9736_s11  ;;  %8622 = vrot.lane.b32.xlu1 %v8621_v54, %s9735_s5 }
 0x3bb   : > { %8592 = vrot.lane.b32.xlu0 %v8581_v39, %s9734_s27  ;;  %8637 = vrot.lane.b32.xlu1 %v8621_v54, %s9738_s20 }
 0x3bf   : > { %8597 = vrot.lane.b32.xlu0 %v8581_v39, %s9738_s20  ;;  %3854 = vrot.lane.b32.xlu1 %v10555_v46, %s9740_s25 }
 0x3c3   : > { %3852 = vrot.lane.b32.xlu0 %v10543_v33, %s9740_s25  ;;  %8652 = vrot.lane.b32.xlu1 %v10566_v50, %s9734_s27 }
 0x3c7   : > { %8602 = vrot.lane.b32.xlu0 %v8611_v38, %s9735_s5  ;;  %8662 = vrot.lane.b32.xlu1 %v8661_v51, %s9735_s5 }
 0x3c9   : > { %v10601_v4 = vpop.permute.xlu1 %8492  ;;  %v10603_v13 = vpop.permute.xlu0 %8482 }
 0x3ca   : > { %v8484_v57 = vunpack.i.l.bf16 %v10603_v13  ;;  %v8485_v53 = vunpack.i.h.bf16 %v10603_v13 }
 0x3cb   : > { %8607 = vrot.lane.b32.xlu0 %v8611_v38, %s9736_s11  ;;  %8667 = vrot.lane.b32.xlu1 %v8661_v51, %s9736_s11 }
 0x3cd   : > { %v10607_v14 = vpop.permute.xlu1 %2819  ;;  %v10609_v61 = vpop.permute.xlu0 %8487 }
 0x3ce   : > { %15602 = vst [vmem:[#allocation18_spill] sm:$0xff] %v10607_v14 }
 0x3cf   : > { %8627 = vrot.lane.b32.xlu0 %v8621_v54, %s9736_s11  ;;  %8672 = vrot.lane.b32.xlu1 %v8661_v51, %s9734_s27 }
 0x3d1   : > { %v10613_v8 = vpop.permute.xlu1 %2411  ;;  %v10615_v17 = vpop.permute.xlu0 %8497 }
 0x3d3   : > { %8632 = vrot.lane.b32.xlu0 %v8621_v54, %s9734_s27  ;;  %8677 = vrot.lane.b32.xlu1 %v8661_v51, %s9738_s20 }
 0x3d5   : > { %v10619_v7 = vpop.permute.xlu1 %8502  ;;  %v10621_v34 = vpop.permute.xlu0 %3836 }
 0x3d6   : > { %15603 = vst [vmem:[#allocation19_spill] sm:$0xff] %v10621_v34  ;;  %v8505_v16 = vunpack.i.h.bf16 %v10619_v7 }
 0x3d7   : > { %2837 = vrot.lane.b32.xlu0 %v10555_v46, %s9737_s30  ;;  %2839 = vrot.lane.b32.xlu1 %v10568_v27, %s9737_s30 }
 0x3d9   : > { %v10627_v35 = vpop.permute.xlu1 %8507  ;;  %v10629_v23 = vpop.permute.xlu0 %8517 }
 0x3db   : > { %2429 = vrot.lane.b32.xlu0 %v10555_v46, %s9739_s16  ;;  %8702 = vrot.lane.b32.xlu1 %v10582_v58, %s9735_s5 }
 0x3dd   : > { %v10635_v63 = vpop.permute.xlu1 %8512  ;;  %v10637_v36 = vpop.permute.xlu0 %2821 }
 0x3de   : > { %15604 = vst [vmem:[#allocation20_spill] sm:$0xff] %v10637_v36 }
 0x3df   : > { %8642 = vrot.lane.b32.xlu0 %v10566_v50, %s9735_s5  ;;  %8707 = vrot.lane.b32.xlu1 %v10582_v58, %s9736_s11 }
 0x3e1   : > { %v10643_v0 = vpop.permute.xlu1 %3838  ;;  %v10645_v10 = vpop.permute.xlu0 %2413 }
 0x3e2   : > { %15605 = vst [vmem:[#allocation21_spill] sm:$0xff] %v10643_v0 }
 0x3e3   : > { %8647 = vrot.lane.b32.xlu0 %v10566_v50, %s9736_s11  ;;  %8712 = vrot.lane.b32.xlu1 %v10582_v58, %s9734_s27 }
 0x3e5   : > { %v8523_v9 = vpop.permute.xlu1 %8522  ;;  %v10652_v47 = vpop.permute.xlu0 %8527 }
 0x3e6   : > { %v8524_v13 = vunpack.i.l.bf16 %v8523_v9  ;;  %v8525_v56 = vunpack.i.h.bf16 %v8523_v9  ;;  %v8509_v9 = vunpack.i.l.bf16 %v10627_v35 }
 0x3e7   : > { %8657 = vrot.lane.b32.xlu0 %v10566_v50, %s9738_s20  ;;  %4760 = vrot.lane.b32.xlu1 %v1626_v55, %s9738_s20 }
 0x3e9   : > { %v10659_v29 = vpop.permute.xlu1 %8532  ;;  %v10661_v30 = vpop.permute.xlu0 %8537 }
 0x3eb   : > { %8682 = vrot.lane.b32.xlu0 %v10578_v5, %s9735_s5  ;;  %2843 = vrot.lane.b32.xlu1 %v10657_v20, %s9737_s30 }
 0x3ed   : > { %v10667_v62 = vpop.permute.xlu1 %2823  ;;  %v10669_v26 = vpop.permute.xlu0 %3840 }
 0x3ee   : > { %15607 = vst [vmem:[#allocation23_spill] sm:$0xff] %v10667_v62  ;;  %15608 = vst [vmem:[#allocation24_spill] sm:$0xff] %v10669_v26 }
 0x3ef   : > { %8687 = vrot.lane.b32.xlu0 %v10578_v5, %s9736_s11 }
 0x3f1   : > { %v8543_v39 = vpop.permute.xlu1 %8542  ;;  %v10673_v3 = vpop.permute.xlu0 %2415 }
 0x3f3   : > { %8692 = vrot.lane.b32.xlu0 %v10578_v5, %s9734_s27 }
 0x3f5   : > { %v10677_v21 = vpop.permute.xlu1 %8552  ;;  %v10679_v40 = vpop.permute.xlu0 %8547 }
 0x3f7   : > { %8697 = vrot.lane.b32.xlu0 %v10578_v5, %s9738_s20 }
 0x3f9   : > { %v10683_v49 = vpop.permute.xlu1 %2825  ;;  %v10685_v24 = vpop.permute.xlu0 %8557 }
 0x3fa   : > { %15609 = vst [vmem:[#allocation25_spill] sm:$0xff] %v10683_v49 }
 0x3fb   : > { %8717 = vrot.lane.b32.xlu0 %v10582_v58, %s9738_s20  ;;  %v8504_v58 = vunpack.i.l.bf16 %v10619_v7  ;;  %v8544_v7 = vunpack.i.l.bf16 %v8543_v39 }
 0x3fd   : > { %v10689_v43 = vpop.permute.xlu1 %2417  ;;  %v10691_v38 = vpop.permute.xlu0 %3842 }
 0x3fe   : > { %15610 = vst [vmem:[#allocation26_spill] sm:$0xff] %v10691_v38 }
 0x3ff   : > { %2841 = vrot.lane.b32.xlu0 %v10580_v32, %s9737_s30 }
 0x401   : > { %v10695_v54 = vpop.permute.xlu1 %3844  ;;  %v10697_v48 = vpop.permute.xlu0 %2827 }
 0x402   : > { %15611 = vst [vmem:[#allocation27_spill] sm:$0xff] %v10695_v54  ;;  %15612 = vst [vmem:[#allocation28_spill] sm:$0xff] %v10697_v48  ;;  %v8545_v54 = vunpack.i.h.bf16 %v8543_v39  ;;  %v8529_v39 = vunpack.i.l.bf16 %v10652_v47 }
 0x403   : > { %1717 = vrot.lane.b32.xlu0 %v1626_v55, %s9735_s5 }
 0x405   : > { %v10700_v18 = vpop.permute.xlu1 %2419  ;;  %v10702_v45 = vpop.permute.xlu0 %3846 }
 0x406   : > { %15613 = vst [vmem:[#allocation29_spill] sm:$0xff] %v10702_v45 }
 0x407   : > { %2726 = vrot.lane.b32.xlu0 %v1626_v55, %s9736_s11  ;;  %s16473_s11 = scalar_lea.vmem %s15262_s9, %s9868_s28 }
 0x409   : > { %v10705_v42 = vpop.permute.xlu1 %2829  ;;  %v10707_v2 = vpop.permute.xlu0 %2421 }
 0x40a   : > { %15614 = vst [vmem:[#allocation30_spill] sm:$0xff] %v10705_v42 }
 0x40b   : > { %3743 = vrot.lane.b32.xlu0 %v1626_v55, %s9734_s27  ;;  %s16463_s27 = scalar_lea.vmem %s15261_s8, %s9868_s28 }
 0x40d   : > { %v10710_v22 = vpop.permute.xlu1 %2831  ;;  %v10712_v50 = vpop.permute.xlu0 %3848 }
 0x40e   : > { %15615 = vst [vmem:[#allocation31_spill] sm:$0xff] %v10710_v22  ;;  %15616 = vst [vmem:[#allocation32_spill] sm:$0xff] %v10712_v50 }
 0x411   : > { %v10714_v51 = vpop.permute.xlu1 %3850  ;;  %v10716_v28 = vpop.permute.xlu0 %2423 }
 0x412   : > { %15617 = vst [vmem:[#allocation33_spill] sm:$0xff] %v10714_v51 }
 0x414   : > { %1744 = vxpose.xlu1.b32.start [1/16] (narrow) %v8484_v57, 8 }
 0x415   : > { %v10719_v12 = vpop.permute.xlu1 %8572  ;;  %v10721_v41 = vpop.permute.xlu0 %2833 }
 0x416   : > { %15618 = vst [vmem:[#allocation34_spill] sm:$0xff] %v10721_v41 }
 0x418   : > { %1745 = vxpose.xlu1.b32.cont [2/16] (narrow) %v8485_v53, 8 }
 0x419   : > { %v10724_v31 = vpop.permute.xlu1 %8582  ;;  %v10726_v5 = vpop.permute.xlu0 %2425 }
 0x41a   : > { %v8584_v46 = vunpack.i.l.bf16 %v10724_v31 }
 0x41c   : > { %1746 = vxpose.xlu1.b32.cont [3/16] (narrow) %v8504_v58, 8  ;;  %v8489_v58 = vunpack.i.l.bf16 %v10609_v61 }
 0x41d   : > { %v10729_v15 = vpop.permute.xlu1 %2835  ;;  %v10731_v60 = vpop.permute.xlu0 %8562 }
 0x41e   : > { %15619 = vst [vmem:[#allocation35_spill] sm:$0xff] %v10729_v15 }
 0x420   : > { %1747 = vxpose.xlu1.b32.cont [4/16] (narrow) %v8505_v16, 8  ;;  %v8490_v16 = vunpack.i.h.bf16 %v10609_v61 }
 0x421   : > { %v10734_v37 = vpop.permute.xlu1 %8612  ;;  %v10736_v55 = vpop.permute.xlu0 %8567 }
 0x424   : > { %1748 = vxpose.xlu1.b32.cont [5/16] (narrow) %v8524_v13, 8 }
 0x425   : > { %v10738_v57 = vpop.permute.xlu1 %8617  ;;  %v10740_v53 = vpop.permute.xlu0 %8577 }
 0x428   : > { %1749 = vxpose.xlu1.b32.cont [6/16] (narrow) %v8525_v56, 8  ;;  %v8565_v56 = vunpack.i.h.bf16 %v10731_v60 }
 0x429   : > { %v10743_v51 = vpop.permute.xlu1 %8622  ;;  %v10745_v50 = vpop.permute.xlu0 %8587  ;;  %2753 = vxpose.xlu0.b32.start [1/16] (narrow) %v8489_v58, 8  ;;  %v8510_v58 = vunpack.i.h.bf16 %v10627_v35  ;;  %v8530_v35 = vunpack.i.h.bf16 %v10652_v47  ;;  %v8570_v47 = vunpack.i.h.bf16 %v10736_v55 }
 0x42c   : > { %1750 = vxpose.xlu1.b32.cont [7/16] (narrow) %v8544_v7, 8  ;;  %v8585_v7 = vunpack.i.h.bf16 %v10724_v31  ;;  %v8535_v31 = vunpack.i.h.bf16 %v10659_v29 }
 0x42d   : > { %v10748_v45 = vpop.permute.xlu1 %8637  ;;  %v10750_v13 = vpop.permute.xlu0 %8592  ;;  %2754 = vxpose.xlu0.b32.cont [2/16] (narrow) %v8490_v16, 8 }
 0x430   : > { %1751 = vxpose.xlu1.b32.cont [8/16] (narrow) %v8545_v54, 8 }
 0x431   : > { %v10753_v38 = vpop.permute.xlu0 %8597  ;;  %2755 = vxpose.xlu0.b32.cont [3/16] (narrow) %v8509_v9, 8  ;;  %v10757_v26 = vpop.permute.xlu1 %3854 }
 0x432   : > { %15620 = vst [vmem:[#allocation36_spill] sm:$0xff] %v10757_v26 }
 0x434   : > { %1752 = vxpose.xlu1.b32.cont [9/16] (narrow) %v8565_v56, 8  ;;  %v8625_v56 = vunpack.i.h.bf16 %v10743_v51 }
 0x435   : > { %v10759_v61 = vpop.permute.xlu0 %3852  ;;  %2756 = vxpose.xlu0.b32.cont [4/16] (narrow) %v8510_v58, 8  ;;  %v10763_v16 = vpop.permute.xlu1 %8652  ;;  %v8549_v58 = vunpack.i.l.bf16 %v10679_v40 }
 0x436   : > { %15621 = vst [vmem:[#allocation37_spill] sm:$0xff] %v10759_v61 }
 0x438   : > { %1753 = vxpose.xlu1.b32.cont [10/16] (narrow) %v8585_v7, 8 }
 0x439   : > { %v10765_v54 = vpop.permute.xlu0 %8602  ;;  %2757 = vxpose.xlu0.b32.cont [5/16] (narrow) %v8529_v39, 8  ;;  %v10773_v61 = vpop.permute.xlu1 %8662  ;;  %v8550_v39 = vunpack.i.h.bf16 %v10679_v40 }
 0x43a   : > { %v8605_v9 = vunpack.i.h.bf16 %v10765_v54 }
 0x43c   : > { %1754 = vxpose.xlu1.b32.cont [11/16] (narrow) %v8605_v9, 8 }
 0x43d   : > { %v10769_v26 = vpop.permute.xlu0 %8607  ;;  %2758 = vxpose.xlu0.b32.cont [6/16] (narrow) %v8530_v35, 8  ;;  %v10778_v0 = vpop.permute.xlu1 %8667  ;;  %v8590_v35 = vunpack.i.h.bf16 %v10745_v50 }
 0x440   : > { %1755 = vxpose.xlu1.b32.cont [12/16] (narrow) %v8625_v56, 8 }
 0x441   : > { %v10775_v7 = vpop.permute.xlu0 %8627  ;;  %2759 = vxpose.xlu0.b32.cont [7/16] (narrow) %v8549_v58, 8  ;;  %v10786_v15 = vpop.permute.xlu1 %8672  ;;  %v8610_v58 = vunpack.i.h.bf16 %v10769_v26 }
 0x445   : > { %v10780_v34 = vpop.permute.xlu0 %8632  ;;  %2760 = vxpose.xlu0.b32.cont [8/16] (narrow) %v8550_v39, 8  ;;  %v10791_v40 = vpop.permute.xlu1 %8677  ;;  %v8630_v39 = vunpack.i.h.bf16 %v10775_v7 }
 0x449   : > { %v10783_v9 = vpop.permute.xlu0 %2837  ;;  %2761 = vxpose.xlu0.b32.cont [9/16] (narrow) %v8570_v47, 8  ;;  %v8665_v47 = vunpack.i.h.bf16 %v10773_v61  ;;  %v10798_v48 = vpop.permute.xlu1 %2839 }
 0x44a   : > { %15622 = vst [vmem:[#allocation38_spill] sm:$0xff] %v10783_v9  ;;  %15624 = vst [vmem:[#allocation40_spill] sm:$0xff] %v10798_v48  ;;  %v8495_v48 = vunpack.i.h.bf16 %v10601_v4 }
 0x44d   : > { %v10788_v56 = vpop.permute.xlu0 %2429  ;;  %2762 = vxpose.xlu0.b32.cont [10/16] (narrow) %v8590_v35, 8 }
 0x44e   : > { %15623 = vst [vmem:[#allocation39_spill] sm:$0xff] %v10788_v56  ;;  %v8670_v56 = vunpack.i.h.bf16 %v10778_v0 }
 0x451   : > { %v8643_v41 = vpop.permute.xlu0 %8642  ;;  %2763 = vxpose.xlu0.b32.cont [11/16] (narrow) %v8610_v58, 8  ;;  %v8703_v58 = vpop.permute.xlu1 %8702 }
 0x452   : > { %v8645_v22 = vunpack.i.h.bf16 %v8643_v41 }
 0x454   : > { %1756 = vxpose.xlu1.b32.cont [13/16] (narrow) %v8645_v22, 8 }
 0x455   : > { %v10794_v42 = vpop.permute.xlu0 %8647  ;;  %2764 = vxpose.xlu0.b32.cont [12/16] (narrow) %v8630_v39, 8  ;;  %v8705_v39 = vunpack.i.h.bf16 %v8703_v58  ;;  %v10806_v14 = vpop.permute.xlu1 %8707 }
 0x456   : > { %v8650_v9 = vunpack.i.h.bf16 %v10794_v42 }
 0x458   : > { %1757 = vxpose.xlu1.b32.cont [14/16] (narrow) %v8665_v47, 8  ;;  %v8494_v47 = vunpack.i.l.bf16 %v10601_v4 }
 0x459   : > { %v10800_v35 = vpop.permute.xlu0 %8657  ;;  %2765 = vxpose.xlu0.b32.cont [13/16] (narrow) %v8650_v9, 8  ;;  %v8710_v9 = vunpack.i.h.bf16 %v10806_v14 }
 0x45d   : > { %v8683_v49 = vpop.permute.xlu0 %8682  ;;  %2766 = vxpose.xlu0.b32.cont [14/16] (narrow) %v8670_v56, 8  ;;  %v8564_v56 = vunpack.i.l.bf16 %v10731_v60  ;;  %v8624_v60 = vunpack.i.l.bf16 %v10743_v51 }
 0x45e   : > { %v8685_v62 = vunpack.i.h.bf16 %v8683_v49  ;;  %v8684_v51 = vunpack.i.l.bf16 %v8683_v49  ;;  %v8635_v49 = vunpack.i.h.bf16 %v10780_v34 }
 0x460   : > { %1758 = vxpose.xlu1.b32.cont [15/16] (narrow) %v8685_v62, 8  ;;  %v8514_v62 = vunpack.i.l.bf16 %v10635_v63 }
 0x461   : > { %v10803_v22 = vpop.permute.xlu0 %8687 }
 0x462   : > { %v8690_v36 = vunpack.i.h.bf16 %v10803_v22 }
 0x464   : > { %2767 = vxpose.xlu0.b32.cont [15/16] (narrow) %v8690_v36, 8  ;;  %1759 = vxpose.xlu1.b32.end [16/16] (narrow) %v8705_v39, 8  ;;  %v15278_v36 = vmov 0   ;;  %v8515_v39 = vunpack.i.h.bf16 %v10635_v63  ;;  %v8554_v63 = vunpack.i.l.bf16 %v10677_v21 }
 0x465   : > { %1889 = vmatprep.mubr.bf16.mxu1 %v15278_v36  ;;  %2922 = vmatprep.mubr.bf16.mxu0 %v15278_v36  ;;  %v8693_v4 = vpop.permute.xlu0 %8692 }
 0x468   : > { %2768 = vxpose.xlu0.b32.end [16/16] (narrow) %v8710_v9, 8  ;;  %3770 = vxpose.xlu1.b32.start [1/16] (narrow) %v8494_v47, 8  ;;  %v8604_v47 = vunpack.i.l.bf16 %v10765_v54  ;;  %v8644_v9 = vunpack.i.l.bf16 %v8643_v41  ;;  %v8664_v54 = vunpack.i.l.bf16 %v10773_v61  ;;  %v8704_v41 = vunpack.i.l.bf16 %v8703_v58 }
 0x469   : > { %v8574_v61 = vunpack.i.l.bf16 %v10719_v12  ;;  %v8614_v58 = vunpack.i.l.bf16 %v10734_v37 }
 0x46c   : > { %1776 = vxpose.xlu0.b32.start [1/9] (short) (narrow) %v8564_v56, 8  ;;  %3771 = vxpose.xlu1.b32.cont [2/16] (narrow) %v8495_v48, 8  ;;  %v8534_v48 = vunpack.i.l.bf16 %v10659_v29  ;;  %v8575_v29 = vunpack.i.h.bf16 %v10719_v12  ;;  %v8634_v12 = vunpack.i.l.bf16 %v10780_v34  ;;  %v8500_v34 = vunpack.i.h.bf16 %v10615_v17 }
 0x470   : > { %1777 = vxpose.xlu0.b32.cont [2/9] (short) (narrow) %v8584_v46, 8  ;;  %3772 = vxpose.xlu1.b32.cont [3/16] (narrow) %v8514_v62, 8  ;;  %v10820_v46 = vpop.permute.xlu0 %8697  ;;  %v8555_v62 = vunpack.i.h.bf16 %v10677_v21  ;;  %v8594_v21 = vunpack.i.l.bf16 %v10750_v13 }
 0x474   : > { %1778 = vxpose.xlu0.b32.cont [3/9] (short) (narrow) %v8604_v47, 8  ;;  %3773 = vxpose.xlu1.b32.cont [4/16] (narrow) %v8515_v39, 8  ;;  %v10825_v56 = vpop.permute.xlu0 %8717  ;;  %v8595_v47 = vunpack.i.h.bf16 %v10750_v13  ;;  %v8713_v13 = vpop.permute.xlu1 %8712 }
 0x478   : > { %1779 = vxpose.xlu0.b32.cont [4/9] (short) (narrow) %v8624_v60, 8  ;;  %3774 = vxpose.xlu1.b32.cont [5/16] (narrow) %v8534_v48, 8  ;;  %v10828_v39 = vpop.permute.xlu0 %2841  ;;  %v8615_v60 = vunpack.i.h.bf16 %v10734_v37  ;;  %v8499_v37 = vunpack.i.l.bf16 %v10615_v17  ;;  %v8540_v17 = vunpack.i.h.bf16 %v10661_v30 }
 0x47c   : > { %1780 = vxpose.xlu0.b32.cont [5/9] (short) (narrow) %v8644_v9, 8  ;;  %3775 = vxpose.xlu1.b32.cont [6/16] (narrow) %v8535_v31, 8  ;;  %v1718_v48 = vpop.permute.xlu0 %1717  ;;  %v8655_v31 = vunpack.i.h.bf16 %v10763_v16  ;;  %v8675_v9 = vunpack.i.h.bf16 %v10786_v15 }
 0x480   : > { %1781 = vxpose.xlu0.b32.cont [6/9] (short) (narrow) %v8664_v54, 8  ;;  %3776 = vxpose.xlu1.b32.cont [7/16] (narrow) %v8554_v63, 8  ;;  %v8654_v63 = vunpack.i.l.bf16 %v10763_v16  ;;  %v8695_v54 = vunpack.i.h.bf16 %v8693_v4  ;;  %v8519_v16 = vunpack.i.l.bf16 %v10629_v23 }
 0x484   : > { %1782 = vxpose.xlu0.b32.cont [7/9] (short) (narrow) %v8684_v51, 8  ;;  %3777 = vxpose.xlu1.b32.cont [8/16] (narrow) %v8555_v62, 8  ;;  %v8674_v62 = vunpack.i.l.bf16 %v10786_v15  ;;  %v8715_v51 = vunpack.i.h.bf16 %v8713_v13  ;;  %v8520_v15 = vunpack.i.h.bf16 %v10629_v23  ;;  %v8639_v23 = vunpack.i.l.bf16 %v10748_v45 }
 0x488   : > { %1783 = vxpose.xlu0.b32.cont [8/9] (short) (narrow) %v8704_v41, 8  ;;  %3778 = vxpose.xlu1.b32.cont [9/16] (narrow) %v8575_v29, 8  ;;  %v8694_v29 = vunpack.i.l.bf16 %v8693_v4  ;;  %v10843_v41 = vpop.permute.xlu0 %2726  ;;  %v8539_v4 = vunpack.i.l.bf16 %v10661_v30  ;;  %v8679_v30 = vunpack.i.l.bf16 %v10791_v40 }
 0x48c   : > { %1784 = vxpose.xlu0.b32.end [9/9] (short) (narrow) %v1718_v48, 8  ;;  %3779 = vxpose.xlu1.b32.cont [10/16] (narrow) %v8595_v47, 8  ;;  %v8714_v47 = vunpack.i.l.bf16 %v8713_v13  ;;  %v3744_v48 = vpop.permute.xlu0 %3743  ;;  %v8640_v13 = vunpack.i.h.bf16 %v10748_v45 }
 0x490   : > { %3802 = vxpose.xlu0.b32.start [1/9] (short) (narrow) %v8574_v61, 8  ;;  %3780 = vxpose.xlu1.b32.cont [11/16] (narrow) %v8615_v60, 8  ;;  %v8579_v61 = vunpack.i.l.bf16 %v10740_v53  ;;  %v8599_v60 = vunpack.i.l.bf16 %v10753_v38 }
 0x494   : > { %3803 = vxpose.xlu0.b32.cont [2/9] (short) (narrow) %v8594_v21, 8  ;;  %3781 = vxpose.xlu1.b32.cont [12/16] (narrow) %v8635_v49, 8  ;;  %v8619_v21 = vunpack.i.l.bf16 %v10738_v57  ;;  %v8559_v49 = vunpack.i.l.bf16 %v10685_v24 }
 0x498   : > { %3804 = vxpose.xlu0.b32.cont [3/9] (short) (narrow) %v8614_v58, 8  ;;  %3782 = vxpose.xlu1.b32.cont [13/16] (narrow) %v8655_v31, 8  ;;  %v8560_v58 = vunpack.i.h.bf16 %v10685_v24  ;;  %v8659_v31 = vunpack.i.l.bf16 %v10800_v35  ;;  %v8719_v24 = vunpack.i.l.bf16 %v10825_v56 }
 0x49c   : > { %3805 = vxpose.xlu0.b32.cont [4/9] (short) (narrow) %v8634_v12, 8  ;;  %3783 = vxpose.xlu1.b32.cont [14/16] (narrow) %v8675_v9, 8  ;;  %v8580_v9 = vunpack.i.h.bf16 %v10740_v53  ;;  %v8600_v12 = vunpack.i.h.bf16 %v10753_v38  ;;  %v8660_v53 = vunpack.i.h.bf16 %v10800_v35  ;;  %v8680_v38 = vunpack.i.h.bf16 %v10791_v40 }
 0x49d   : > { %v8589_v35 = vunpack.i.l.bf16 %v10745_v50  ;;  %v8669_v50 = vunpack.i.l.bf16 %v10778_v0  ;;  %v8709_v0 = vunpack.i.l.bf16 %v10806_v14  ;;  %v15625_v14 = vld [vmem:[#allocation15_spill] sm:$0xff] }
 0x4a0   : > { %3806 = vxpose.xlu0.b32.cont [5/9] (short) (narrow) %v8654_v63, 8  ;;  %3784 = vxpose.xlu1.b32.cont [15/16] (narrow) %v8695_v54, 8  ;;  %v8699_v63 = vunpack.i.l.bf16 %v10820_v46  ;;  %v8620_v54 = vunpack.i.h.bf16 %v10738_v57  ;;  %v8720_v57 = vunpack.i.h.bf16 %v10825_v56 }
 0x4a4   : > { %3807 = vxpose.xlu0.b32.cont [6/9] (short) (narrow) %v8674_v62, 8  ;;  %3785 = vxpose.xlu1.b32.end [16/16] (narrow) %v8715_v51, 8  ;;  %v4761_v62 = vpop.permute.xlu1 %4760  ;;  %v8700_v51 = vunpack.i.h.bf16 %v10820_v46 }
 0x4a8   : > { %3808 = vxpose.xlu0.b32.cont [7/9] (short) (narrow) %v8694_v29, 8  ;;  %4787 = vxpose.xlu1.b32.start [1/16] (narrow) %v8499_v37, 8  ;;  %v10867_v37 = vpop.permute.xlu1 %2843  ;;  %v8569_v29 = vunpack.i.l.bf16 %v10736_v55  ;;  %v8629_v55 = vunpack.i.l.bf16 %v10775_v7 }
 0x4ac   : > { %3809 = vxpose.xlu0.b32.cont [8/9] (short) (narrow) %v8714_v47, 8  ;;  %4788 = vxpose.xlu1.b32.cont [2/16] (narrow) %v8500_v34, 8  ;;  %v10871_v45 = vpop.trf.xlu0  ;;  %v1760_v34 = vpop.trf.xlu1 }
 0x4ad   : > { %v1808_v47 = vpack.c.bf16 %v1760_v34, %v1760_v34 }
 0x4af   : > { %v1852_v46 = vsel %vm1850_vm8, %v1808_v47, 0 }
 0x4b0   : > { %3810 = vxpose.xlu0.b32.end [9/9] (short) (narrow) %v3744_v48, 8  ;;  %4789 = vxpose.xlu1.b32.cont [3/16] (narrow) %v8519_v16, 8  ;;  %v8609_v48 = vunpack.i.l.bf16 %v10769_v26  ;;  %v8649_v26 = vunpack.i.l.bf16 %v10794_v42 }
 0x4b4   : > { %4819 = vxpose.xlu0.b32.start [1/9] (short) (narrow) %v8579_v61, 8  ;;  %4790 = vxpose.xlu1.b32.cont [4/16] (narrow) %v8520_v15, 8  ;;  %v15626_v15 = vld [vmem:[#allocation18_spill] sm:$0xff]  ;;  %v15627_v61 = vld [vmem:[#allocation20_spill] sm:$0xff] }
 0x4b8   : > { %4820 = vxpose.xlu0.b32.cont [2/9] (short) (narrow) %v8599_v60, 8  ;;  %4791 = vxpose.xlu1.b32.cont [5/16] (narrow) %v8539_v4, 8  ;;  %v15628_v4 = vld [vmem:[#allocation23_spill] sm:$0xff]  ;;  %v15629_v60 = vld [vmem:[#allocation25_spill] sm:$0xff] }
 0x4bc   : > { %4821 = vxpose.xlu0.b32.cont [3/9] (short) (narrow) %v8619_v21, 8  ;;  %4792 = vxpose.xlu1.b32.cont [6/16] (narrow) %v8540_v17, 8  ;;  %v15630_v17 = vld [vmem:[#allocation28_spill] sm:$0xff]  ;;  %v15631_v21 = vld [vmem:[#allocation30_spill] sm:$0xff] }
 0x4c0   : > { %4822 = vxpose.xlu0.b32.cont [4/9] (short) (narrow) %v8639_v23, 8  ;;  %4793 = vxpose.xlu1.b32.cont [7/16] (narrow) %v8559_v49, 8 }
 0x4c4   : > { %4823 = vxpose.xlu0.b32.cont [5/9] (short) (narrow) %v8659_v31, 8  ;;  %4794 = vxpose.xlu1.b32.cont [8/16] (narrow) %v8560_v58, 8  ;;  %v15632_v58 = vld [vmem:[#allocation31_spill] sm:$0xff] }
 0x4c5   : > { %v15633_v31 = vld [vmem:[#allocation39_spill] sm:$0xff] }
 0x4c8   : > { %4824 = vxpose.xlu0.b32.cont [6/9] (short) (narrow) %v8679_v30, 8  ;;  %4795 = vxpose.xlu1.b32.cont [9/16] (narrow) %v8580_v9, 8 }
 0x4cc   : > { %4825 = vxpose.xlu0.b32.cont [7/9] (short) (narrow) %v8699_v63, 8  ;;  %4796 = vxpose.xlu1.b32.cont [10/16] (narrow) %v8600_v12, 8  ;;  %v15634_v12 = vld [vmem:[#allocation34_spill] sm:$0xff] }
 0x4d0   : > { %4826 = vxpose.xlu0.b32.cont [8/9] (short) (narrow) %v8719_v24, 8  ;;  %4797 = vxpose.xlu1.b32.cont [11/16] (narrow) %v8620_v54, 8 }
 0x4d4   : > { %4827 = vxpose.xlu0.b32.end [9/9] (short) (narrow) %v4761_v62, 8  ;;  %4798 = vxpose.xlu1.b32.cont [12/16] (narrow) %v8640_v13, 8  ;;  %v15635_v13 = vld [vmem:[#allocation35_spill] sm:$0xff]  ;;  %v15636_v62 = vld [vmem:[#allocation38_spill] sm:$0xff] }
 0x4d8   : > { %4799 = vxpose.xlu1.b32.cont [13/16] (narrow) %v8660_v53, 8  ;;  %v15637_v53 = vld [vmem:[#allocation40_spill] sm:$0xff] }
 0x4dc   : > { %4800 = vxpose.xlu1.b32.cont [14/16] (narrow) %v8680_v38, 8 }
 0x4e0   : > { %4801 = vxpose.xlu1.b32.cont [15/16] (narrow) %v8700_v51, 8 }
 0x4e4   : > { %4802 = vxpose.xlu1.b32.end [16/16] (narrow) %v8720_v57, 8 }
 0x4e8   : > { %2785 = vxpose.xlu1.b32.start [1/9] (short) (narrow) %v8569_v29, 8 }
 0x4ec   : > { %v1792_v16 = vpop.trf.xlu0  ;;  %2786 = vxpose.xlu1.b32.cont [2/9] (short) (narrow) %v8589_v35, 8 }
 0x4ed   : > { %v1809_v40 = vpack.c.bf16 %v1792_v16, %v1792_v16 }
 0x4ef   : > { %7885 = vmatprep.subr.msk.bf16.mxu1 %vm1850_vm8, %v1809_v40 }
 0x4f0   : > { %2787 = vxpose.xlu1.b32.cont [3/9] (short) (narrow) %v8609_v48, 8  ;;  %1858 = vmatpush1.bf16.msra.mxu1 %v1852_v46 }
 0x4f1   : > { %2492 = vmatprep.subr.bf16.mxu1 %v15278_v36 }
 0x4f3   : > { %7886 = vmatmul.mubr.msk.bf16.vlgmr.msra.gmra.mrb[0].mxu1 %vm1810_vm9, %v10463_v1 }
 0x4f4   : > { %2788 = vxpose.xlu1.b32.cont [4/9] (short) (narrow) %v8629_v55, 8  ;;  %2493 = vmatpush1.bf16.msra.mxu1 %v10613_v8  ;;  %v8689_v8 = vunpack.i.l.bf16 %v10803_v22 }
 0x4f5   : > { %2494 = vmatprep.subr.bf16.mxu1 %v15278_v36  ;;  %1899 = vmatprep.mubr.bf16.mxu1 %v15278_v36 }
 0x4f8   : > { %2789 = vxpose.xlu1.b32.cont [5/9] (short) (narrow) %v8649_v26, 8  ;;  %2495 = vmatpush1.bf16.msra.mxu1 %v10645_v10  ;;  %v3786_v10 = vpop.trf.xlu1 }
 0x4f9   : > { %2496 = vmatprep.subr.bf16.mxu1 %v15278_v36 }
 0x4fb   : > { %7887 = vmatmul.mubr.msk.bf16.gmra.mrb[4].mxu1 %vm1810_vm9, %v10472_v44 }
 0x4fc   : > { %2790 = vxpose.xlu1.b32.cont [6/9] (short) (narrow) %v8669_v50, 8  ;;  %2497 = vmatpush1.bf16.msra.mxu1 %v10673_v3 }
 0x4fd   : > { %2431 = vrot.lane.b32.xlu0 %v10568_v27, %s9739_s16  ;;  %2498 = vmatprep.subr.bf16.mxu1 %v15278_v36 }
 0x4fe   : > { %1909 = vmatprep.mubr.bf16.mxu1 %v15278_v36 }
 0x500   : > { %2791 = vxpose.xlu1.b32.cont [7/9] (short) (narrow) %v8689_v8, 8  ;;  %2499 = vmatpush1.bf16.msra.mxu1 %v10689_v43 }
 0x501   : > { %2433 = vrot.lane.b32.xlu0 %v10580_v32, %s9739_s16  ;;  %2500 = vmatprep.subr.bf16.mxu1 %v15278_v36 }
 0x503   : > { %7888 = vmatmul.mubr.msk.bf16.gmra.mrb[8].mxu1 %vm1810_vm9, %v10482_v52 }
 0x504   : > { %2792 = vxpose.xlu1.b32.cont [8/9] (short) (narrow) %v8709_v0, 8  ;;  %2501 = vmatpush1.bf16.msra.mxu1 %v10700_v18  ;;  %v2817_v18 = vpack.c.bf16 %v10871_v45, %v10871_v45 }
 0x505   : > { %4853 = vrot.lane.b32.xlu0 %v10463_v1, %s9742_s24  ;;  %2502 = vmatprep.subr.bf16.mxu1 %v15278_v36 }
 0x506   : > { %1919 = vmatprep.mubr.bf16.mxu1 %v15278_v36  ;;  %v2885_v7 = vsel %vm1850_vm8, %v2817_v18, 0 }
 0x508   : > { %2793 = vxpose.xlu1.b32.end [9/9] (short) (narrow) %v10843_v41, 8  ;;  %2503 = vmatpush1.bf16.msra.mxu1 %v10707_v2  ;;  %v3834_v2 = vpack.c.bf16 %v3786_v10, %v3786_v10  ;;  %v15638_v10 = vld [vmem:[#allocation19_spill] sm:$0xff] }
 0x509   : > { %4857 = vrot.lane.b32.xlu0 %v10482_v52, %s9742_s24  ;;  %2504 = vmatprep.subr.bf16.mxu1 %v15278_v36 }
 0x50a   : > { %v3902_v41 = vsel %vm1850_vm8, %v3834_v2, 0 }
 0x50b   : > { %7889 = vmatmul.mubr.msk.bf16.gmra.mrb[12].mxu1 %vm1810_vm9, %v10491_v11 }
 0x50c   : > { %2505 = vmatpush1.bf16.msra.mxu1 %v10716_v28  ;;  %1929 = vmatprep.mubr.bf16.mxu1 %v15278_v36 }
 0x50d   : > { %4859 = vrot.lane.b32.xlu0 %v10491_v11, %s9742_s24  ;;  %2506 = vmatprep.subr.bf16.mxu1 %v15278_v36 }
 0x510   : > { %2507 = vmatpush1.bf16.msra.mxu1 %v10726_v5  ;;  %v3818_v43 = vpop.trf.xlu0 }
 0x511   : > { %2508 = vmatprep.subr.bf16.mxu1 %v15278_v36  ;;  %v3835_v28 = vpack.c.bf16 %v3818_v43, %v3818_v43 }
 0x513   : > { %7890 = vmatmul.mubr.msk.bf16.gmra.mrb[16].mxu1 %vm1810_vm9, %v10501_v6 }
 0x514   : > { %1939 = vmatprep.mubr.bf16.mxu1 %v15278_v36 }
 0x51b   : > { %7891 = vmatmul.mubr.msk.bf16.gmra.mrb[20].mxu1 %vm1810_vm9, %v10511_v59 }
 0x51c   : > { %1949 = vmatprep.mubr.bf16.mxu1 %v15278_v36 }
 0x523   : > { %7892 = vmatmul.mubr.msk.bf16.gmra.mrb[24].mxu1 %vm1810_vm9, %v10520_v25 }
 0x524   : > { %1959 = vmatprep.mubr.bf16.mxu1 %v15278_v36 }
 0x526   : > { %3856 = vrot.lane.b32.xlu1 %v10568_v27, %s9740_s25 }
 0x528   : > { %v10960_v3 = vpop.trf.xlu1 }
 0x529   : > { %v4851_v50 = vpack.c.bf16 %v10960_v3, %v10960_v3 }
 0x52a   : > { %2427 = vrot.lane.b32.xlu1 %v10543_v33, %s9739_s16 }
 0x52b   : > { %7893 = vmatmul.mubr.msk.bf16.gmra.mrb[28].mxu1 %vm1810_vm9, %v10531_v19  ;;  %v4919_v43 = vsel %vm1850_vm8, %v4851_v50, 0 }
 0x52c   : > { %1969 = vmatprep.mubr.bf16.mxu1 %v15278_v36 }
 0x52e   : > { %3858 = vrot.lane.b32.xlu1 %v10580_v32, %s9740_s25 }
 0x532   : > { %2435 = vrot.lane.b32.xlu1 %v10657_v20, %s9739_s16  ;;  %s16474_s16 = scalar_lea.vmem %s15263_s10, %s9868_s28  ;;  %s16478_s28 = sld [smem:[#allocation3_spill]] }
 0x533   : > { %7894 = vmatmul.mubr.msk.bf16.gmra.mrb[32].mxu1 %vm1810_vm9, %v10543_v33 }
 0x534   : > { %1979 = vmatprep.mubr.bf16.mxu1 %v15278_v36  ;;  %v4835_v22 = vpop.trf.xlu0 }
 0x535   : > { %v4852_v56 = vpack.c.bf16 %v4835_v22, %v4835_v22 }
 0x536   : > { %3860 = vrot.lane.b32.xlu1 %v10657_v20, %s9740_s25 }
 0x538   : > { %p8036_p8 = scmp.ne.s32.totalorder %s16478_s28, 9 }
 0x53a   : > { %4855 = vrot.lane.b32.xlu1 %v10472_v44, %s9742_s24 }
 0x53b   : > { %7895 = vmatmul.mubr.msk.bf16.gmra.mrb[36].mxu1 %vm1810_vm9, %v15625_v14 }
 0x53c   : > { %1989 = vmatprep.mubr.bf16.mxu1 %v15278_v36 }
 0x543   : > { %7896 = vmatmul.mubr.msk.bf16.gmra.mrb[40].mxu1 %vm1810_vm9, %v10568_v27 }
 0x544   : > { %1999 = vmatprep.mubr.bf16.mxu1 %v15278_v36 }
 0x54b   : > { %7897 = vmatmul.mubr.msk.bf16.gmra.mrb[44].mxu1 %vm1810_vm9, %v10580_v32 }
 0x54c   : > { %2009 = vmatprep.mubr.bf16.mxu1 %v15278_v36 }
 0x553   : > { %7898 = vmatmul.mubr.msk.bf16.gmra.mrb[48].mxu1 %vm1810_vm9, %v10657_v20  ;;  %v15655_v20 = vmov 0  }
 0x568   : > { %v2801_v42 = vpop.trf.xlu1 }
 0x569   : > { %v2818_v5 = vpack.c.bf16 %v2801_v42, %v2801_v42 }
 0x56b   : > { %7912 = vmatprep.subr.msk.bf16.mxu0 %vm1850_vm8, %v2818_v5 }
 0x56c   : > { %2891 = vmatpush1.bf16.msra.mxu0 %v2885_v7 }
 0x56d   : > { %7939 = vmatprep.subr.msk.bf16.mxu0 %vm1850_vm8, %v3835_v28  ;;  %v15639_v28 = vmov 0.0  }
 0x56f   : > { %7913 = vmatmul.mubr.msk.bf16.vlgmr.msra.gmra.mrb[52].mxu0 %vm1810_vm9, %v15626_v15  ;;  %v2432_v9 = vpop.permute.xlu0 %2431 }
 0x570   : > { %3908 = vmatpush1.bf16.msra.mxu0 %v3902_v41  ;;  %2932 = vmatprep.mubr.bf16.mxu0 %v15278_v36  ;;  %v15640_v41 = vld [vmem:[#allocation21_spill] sm:$0xff] }
 0x571   : > { %7966 = vmatprep.subr.msk.bf16.mxu0 %vm1850_vm8, %v4852_v56 }
 0x573   : > { %v2434_v63 = vpop.permute.xlu0 %2433 }
 0x577   : > { %7914 = vmatmul.mubr.msk.bf16.gmra.mrb[56].mxu0 %vm1810_vm9, %v15627_v61 }
 0x578   : > { %2942 = vmatprep.mubr.bf16.mxu0 %v15278_v36 }
 0x57f   : > { %7915 = vmatmul.mubr.msk.bf16.gmra.mrb[60].mxu0 %vm1810_vm9, %v15628_v4 }
 0x580   : > { %2952 = vmatprep.mubr.bf16.mxu0 %v15278_v36 }
 0x587   : > { %7916 = vmatmul.mubr.msk.bf16.gmra.mrb[64].mxu0 %vm1810_vm9, %v15629_v60 }
 0x588   : > { %2962 = vmatprep.mubr.bf16.mxu0 %v15278_v36 }
 0x58f   : > { %7917 = vmatmul.mubr.msk.bf16.gmra.mrb[68].mxu0 %vm1810_vm9, %v15630_v17 }
 0x590   : > { %2972 = vmatprep.mubr.bf16.mxu0 %v15278_v36 }
 0x597   : > { %7918 = vmatmul.mubr.msk.bf16.gmra.mrb[72].mxu0 %vm1810_vm9, %v15631_v21 }
 0x598   : > { %v10986_v49 = vpop.permute.xlu1 %3856  ;;  %2982 = vmatprep.mubr.bf16.mxu0 %v15278_v36 }
 0x59c   : > { %v2428_v23 = vpop.permute.xlu1 %2427 }
 0x59d   : > { %2509 = vmatpush1.bf16.msra.mxu1 %v2428_v23 }
 0x59e   : > { %2510 = vmatprep.subr.bf16.mxu1 %v15278_v36 }
 0x59f   : > { %7919 = vmatmul.mubr.msk.bf16.gmra.mrb[76].mxu0 %vm1810_vm9, %v15632_v58 }
 0x5a0   : > { %2992 = vmatprep.mubr.bf16.mxu0 %v15278_v36  ;;  %v10995_v30 = vpop.permute.xlu1 %3858 }
 0x5a1   : > { %2511 = vmatpush1.bf16.msra.mxu1 %v15633_v31  ;;  %v15641_v31 = vld [vmem:[#allocation24_spill] sm:$0xff] }
 0x5a2   : > { %2512 = vmatprep.subr.bf16.mxu1 %v15278_v36 }
 0x5a4   : > { %v2436_v54 = vpop.permute.xlu1 %2435 }
 0x5a5   : > { %2513 = vmatpush1.bf16.msra.mxu1 %v2432_v9  ;;  %v2490_v24 = vsel %vm2488_vm10, %v2436_v54, 0 }
 0x5a6   : > { %2514 = vmatprep.subr.bf16.mxu1 %v15278_v36 }
 0x5a7   : > { %7920 = vmatmul.mubr.msk.bf16.gmra.mrb[80].mxu0 %vm1810_vm9, %v15634_v12 }
 0x5a8   : > { %3002 = vmatprep.mubr.bf16.mxu0 %v15278_v36 }
 0x5a9   : > { %2515 = vmatpush1.bf16.msra.mxu1 %v2434_v63 }
 0x5aa   : > { %2516 = vmatprep.subr.bf16.mxu1 %v15278_v36 }
 0x5ad   : > { %2517 = vmatpush1.bf16.msra.mxu1 %v2490_v24 }
 0x5ae   : > { %3509 = vmatprep.subr.bf16.mxu1 %v15278_v36 }
 0x5af   : > { %7921 = vmatmul.mubr.msk.bf16.gmra.mrb[84].mxu0 %vm1810_vm9, %v15635_v13 }
 0x5b0   : > { %3012 = vmatprep.mubr.bf16.mxu0 %v15278_v36 }
 0x5b7   : > { %7922 = vmatmul.mubr.msk.bf16.gmra.mrb[88].mxu0 %vm1810_vm9, %v15636_v62 }
 0x5b8   : > { %3022 = vmatprep.mubr.bf16.mxu0 %v15278_v36 }
 0x5bf   : > { %7923 = vmatmul.mubr.msk.bf16.gmra.mrb[92].mxu0 %vm1810_vm9, %v15637_v53 }
 0x5c0   : > { %3032 = vmatprep.mubr.bf16.mxu0 %v15278_v36 }
 0x5c6   : > { %v11013_v38 = vpop.f32.mrb[0].mxu1 }
 0x5c7   : > { %v11015_v51 = vpop.f32.mrb[1].mxu1  ;;  %7924 = vmatmul.mubr.msk.bf16.gmra.mrb[96].mxu0 %vm1810_vm9, %v10828_v39 }
 0x5c8   : > { %v11019_v57 = vpop.f32.mrb[2].mxu1  ;;  %v2019_v29 = vsel %vm2018_vm11, %v11015_v51, -inf  ;;  %3042 = vmatprep.mubr.bf16.mxu0 %v15278_v36 }
 0x5c9   : > { %v11024_v45 = vpop.f32.mrb[3].mxu1  ;;  %v2020_v34 = vmax.f32 %v11013_v38, %v2019_v29  ;;  %v15642_v29 = vld [vmem:[#allocation26_spill] sm:$0xff] }
 0x5ca   : > { %v2023_v47 = vsel %vm2018_vm11, %v11024_v45, -inf }
 0x5cb   : > { %2021 = vmax.xlane.f32.xlu0 %v2020_v34  ;;  %v2024_v35 = vmax.f32 %v11019_v57, %v2023_v47 }
 0x5cd   : > { %2025 = vmax.xlane.f32.xlu1 %v2024_v35 }
 0x5ce   : > { %v11030_v16 = vpop.f32.mrb[4].mxu1 }
 0x5cf   : > { %v11032_v39 = vpop.f32.mrb[5].mxu1  ;;  %7925 = vmatmul.mubr.msk.bf16.gmra.mrb[100].mxu0 %vm1810_vm9, %v10867_v37 }
 0x5d0   : > { %v11036_v40 = vpop.f32.mrb[6].mxu1  ;;  %v2027_v46 = vsel %vm2018_vm11, %v11032_v39, -inf  ;;  %3939 = vmatprep.mubr.bf16.mxu0 %v15278_v36 }
 0x5d1   : > { %v11041_v48 = vpop.f32.mrb[7].mxu1  ;;  %v2028_v55 = vmax.f32 %v11030_v16, %v2027_v46 }
 0x5d2   : > { %v2031_v26 = vsel %vm2018_vm11, %v11041_v48, -inf }
 0x5d3   : > { %2029 = vmax.xlane.f32.xlu1 %v2028_v55  ;;  %v2032_v37 = vmax.f32 %v11036_v40, %v2031_v26 }
 0x5d5   : > { %2033 = vmax.xlane.f32.xlu0 %v2032_v37 }
 0x5d6   : > { %v11049_v8 = vpop.f32.mrb[8].mxu1 }
 0x5d7   : > { %v11051_v0 = vpop.f32.mrb[9].mxu1  ;;  %7940 = vmatmul.mubr.msk.bf16.vlgmr.msra.gmra.mrb[104].mxu0 %vm1810_vm9, %v15638_v10  ;;  %v15643_v10 = vld [vmem:[#allocation27_spill] sm:$0xff] }
 0x5d8   : > { %4925 = vmatpush1.bf16.msra.mxu0 %v4919_v43  ;;  %v11056_v18 = vpop.f32.mrb[10].mxu1  ;;  %v2035_v42 = vsel %vm2018_vm11, %v11051_v0, -inf  ;;  %3949 = vmatprep.mubr.bf16.mxu0 %v15278_v36 }
 0x5d9   : > { %v11061_v3 = vpop.f32.mrb[11].mxu1  ;;  %v2036_v2 = vmax.f32 %v11049_v8, %v2035_v42  ;;  %8236 = vmatprep.subr.bf16.mxu0 %v15639_v28  ;;  %v15654_v28 = vld [vmem:[#allocation37_spill] sm:$0xff] }
 0x5da   : > { %v2039_v5 = vsel %vm2018_vm11, %v11061_v3, -inf }
 0x5db   : > { %2037 = vmax.xlane.f32.xlu0 %v2036_v2  ;;  %v2040_v7 = vmax.f32 %v11056_v18, %v2039_v5 }
 0x5dd   : > { %2041 = vmax.xlane.f32.xlu1 %v2040_v7 }
 0x5de   : > { %v11068_v22 = vpop.f32.mrb[12].mxu1 }
 0x5df   : > { %v11070_v56 = vpop.f32.mrb[13].mxu1  ;;  %7941 = vmatmul.mubr.msk.bf16.gmra.mrb[108].mxu0 %vm1810_vm9, %v15640_v41 }
 0x5e0   : > { %v11074_v15 = vpop.f32.mrb[14].mxu1  ;;  %v2043_v61 = vsel %vm2018_vm11, %v11070_v56, -inf  ;;  %3959 = vmatprep.mubr.bf16.mxu0 %v15278_v36 }
 0x5e1   : > { %v11079_v4 = vpop.f32.mrb[15].mxu1  ;;  %v2044_v60 = vmax.f32 %v11068_v22, %v2043_v61 }
 0x5e2   : > { %v2047_v17 = vsel %vm2018_vm11, %v11079_v4, -inf }
 0x5e3   : > { %2045 = vmax.xlane.f32.xlu1 %v2044_v60  ;;  %v2048_v21 = vmax.f32 %v11074_v15, %v2047_v17  ;;  %v15644_v17 = vld [vmem:[#allocation29_spill] sm:$0xff] }
 0x5e5   : > { %2049 = vmax.xlane.f32.xlu0 %v2048_v21 }
 0x5e6   : > { %v11085_v23 = vpop.f32.mrb[16].mxu1 }
 0x5e7   : > { %v11087_v58 = vpop.f32.mrb[17].mxu1  ;;  %7942 = vmatmul.mubr.msk.bf16.gmra.mrb[112].mxu0 %vm1810_vm9, %v15641_v31 }
 0x5e8   : > { %v11091_v9 = vpop.f32.mrb[18].mxu1  ;;  %v2051_v12 = vsel %vm2018_vm11, %v11087_v58, -inf  ;;  %3969 = vmatprep.mubr.bf16.mxu0 %v15278_v36 }
 0x5e9   : > { %v11096_v63 = vpop.f32.mrb[19].mxu1  ;;  %v2052_v54 = vmax.f32 %v11085_v23, %v2051_v12 }
 0x5ea   : > { %v2055_v24 = vsel %vm2018_vm11, %v11096_v63, -inf }
 0x5eb   : > { %2053 = vmax.xlane.f32.xlu0 %v2052_v54  ;;  %v2056_v13 = vmax.f32 %v11091_v9, %v2055_v24 }
 0x5ed   : > { %2057 = vmax.xlane.f32.xlu1 %v2056_v13 }
 0x5ee   : > { %v11102_v62 = vpop.f32.mrb[20].mxu1 }
 0x5ef   : > { %v11104_v53 = vpop.f32.mrb[21].mxu1  ;;  %7943 = vmatmul.mubr.msk.bf16.gmra.mrb[116].mxu0 %vm1810_vm9, %v15642_v29 }
 0x5f0   : > { %v11108_v34 = vpop.f32.mrb[22].mxu1  ;;  %v2059_v47 = vsel %vm2018_vm11, %v11104_v53, -inf  ;;  %3979 = vmatprep.mubr.bf16.mxu0 %v15278_v36 }
 0x5f1   : > { %v11113_v35 = vpop.f32.mrb[23].mxu1  ;;  %v2060_v46 = vmax.f32 %v11102_v62, %v2059_v47 }
 0x5f2   : > { %v2063_v55 = vsel %vm2018_vm11, %v11113_v35, -inf }
 0x5f3   : > { %2061 = vmax.xlane.f32.xlu1 %v2060_v46  ;;  %v2064_v26 = vmax.f32 %v11108_v34, %v2063_v55  ;;  %v15645_v46 = vld [vmem:[#allocation32_spill] sm:$0xff] }
 0x5f6   : > { %v11119_v50 = vpop.f32.mrb[24].mxu1 }
 0x5f7   : > { %2065 = vmax.xlane.f32.xlu1 %v2064_v26  ;;  %v11121_v37 = vpop.f32.mrb[25].mxu1  ;;  %7944 = vmatmul.mubr.msk.bf16.gmra.mrb[120].mxu0 %vm1810_vm9, %v15643_v10 }
 0x5f8   : > { %v11125_v43 = vpop.f32.mrb[26].mxu1  ;;  %v2067_v42 = vsel %vm2018_vm11, %v11121_v37, -inf  ;;  %3989 = vmatprep.mubr.bf16.mxu0 %v15278_v36 }
 0x5f9   : > { %v11130_v2 = vpop.f32.mrb[27].mxu1  ;;  %v2068_v5 = vmax.f32 %v11119_v50, %v2067_v42 }
 0x5fa   : > { %v2071_v7 = vsel %vm2018_vm11, %v11130_v2, -inf }
 0x5fb   : > { %2069 = vmax.xlane.f32.xlu0 %v2068_v5  ;;  %v2072_v41 = vmax.f32 %v11125_v43, %v2071_v7 }
 0x5fd   : > { %2073 = vmax.xlane.f32.xlu1 %v2072_v41 }
 0x5fe   : > { %v11136_v61 = vpop.f32.mrb[28].mxu1 }
 0x5ff   : > { %v11138_v60 = vpop.f32.mrb[29].mxu1  ;;  %7945 = vmatmul.mubr.msk.bf16.gmra.mrb[124].mxu0 %vm1810_vm9, %v15644_v17 }
 0x600   : > { %v11142_v21 = vpop.f32.mrb[30].mxu1  ;;  %v2075_v31 = vsel %vm2018_vm11, %v11138_v60, -inf  ;;  %3999 = vmatprep.mubr.bf16.mxu0 %v15278_v36 }
 0x601   : > { %v11147_v12 = vpop.f32.mrb[31].mxu1  ;;  %v2076_v54 = vmax.f32 %v11136_v61, %v2075_v31  ;;  %v15649_v31 = vld [vmem:[#allocation33_spill] sm:$0xff] }
 0x602   : > { %v2079_v24 = vsel %vm2018_vm11, %v11147_v12, -inf }
 0x603   : > { %2077 = vmax.xlane.f32.xlu0 %v2076_v54  ;;  %v2080_v13 = vmax.f32 %v11142_v21, %v2079_v24 }
 0x605   : > { %2081 = vmax.xlane.f32.xlu1 %v2080_v13 }
 0x606   : > { %v11153_v29 = vpop.f32.mrb[32].mxu1 }
 0x607   : > { %v11155_v47 = vpop.f32.mrb[33].mxu1  ;;  %7946 = vmatmul.mubr.msk.bf16.gmra.mrb[128].mxu0 %vm1810_vm9, %v15645_v46 }
 0x608   : > { %v11159_v55 = vpop.f32.mrb[34].mxu1  ;;  %v2083_v26 = vsel %vm2018_vm11, %v11155_v47, -inf  ;;  %4009 = vmatprep.mubr.bf16.mxu0 %v15278_v36 }
 0x609   : > { %15646 = vst [vmem:[#allocation18_spill] sm:$0xff] %v11159_v55  ;;  %v11164_v10 = vpop.f32.mrb[35].mxu1  ;;  %v2084_v42 = vmax.f32 %v11153_v29, %v2083_v26 }
 0x60a   : > { %15647 = vst [vmem:[#allocation20_spill] sm:$0xff] %v11164_v10  ;;  %v2087_v5 = vsel %vm2018_vm11, %v11164_v10, -inf }
 0x60b   : > { %2085 = vmax.xlane.f32.xlu0 %v2084_v42  ;;  %v2088_v7 = vmax.f32 %v11159_v55, %v2087_v5  ;;  %v15659_v55 = vld [vmem:[#allocation36_spill] sm:$0xff] }
 0x60e   : > { %v11170_v41 = vpop.f32.mrb[36].mxu1 }
 0x60f   : > { %v11172_v17 = vpop.f32.mrb[37].mxu1  ;;  %7947 = vmatmul.mubr.msk.bf16.gmra.mrb[132].mxu0 %vm1810_vm9, %v15649_v31 }
 0x610   : > { %15648 = vst [vmem:[#allocation23_spill] sm:$0xff] %v11172_v17  ;;  %v11176_v54 = vpop.f32.mrb[38].mxu1  ;;  %v2091_v24 = vsel %vm2018_vm11, %v11172_v17, -inf  ;;  %4019 = vmatprep.mubr.bf16.mxu0 %v15278_v36 }
 0x611   : > { %15650 = vst [vmem:[#allocation25_spill] sm:$0xff] %v11176_v54  ;;  %v11181_v13 = vpop.f32.mrb[39].mxu1  ;;  %v2092_v46 = vmax.f32 %v11170_v41, %v2091_v24 }
 0x612   : > { %15651 = vst [vmem:[#allocation28_spill] sm:$0xff] %v11181_v13  ;;  %v2095_v26 = vsel %vm2018_vm11, %v11181_v13, -inf }
 0x613   : > { %2093 = vmax.xlane.f32.xlu0 %v2092_v46  ;;  %v2096_v42 = vmax.f32 %v11176_v54, %v2095_v26 }
 0x616   : > { %4861 = vrot.lane.b32.xlu1 %v10501_v6, %s9742_s24  ;;  %v11189_v5 = vpop.f32.mrb[40].mxu1 }
 0x617   : > { %15652 = vst [vmem:[#allocation30_spill] sm:$0xff] %v11189_v5  ;;  %2097 = vmax.xlane.f32.xlu0 %v2096_v42  ;;  %v11191_v31 = vpop.f32.mrb[41].mxu1  ;;  %7948 = vmatmul.mubr.msk.bf16.gmra.mrb[136].mxu0 %vm1810_vm9, %v15654_v28 }
 0x618   : > { %15653 = vst [vmem:[#allocation31_spill] sm:$0xff] %v11191_v31  ;;  %v11195_v36 = vpop.f32.mrb[42].mxu1  ;;  %v2099_v24 = vsel %vm2018_vm11, %v11191_v31, -inf  ;;  %4029 = vmatprep.mubr.bf16.mxu0 %v15655_v20 }
 0x619   : > { %v11200_v46 = vpop.f32.mrb[43].mxu1  ;;  %v2100_v26 = vmax.f32 %v11189_v5, %v2099_v24 }
 0x61a   : > { %15656 = vst [vmem:[#allocation39_spill] sm:$0xff] %v11200_v46  ;;  %v11205_v32 = vsel %vm2018_vm11, %v11200_v46, -inf }
 0x61b   : > { %2101 = vmax.xlane.f32.xlu0 %v2100_v26 }
 0x61e   : > { %v11209_v28 = vpop.f32.mrb[44].mxu1 }
 0x61f   : > { %15657 = vst [vmem:[#allocation34_spill] sm:$0xff] %v11209_v28  ;;  %v11211_v10 = vpop.f32.mrb[45].mxu1  ;;  %7949 = vmatmul.mubr.msk.bf16.gmra.mrb[140].mxu0 %vm1810_vm9, %v15659_v55 }
 0x620   : > { %15658 = vst [vmem:[#allocation35_spill] sm:$0xff] %v11211_v10  ;;  %v11215_v31 = vpop.f32.mrb[46].mxu1  ;;  %4039 = vmatprep.mubr.bf16.mxu0 %v15655_v20  ;;  %v2107_v24 = vsel %vm2018_vm11, %v11211_v10, -inf }
 0x621   : > { %v11220_v46 = vpop.f32.mrb[47].mxu1  ;;  %v2108_v26 = vmax.f32 %v11209_v28, %v2107_v24 }
 0x622   : > { %15660 = vst [vmem:[#allocation38_spill] sm:$0xff] %v11220_v46  ;;  %v11225_v42 = vsel %vm2018_vm11, %v11220_v46, -inf }
 0x626   : > { %v11229_v55 = vpop.f32.mrb[48].mxu1 }
 0x627   : > { %15661 = vst [vmem:[#allocation40_spill] sm:$0xff] %v11229_v55  ;;  %v11231_v14 = vpop.f32.mrb[49].mxu1  ;;  %7950 = vmatmul.mubr.msk.bf16.gmra.mrb[144].mxu0 %vm1810_vm9, %v10986_v49  ;;  %v11237_v10 = vsel %vm1850_vm8, %v11229_v55, -inf  ;;  %v3861_v49 = vpop.permute.xlu1 %3860 }
 0x628   : > { %15662 = vst [vmem:[#allocation19_spill] sm:$0xff] %v11231_v14  ;;  %15663 = vst [vmem:[#allocation21_spill] sm:$0xff] %v11237_v10  ;;  %v2015_v24 = vpop.f32.mrb[50].mxu1  ;;  %4049 = vmatprep.mubr.bf16.mxu0 %v15655_v20  ;;  %v11242_v46 = vsel %vm2116_vm12, %v11231_v14, -inf }
 0x629   : > { %15664 = vst [vmem:[#allocation24_spill] sm:$0xff] %v11242_v46  ;;  %v2016_v5 = vpop.f32.mrb[51].mxu1 }
 0x62a   : > { %v4854_v5 = vpop.permute.xlu0 %4853 }
 0x62e   : > { %v4858_v55 = vpop.permute.xlu0 %4857 }
 0x62f   : > { %7951 = vmatmul.mubr.msk.bf16.gmra.mrb[148].mxu0 %vm1810_vm9, %v10995_v30 }
 0x630   : > { %4059 = vmatprep.mubr.bf16.mxu0 %v15655_v20 }
 0x631   : > { %4865 = vrot.lane.b32.xlu0 %v10520_v25, %s9742_s24 }
 0x632   : > { %v4860_v46 = vpop.permute.xlu0 %4859 }
 0x635   : > { %3429 = vrot.lane.b32.xlu0 %v10463_v1, %s9743_s26 }
 0x637   : > { %7952 = vmatmul.mubr.msk.bf16.gmra.mrb[152].mxu0 %vm1810_vm9, %v3861_v49  ;;  %v4856_v49 = vpop.permute.xlu1 %4855 }
 0x638   : > { %4956 = vmatprep.mubr.bf16.mxu0 %v15655_v20 }
 0x63a   : > { %2089 = vmax.xlane.f32.xlu1 %v2088_v7 }
 0x63f   : > { %7967 = vmatmul.mubr.msk.bf16.vlgmr.msra.gmra.mrb[156].mxu0 %vm1810_vm9, %v4854_v5 }
 0x640   : > { %4966 = vmatprep.mubr.bf16.mxu0 %v15655_v20 }
 0x642   : > { %v11257_v30 = vpop.f32.mrb[52].mxu0 }
 0x643   : > { %v11259_v24 = vpop.f32.mrb[53].mxu0 }
 0x644   : > { %15665 = vst [vmem:[#allocation26_spill] sm:$0xff] %v11259_v24  ;;  %v11261_v28 = vpop.f32.mrb[54].mxu0  ;;  %v11265_v1 = vsel %vm2018_vm11, %v11259_v24, -inf }
 0x645   : > { %15666 = vst [vmem:[#allocation27_spill] sm:$0xff] %v11261_v28  ;;  %v11267_v14 = vpop.f32.mrb[55].mxu0 }
 0x646   : > { %15667 = vst [vmem:[#allocation29_spill] sm:$0xff] %v11267_v14  ;;  %v11273_v5 = vsel %vm2018_vm11, %v11267_v14, -inf }
 0x647   : > { %15668 = vst [vmem:[#allocation32_spill] sm:$0xff] %v11273_v5  ;;  %7968 = vmatmul.mubr.msk.bf16.gmra.mrb[160].mxu0 %vm1810_vm9, %v4856_v49 }
 0x648   : > { %4976 = vmatprep.mubr.bf16.mxu0 %v15655_v20 }
 0x64a   : > { %v11279_v25 = vpop.f32.mrb[56].mxu0 }
 0x64b   : > { %15669 = vst [vmem:[#allocation33_spill] sm:$0xff] %v11279_v25  ;;  %4863 = vrot.lane.b32.xlu1 %v10511_v59, %s9742_s24  ;;  %v11283_v24 = vpop.f32.mrb[57].mxu0 }
 0x64c   : > { %15670 = vst [vmem:[#allocation37_spill] sm:$0xff] %v11283_v24  ;;  %v11287_v7 = vsel %vm2018_vm11, %v11283_v24, -inf  ;;  %v11289_v14 = vpop.f32.mrb[58].mxu0 }
 0x64d   : > { %15671 = vst [vmem:[#allocation36_spill] sm:$0xff] %v11289_v14  ;;  %v11293_v27 = vpop.f32.mrb[59].mxu0 }
 0x64e   : > { %15672 = vst [vmem:[#allocation41_spill] sm:$0xff] %v11293_v27  ;;  %v11297_v5 = vsel %vm2018_vm11, %v11293_v27, -inf }
 0x64f   : > { %15673 = vst [vmem:[#allocation42_spill] sm:$0xff] %v11297_v5  ;;  %7969 = vmatmul.mubr.msk.bf16.gmra.mrb[164].mxu0 %vm1810_vm9, %v4858_v55 }
 0x650   : > { %4986 = vmatprep.mubr.bf16.mxu0 %v15655_v20 }
 0x652   : > { %v11303_v24 = vpop.f32.mrb[60].mxu0 }
 0x653   : > { %15674 = vst [vmem:[#allocation43_spill] sm:$0xff] %v11303_v24  ;;  %v11305_v28 = vpop.f32.mrb[61].mxu0 }
 0x654   : > { %15675 = vst [vmem:[#allocation44_spill] sm:$0xff] %v11305_v28  ;;  %v11309_v49 = vsel %vm2018_vm11, %v11305_v28, -inf  ;;  %2109 = vmax.xlane.f32.xlu0 %v2108_v26  ;;  %v11311_v10 = vpop.f32.mrb[62].mxu0 }
 0x655   : > { %15676 = vst [vmem:[#allocation45_spill] sm:$0xff] %v11309_v49  ;;  %v11315_v59 = vpop.f32.mrb[63].mxu0 }
 0x656   : > { %15677 = vst [vmem:[#allocation46_spill] sm:$0xff] %v11315_v59  ;;  %v11319_v55 = vsel %vm2018_vm11, %v11315_v59, -inf }
 0x657   : > { %15678 = vst [vmem:[#allocation47_spill] sm:$0xff] %v11319_v55  ;;  %7970 = vmatmul.mubr.msk.bf16.gmra.mrb[168].mxu0 %vm1810_vm9, %v4860_v46 }
 0x658   : > { %v2022_v14 = vpop.xlane.xlu0 %2021  ;;  %4996 = vmatprep.mubr.bf16.mxu0 %v15655_v20 }
 0x659   : > { %v2121_v26 = vsub.f32 %v11013_v38, %v2022_v14  ;;  %v2122_v28 = vsub.f32 %v11015_v51, %v2022_v14 }
 0x65a   : > { %v11327_v13 = vpop.f32.mrb[64].mxu0  ;;  %v2026_v27 = vpop.xlane.xlu1 %2025 }
 0x65b   : > { %v2171_v49 = vmul.f32 1.442695, %v2121_v26  ;;  %v2173_v24 = vmul.f32 1.442695, %v2122_v28  ;;  %v2123_v59 = vsub.f32 %v11019_v57, %v2026_v27  ;;  %v2124_v54 = vsub.f32 %v11024_v45, %v2026_v27  ;;  %v11331_v17 = vpop.f32.mrb[65].mxu0 }
 0x65c   : > { %15679 = vst [vmem:[#allocation48_spill] sm:$0xff] %v11331_v17  ;;  %v11335_v46 = vsel %vm2018_vm11, %v11331_v17, -inf  ;;  %v11337_v5 = vpop.f32.mrb[66].mxu0 }
 0x65d   : > { %15680 = vst [vmem:[#allocation49_spill] sm:$0xff] %v11337_v5  ;;  %8965 = vpow2.f32 %v2171_v49  ;;  %v2175_v38 = vmul.f32 1.442695, %v2123_v59  ;;  %v2177_v14 = vmul.f32 1.442695, %v2124_v54  ;;  %v11341_v26 = vpop.f32.mrb[67].mxu0 }
 0x65e   : > { %15681 = vst [vmem:[#allocation50_spill] sm:$0xff] %v11341_v26  ;;  %8967 = vpow2.f32 %v2173_v24  ;;  %v11345_v27 = vsel %vm2018_vm11, %v11341_v26, -inf }
 0x65f   : > { %15682 = vst [vmem:[#allocation51_spill] sm:$0xff] %v11345_v27  ;;  %8969 = vpow2.f32 %v2175_v38 }
 0x660   : > { %8971 = vpow2.f32 %v2177_v14  ;;  %v2030_v45 = vpop.xlane.xlu1 %2029 }
 0x661   : > { %v2125_v28 = vsub.f32 %v11030_v16, %v2030_v45  ;;  %v2126_v59 = vsub.f32 %v11032_v39, %v2030_v45 }
 0x662   : > { %v2034_v54 = vpop.xlane.xlu0 %2033  ;;  %v11351_v49 = vpop.f32.mrb[68].mxu0 }
 0x663   : > { %v2179_v51 = vmul.f32 1.442695, %v2125_v28  ;;  %v2181_v17 = vmul.f32 1.442695, %v2126_v59  ;;  %v2127_v24 = vsub.f32 %v11036_v40, %v2034_v54  ;;  %v2128_v26 = vsub.f32 %v11041_v48, %v2034_v54  ;;  %v11355_v55 = vpop.f32.mrb[69].mxu0 }
 0x664   : > { %15683 = vst [vmem:[#allocation52_spill] sm:$0xff] %v11355_v55  ;;  %v11359_v38 = vsel %vm2018_vm11, %v11355_v55, -inf  ;;  %v11361_v14 = vpop.f32.mrb[70].mxu0 }
 0x665   : > { %15684 = vst [vmem:[#allocation53_spill] sm:$0xff] %v11361_v14  ;;  %8973 = vpow2.f32 %v2179_v51  ;;  %v2183_v16 = vmul.f32 1.442695, %v2127_v24  ;;  %v2185_v39 = vmul.f32 1.442695, %v2128_v26  ;;  %v11365_v28 = vpop.f32.mrb[71].mxu0 }
 0x666   : > { %15685 = vst [vmem:[#allocation54_spill] sm:$0xff] %v11365_v28  ;;  %8975 = vpow2.f32 %v2181_v17  ;;  %v11369_v40 = vsel %vm2018_vm11, %v11365_v28, -inf }
 0x667   : > { %15686 = vst [vmem:[#allocation55_spill] sm:$0xff] %v11369_v40  ;;  %v8966_v48 = vpop.eup %8965  ;;  %8977 = vpow2.f32 %v2183_v16 }
 0x668   : > { %v8968_v54 = vpop.eup %8967  ;;  %8979 = vpow2.f32 %v2185_v39  ;;  %v2038_v51 = vpop.xlane.xlu0 %2037 }
 0x669   : > { %v8970_v24 = vpop.eup %8969  ;;  %v2129_v26 = vsub.f32 %v11049_v8, %v2038_v51  ;;  %v2130_v57 = vsub.f32 %v11051_v0, %v2038_v51  ;;  %v2271_v45 = vsel %vm2018_vm11, %v8968_v54, 0.0 }
 0x66a   : > { %v8972_v17 = vpop.eup %8971  ;;  %3433 = vrot.lane.b32.xlu0 %v10482_v52, %s9743_s26  ;;  %v11378_v28 = vpop.f32.mrb[72].mxu0  ;;  %v2372_v55 = vpack.c.bf16 %v8970_v24, %v8966_v48  ;;  %v11380_v27 = vadd.f32 %v8966_v48, %v2271_v45 }
 0x66b   : > { %v2042_v16 = vpop.xlane.xlu1 %2041  ;;  %v2187_v59 = vmul.f32 1.442695, %v2129_v26  ;;  %v2189_v39 = vmul.f32 1.442695, %v2130_v57  ;;  %v11384_v14 = vpop.f32.mrb[73].mxu0  ;;  %v2373_v51 = vpack.c.bf16 %v8972_v17, %v8968_v54  ;;  %v2275_v5 = vsel %vm2018_vm11, %v8972_v17, 0.0 }
 0x66c   : > { %15687 = vst [vmem:[#allocation56_spill] sm:$0xff] %v11380_v27  ;;  %v2131_v40 = vsub.f32 %v11056_v18, %v2042_v16  ;;  %v2132_v8 = vsub.f32 %v11061_v3, %v2042_v16  ;;  %15688 = vst [vmem:[#allocation57_spill] sm:$0xff] %v11384_v14  ;;  %v11388_v0 = vsel %vm2018_vm11, %v11384_v14, -inf  ;;  %v11390_v52 = vpop.f32.mrb[74].mxu0  ;;  %v11404_v54 = vadd.f32 %v8970_v24, %v2275_v5 }
 0x66d   : > { %8981 = vpow2.f32 %v2187_v59  ;;  %v11395_v18 = vpop.f32.mrb[75].mxu0  ;;  %7899 = vmatprep.mubr.msk.bf16.mxu1 %vm2018_vm11, %v2373_v51  ;;  %v15691_v26 = vmax.f32 %v11195_v36, %v11205_v32 }
 0x66e   : > { %v2191_v45 = vmul.f32 1.442695, %v2131_v40  ;;  %v2193_v48 = vmul.f32 1.442695, %v2132_v8  ;;  %15689 = vst [vmem:[#allocation58_spill] sm:$0xff] %v11395_v18  ;;  %8983 = vpow2.f32 %v2189_v39  ;;  %v11400_v3 = vsel %vm2018_vm11, %v11395_v18, -inf  ;;  %3435 = vrot.lane.b32.xlu0 %v10491_v11, %s9743_s26  ;;  %2525 = vmatmul.mubr.bf16.vlgmr.msra.gmra.mrb[52].mxu1 %v2372_v55 }
 0x66f   : > { %15690 = vst [vmem:[#allocation59_spill] sm:$0xff] %v11404_v54  ;;  %v8974_v59 = vpop.eup %8973  ;;  %2105 = vmax.xlane.f32.xlu1 %v15691_v26 }
 0x670   : > { %8985 = vpow2.f32 %v2191_v45  ;;  %v8976_v17 = vpop.eup %8975  ;;  %v2046_v16 = vpop.xlane.xlu1 %2045 }
 0x671   : > { %8987 = vpow2.f32 %v2193_v48  ;;  %v8978_v39 = vpop.eup %8977  ;;  %v2133_v8 = vsub.f32 %v11068_v22, %v2046_v16  ;;  %v2134_v51 = vsub.f32 %v11070_v56, %v2046_v16  ;;  %v2279_v5 = vsel %vm2018_vm11, %v8976_v17, 0.0 }
 0x672   : > { %v8980_v24 = vpop.eup %8979  ;;  %v2050_v45 = vpop.xlane.xlu0 %2049  ;;  %4869 = vrot.lane.b32.xlu0 %v10543_v33, %s9742_s24  ;;  %v2374_v57 = vpack.c.bf16 %v8978_v39, %v8974_v59  ;;  %v11418_v32 = vadd.f32 %v8974_v59, %v2279_v5  ;;  %v15693_v56 = vmax.f32 %v11215_v31, %v11225_v42 }
 0x673   : > { %v11416_v55 = vpop.f32.mrb[76].mxu0  ;;  %v2195_v26 = vmul.f32 1.442695, %v2133_v8  ;;  %v2197_v48 = vmul.f32 1.442695, %v2134_v51  ;;  %v2135_v40 = vsub.f32 %v11074_v15, %v2050_v45  ;;  %v2136_v22 = vsub.f32 %v11079_v4, %v2050_v45 }
 0x674   : > { %15692 = vst [vmem:[#allocation60_spill] sm:$0xff] %v11418_v32  ;;  %2113 = vmax.xlane.f32.xlu1 %v15693_v56  ;;  %v11425_v16 = vpop.f32.mrb[77].mxu0  ;;  %v2375_v54 = vpack.c.bf16 %v8980_v24, %v8976_v17  ;;  %v2283_v59 = vsel %vm2018_vm11, %v8980_v24, 0.0 }
 0x675   : > { %15694 = vst [vmem:[#allocation61_spill] sm:$0xff] %v11425_v16  ;;  %v11429_v27 = vsel %vm2018_vm11, %v11425_v16, -inf  ;;  %v11431_v14 = vpop.f32.mrb[78].mxu0  ;;  %8989 = vpow2.f32 %v2195_v26  ;;  %v2199_v8 = vmul.f32 1.442695, %v2135_v40  ;;  %v11445_v17 = vadd.f32 %v8978_v39, %v2283_v59 }
 0x676   : > { %v2201_v15 = vmul.f32 1.442695, %v2136_v22  ;;  %v11436_v51 = vpop.f32.mrb[79].mxu0  ;;  %8991 = vpow2.f32 %v2197_v48  ;;  %7900 = vmatprep.mubr.msk.bf16.mxu1 %vm2018_vm11, %v2375_v54  ;;  %3437 = vrot.lane.b32.xlu0 %v10501_v6, %s9743_s26 }
 0x677   : > { %15695 = vst [vmem:[#allocation62_spill] sm:$0xff] %v11436_v51  ;;  %v11441_v42 = vsel %vm2018_vm11, %v11436_v51, -inf  ;;  %15696 = vst [vmem:[#allocation63_spill] sm:$0xff] %v11445_v17  ;;  %v8982_v5 = vpop.eup %8981  ;;  %8993 = vpow2.f32 %v2199_v8  ;;  %2533 = vmatmul.mubr.bf16.gmra.mrb[56].mxu1 %v2374_v57 }
 0x678   : > { %v8984_v24 = vpop.eup %8983  ;;  %8995 = vpow2.f32 %v2201_v15  ;;  %v2054_v45 = vpop.xlane.xlu0 %2053 }
 0x679   : > { %v2137_v54 = vsub.f32 %v11085_v23, %v2054_v45  ;;  %v2138_v48 = vsub.f32 %v11087_v58, %v2054_v45  ;;  %v2287_v22 = vsel %vm2018_vm11, %v8984_v24, 0.0 }
 0x67a   : > { %v8986_v26 = vpop.eup %8985  ;;  %v11452_v4 = vpop.f32.mrb[80].mxu0  ;;  %v11454_v8 = vadd.f32 %v8982_v5, %v2287_v22 }
 0x67b   : > { %v8988_v56 = vpop.eup %8987  ;;  %v2058_v39 = vpop.xlane.xlu1 %2057  ;;  %v2376_v59 = vpack.c.bf16 %v8986_v26, %v8982_v5  ;;  %v2203_v57 = vmul.f32 1.442695, %v2137_v54  ;;  %v2205_v32 = vmul.f32 1.442695, %v2138_v48 }
 0x67c   : > { %15697 = vst [vmem:[#allocation64_spill] sm:$0xff] %v11454_v8  ;;  %v2139_v40 = vsub.f32 %v11091_v9, %v2058_v39  ;;  %v2140_v15 = vsub.f32 %v11096_v63, %v2058_v39  ;;  %v11458_v17 = vpop.f32.mrb[81].mxu0  ;;  %v2377_v58 = vpack.c.bf16 %v8988_v56, %v8984_v24  ;;  %v2291_v18 = vsel %vm2018_vm11, %v8988_v56, 0.0 }
 0x67d   : > { %15698 = vst [vmem:[#allocation65_spill] sm:$0xff] %v11458_v17  ;;  %v11462_v23 = vsel %vm2018_vm11, %v11458_v17, -inf  ;;  %v11464_v45 = vpop.f32.mrb[82].mxu0  ;;  %8997 = vpow2.f32 %v2203_v57  ;;  %v11476_v24 = vadd.f32 %v8986_v26, %v2291_v18 }
 0x67e   : > { %v2207_v5 = vmul.f32 1.442695, %v2139_v40  ;;  %v2209_v22 = vmul.f32 1.442695, %v2140_v15  ;;  %v11469_v9 = vpop.f32.mrb[83].mxu0  ;;  %8999 = vpow2.f32 %v2205_v32  ;;  %7901 = vmatprep.mubr.msk.bf16.mxu1 %vm2018_vm11, %v2377_v58 }
 0x67f   : > { %15699 = vst [vmem:[#allocation66_spill] sm:$0xff] %v11469_v9  ;;  %v11474_v63 = vsel %vm2018_vm11, %v11469_v9, -inf  ;;  %15700 = vst [vmem:[#allocation67_spill] sm:$0xff] %v11476_v24  ;;  %v8990_v48 = vpop.eup %8989  ;;  %2541 = vmatmul.mubr.bf16.gmra.mrb[60].mxu1 %v2376_v59 }
 0x680   : > { %9001 = vpow2.f32 %v2207_v5  ;;  %v8992_v56 = vpop.eup %8991  ;;  %v2062_v39 = vpop.xlane.xlu1 %2061 }
 0x681   : > { %9003 = vpow2.f32 %v2209_v22  ;;  %v8994_v57 = vpop.eup %8993  ;;  %v2141_v32 = vsub.f32 %v11102_v62, %v2062_v39  ;;  %v2142_v15 = vsub.f32 %v11104_v53, %v2062_v39  ;;  %v2295_v58 = vsel %vm2018_vm11, %v8992_v56, 0.0 }
 0x682   : > { %v8996_v54 = vpop.eup %8995  ;;  %v11483_v8 = vpop.f32.mrb[84].mxu0  ;;  %v2378_v18 = vpack.c.bf16 %v8994_v57, %v8990_v48  ;;  %v11485_v26 = vadd.f32 %v8990_v48, %v2295_v58 }
 0x683   : > { %v2211_v59 = vmul.f32 1.442695, %v2141_v32  ;;  %v2213_v5 = vmul.f32 1.442695, %v2142_v15  ;;  %v11487_v24 = vpop.f32.mrb[85].mxu0  ;;  %v2379_v40 = vpack.c.bf16 %v8996_v54, %v8992_v56  ;;  %v2299_v22 = vsel %vm2018_vm11, %v8996_v54, 0.0 }
 0x684   : > { %15701 = vst [vmem:[#allocation68_spill] sm:$0xff] %v11485_v26  ;;  %15702 = vst [vmem:[#allocation69_spill] sm:$0xff] %v11487_v24  ;;  %v11492_v62 = vsel %vm2018_vm11, %v11487_v24, -inf  ;;  %v11496_v53 = vpop.f32.mrb[86].mxu0  ;;  %v2066_v39 = vpop.xlane.xlu1 %2065  ;;  %v11498_v9 = vadd.f32 %v8994_v57, %v2299_v22 }
 0x685   : > { %3431 = vrot.lane.b32.xlu1 %v10472_v44, %s9743_s26  ;;  %9005 = vpow2.f32 %v2211_v59  ;;  %7902 = vmatprep.mubr.msk.bf16.mxu1 %vm2018_vm11, %v2379_v40  ;;  %v2143_v54 = vsub.f32 %v11108_v34, %v2066_v39  ;;  %v2144_v56 = vsub.f32 %v11113_v35, %v2066_v39  ;;  %v11505_v32 = vpop.f32.mrb[87].mxu0 }
 0x686   : > { %15703 = vst [vmem:[#allocation70_spill] sm:$0xff] %v11498_v9  ;;  %15704 = vst [vmem:[#allocation71_spill] sm:$0xff] %v11505_v32  ;;  %9007 = vpow2.f32 %v2213_v5  ;;  %v11509_v15 = vsel %vm2018_vm11, %v11505_v32, -inf }
 0x687   : > { %v8998_v58 = vpop.eup %8997  ;;  %v2215_v57 = vmul.f32 1.442695, %v2143_v54  ;;  %v2217_v22 = vmul.f32 1.442695, %v2144_v56  ;;  %2549 = vmatmul.mubr.bf16.gmra.mrb[64].mxu1 %v2378_v18 }
 0x688   : > { %v9000_v48 = vpop.eup %8999  ;;  %v2070_v40 = vpop.xlane.xlu0 %2069 }
 0x689   : > { %4867 = vrot.lane.b32.xlu1 %v10531_v19, %s9742_s24  ;;  %9009 = vpow2.f32 %v2215_v57  ;;  %v2145_v35 = vsub.f32 %v11119_v50, %v2070_v40  ;;  %v2146_v5 = vsub.f32 %v11121_v37, %v2070_v40  ;;  %v2303_v39 = vsel %vm2018_vm11, %v9000_v48, 0.0 }
 0x68a   : > { %v9002_v34 = vpop.eup %9001  ;;  %9011 = vpow2.f32 %v2217_v22  ;;  %v11518_v54 = vpop.f32.mrb[88].mxu0  ;;  %v11520_v59 = vadd.f32 %v8998_v58, %v2303_v39 }
 0x68b   : > { %v9004_v26 = vpop.eup %9003  ;;  %v2074_v18 = vpop.xlane.xlu1 %2073  ;;  %v2380_v56 = vpack.c.bf16 %v9002_v34, %v8998_v58  ;;  %v2219_v9 = vmul.f32 1.442695, %v2145_v35  ;;  %v2221_v32 = vmul.f32 1.442695, %v2146_v5 }
 0x68c   : > { %15705 = vst [vmem:[#allocation72_spill] sm:$0xff] %v11520_v59  ;;  %v2147_v24 = vsub.f32 %v11125_v43, %v2074_v18  ;;  %v2148_v57 = vsub.f32 %v11130_v2, %v2074_v18  ;;  %v11524_v17 = vpop.f32.mrb[89].mxu0  ;;  %v2381_v37 = vpack.c.bf16 %v9004_v26, %v9000_v48  ;;  %v2307_v40 = vsel %vm2018_vm11, %v9004_v26, 0.0 }
 0x68d   : > { %15706 = vst [vmem:[#allocation73_spill] sm:$0xff] %v11524_v17  ;;  %v11528_v50 = vsel %vm2018_vm11, %v11524_v17, -inf  ;;  %v11530_v22 = vpop.f32.mrb[90].mxu0  ;;  %9013 = vpow2.f32 %v2219_v9  ;;  %v11542_v48 = vadd.f32 %v9002_v34, %v2307_v40 }
 0x68e   : > { %v2223_v58 = vmul.f32 1.442695, %v2147_v24  ;;  %v2225_v39 = vmul.f32 1.442695, %v2148_v57  ;;  %v11535_v43 = vpop.f32.mrb[91].mxu0  ;;  %9015 = vpow2.f32 %v2221_v32  ;;  %7903 = vmatprep.mubr.msk.bf16.mxu1 %vm2018_vm11, %v2381_v37 }
 0x68f   : > { %15707 = vst [vmem:[#allocation74_spill] sm:$0xff] %v11535_v43  ;;  %v11540_v2 = vsel %vm2018_vm11, %v11535_v43, -inf  ;;  %15708 = vst [vmem:[#allocation75_spill] sm:$0xff] %v11542_v48  ;;  %v9006_v5 = vpop.eup %9005  ;;  %2557 = vmatmul.mubr.bf16.gmra.mrb[68].mxu1 %v2380_v56 }
 0x690   : > { %9017 = vpow2.f32 %v2223_v58  ;;  %v9008_v24 = vpop.eup %9007  ;;  %v2078_v26 = vpop.xlane.xlu0 %2077 }
 0x691   : > { %9019 = vpow2.f32 %v2225_v39  ;;  %v2149_v18 = vsub.f32 %v11136_v61, %v2078_v26  ;;  %v2150_v32 = vsub.f32 %v11138_v60, %v2078_v26  ;;  %v2311_v57 = vsel %vm2018_vm11, %v9008_v24, 0.0 }
 0x692   : > { %v11549_v37 = vpop.f32.mrb[92].mxu0  ;;  %v2082_v35 = vpop.xlane.xlu1 %2081  ;;  %v11551_v34 = vadd.f32 %v9006_v5, %v2311_v57 }
 0x693   : > { %15709 = vst [vmem:[#allocation76_spill] sm:$0xff] %v11549_v37  ;;  %v9010_v40 = vpop.eup %9009  ;;  %v2227_v58 = vmul.f32 1.442695, %v2149_v18  ;;  %v2229_v56 = vmul.f32 1.442695, %v2150_v32  ;;  %v2151_v59 = vsub.f32 %v11142_v21, %v2082_v35  ;;  %v2152_v9 = vsub.f32 %v11147_v12, %v2082_v35  ;;  %v11555_v39 = vpop.f32.mrb[93].mxu0 }
 0x694   : > { %15710 = vst [vmem:[#allocation77_spill] sm:$0xff] %v11551_v34  ;;  %15711 = vst [vmem:[#allocation78_spill] sm:$0xff] %v11555_v39  ;;  %v9012_v48 = vpop.eup %9011  ;;  %v11559_v61 = vsel %vm2018_vm11, %v11555_v39, -inf  ;;  %v11561_v60 = vpop.f32.mrb[94].mxu0  ;;  %v2382_v26 = vpack.c.bf16 %v9010_v40, %v9006_v5  ;;  %v15713_v21 = vmax.f32 %v11257_v30, %v11265_v1 }
 0x695   : > { %15712 = vst [vmem:[#allocation79_spill] sm:$0xff] %v11559_v61  ;;  %9021 = vpow2.f32 %v2227_v58  ;;  %v2231_v57 = vmul.f32 1.442695, %v2151_v59  ;;  %v2233_v34 = vmul.f32 1.442695, %v2152_v9  ;;  %v11568_v12 = vpop.f32.mrb[95].mxu0  ;;  %v2383_v32 = vpack.c.bf16 %v9012_v48, %v9008_v24 }
 0x696   : > { %3053 = vmax.xlane.f32.xlu0 %v15713_v21  ;;  %15714 = vst [vmem:[#allocation80_spill] sm:$0xff] %v11568_v12  ;;  %9023 = vpow2.f32 %v2229_v56  ;;  %v11572_v35 = vsel %vm2018_vm11, %v11568_v12, -inf  ;;  %v4862_v39 = vpop.permute.xlu1 %4861  ;;  %v2315_v5 = vsel %vm2018_vm11, %v9012_v48, 0.0  ;;  %v15716_v21 = vmax.f32 %v11279_v25, %v11287_v7  ;;  %v15767_v25 = vld [vmem:[#allocation20_spill] sm:$0xff] }
 0x697   : > { %v9014_v59 = vpop.eup %9013  ;;  %9025 = vpow2.f32 %v2231_v57  ;;  %7971 = vmatmul.mubr.msk.bf16.gmra.mrb[172].mxu0 %vm1810_vm9, %v4862_v39  ;;  %v11578_v1 = vadd.f32 %v9010_v40, %v2315_v5  ;;  %7904 = vmatprep.mubr.msk.bf16.mxu1 %vm2018_vm11, %v2383_v32 }
 0x698   : > { %v9016_v58 = vpop.eup %9015  ;;  %9027 = vpow2.f32 %v2233_v34  ;;  %v2086_v56 = vpop.xlane.xlu0 %2085  ;;  %5006 = vmatprep.mubr.bf16.mxu0 %v15655_v20  ;;  %2565 = vmatmul.mubr.bf16.gmra.mrb[72].mxu1 %v2382_v26 }
 0x699   : > { %15715 = vst [vmem:[#allocation81_spill] sm:$0xff] %v11578_v1  ;;  %v2153_v48 = vsub.f32 %v11153_v29, %v2086_v56  ;;  %v2154_v57 = vsub.f32 %v11155_v47, %v2086_v56  ;;  %v2319_v40 = vsel %vm2018_vm11, %v9016_v58, 0.0 }
 0x69a   : > { %v9018_v24 = vpop.eup %9017  ;;  %3061 = vmax.xlane.f32.xlu0 %v15716_v21  ;;  %v11588_v5 = vpop.f32.mrb[96].mxu0  ;;  %v11590_v32 = vadd.f32 %v9014_v59, %v2319_v40 }
 0x69b   : > { %v9020_v39 = vpop.eup %9019  ;;  %v2384_v34 = vpack.c.bf16 %v9018_v24, %v9014_v59  ;;  %v2235_v18 = vmul.f32 1.442695, %v2153_v48  ;;  %v2237_v9 = vmul.f32 1.442695, %v2154_v57  ;;  %v11592_v1 = vpop.f32.mrb[97].mxu0 }
 0x69c   : > { %15717 = vst [vmem:[#allocation82_spill] sm:$0xff] %v11590_v32  ;;  %15718 = vst [vmem:[#allocation83_spill] sm:$0xff] %v11592_v1  ;;  %v2385_v26 = vpack.c.bf16 %v9020_v39, %v9016_v58  ;;  %v2323_v29 = vsel %vm2018_vm11, %v9020_v39, 0.0  ;;  %v11597_v47 = vsel %vm2018_vm11, %v11592_v1, -inf  ;;  %v11599_v7 = vpop.f32.mrb[98].mxu0 }
 0x69d   : > { %v11601_v56 = vadd.f32 %v9018_v24, %v2323_v29  ;;  %9029 = vpow2.f32 %v2235_v18  ;;  %v11606_v48 = vpop.f32.mrb[99].mxu0  ;;  %v15721_v29 = vld [vmem:[#allocation23_spill] sm:$0xff] }
 0x69e   : > { %7905 = vmatprep.mubr.msk.bf16.mxu1 %vm2018_vm11, %v2385_v26  ;;  %15720 = vst [vmem:[#allocation85_spill] sm:$0xff] %v11606_v48  ;;  %9031 = vpow2.f32 %v2237_v9  ;;  %v11610_v58 = vsel %vm2018_vm11, %v11606_v48, -inf }
 0x69f   : > { %15719 = vst [vmem:[#allocation84_spill] sm:$0xff] %v11601_v56  ;;  %v9022_v57 = vpop.eup %9021 }
 0x6a0   : > { %v9024_v40 = vpop.eup %9023  ;;  %v2094_v24 = vpop.xlane.xlu0 %2093  ;;  %2573 = vmatmul.mubr.bf16.gmra.mrb[76].mxu1 %v2384_v34 }
 0x6a1   : > { %v9026_v39 = vpop.eup %9025  ;;  %v2157_v18 = vsub.f32 %v11170_v41, %v2094_v24  ;;  %v2158_v59 = vsub.f32 %v15721_v29, %v2094_v24  ;;  %v2327_v26 = vsel %vm2018_vm11, %v9024_v40, 0.0 }
 0x6a2   : > { %v9028_v32 = vpop.eup %9027  ;;  %v11617_v9 = vpop.f32.mrb[100].mxu0  ;;  %v2386_v56 = vpack.c.bf16 %v9026_v39, %v9022_v57  ;;  %v11619_v48 = vadd.f32 %v9022_v57, %v2327_v26  ;;  %v15728_v26 = vld [vmem:[#allocation28_spill] sm:$0xff] }
 0x6a3   : > { %15722 = vst [vmem:[#allocation23_spill] sm:$0xff] %v11617_v9  ;;  %v2243_v1 = vmul.f32 1.442695, %v2157_v18  ;;  %v2245_v12 = vmul.f32 1.442695, %v2158_v59  ;;  %v11623_v21 = vsel %vm1850_vm8, %v11617_v9, -inf  ;;  %v2387_v34 = vpack.c.bf16 %v9028_v32, %v9024_v40 }
 0x6a4   : > { %15723 = vst [vmem:[#allocation86_spill] sm:$0xff] %v11619_v48  ;;  %15724 = vst [vmem:[#allocation87_spill] sm:$0xff] %v11623_v21  ;;  %v11625_v43 = vpop.f32.mrb[101].mxu0  ;;  %v2098_v24 = vpop.xlane.xlu0 %2097  ;;  %v2331_v17 = vsel %vm2018_vm11, %v9028_v32, 0.0  ;;  %v15727_v59 = vld [vmem:[#allocation25_spill] sm:$0xff]  ;;  %v15741_v57 = vld [vmem:[#allocation32_spill] sm:$0xff] }
 0x6a5   : > { %15725 = vst [vmem:[#allocation88_spill] sm:$0xff] %v11625_v43  ;;  %v11629_v41 = vsel %vm2116_vm12, %v11625_v43, -inf  ;;  %v3048_v29 = vpop.f32.mrb[102].mxu0  ;;  %9033 = vpow2.f32 %v2243_v1  ;;  %v2159_v18 = vsub.f32 %v15727_v59, %v2098_v24  ;;  %v2160_v48 = vsub.f32 %v15728_v26, %v2098_v24  ;;  %7906 = vmatprep.mubr.msk.bf16.mxu1 %vm2018_vm11, %v2387_v34 }
 0x6a6   : > { %15726 = vst [vmem:[#allocation89_spill] sm:$0xff] %v11629_v41  ;;  %v3049_v9 = vpop.f32.mrb[103].mxu0  ;;  %9035 = vpow2.f32 %v2245_v12  ;;  %v11637_v40 = vadd.f32 %v9026_v39, %v2331_v17 }
 0x6a7   : > { %v11639_v43 = vpop.eup %9029  ;;  %v2247_v51 = vmul.f32 1.442695, %v2159_v18  ;;  %v2249_v29 = vmul.f32 1.442695, %v2160_v48  ;;  %v15734_v9 = vld [vmem:[#allocation21_spill] sm:$0xff] }
 0x6a8   : > { %15729 = vst [vmem:[#allocation25_spill] sm:$0xff] %v11637_v40  ;;  %v11641_v16 = vpop.eup %9031  ;;  %v11643_v1 = vpop.xlane.xlu0 %2101  ;;  %2581 = vmatmul.mubr.bf16.gmra.mrb[80].mxu1 %v2386_v56 }
 0x6a9   : > { %9037 = vpow2.f32 %v2247_v51  ;;  %v2335_v32 = vsel %vm2018_vm11, %v11641_v16, 0.0  ;;  %v15735_v51 = vld [vmem:[#allocation24_spill] sm:$0xff] }
 0x6aa   : > { %9039 = vpow2.f32 %v2249_v29  ;;  %v11647_v24 = vpop.f32.mrb[104].mxu0  ;;  %v11650_v12 = vadd.f32 %v11639_v43, %v2335_v32  ;;  %v15736_v56 = vmax.f32 %v15734_v9, %v15735_v51 }
 0x6ab   : > { %15730 = vst [vmem:[#allocation28_spill] sm:$0xff] %v11647_v24  ;;  %v11652_v17 = vpop.f32.mrb[105].mxu0  ;;  %v15768_v24 = vld [vmem:[#allocation12_spill] sm:$0xff] }
 0x6ac   : > { %15731 = vst [vmem:[#allocation90_spill] sm:$0xff] %v11650_v12  ;;  %15732 = vst [vmem:[#allocation91_spill] sm:$0xff] %v11652_v17  ;;  %v11656_v48 = vsel %vm2018_vm11, %v11652_v17, -inf  ;;  %v11658_v39 = vpop.permute.xlu0 %4865  ;;  %v11663_v34 = vpop.f32.mrb[106].mxu0  ;;  %v15745_v17 = vld [vmem:[#allocation16_spill] sm:$0xff] }
 0x6ad   : > { %15733 = vst [vmem:[#allocation92_spill] sm:$0xff] %v11656_v48  ;;  %2119 = vmax.xlane.f32.xlu1 %v15736_v56  ;;  %15737 = vst [vmem:[#allocation21_spill] sm:$0xff] %v11663_v34  ;;  %v11667_v18 = vpop.f32.mrb[107].mxu0  ;;  %v15740_v56 = vld [vmem:[#allocation27_spill] sm:$0xff] }
 0x6ae   : > { %15738 = vst [vmem:[#allocation24_spill] sm:$0xff] %v11667_v18  ;;  %v11671_v26 = vsel %vm2018_vm11, %v11667_v18, -inf  ;;  %v15742_v59 = vmax.f32 %v15740_v56, %v15741_v57 }
 0x6af   : > { %15739 = vst [vmem:[#allocation93_spill] sm:$0xff] %v11671_v26  ;;  %v11673_v29 = vpop.eup %9033 }
 0x6b0   : > { %3443 = vrot.lane.b32.xlu0 %v10531_v19, %s9743_s26  ;;  %v11679_v9 = vpop.eup %9035  ;;  %v3430_v51 = vpop.permute.xlu0 %3429 }
 0x6b1   : > { %3057 = vmax.xlane.f32.xlu1 %v15742_v59  ;;  %3510 = vmatpush1.bf16.msra.mxu1 %v3430_v51  ;;  %v2343_v12 = vsel %vm2018_vm11, %v11679_v9, 0.0 }
 0x6b2   : > { %v11686_v40 = vpop.f32.mrb[108].mxu0  ;;  %3511 = vmatprep.subr.bf16.mxu1 %v15655_v20  ;;  %v11690_v32 = vadd.f32 %v11673_v29, %v2343_v12 }
 0x6b3   : > { %15743 = vst [vmem:[#allocation27_spill] sm:$0xff] %v11686_v40  ;;  %v11692_v18 = vpop.eup %9037  ;;  %v11696_v19 = vpop.f32.mrb[109].mxu0 }
 0x6b4   : > { %15744 = vst [vmem:[#allocation32_spill] sm:$0xff] %v11690_v32  ;;  %4873 = vrot.lane.b32.xlu0 %v15745_v17, %s9742_s24  ;;  %15746 = vst [vmem:[#allocation16_spill] sm:$0xff] %v11696_v19  ;;  %v11698_v57 = vpop.eup %9039  ;;  %v11702_v59 = vsel %vm2018_vm11, %v11696_v19, -inf  ;;  %v11704_v51 = vpop.f32.mrb[110].mxu0 }
 0x6b5   : > { %15747 = vst [vmem:[#allocation94_spill] sm:$0xff] %v11702_v59  ;;  %15748 = vst [vmem:[#allocation95_spill] sm:$0xff] %v11704_v51  ;;  %v11710_v32 = vpop.f32.mrb[111].mxu0  ;;  %v2347_v41 = vsel %vm2018_vm11, %v11698_v57, 0.0 }
 0x6b6   : > { %15749 = vst [vmem:[#allocation96_spill] sm:$0xff] %v11710_v32  ;;  %v11718_v19 = vsel %vm2018_vm11, %v11710_v32, -inf  ;;  %v11721_v21 = vadd.f32 %v11692_v18, %v2347_v41 }
 0x6b7   : > { %15750 = vst [vmem:[#allocation97_spill] sm:$0xff] %v11718_v19 }
 0x6b8   : > { %15751 = vst [vmem:[#allocation98_spill] sm:$0xff] %v11721_v21  ;;  %3445 = vrot.lane.b32.xlu0 %v10543_v33, %s9743_s26  ;;  %v15758_v33 = vld [vmem:[#allocation11_spill] sm:$0xff] }
 0x6ba   : > { %v11727_v12 = vpop.f32.mrb[112].mxu0 }
 0x6bb   : > { %15752 = vst [vmem:[#allocation99_spill] sm:$0xff] %v11727_v12  ;;  %v11729_v59 = vpop.f32.mrb[113].mxu0 }
 0x6bc   : > { %15753 = vst [vmem:[#allocation100_spill] sm:$0xff] %v11729_v59  ;;  %v11733_v34 = vsel %vm2018_vm11, %v11729_v59, -inf  ;;  %v11735_v40 = vpop.f32.mrb[114].mxu0 }
 0x6bd   : > { %15754 = vst [vmem:[#allocation101_spill] sm:$0xff] %v11733_v34  ;;  %15755 = vst [vmem:[#allocation102_spill] sm:$0xff] %v11735_v40  ;;  %v11739_v21 = vpop.f32.mrb[115].mxu0  ;;  %v15763_v34 = vld [vmem:[#allocation15_spill] sm:$0xff] }
 0x6be   : > { %15756 = vst [vmem:[#allocation103_spill] sm:$0xff] %v11739_v21  ;;  %v11743_v26 = vsel %vm2018_vm11, %v11739_v21, -inf }
 0x6bf   : > { %15757 = vst [vmem:[#allocation104_spill] sm:$0xff] %v11743_v26 }
 0x6c2   : > { %3439 = vrot.lane.b32.xlu1 %v15758_v33, %s9743_s26  ;;  %v11749_v19 = vpop.f32.mrb[116].mxu0 }
 0x6c3   : > { %15759 = vst [vmem:[#allocation105_spill] sm:$0xff] %v11749_v19  ;;  %v11751_v59 = vpop.f32.mrb[117].mxu0 }
 0x6c4   : > { %15760 = vst [vmem:[#allocation106_spill] sm:$0xff] %v11751_v59  ;;  %v11755_v51 = vsel %vm2018_vm11, %v11751_v59, -inf  ;;  %v11757_v41 = vpop.f32.mrb[118].mxu0  ;;  %v15766_v59 = vld [vmem:[#allocation18_spill] sm:$0xff] }
 0x6c5   : > { %15761 = vst [vmem:[#allocation107_spill] sm:$0xff] %v11755_v51  ;;  %15762 = vst [vmem:[#allocation108_spill] sm:$0xff] %v11757_v41  ;;  %v11763_v32 = vpop.f32.mrb[119].mxu0 }
 0x6c6   : > { %4871 = vrot.lane.b32.xlu1 %v15763_v34, %s9742_s24  ;;  %15764 = vst [vmem:[#allocation15_spill] sm:$0xff] %v11763_v32  ;;  %v11767_v12 = vsel %vm2018_vm11, %v11763_v32, -inf }
 0x6c7   : > { %15765 = vst [vmem:[#allocation109_spill] sm:$0xff] %v11767_v12  ;;  %v2090_v40 = vpop.xlane.xlu1 %2089 }
 0x6c8   : > { %v2155_v33 = vsub.f32 %v15766_v59, %v2090_v40  ;;  %v2156_v48 = vsub.f32 %v15767_v25, %v2090_v40 }
 0x6ca   : > { %3441 = vrot.lane.b32.xlu1 %v15768_v24, %s9743_s26  ;;  %v2239_v21 = vmul.f32 1.442695, %v2155_v33  ;;  %v2241_v51 = vmul.f32 1.442695, %v2156_v48  ;;  %v11775_v19 = vpop.f32.mrb[120].mxu0 }
 0x6cb   : > { %15769 = vst [vmem:[#allocation18_spill] sm:$0xff] %v11775_v19  ;;  %v11777_v61 = vpop.f32.mrb[121].mxu0  ;;  %v4864_v37 = vpop.permute.xlu1 %4863 }
 0x6cc   : > { %15770 = vst [vmem:[#allocation20_spill] sm:$0xff] %v11777_v61  ;;  %9041 = vpow2.f32 %v2239_v21  ;;  %v11781_v32 = vsel %vm2018_vm11, %v11777_v61, -inf  ;;  %v11783_v26 = vpop.f32.mrb[122].mxu0  ;;  %7972 = vmatmul.mubr.msk.bf16.gmra.mrb[176].mxu0 %vm1810_vm9, %v4864_v37 }
 0x6cd   : > { %15771 = vst [vmem:[#allocation12_spill] sm:$0xff] %v11781_v32  ;;  %15772 = vst [vmem:[#allocation110_spill] sm:$0xff] %v11783_v26  ;;  %9043 = vpow2.f32 %v2241_v51  ;;  %v11788_v33 = vpop.f32.mrb[123].mxu0  ;;  %5016 = vmatprep.mubr.bf16.mxu0 %v15655_v20  ;;  %v15781_v32 = vld [vmem:[#allocation43_spill] sm:$0xff] }
 0x6ce   : > { %15773 = vst [vmem:[#allocation111_spill] sm:$0xff] %v11788_v33  ;;  %v11793_v40 = vsel %vm2018_vm11, %v11788_v33, -inf }
 0x6cf   : > { %15774 = vst [vmem:[#allocation112_spill] sm:$0xff] %v11793_v40 }
 0x6d2   : > { %v11797_v48 = vpop.f32.mrb[124].mxu0 }
 0x6d3   : > { %15775 = vst [vmem:[#allocation113_spill] sm:$0xff] %v11797_v48  ;;  %v11799_v59 = vpop.f32.mrb[125].mxu0 }
 0x6d4   : > { %15776 = vst [vmem:[#allocation114_spill] sm:$0xff] %v11799_v59  ;;  %v11803_v37 = vsel %vm2018_vm11, %v11799_v59, -inf  ;;  %v11805_v51 = vpop.f32.mrb[126].mxu0  ;;  %7973 = vmatmul.mubr.msk.bf16.gmra.mrb[180].mxu0 %vm1810_vm9, %v11658_v39  ;;  %v15782_v59 = vld [vmem:[#allocation45_spill] sm:$0xff] }
 0x6d5   : > { %15777 = vst [vmem:[#allocation115_spill] sm:$0xff] %v11803_v37  ;;  %15778 = vst [vmem:[#allocation116_spill] sm:$0xff] %v11805_v51  ;;  %v11811_v61 = vpop.f32.mrb[127].mxu0  ;;  %5026 = vmatprep.mubr.bf16.mxu0 %v15655_v20  ;;  %v15783_v19 = vmax.f32 %v15781_v32, %v15782_v59 }
 0x6d6   : > { %15779 = vst [vmem:[#allocation117_spill] sm:$0xff] %v11811_v61  ;;  %v9042_v21 = vpop.eup %9041  ;;  %v11816_v33 = vsel %vm2018_vm11, %v11811_v61, -inf  ;;  %v15785_v61 = vmax.f32 %v11327_v13, %v11335_v46 }
 0x6d7   : > { %15780 = vst [vmem:[#allocation118_spill] sm:$0xff] %v11816_v33  ;;  %3069 = vmax.xlane.f32.xlu0 %v15783_v19  ;;  %v9044_v40 = vpop.eup %9043  ;;  %v2388_v26 = vpack.c.bf16 %v9042_v21, %v11639_v43  ;;  %v15788_v43 = vpack.c.bf16 %v11698_v57, %v11679_v9  ;;  %v15818_v33 = vld [vmem:[#allocation22_spill] sm:$0xff] }
 0x6d8   : > { %v2389_v25 = vpack.c.bf16 %v9044_v40, %v11641_v16  ;;  %v2339_v37 = vsel %vm2018_vm11, %v9044_v40, 0.0 }
 0x6d9   : > { %v11826_v48 = vadd.f32 %v9042_v21, %v2339_v37  ;;  %v15794_v37 = vld [vmem:[#allocation35_spill] sm:$0xff] }
 0x6da   : > { %7907 = vmatprep.mubr.msk.bf16.mxu1 %vm2018_vm11, %v2389_v25  ;;  %v11832_v59 = vpop.f32.mrb[128].mxu0  ;;  %v15793_v25 = vld [vmem:[#allocation34_spill] sm:$0xff] }
 0x6db   : > { %15784 = vst [vmem:[#allocation43_spill] sm:$0xff] %v11826_v48  ;;  %3077 = vmax.xlane.f32.xlu0 %v15785_v61  ;;  %15786 = vst [vmem:[#allocation45_spill] sm:$0xff] %v11832_v59  ;;  %2589 = vmatmul.mubr.bf16.gmra.mrb[84].mxu1 %v2388_v26  ;;  %v11834_v19 = vpop.f32.mrb[129].mxu0  ;;  %v15796_v48 = vpack.c.bf16 %v11692_v18, %v11673_v29 }
 0x6dc   : > { %15787 = vst [vmem:[#allocation119_spill] sm:$0xff] %v11834_v19  ;;  %7908 = vmatprep.mubr.msk.bf16.mxu1 %vm2018_vm11, %v15788_v43  ;;  %v11842_v16 = vsel %vm2018_vm11, %v11834_v19, -inf  ;;  %v11844_v40 = vpop.f32.mrb[130].mxu0 }
 0x6dd   : > { %15789 = vst [vmem:[#allocation120_spill] sm:$0xff] %v11842_v16  ;;  %15790 = vst [vmem:[#allocation121_spill] sm:$0xff] %v11844_v40  ;;  %v11848_v61 = vpop.f32.mrb[131].mxu0 }
 0x6de   : > { %15791 = vst [vmem:[#allocation122_spill] sm:$0xff] %v11848_v61  ;;  %v11852_v26 = vsel %vm2018_vm11, %v11848_v61, -inf }
 0x6df   : > { %15792 = vst [vmem:[#allocation123_spill] sm:$0xff] %v11852_v26 }
 0x6e1   : > { %v2110_v57 = vpop.xlane.xlu0 %2109 }
 0x6e2   : > { %v2165_v21 = vsub.f32 %v15793_v25, %v2110_v57  ;;  %v2166_v43 = vsub.f32 %v15794_v37, %v2110_v57  ;;  %v11858_v39 = vpop.f32.mrb[132].mxu0  ;;  %v15806_v25 = vld [vmem:[#allocation36_spill] sm:$0xff] }
 0x6e3   : > { %15795 = vst [vmem:[#allocation34_spill] sm:$0xff] %v11858_v39  ;;  %2597 = vmatmul.mubr.bf16.gmra.mrb[88].mxu1 %v15796_v48  ;;  %v11863_v46 = vpop.f32.mrb[133].mxu0  ;;  %v15811_v39 = vld [vmem:[#allocation17_spill] sm:$0xff] }
 0x6e4   : > { %15797 = vst [vmem:[#allocation35_spill] sm:$0xff] %v11863_v46  ;;  %v2259_v19 = vmul.f32 1.442695, %v2165_v21  ;;  %v2261_v16 = vmul.f32 1.442695, %v2166_v43  ;;  %v11867_v61 = vsel %vm2018_vm11, %v11863_v46, -inf }
 0x6e5   : > { %15798 = vst [vmem:[#allocation124_spill] sm:$0xff] %v11867_v61  ;;  %v11869_v9 = vpop.f32.mrb[134].mxu0  ;;  %v15807_v46 = vld [vmem:[#allocation42_spill] sm:$0xff] }
 0x6e6   : > { %15799 = vst [vmem:[#allocation125_spill] sm:$0xff] %v11869_v9  ;;  %v11873_v57 = vpop.f32.mrb[135].mxu0  ;;  %9045 = vpow2.f32 %v2259_v19  ;;  %v15812_v19 = vld [vmem:[#allocation47_spill] sm:$0xff] }
 0x6e7   : > { %15800 = vst [vmem:[#allocation126_spill] sm:$0xff] %v11873_v57  ;;  %v11877_v18 = vsel %vm2018_vm11, %v11873_v57, -inf  ;;  %9047 = vpow2.f32 %v2261_v16  ;;  %v15808_v57 = vmax.f32 %v15806_v25, %v15807_v46  ;;  %v15813_v46 = vmax.f32 %v11311_v10, %v15812_v19 }
 0x6e8   : > { %15801 = vst [vmem:[#allocation127_spill] sm:$0xff] %v11877_v18 }
 0x6ea   : > { %v11881_v48 = vpop.f32.mrb[136].mxu0 }
 0x6eb   : > { %15802 = vst [vmem:[#allocation128_spill] sm:$0xff] %v11881_v48  ;;  %v11883_v21 = vpop.f32.mrb[137].mxu0 }
 0x6ec   : > { %15803 = vst [vmem:[#allocation129_spill] sm:$0xff] %v11883_v21  ;;  %v11887_v37 = vsel %vm2018_vm11, %v11883_v21, -inf  ;;  %v11889_v43 = vpop.f32.mrb[138].mxu0 }
 0x6ed   : > { %15804 = vst [vmem:[#allocation130_spill] sm:$0xff] %v11887_v37  ;;  %15805 = vst [vmem:[#allocation131_spill] sm:$0xff] %v11889_v43  ;;  %v11896_v16 = vpop.f32.mrb[139].mxu0  ;;  %v15823_v43 = vld [vmem:[#allocation31_spill] sm:$0xff] }
 0x6ee   : > { %3065 = vmax.xlane.f32.xlu1 %v15808_v57  ;;  %15809 = vst [vmem:[#allocation36_spill] sm:$0xff] %v11896_v16  ;;  %v11900_v29 = vsel %vm2018_vm11, %v11896_v16, -inf  ;;  %v2162_v18 = vsub.f32 %v15823_v43, %v11643_v1 }
 0x6ef   : > { %15810 = vst [vmem:[#allocation42_spill] sm:$0xff] %v11900_v29 }
 0x6f0   : > { %v11904_v21 = vpop.eup %9045  ;;  %v2253_v19 = vmul.f32 1.442695, %v2162_v18 }
 0x6f1   : > { %3451 = vrot.lane.b32.xlu0 %v15811_v39, %s9743_s26  ;;  %v11908_v59 = vpop.eup %9047 }
 0x6f2   : > { %3073 = vmax.xlane.f32.xlu1 %v15813_v46  ;;  %v11913_v57 = vpop.f32.mrb[140].mxu0  ;;  %v2359_v16 = vsel %vm2018_vm11, %v11908_v59, 0.0 }
 0x6f3   : > { %15814 = vst [vmem:[#allocation17_spill] sm:$0xff] %v11913_v57  ;;  %v11917_v37 = vpop.f32.mrb[141].mxu0  ;;  %v11920_v61 = vadd.f32 %v11904_v21, %v2359_v16  ;;  %v15822_v16 = vld [vmem:[#allocation30_spill] sm:$0xff] }
 0x6f4   : > { %15815 = vst [vmem:[#allocation47_spill] sm:$0xff] %v11917_v37  ;;  %v11924_v48 = vsel %vm2018_vm11, %v11917_v37, -inf  ;;  %v11928_v51 = vpop.f32.mrb[142].mxu0 }
 0x6f5   : > { %15816 = vst [vmem:[#allocation132_spill] sm:$0xff] %v11920_v61  ;;  %15817 = vst [vmem:[#allocation133_spill] sm:$0xff] %v11924_v48  ;;  %3453 = vrot.lane.b32.xlu0 %v15818_v33, %s9743_s26  ;;  %v11932_v46 = vpop.f32.mrb[143].mxu0  ;;  %v2161_v61 = vsub.f32 %v15822_v16, %v11643_v1  ;;  %v3434_v16 = vpop.permute.xlu0 %3433  ;;  %v15827_v1 = vld [vmem:[#allocation39_spill] sm:$0xff] }
 0x6f6   : > { %15819 = vst [vmem:[#allocation22_spill] sm:$0xff] %v11928_v51  ;;  %15820 = vst [vmem:[#allocation134_spill] sm:$0xff] %v11932_v46  ;;  %v11936_v29 = vsel %vm2018_vm11, %v11932_v46, -inf }
 0x6f7   : > { %15821 = vst [vmem:[#allocation135_spill] sm:$0xff] %v11936_v29  ;;  %v2251_v26 = vmul.f32 1.442695, %v2161_v61 }
 0x6f9   : > { %9049 = vpow2.f32 %v2251_v26 }
 0x6fa   : > { %v11944_v9 = vpop.f32.mrb[144].mxu0  ;;  %9051 = vpow2.f32 %v2253_v19 }
 0x6fb   : > { %15824 = vst [vmem:[#allocation30_spill] sm:$0xff] %v11944_v9  ;;  %v11946_v40 = vpop.f32.mrb[145].mxu0 }
 0x6fc   : > { %15825 = vst [vmem:[#allocation31_spill] sm:$0xff] %v11946_v40  ;;  %v11950_v48 = vsel %vm2018_vm11, %v11946_v40, -inf  ;;  %v11952_v46 = vpop.f32.mrb[146].mxu0  ;;  %v2106_v57 = vpop.xlane.xlu1 %2105 }
 0x6fd   : > { %15826 = vst [vmem:[#allocation136_spill] sm:$0xff] %v11950_v48  ;;  %v2163_v29 = vsub.f32 %v11195_v36, %v2106_v57  ;;  %v2164_v43 = vsub.f32 %v15827_v1, %v2106_v57  ;;  %v11958_v51 = vpop.f32.mrb[147].mxu0  ;;  %v15829_v36 = vld [vmem:[#allocation38_spill] sm:$0xff]  ;;  %v3436_v1 = vpop.permute.xlu0 %3435 }
 0x6fe   : > { %15828 = vst [vmem:[#allocation39_spill] sm:$0xff] %v11958_v51  ;;  %v11962_v61 = vsel %vm2018_vm11, %v11958_v51, -inf }
 0x6ff   : > { %v2255_v18 = vmul.f32 1.442695, %v2163_v29  ;;  %v2257_v40 = vmul.f32 1.442695, %v2164_v43 }
 0x701   : > { %v2114_v41 = vpop.xlane.xlu1 %2113  ;;  %9053 = vpow2.f32 %v2255_v18 }
 0x702   : > { %v2167_v37 = vsub.f32 %v11215_v31, %v2114_v41  ;;  %v2168_v48 = vsub.f32 %v15829_v36, %v2114_v41  ;;  %9055 = vpow2.f32 %v2257_v40  ;;  %v11970_v57 = vpop.f32.mrb[148].mxu0 }
 0x703   : > { %3447 = vrot.lane.b32.xlu1 %v15763_v34, %s9743_s26  ;;  %15830 = vst [vmem:[#allocation38_spill] sm:$0xff] %v11970_v57  ;;  %v11972_v43 = vpop.f32.mrb[149].mxu0 }
 0x704   : > { %v2263_v26 = vmul.f32 1.442695, %v2167_v37  ;;  %v2265_v29 = vmul.f32 1.442695, %v2168_v48  ;;  %15831 = vst [vmem:[#allocation137_spill] sm:$0xff] %v11972_v43  ;;  %v11976_v19 = vsel %vm2018_vm11, %v11972_v43, -inf }
 0x705   : > { %15832 = vst [vmem:[#allocation138_spill] sm:$0xff] %v11976_v19  ;;  %v11978_v18 = vpop.f32.mrb[150].mxu0  ;;  %v3432_v31 = vpop.permute.xlu1 %3431 }
 0x706   : > { %15833 = vst [vmem:[#allocation139_spill] sm:$0xff] %v11978_v18  ;;  %9057 = vpow2.f32 %v2263_v26  ;;  %3512 = vmatpush1.bf16.msra.mxu1 %v3432_v31  ;;  %v11982_v40 = vpop.f32.mrb[151].mxu0  ;;  %v11993_v26 = vpop.eup %9049 }
 0x707   : > { %15834 = vst [vmem:[#allocation140_spill] sm:$0xff] %v11982_v40  ;;  %9059 = vpow2.f32 %v2265_v29  ;;  %v11986_v48 = vsel %vm2018_vm11, %v11982_v40, -inf  ;;  %4875 = vrot.lane.b32.xlu1 %v15811_v39, %s9742_s24  ;;  %3513 = vmatprep.subr.bf16.mxu1 %v15655_v20  ;;  %15836 = vst [vmem:[#allocation142_spill] sm:$0xff] %v11993_v26  ;;  %v11996_v31 = vpop.eup %9051  ;;  %v4870_v29 = vpop.permute.xlu0 %4869 }
 0x708   : > { %15835 = vst [vmem:[#allocation141_spill] sm:$0xff] %v11986_v48  ;;  %15837 = vst [vmem:[#allocation143_spill] sm:$0xff] %v11996_v31 }
 0x709   : > { %v4868_v36 = vpop.permute.xlu1 %4867 }
 0x70a   : > { %3514 = vmatpush1.bf16.msra.mxu1 %v3434_v16  ;;  %7974 = vmatmul.mubr.msk.bf16.gmra.mrb[184].mxu0 %vm1810_vm9, %v4868_v36  ;;  %v12000_v41 = vpop.f32.mrb[152].mxu0 }
 0x70b   : > { %3449 = vrot.lane.b32.xlu1 %v15745_v17, %s9743_s26  ;;  %15838 = vst [vmem:[#allocation144_spill] sm:$0xff] %v12000_v41  ;;  %3515 = vmatprep.subr.bf16.mxu1 %v15655_v20  ;;  %v9054_v12 = vpop.eup %9053  ;;  %v12005_v37 = vsel %vm1850_vm8, %v12000_v41, -inf  ;;  %v12007_v40 = vpop.f32.mrb[153].mxu0 }
 0x70c   : > { %15839 = vst [vmem:[#allocation145_spill] sm:$0xff] %v12007_v40  ;;  %5036 = vmatprep.mubr.bf16.mxu0 %v15655_v20  ;;  %v9056_v16 = vpop.eup %9055  ;;  %v12012_v36 = vsel %vm2116_vm12, %v12007_v40, -inf  ;;  %v4065_v43 = vpop.f32.mrb[154].mxu0  ;;  %v2392_v51 = vpack.c.bf16 %v9054_v12, %v11993_v26 }
 0x70d   : > { %v4066_v48 = vpop.f32.mrb[155].mxu0  ;;  %v2393_v41 = vpack.c.bf16 %v9056_v16, %v11996_v31  ;;  %v2355_v18 = vsel %vm2018_vm11, %v9056_v16, 0.0  ;;  %v3438_v43 = vpop.permute.xlu0 %3437  ;;  %v15856_v31 = vld [vmem:[#allocation26_spill] sm:$0xff] }
 0x70e   : > { %3516 = vmatpush1.bf16.msra.mxu1 %v3436_v1  ;;  %v12020_v19 = vadd.f32 %v9054_v12, %v2355_v18 }
 0x70f   : > { %3517 = vmatprep.subr.bf16.mxu1 %v15655_v20  ;;  %7909 = vmatprep.mubr.msk.bf16.mxu1 %vm2018_vm11, %v2393_v41 }
 0x710   : > { %15840 = vst [vmem:[#allocation146_spill] sm:$0xff] %v12020_v19  ;;  %v9058_v57 = vpop.eup %9057  ;;  %2605 = vmatmul.mubr.bf16.gmra.mrb[92].mxu1 %v2392_v51  ;;  %v15842_v51 = vmax.f32 %v11351_v49, %v11359_v38  ;;  %v15857_v19 = vmax.f32 %v11452_v4, %v11462_v23 }
 0x711   : > { %v9060_v40 = vpop.eup %9059  ;;  %v2394_v26 = vpack.c.bf16 %v9058_v57, %v11904_v21 }
 0x712   : > { %3518 = vmatpush1.bf16.msra.mxu1 %v3438_v43  ;;  %7975 = vmatmul.mubr.msk.bf16.gmra.mrb[188].mxu0 %vm1810_vm9, %v4870_v29  ;;  %v2395_v1 = vpack.c.bf16 %v9060_v40, %v11908_v59  ;;  %v2363_v48 = vsel %vm2018_vm11, %v9060_v40, 0.0  ;;  %v12027_v16 = vpop.f32.mrb[156].mxu0  ;;  %v15846_v29 = vmax.f32 %v11390_v52, %v11400_v3 }
 0x713   : > { %3519 = vmatprep.subr.bf16.mxu1 %v15655_v20  ;;  %5046 = vmatprep.mubr.bf16.mxu0 %v15655_v20  ;;  %v12031_v12 = vadd.f32 %v9058_v57, %v2363_v48  ;;  %v12037_v21 = vpop.f32.mrb[157].mxu0 }
 0x714   : > { %7910 = vmatprep.mubr.msk.bf16.mxu1 %vm2018_vm11, %v2395_v1  ;;  %3085 = vmax.xlane.f32.xlu0 %v15842_v51  ;;  %15843 = vst [vmem:[#allocation148_spill] sm:$0xff] %v12037_v21  ;;  %v12041_v59 = vsel %vm2018_vm11, %v12037_v21, -inf  ;;  %v12043_v18 = vpop.f32.mrb[158].mxu0  ;;  %v15848_v1 = vmax.f32 %v11416_v55, %v11429_v27 }
 0x715   : > { %15841 = vst [vmem:[#allocation147_spill] sm:$0xff] %v12031_v12  ;;  %v12047_v40 = vpop.f32.mrb[159].mxu0 }
 0x716   : > { %15844 = vst [vmem:[#allocation149_spill] sm:$0xff] %v12047_v40  ;;  %v12051_v57 = vsel %vm2018_vm11, %v12047_v40, -inf }
 0x717   : > { %15845 = vst [vmem:[#allocation150_spill] sm:$0xff] %v12051_v57 }
 0x718   : > { %3097 = vmax.xlane.f32.xlu0 %v15846_v29  ;;  %2613 = vmatmul.mubr.bf16.gmra.mrb[96].mxu1 %v2394_v26  ;;  %v15854_v29 = vmax.f32 %v11431_v14, %v11441_v42 }
 0x71a   : > { %v12058_v43 = vpop.f32.mrb[160].mxu0 }
 0x71b   : > { %15847 = vst [vmem:[#allocation151_spill] sm:$0xff] %v12058_v43  ;;  %v12063_v48 = vpop.f32.mrb[161].mxu0 }
 0x71c   : > { %3101 = vmax.xlane.f32.xlu0 %v15848_v1  ;;  %15849 = vst [vmem:[#allocation152_spill] sm:$0xff] %v12063_v48  ;;  %v12067_v51 = vsel %vm2018_vm11, %v12063_v48, -inf  ;;  %v12069_v9 = vpop.f32.mrb[162].mxu0 }
 0x71d   : > { %15850 = vst [vmem:[#allocation153_spill] sm:$0xff] %v12067_v51  ;;  %15851 = vst [vmem:[#allocation154_spill] sm:$0xff] %v12069_v9  ;;  %v12073_v3 = vpop.f32.mrb[163].mxu0  ;;  %v16015_v9 = vld [vmem:[#allocation78_spill] sm:$0xff] }
 0x71e   : > { %15852 = vst [vmem:[#allocation155_spill] sm:$0xff] %v12073_v3  ;;  %v12077_v26 = vsel %vm2018_vm11, %v12073_v3, -inf }
 0x71f   : > { %15853 = vst [vmem:[#allocation156_spill] sm:$0xff] %v12077_v26 }
 0x720   : > { %3105 = vmax.xlane.f32.xlu0 %v15854_v29 }
 0x722   : > { %v12084_v41 = vpop.f32.mrb[164].mxu0 }
 0x723   : > { %v3054_v1 = vpop.xlane.xlu0 %3053  ;;  %15855 = vst [vmem:[#allocation157_spill] sm:$0xff] %v12084_v41  ;;  %v12091_v48 = vpop.f32.mrb[165].mxu0 }
 0x724   : > { %v3152_v12 = vsub.f32 %v11257_v30, %v3054_v1  ;;  %v3153_v38 = vsub.f32 %v15856_v31, %v3054_v1  ;;  %3109 = vmax.xlane.f32.xlu0 %v15857_v19  ;;  %15858 = vst [vmem:[#allocation26_spill] sm:$0xff] %v12091_v48  ;;  %v12095_v27 = vsel %vm2018_vm11, %v12091_v48, -inf  ;;  %v12097_v3 = vpop.f32.mrb[166].mxu0  ;;  %v15863_v19 = vmax.f32 %v11464_v45, %v11474_v63  ;;  %v15881_v48 = vld [vmem:[#allocation40_spill] sm:$0xff] }
 0x725   : > { %15859 = vst [vmem:[#allocation158_spill] sm:$0xff] %v12095_v27  ;;  %15860 = vst [vmem:[#allocation159_spill] sm:$0xff] %v12097_v3  ;;  %v12101_v30 = vpop.f32.mrb[167].mxu0 }
 0x726   : > { %v3202_v42 = vmul.f32 1.442695, %v3152_v12  ;;  %v3204_v29 = vmul.f32 1.442695, %v3153_v38  ;;  %15861 = vst [vmem:[#allocation160_spill] sm:$0xff] %v12101_v30  ;;  %v12105_v31 = vsel %vm2018_vm11, %v12101_v30, -inf  ;;  %v15865_v38 = vmax.f32 %v11483_v8, %v11492_v62 }
 0x727   : > { %15862 = vst [vmem:[#allocation161_spill] sm:$0xff] %v12105_v31  ;;  %v15872_v62 = vld [vmem:[#allocation51_spill] sm:$0xff]  ;;  %v12164_v21 = vpop.xlane.xlu0 %3061 }
 0x728   : > { %9061 = vpow2.f32 %v3202_v42  ;;  %3113 = vmax.xlane.f32.xlu0 %v15863_v19  ;;  %v15871_v19 = vld [vmem:[#allocation49_spill] sm:$0xff] }
 0x729   : > { %9063 = vpow2.f32 %v3204_v29 }
 0x72a   : > { %v12112_v12 = vpop.f32.mrb[168].mxu0 }
 0x72b   : > { %15864 = vst [vmem:[#allocation162_spill] sm:$0xff] %v12112_v12  ;;  %v12117_v1 = vpop.f32.mrb[169].mxu0  ;;  %v15876_v12 = vld [vmem:[#allocation55_spill] sm:$0xff] }
 0x72c   : > { %3117 = vmax.xlane.f32.xlu0 %v15865_v38  ;;  %15866 = vst [vmem:[#allocation163_spill] sm:$0xff] %v12117_v1  ;;  %v12121_v40 = vsel %vm2018_vm11, %v12117_v1, -inf  ;;  %v12123_v42 = vpop.f32.mrb[170].mxu0  ;;  %v15873_v38 = vmax.f32 %v15871_v19, %v15872_v62  ;;  %v15874_v1 = vmax.f32 %v11496_v53, %v11509_v15  ;;  %v15880_v15 = vmax.f32 %v11530_v22, %v11540_v2 }
 0x72d   : > { %15867 = vst [vmem:[#allocation164_spill] sm:$0xff] %v12121_v40  ;;  %15868 = vst [vmem:[#allocation165_spill] sm:$0xff] %v12123_v42  ;;  %v12127_v63 = vpop.f32.mrb[171].mxu0  ;;  %v15875_v40 = vld [vmem:[#allocation53_spill] sm:$0xff]  ;;  %v15882_v42 = vld [vmem:[#allocation19_spill] sm:$0xff] }
 0x72e   : > { %15869 = vst [vmem:[#allocation166_spill] sm:$0xff] %v12127_v63  ;;  %v12131_v29 = vsel %vm2018_vm11, %v12127_v63, -inf  ;;  %v15877_v27 = vmax.f32 %v15875_v40, %v15876_v12  ;;  %v15878_v63 = vmax.f32 %v11518_v54, %v11528_v50 }
 0x72f   : > { %15870 = vst [vmem:[#allocation167_spill] sm:$0xff] %v12131_v29  ;;  %3081 = vmax.xlane.f32.xlu1 %v15873_v38 }
 0x730   : > { %3121 = vmax.xlane.f32.xlu0 %v15874_v1 }
 0x732   : > { %v12141_v30 = vpop.eup %9061 }
 0x733   : > { %v12143_v23 = vpop.eup %9063  ;;  %3089 = vmax.xlane.f32.xlu1 %v15877_v27  ;;  %v15883_v27 = vmax.f32 %v11561_v60, %v11572_v35 }
 0x734   : > { %3125 = vmax.xlane.f32.xlu0 %v15878_v63  ;;  %v3302_v62 = vsel %vm2018_vm11, %v12143_v23, 0.0 }
 0x735   : > { %v12154_v38 = vadd.f32 %v12141_v30, %v3302_v62 }
 0x737   : > { %15879 = vst [vmem:[#allocation49_spill] sm:$0xff] %v12154_v38  ;;  %v15884_v38 = vld [vmem:[#allocation29_spill] sm:$0xff] }
 0x738   : > { %3129 = vmax.xlane.f32.xlu0 %v15880_v15 }
 0x73a   : > { %v2120_v1 = vpop.xlane.xlu1 %2119 }
 0x73b   : > { %v2169_v29 = vsub.f32 %v15881_v48, %v2120_v1  ;;  %v2170_v12 = vsub.f32 %v15882_v42, %v2120_v1  ;;  %v15885_v48 = vmax.f32 %v11588_v5, %v11597_v47 }
 0x73c   : > { %3137 = vmax.xlane.f32.xlu0 %v15883_v27 }
 0x73d   : > { %v2267_v50 = vmul.f32 1.442695, %v2169_v29  ;;  %v2269_v63 = vmul.f32 1.442695, %v2170_v12 }
 0x73e   : > { %v3058_v41 = vpop.xlane.xlu1 %3057 }
 0x73f   : > { %9065 = vpow2.f32 %v2267_v50  ;;  %v3154_v62 = vsub.f32 %v15740_v56, %v3058_v41  ;;  %v3155_v2 = vsub.f32 %v15884_v38, %v3058_v41  ;;  %v15887_v56 = vmax.f32 %v11599_v7, %v11610_v58  ;;  %v3444_v41 = vpop.permute.xlu0 %3443 }
 0x740   : > { %9067 = vpow2.f32 %v2269_v63  ;;  %3141 = vmax.xlane.f32.xlu0 %v15885_v48 }
 0x741   : > { %v3206_v42 = vmul.f32 1.442695, %v3154_v62  ;;  %v3208_v15 = vmul.f32 1.442695, %v3155_v2  ;;  %v12171_v35 = vpop.f32.mrb[52].mxu1 }
 0x742   : > { %v3440_v1 = vpop.permute.xlu1 %3439  ;;  %15886 = vst [vmem:[#allocation51_spill] sm:$0xff] %v12171_v35  ;;  %v2528_v29 = vpop.f32.mrb[53].mxu1 }
 0x743   : > { %9069 = vpow2.f32 %v3206_v42  ;;  %3520 = vmatpush1.bf16.msra.mxu1 %v3440_v1  ;;  %v12178_v38 = vpop.f32.mrb[54].mxu1 }
 0x744   : > { %9071 = vpow2.f32 %v3208_v15  ;;  %4877 = vrot.lane.b32.xlu1 %v15818_v33, %s9742_s24  ;;  %3145 = vmax.xlane.f32.xlu0 %v15887_v56  ;;  %15888 = vst [vmem:[#allocation53_spill] sm:$0xff] %v12178_v38  ;;  %v2531_v47 = vpop.f32.mrb[55].mxu1  ;;  %v4874_v15 = vpop.permute.xlu0 %4873 }
 0x745   : > { %3521 = vmatprep.subr.bf16.mxu1 %v15655_v20 }
 0x746   : > { %v4872_v12 = vpop.permute.xlu1 %4871 }
 0x747   : > { %7976 = vmatmul.mubr.msk.bf16.gmra.mrb[192].mxu0 %vm1810_vm9, %v4872_v12 }
 0x748   : > { %5056 = vmatprep.mubr.bf16.mxu0 %v15655_v20 }
 0x749   : > { %v9066_v27 = vpop.eup %9065 }
 0x74a   : > { %v9068_v50 = vpop.eup %9067  ;;  %v3442_v63 = vpop.permute.xlu1 %3441  ;;  %v2396_v62 = vpack.c.bf16 %v9066_v27, %v9066_v27  ;;  %v2367_v2 = vsel %vm1850_vm8, %v9066_v27, 0.0 }
 0x74b   : > { %v12184_v48 = vpop.f32.mrb[56].mxu1  ;;  %3522 = vmatpush1.bf16.msra.mxu1 %v3442_v63  ;;  %v2397_v58 = vpack.c.bf16 %v9068_v50, %v9068_v50  ;;  %v2368_v42 = vsel %vm2116_vm12, %v9068_v50, 0.0 }
 0x74c   : > { %15889 = vst [vmem:[#allocation55_spill] sm:$0xff] %v12184_v48  ;;  %v2536_v1 = vpop.f32.mrb[57].mxu1  ;;  %3523 = vmatprep.subr.bf16.mxu1 %v15655_v20  ;;  %v12188_v29 = vadd.f32 %v2368_v42, %v2367_v2 }
 0x74d   : > { %v12190_v56 = vpop.eup %9069  ;;  %v12192_v47 = vpop.f32.mrb[58].mxu1  ;;  %7911 = vmatprep.mubr.msk.bf16.mxu1 %vm2018_vm11, %v2397_v58 }
 0x74e   : > { %15890 = vst [vmem:[#allocation40_spill] sm:$0xff] %v12188_v29  ;;  %15891 = vst [vmem:[#allocation19_spill] sm:$0xff] %v12192_v47  ;;  %v9072_v12 = vpop.eup %9071  ;;  %v2539_v27 = vpop.f32.mrb[59].mxu1  ;;  %2621 = vmatmul.mubr.bf16.gmra.mrb[100].mxu1 %v2396_v62  ;;  %v15899_v29 = vld [vmem:[#allocation44_spill] sm:$0xff] }
 0x74f   : > { %3524 = vmatpush1.bf16.msra.mxu1 %v3444_v41  ;;  %7977 = vmatmul.mubr.msk.bf16.gmra.mrb[196].mxu0 %vm1810_vm9, %v4874_v15  ;;  %v3404_v50 = vpack.c.bf16 %v9072_v12, %v12143_v23  ;;  %v3306_v2 = vsel %vm2018_vm11, %v9072_v12, 0.0  ;;  %v3446_v62 = vpop.permute.xlu0 %3445 }
 0x750   : > { %3525 = vmatprep.subr.bf16.mxu1 %v15655_v20  ;;  %5066 = vmatprep.mubr.bf16.mxu0 %v15655_v20  ;;  %v12203_v42 = vadd.f32 %v12190_v56, %v3306_v2 }
 0x751   : > { %7926 = vmatprep.mubr.msk.bf16.mxu1 %vm2018_vm11, %v3404_v50 }
 0x752   : > { %15892 = vst [vmem:[#allocation29_spill] sm:$0xff] %v12203_v42  ;;  %v12206_v58 = vpop.f32.mrb[60].mxu1  ;;  %v15917_v42 = vld [vmem:[#allocation9_spill] sm:$0xff] }
 0x753   : > { %15893 = vst [vmem:[#allocation168_spill] sm:$0xff] %v12206_v58  ;;  %3526 = vmatpush1.bf16.msra.mxu1 %v3446_v62  ;;  %v2544_v41 = vpop.f32.mrb[61].mxu1 }
 0x754   : > { %3527 = vmatprep.subr.bf16.mxu1 %v15655_v20  ;;  %v12209_v15 = vpop.f32.mrb[62].mxu1 }
 0x755   : > { %15894 = vst [vmem:[#allocation169_spill] sm:$0xff] %v12209_v15  ;;  %v2547_v23 = vpop.f32.mrb[63].mxu1 }
 0x75a   : > { %4448 = vrot.lane.b32.xlu0 %v10472_v44, %s9744_s1  ;;  %v12213_v1 = vpop.f32.mrb[64].mxu1 }
 0x75b   : > { %15895 = vst [vmem:[#allocation170_spill] sm:$0xff] %v12213_v1  ;;  %v2552_v12 = vpop.f32.mrb[65].mxu1 }
 0x75c   : > { %v12215_v27 = vpop.f32.mrb[66].mxu1 }
 0x75d   : > { %15896 = vst [vmem:[#allocation171_spill] sm:$0xff] %v12215_v27  ;;  %v2555_v50 = vpop.f32.mrb[67].mxu1 }
 0x75e   : > { %4452 = vrot.lane.b32.xlu0 %v10491_v11, %s9744_s1  ;;  %v15900_v50 = vmax.f32 %v11378_v28, %v11388_v0 }
 0x762   : > { %4454 = vrot.lane.b32.xlu0 %v10501_v6, %s9744_s1  ;;  %v12221_v2 = vpop.f32.mrb[68].mxu1 }
 0x763   : > { %15897 = vst [vmem:[#allocation172_spill] sm:$0xff] %v12221_v2  ;;  %v2560_v62 = vpop.f32.mrb[69].mxu1  ;;  %v15902_v2 = vld [vmem:[#allocation76_spill] sm:$0xff] }
 0x764   : > { %v3070_v41 = vpop.xlane.xlu0 %3069  ;;  %v12223_v23 = vpop.f32.mrb[70].mxu1  ;;  %v15903_v62 = vld [vmem:[#allocation79_spill] sm:$0xff] }
 0x765   : > { %15898 = vst [vmem:[#allocation173_spill] sm:$0xff] %v12223_v23  ;;  %v3160_v63 = vsub.f32 %v15781_v32, %v3070_v41  ;;  %v3161_v1 = vsub.f32 %v15899_v29, %v3070_v41  ;;  %v2563_v12 = vpop.f32.mrb[71].mxu1  ;;  %v15904_v47 = vmax.f32 %v15902_v2, %v15903_v62 }
 0x766   : > { %v15915_v12 = vld [vmem:[#allocation41_spill] sm:$0xff] }
 0x767   : > { %v3218_v15 = vmul.f32 1.442695, %v3160_v63  ;;  %v3220_v27 = vmul.f32 1.442695, %v3161_v1 }
 0x768   : > { %3093 = vmax.xlane.f32.xlu1 %v15900_v50 }
 0x769   : > { %9073 = vpow2.f32 %v3218_v15 }
 0x76a   : > { %9075 = vpow2.f32 %v3220_v27  ;;  %v12230_v58 = vpop.f32.mrb[172].mxu0 }
 0x76b   : > { %15901 = vst [vmem:[#allocation44_spill] sm:$0xff] %v12230_v58  ;;  %v12235_v48 = vpop.f32.mrb[173].mxu0  ;;  %v12237_v32 = vpop.f32.mrb[72].mxu1 }
 0x76c   : > { %3133 = vmax.xlane.f32.xlu1 %v15904_v47  ;;  %15905 = vst [vmem:[#allocation76_spill] sm:$0xff] %v12235_v48  ;;  %15906 = vst [vmem:[#allocation79_spill] sm:$0xff] %v12237_v32  ;;  %v12241_v29 = vsel %vm2018_vm11, %v12235_v48, -inf  ;;  %v12243_v63 = vpop.f32.mrb[174].mxu0  ;;  %v2568_v0 = vpop.f32.mrb[73].mxu1 }
 0x76d   : > { %15907 = vst [vmem:[#allocation174_spill] sm:$0xff] %v12241_v29  ;;  %15908 = vst [vmem:[#allocation175_spill] sm:$0xff] %v12243_v63  ;;  %v12247_v1 = vpop.f32.mrb[175].mxu0  ;;  %v12249_v27 = vpop.f32.mrb[74].mxu1 }
 0x76e   : > { %15909 = vst [vmem:[#allocation176_spill] sm:$0xff] %v12247_v1  ;;  %15910 = vst [vmem:[#allocation177_spill] sm:$0xff] %v12249_v27  ;;  %v12253_v47 = vsel %vm2018_vm11, %v12247_v1, -inf  ;;  %v2571_v41 = vpop.f32.mrb[75].mxu1 }
 0x76f   : > { %15911 = vst [vmem:[#allocation178_spill] sm:$0xff] %v12253_v47 }
 0x773   : > { %v12257_v50 = vpop.eup %9073  ;;  %v12261_v0 = vpop.f32.mrb[76].mxu1 }
 0x774   : > { %v12259_v62 = vpop.eup %9075  ;;  %15912 = vst [vmem:[#allocation179_spill] sm:$0xff] %v12261_v0  ;;  %v2576_v32 = vpop.f32.mrb[77].mxu1 }
 0x775   : > { %v3318_v15 = vsel %vm2018_vm11, %v12259_v62, 0.0  ;;  %v12268_v23 = vpop.f32.mrb[78].mxu1 }
 0x776   : > { %v12266_v27 = vadd.f32 %v12257_v50, %v3318_v15  ;;  %15914 = vst [vmem:[#allocation181_spill] sm:$0xff] %v12268_v23  ;;  %v2579_v38 = vpop.f32.mrb[79].mxu1  ;;  %v15919_v23 = vld [vmem:[#allocation46_spill] sm:$0xff] }
 0x778   : > { %15913 = vst [vmem:[#allocation180_spill] sm:$0xff] %v12266_v27 }
 0x77b   : > { %v3066_v41 = vpop.xlane.xlu1 %3065  ;;  %v12272_v1 = vpop.f32.mrb[80].mxu1 }
 0x77c   : > { %v3158_v35 = vsub.f32 %v15806_v25, %v3066_v41  ;;  %v3159_v48 = vsub.f32 %v15915_v12, %v3066_v41  ;;  %15916 = vst [vmem:[#allocation41_spill] sm:$0xff] %v12272_v1  ;;  %v2584_v58 = vpop.f32.mrb[81].mxu1  ;;  %v15920_v25 = vld [vmem:[#allocation10_spill] sm:$0xff]  ;;  %v15921_v12 = vld [vmem:[#allocation28_spill] sm:$0xff] }
 0x77d   : > { %4446 = vrot.lane.b32.xlu1 %v15917_v42, %s9744_s1  ;;  %v12276_v32 = vpop.f32.mrb[82].mxu1  ;;  %v15922_v41 = vld [vmem:[#allocation92_spill] sm:$0xff]  ;;  %v15924_v58 = vld [vmem:[#allocation37_spill] sm:$0xff] }
 0x77e   : > { %v3214_v0 = vmul.f32 1.442695, %v3158_v35  ;;  %v3216_v29 = vmul.f32 1.442695, %v3159_v48  ;;  %15918 = vst [vmem:[#allocation9_spill] sm:$0xff] %v12276_v32  ;;  %v2587_v27 = vpop.f32.mrb[83].mxu1  ;;  %v15923_v1 = vmax.f32 %v15921_v12, %v15922_v41  ;;  %v3157_v32 = vsub.f32 %v15924_v58, %v12164_v21 }
 0x77f   : > { %v3074_v15 = vpop.xlane.xlu1 %3073 }
 0x780   : > { %9077 = vpow2.f32 %v3214_v0  ;;  %v3162_v38 = vsub.f32 %v11311_v10, %v3074_v15  ;;  %v3163_v47 = vsub.f32 %v15919_v23, %v3074_v15  ;;  %v12287_v0 = vpop.xlane.xlu0 %3077  ;;  %v3212_v10 = vmul.f32 1.442695, %v3157_v32 }
 0x781   : > { %9079 = vpow2.f32 %v3216_v29  ;;  %4450 = vrot.lane.b32.xlu1 %v15920_v25, %s9744_s1  ;;  %4070 = vmax.xlane.f32.xlu0 %v15923_v1  ;;  %v15925_v1 = vld [vmem:[#allocation33_spill] sm:$0xff] }
 0x782   : > { %v3222_v35 = vmul.f32 1.442695, %v3162_v38  ;;  %v3224_v48 = vmul.f32 1.442695, %v3163_v47  ;;  %v3156_v27 = vsub.f32 %v15925_v1, %v12164_v21 }
 0x783   : > { %v3448_v63 = vpop.permute.xlu1 %3447 }
 0x784   : > { %9081 = vpow2.f32 %v3222_v35  ;;  %3528 = vmatpush1.bf16.msra.mxu1 %v3448_v63  ;;  %v3452_v47 = vpop.permute.xlu0 %3451  ;;  %v3210_v35 = vmul.f32 1.442695, %v3156_v27 }
 0x785   : > { %9083 = vpow2.f32 %v3224_v48  ;;  %3529 = vmatprep.subr.bf16.mxu1 %v15655_v20 }
 0x786   : > { %9085 = vpow2.f32 %v3212_v10 }
 0x787   : > { %v4876_v23 = vpop.permute.xlu1 %4875  ;;  %9087 = vpow2.f32 %v3210_v35 }
 0x788   : > { %7978 = vmatmul.mubr.msk.bf16.gmra.mrb[200].mxu0 %vm1810_vm9, %v4876_v23  ;;  %v3454_v23 = vpop.permute.xlu0 %3453 }
 0x789   : > { %5076 = vmatprep.mubr.bf16.mxu0 %v15655_v20 }
 0x78a   : > { %v9078_v29 = vpop.eup %9077 }
 0x78b   : > { %v9080_v15 = vpop.eup %9079  ;;  %v3450_v38 = vpop.permute.xlu1 %3449 }
 0x78c   : > { %3530 = vmatpush1.bf16.msra.mxu1 %v3450_v38  ;;  %v3314_v63 = vsel %vm2018_vm11, %v9080_v15, 0.0  ;;  %v3507_v38 = vsel %vm2488_vm10, %v3454_v23, 0  ;;  %v15933_v23 = vld [vmem:[#allocation52_spill] sm:$0xff] }
 0x78d   : > { %3531 = vmatprep.subr.bf16.mxu1 %v15655_v20  ;;  %v12296_v41 = vadd.f32 %v9078_v29, %v3314_v63 }
 0x78e   : > { %v9082_v32 = vpop.eup %9081 }
 0x78f   : > { %15926 = vst [vmem:[#allocation46_spill] sm:$0xff] %v12296_v41  ;;  %v9084_v48 = vpop.eup %9083  ;;  %v3407_v58 = vpack.c.bf16 %v9082_v32, %v12257_v50 }
 0x790   : > { %3532 = vmatpush1.bf16.msra.mxu1 %v3452_v47  ;;  %v3408_v21 = vpack.c.bf16 %v9084_v48, %v12259_v62  ;;  %v3322_v1 = vsel %vm2018_vm11, %v9084_v48, 0.0  ;;  %v12305_v63 = vpop.eup %9085  ;;  %v15929_v62 = vpack.c.bf16 %v12190_v56, %v12141_v30 }
 0x791   : > { %3533 = vmatprep.subr.bf16.mxu1 %v15655_v20  ;;  %v12302_v10 = vadd.f32 %v9082_v32, %v3322_v1  ;;  %15928 = vst [vmem:[#allocation28_spill] sm:$0xff] %v12305_v63  ;;  %v3406_v50 = vpack.c.bf16 %v9080_v15, %v12305_v63  ;;  %v12315_v27 = vpop.eup %9087 }
 0x792   : > { %15930 = vst [vmem:[#allocation92_spill] sm:$0xff] %v12315_v27  ;;  %v3405_v47 = vpack.c.bf16 %v9078_v29, %v12315_v27 }
 0x793   : > { %15927 = vst [vmem:[#allocation10_spill] sm:$0xff] %v12302_v10  ;;  %v15943_v10 = vld [vmem:[#allocation93_spill] sm:$0xff] }
 0x794   : > { %3534 = vmatpush1.bf16.msra.mxu1 %v3507_v38 }
 0x795   : > { %4526 = vmatprep.subr.bf16.mxu1 %v15655_v20 }
 0x797   : > { %4458 = vrot.lane.b32.xlu0 %v15768_v24, %s9744_s1  ;;  %3542 = vmatmul.mubr.bf16.vlgmr.msra.gmra.mrb[104].mxu1 %v15929_v62 }
 0x798   : > { %7927 = vmatprep.mubr.msk.bf16.mxu1 %vm2018_vm11, %v3406_v50 }
 0x79f   : > { %3550 = vmatmul.mubr.bf16.gmra.mrb[108].mxu1 %v3405_v47  ;;  %v12319_v32 = vpop.f32.mrb[176].mxu0 }
 0x7a0   : > { %7928 = vmatprep.mubr.msk.bf16.mxu1 %vm2018_vm11, %v3408_v21  ;;  %15931 = vst [vmem:[#allocation37_spill] sm:$0xff] %v12319_v32  ;;  %v12321_v15 = vpop.f32.mrb[177].mxu0 }
 0x7a1   : > { %v3086_v35 = vpop.xlane.xlu0 %3085  ;;  %15932 = vst [vmem:[#allocation33_spill] sm:$0xff] %v12321_v15  ;;  %v12327_v30 = vsel %vm2018_vm11, %v12321_v15, -inf  ;;  %v12329_v56 = vpop.f32.mrb[178].mxu0 }
 0x7a2   : > { %v3168_v48 = vsub.f32 %v11351_v49, %v3086_v35  ;;  %v3169_v1 = vsub.f32 %v15933_v23, %v3086_v35  ;;  %15934 = vst [vmem:[#allocation52_spill] sm:$0xff] %v12327_v30  ;;  %15935 = vst [vmem:[#allocation182_spill] sm:$0xff] %v12329_v56  ;;  %v12333_v38 = vpop.f32.mrb[179].mxu0  ;;  %v15938_v35 = vld [vmem:[#allocation87_spill] sm:$0xff]  ;;  %v15939_v23 = vld [vmem:[#allocation89_spill] sm:$0xff] }
 0x7a3   : > { %15936 = vst [vmem:[#allocation183_spill] sm:$0xff] %v12333_v38  ;;  %v12337_v62 = vsel %vm2018_vm11, %v12333_v38, -inf  ;;  %v15940_v15 = vmax.f32 %v15938_v35, %v15939_v23 }
 0x7a4   : > { %v3234_v21 = vmul.f32 1.442695, %v3168_v48  ;;  %v3236_v50 = vmul.f32 1.442695, %v3169_v1  ;;  %15937 = vst [vmem:[#allocation184_spill] sm:$0xff] %v12337_v62  ;;  %v15942_v1 = vld [vmem:[#allocation21_spill] sm:$0xff] }
 0x7a5   : > { %v12341_v47 = vpop.xlane.xlu0 %3097  ;;  %3150 = vmax.xlane.f32.xlu1 %v15940_v15  ;;  %v15944_v41 = vmax.f32 %v15942_v1, %v15943_v10  ;;  %v15946_v62 = vld [vmem:[#allocation61_spill] sm:$0xff] }
 0x7a6   : > { %9089 = vpow2.f32 %v3234_v21 }
 0x7a7   : > { %9091 = vpow2.f32 %v3236_v50  ;;  %3558 = vmatmul.mubr.bf16.gmra.mrb[112].mxu1 %v3407_v58  ;;  %v12346_v29 = vpop.f32.mrb[180].mxu0 }
 0x7a8   : > { %15941 = vst [vmem:[#allocation87_spill] sm:$0xff] %v12346_v29  ;;  %v12351_v38 = vpop.f32.mrb[181].mxu0 }
 0x7a9   : > { %v3102_v48 = vpop.xlane.xlu0 %3101  ;;  %4074 = vmax.xlane.f32.xlu1 %v15944_v41  ;;  %15945 = vst [vmem:[#allocation89_spill] sm:$0xff] %v12351_v38  ;;  %v12357_v35 = vsel %vm2018_vm11, %v12351_v38, -inf  ;;  %v12359_v15 = vpop.f32.mrb[182].mxu0 }
 0x7aa   : > { %v3176_v49 = vsub.f32 %v11416_v55, %v3102_v48  ;;  %v3177_v56 = vsub.f32 %v15946_v62, %v3102_v48  ;;  %15947 = vst [vmem:[#allocation21_spill] sm:$0xff] %v12357_v35  ;;  %15948 = vst [vmem:[#allocation93_spill] sm:$0xff] %v12359_v15  ;;  %v12363_v21 = vpop.f32.mrb[183].mxu0  ;;  %v15951_v48 = vld [vmem:[#allocation62_spill] sm:$0xff]  ;;  %v15954_v55 = vld [vmem:[#allocation65_spill] sm:$0xff] }
 0x7ab   : > { %15949 = vst [vmem:[#allocation61_spill] sm:$0xff] %v12363_v21  ;;  %v12367_v41 = vsel %vm2018_vm11, %v12363_v21, -inf }
 0x7ac   : > { %v3250_v50 = vmul.f32 1.442695, %v3176_v49  ;;  %v3252_v10 = vmul.f32 1.442695, %v3177_v56  ;;  %15950 = vst [vmem:[#allocation185_spill] sm:$0xff] %v12367_v41 }
 0x7ad   : > { %v3106_v62 = vpop.xlane.xlu0 %3105 }
 0x7ae   : > { %9093 = vpow2.f32 %v3250_v50  ;;  %v3178_v23 = vsub.f32 %v11431_v14, %v3106_v62  ;;  %v3179_v38 = vsub.f32 %v15951_v48, %v3106_v62  ;;  %v12373_v30 = vpop.f32.mrb[84].mxu1 }
 0x7af   : > { %9095 = vpow2.f32 %v3252_v10  ;;  %15952 = vst [vmem:[#allocation62_spill] sm:$0xff] %v12373_v30  ;;  %v2592_v35 = vpop.f32.mrb[85].mxu1 }
 0x7b0   : > { %v12375_v58 = vpop.eup %9089  ;;  %v3254_v49 = vmul.f32 1.442695, %v3178_v23  ;;  %v3256_v56 = vmul.f32 1.442695, %v3179_v38  ;;  %v12379_v21 = vpop.f32.mrb[86].mxu1  ;;  %v3164_v23 = vsub.f32 %v11327_v13, %v12287_v0 }
 0x7b1   : > { %v12377_v29 = vpop.eup %9091  ;;  %15953 = vst [vmem:[#allocation186_spill] sm:$0xff] %v12379_v21  ;;  %v3110_v32 = vpop.xlane.xlu0 %3109 }
 0x7b2   : > { %9097 = vpow2.f32 %v3254_v49  ;;  %v3180_v50 = vsub.f32 %v11452_v4, %v3110_v32  ;;  %v3181_v14 = vsub.f32 %v15954_v55, %v3110_v32  ;;  %v2595_v27 = vpop.f32.mrb[87].mxu1  ;;  %v3334_v10 = vsel %vm2018_vm11, %v12377_v29, 0.0  ;;  %v15956_v4 = vld [vmem:[#allocation66_spill] sm:$0xff]  ;;  %v15957_v32 = vld [vmem:[#allocation95_spill] sm:$0xff] }
 0x7b3   : > { %9099 = vpow2.f32 %v3256_v56  ;;  %v12386_v62 = vadd.f32 %v12375_v58, %v3334_v10  ;;  %v15958_v27 = vld [vmem:[#allocation97_spill] sm:$0xff] }
 0x7b4   : > { %v3258_v38 = vmul.f32 1.442695, %v3180_v50  ;;  %v3260_v35 = vmul.f32 1.442695, %v3181_v14  ;;  %v15959_v55 = vmax.f32 %v15957_v32, %v15958_v27  ;;  %v15961_v50 = vld [vmem:[#allocation48_spill] sm:$0xff] }
 0x7b5   : > { %15955 = vst [vmem:[#allocation65_spill] sm:$0xff] %v12386_v62  ;;  %v3114_v48 = vpop.xlane.xlu0 %3113  ;;  %v3165_v14 = vsub.f32 %v15961_v50, %v12287_v0 }
 0x7b6   : > { %9101 = vpow2.f32 %v3258_v38  ;;  %v3182_v49 = vsub.f32 %v11464_v45, %v3114_v48  ;;  %v3183_v30 = vsub.f32 %v15956_v4, %v3114_v48  ;;  %4082 = vmax.xlane.f32.xlu0 %v15959_v55  ;;  %v12395_v56 = vpop.f32.mrb[88].mxu1  ;;  %v3226_v45 = vmul.f32 1.442695, %v3164_v23 }
 0x7b7   : > { %9103 = vpow2.f32 %v3260_v35  ;;  %15960 = vst [vmem:[#allocation66_spill] sm:$0xff] %v12395_v56  ;;  %v2600_v62 = vpop.f32.mrb[89].mxu1  ;;  %v15963_v35 = vld [vmem:[#allocation69_spill] sm:$0xff]  ;;  %v15964_v56 = vld [vmem:[#allocation11_spill] sm:$0xff]  ;;  %v3228_v23 = vmul.f32 1.442695, %v3165_v14 }
 0x7b8   : > { %v12397_v10 = vpop.eup %9093  ;;  %v3262_v21 = vmul.f32 1.442695, %v3182_v49  ;;  %v3264_v13 = vmul.f32 1.442695, %v3183_v30  ;;  %v12403_v63 = vpop.f32.mrb[90].mxu1  ;;  %v15970_v14 = vld [vmem:[#allocation73_spill] sm:$0xff] }
 0x7b9   : > { %v12401_v38 = vpop.eup %9095  ;;  %15962 = vst [vmem:[#allocation95_spill] sm:$0xff] %v12403_v63  ;;  %v3118_v48 = vpop.xlane.xlu0 %3117 }
 0x7ba   : > { %9105 = vpow2.f32 %v3262_v21  ;;  %v3184_v4 = vsub.f32 %v11483_v8, %v3118_v48  ;;  %v3185_v27 = vsub.f32 %v15963_v35, %v3118_v48  ;;  %v2603_v55 = vpop.f32.mrb[91].mxu1  ;;  %4456 = vrot.lane.b32.xlu1 %v15964_v56, %s9744_s1  ;;  %v3350_v0 = vsel %vm2018_vm11, %v12401_v38, 0.0  ;;  %v15966_v35 = vld [vmem:[#allocation50_spill] sm:$0xff] }
 0x7bb   : > { %9107 = vpow2.f32 %v3264_v13  ;;  %v12412_v30 = vadd.f32 %v12397_v10, %v3350_v0 }
 0x7bc   : > { %v12414_v62 = vpop.eup %9097  ;;  %v3266_v49 = vmul.f32 1.442695, %v3184_v4  ;;  %v3268_v21 = vmul.f32 1.442695, %v3185_v27  ;;  %v3082_v50 = vpop.xlane.xlu1 %3081  ;;  %9109 = vpow2.f32 %v3226_v45 }
 0x7bd   : > { %15965 = vst [vmem:[#allocation97_spill] sm:$0xff] %v12412_v30  ;;  %v12416_v8 = vpop.eup %9099  ;;  %v3166_v48 = vsub.f32 %v15871_v19, %v3082_v50  ;;  %v3167_v55 = vsub.f32 %v15966_v35, %v3082_v50  ;;  %v3122_v63 = vpop.xlane.xlu0 %3121  ;;  %v15967_v30 = vld [vmem:[#allocation71_spill] sm:$0xff] }
 0x7be   : > { %9111 = vpow2.f32 %v3266_v49  ;;  %v3186_v0 = vsub.f32 %v11496_v53, %v3122_v63  ;;  %v3187_v41 = vsub.f32 %v15967_v30, %v3122_v63  ;;  %v3354_v19 = vsel %vm2018_vm11, %v12416_v8, 0.0  ;;  %v15969_v30 = vld [vmem:[#allocation54_spill] sm:$0xff] }
 0x7bf   : > { %9113 = vpow2.f32 %v3268_v21  ;;  %v3230_v4 = vmul.f32 1.442695, %v3166_v48  ;;  %v3232_v27 = vmul.f32 1.442695, %v3167_v55  ;;  %v12431_v49 = vadd.f32 %v12414_v62, %v3354_v19 }
 0x7c0   : > { %v12428_v45 = vpop.eup %9101  ;;  %9115 = vpow2.f32 %v3228_v23  ;;  %v3270_v50 = vmul.f32 1.442695, %v3186_v0  ;;  %v3272_v35 = vmul.f32 1.442695, %v3187_v41  ;;  %v3090_v13 = vpop.xlane.xlu1 %3089 }
 0x7c1   : > { %15968 = vst [vmem:[#allocation48_spill] sm:$0xff] %v12431_v49  ;;  %v12433_v53 = vpop.eup %9103  ;;  %9117 = vpow2.f32 %v3230_v4  ;;  %v3170_v63 = vsub.f32 %v15875_v40, %v3090_v13  ;;  %v3171_v21 = vsub.f32 %v15969_v30, %v3090_v13  ;;  %v3126_v48 = vpop.xlane.xlu0 %3125 }
 0x7c2   : > { %9119 = vpow2.f32 %v3232_v27  ;;  %v3188_v55 = vsub.f32 %v11518_v54, %v3126_v48  ;;  %v3189_v15 = vsub.f32 %v15970_v14, %v3126_v48  ;;  %v3358_v41 = vsel %vm2018_vm11, %v12433_v53, 0.0 }
 0x7c3   : > { %9121 = vpow2.f32 %v3270_v50  ;;  %v3238_v23 = vmul.f32 1.442695, %v3170_v63  ;;  %v3240_v0 = vmul.f32 1.442695, %v3171_v21  ;;  %v12442_v19 = vadd.f32 %v12428_v45, %v3358_v41  ;;  %v15972_v63 = vld [vmem:[#allocation74_spill] sm:$0xff] }
 0x7c4   : > { %v12444_v4 = vpop.eup %9105  ;;  %9123 = vpow2.f32 %v3272_v35  ;;  %v3274_v40 = vmul.f32 1.442695, %v3188_v55  ;;  %v3276_v13 = vmul.f32 1.442695, %v3189_v15  ;;  %v4878_v30 = vpop.permute.xlu1 %4877  ;;  %v15973_v48 = vmov 0.0  }
 0x7c5   : > { %15971 = vst [vmem:[#allocation69_spill] sm:$0xff] %v12442_v19  ;;  %v12446_v27 = vpop.eup %9107  ;;  %9125 = vpow2.f32 %v3238_v23  ;;  %v3130_v54 = vpop.xlane.xlu0 %3129  ;;  %7979 = vmatmul.mubr.msk.bf16.gmra.mrb[204].mxu0 %vm1810_vm9, %v4878_v30 }
 0x7c6   : > { %9127 = vpow2.f32 %v3240_v0  ;;  %v3190_v50 = vsub.f32 %v11530_v22, %v3130_v54  ;;  %v3191_v21 = vsub.f32 %v15972_v63, %v3130_v54  ;;  %8240 = vmatprep.mubr.msk.bf16.mxu0 %vm9733_vm7, %v15973_v48  ;;  %v12457_v15 = vpop.eup %9109  ;;  %v3362_v55 = vsel %vm2018_vm11, %v12446_v27, 0.0 }
 0x7c7   : > { %15974 = vst [vmem:[#allocation50_spill] sm:$0xff] %v12457_v15  ;;  %9129 = vpow2.f32 %v3274_v40  ;;  %v12464_v22 = vadd.f32 %v12444_v4, %v3362_v55  ;;  %v15977_v40 = vld [vmem:[#allocation80_spill] sm:$0xff] }
 0x7c8   : > { %v12461_v41 = vpop.eup %9111  ;;  %9131 = vpow2.f32 %v3276_v13  ;;  %v3278_v23 = vmul.f32 1.442695, %v3190_v50  ;;  %v3280_v0 = vmul.f32 1.442695, %v3191_v21 }
 0x7c9   : > { %15975 = vst [vmem:[#allocation71_spill] sm:$0xff] %v12464_v22  ;;  %v12466_v30 = vpop.eup %9113  ;;  %v3138_v54 = vpop.xlane.xlu0 %3137  ;;  %v15979_v22 = vld [vmem:[#allocation14_spill] sm:$0xff] }
 0x7ca   : > { %v12468_v63 = vpop.eup %9115  ;;  %9133 = vpow2.f32 %v3278_v23  ;;  %v3194_v14 = vsub.f32 %v11561_v60, %v3138_v54  ;;  %v3195_v35 = vsub.f32 %v15977_v40, %v3138_v54  ;;  %v3366_v19 = vsel %vm2018_vm11, %v12466_v30, 0.0 }
 0x7cb   : > { %15976 = vst [vmem:[#allocation54_spill] sm:$0xff] %v12468_v63  ;;  %v9118_v49 = vpop.eup %9117  ;;  %9135 = vpow2.f32 %v3280_v0  ;;  %v12475_v13 = vadd.f32 %v12461_v41, %v3366_v19  ;;  %v15980_v0 = vld [vmem:[#allocation83_spill] sm:$0xff] }
 0x7cc   : > { %v9120_v50 = vpop.eup %9119  ;;  %v3286_v21 = vmul.f32 1.442695, %v3194_v14  ;;  %v3288_v55 = vmul.f32 1.442695, %v3195_v35  ;;  %4462 = vrot.lane.b32.xlu0 %v15979_v22, %s9744_s1  ;;  %v3409_v23 = vpack.c.bf16 %v9118_v49, %v12457_v15 }
 0x7cd   : > { %15978 = vst [vmem:[#allocation73_spill] sm:$0xff] %v12475_v13  ;;  %v12480_v48 = vpop.eup %9121  ;;  %v3142_v60 = vpop.xlane.xlu0 %3141  ;;  %v3410_v54 = vpack.c.bf16 %v9120_v50, %v12468_v63  ;;  %v3330_v40 = vsel %vm2018_vm11, %v9120_v50, 0.0 }
 0x7ce   : > { %v12484_v31 = vpop.eup %9123  ;;  %9137 = vpow2.f32 %v3286_v21  ;;  %v3196_v19 = vsub.f32 %v11588_v5, %v3142_v60  ;;  %v3197_v14 = vsub.f32 %v15980_v0, %v3142_v60  ;;  %v12493_v63 = vadd.f32 %v9118_v49, %v3330_v40 }
 0x7cf   : > { %v9126_v13 = vpop.eup %9125  ;;  %9139 = vpow2.f32 %v3288_v55  ;;  %7929 = vmatprep.mubr.msk.bf16.mxu1 %vm2018_vm11, %v3410_v54  ;;  %v3370_v50 = vsel %vm2018_vm11, %v12484_v31, 0.0 }
 0x7d0   : > { %15981 = vst [vmem:[#allocation74_spill] sm:$0xff] %v12493_v63  ;;  %v9128_v21 = vpop.eup %9127  ;;  %v3290_v3 = vmul.f32 1.442695, %v3196_v19  ;;  %v3292_v5 = vmul.f32 1.442695, %v3197_v14  ;;  %3566 = vmatmul.mubr.bf16.gmra.mrb[116].mxu1 %v3409_v23  ;;  %v3411_v60 = vpack.c.bf16 %v9126_v13, %v12375_v58  ;;  %v12499_v0 = vadd.f32 %v12480_v48, %v3370_v50  ;;  %v15983_v19 = vld [vmem:[#allocation85_spill] sm:$0xff] }
 0x7d1   : > { %v12501_v55 = vpop.eup %9129  ;;  %v3146_v54 = vpop.xlane.xlu0 %3145  ;;  %v3412_v35 = vpack.c.bf16 %v9128_v21, %v12377_v29  ;;  %v3338_v49 = vsel %vm2018_vm11, %v9128_v21, 0.0 }
 0x7d2   : > { %15982 = vst [vmem:[#allocation80_spill] sm:$0xff] %v12499_v0  ;;  %v12505_v40 = vpop.eup %9131  ;;  %9141 = vpow2.f32 %v3290_v3  ;;  %v3198_v15 = vsub.f32 %v11599_v7, %v3146_v54  ;;  %v3199_v14 = vsub.f32 %v15983_v19, %v3146_v54  ;;  %v12509_v23 = vadd.f32 %v9126_v13, %v3338_v49 }
 0x7d3   : > { %9143 = vpow2.f32 %v3292_v5  ;;  %7930 = vmatprep.mubr.msk.bf16.mxu1 %vm2018_vm11, %v3412_v35  ;;  %v3374_v58 = vsel %vm2018_vm11, %v12505_v40, 0.0 }
 0x7d4   : > { %15984 = vst [vmem:[#allocation83_spill] sm:$0xff] %v12509_v23  ;;  %v12514_v50 = vpop.eup %9133  ;;  %v3294_v29 = vmul.f32 1.442695, %v3198_v15  ;;  %v3296_v0 = vmul.f32 1.442695, %v3199_v14  ;;  %v12517_v21 = vadd.f32 %v12501_v55, %v3374_v58 }
 0x7d5   : > { %v12519_v3 = vpop.eup %9135 }
 0x7d6   : > { %15985 = vst [vmem:[#allocation85_spill] sm:$0xff] %v12517_v21  ;;  %9145 = vpow2.f32 %v3294_v29  ;;  %v3378_v35 = vsel %vm2018_vm11, %v12519_v3, 0.0 }
 0x7d7   : > { %9147 = vpow2.f32 %v3296_v0  ;;  %v12528_v5 = vadd.f32 %v12514_v50, %v3378_v35  ;;  %v15989_v0 = vld [vmem:[#allocation27_spill] sm:$0xff]  ;;  %v15990_v35 = vld [vmem:[#allocation94_spill] sm:$0xff] }
 0x7d8   : > { %v12530_v15 = vpop.eup %9137  ;;  %3574 = vmatmul.mubr.bf16.gmra.mrb[120].mxu1 %v3411_v60  ;;  %v15991_v7 = vmax.f32 %v15989_v0, %v15990_v35 }
 0x7d9   : > { %15986 = vst [vmem:[#allocation187_spill] sm:$0xff] %v12528_v5  ;;  %v12532_v54 = vpop.eup %9139 }
 0x7da   : > { %v3386_v49 = vsel %vm2018_vm11, %v12532_v54, 0.0 }
 0x7db   : > { %v12537_v19 = vadd.f32 %v12530_v15, %v3386_v49 }
 0x7dc   : > { %v12539_v14 = vpop.eup %9141 }
 0x7dd   : > { %15987 = vst [vmem:[#allocation188_spill] sm:$0xff] %v12537_v19  ;;  %v12541_v58 = vpop.eup %9143  ;;  %v12543_v29 = vpop.f32.mrb[184].mxu0 }
 0x7de   : > { %15988 = vst [vmem:[#allocation189_spill] sm:$0xff] %v12543_v29  ;;  %4078 = vmax.xlane.f32.xlu1 %v15991_v7  ;;  %v12548_v13 = vpop.f32.mrb[185].mxu0  ;;  %v3390_v60 = vsel %vm2018_vm11, %v12541_v58, 0.0 }
 0x7df   : > { %15992 = vst [vmem:[#allocation27_spill] sm:$0xff] %v12548_v13  ;;  %v12554_v21 = vsel %vm2018_vm11, %v12548_v13, -inf  ;;  %v12556_v49 = vpop.f32.mrb[186].mxu0  ;;  %v12559_v19 = vadd.f32 %v12539_v14, %v3390_v60 }
 0x7e0   : > { %15993 = vst [vmem:[#allocation94_spill] sm:$0xff] %v12554_v21  ;;  %15994 = vst [vmem:[#allocation190_spill] sm:$0xff] %v12556_v49  ;;  %v12561_v5 = vpop.eup %9145  ;;  %v12565_v7 = vpop.f32.mrb[187].mxu0 }
 0x7e1   : > { %15995 = vst [vmem:[#allocation191_spill] sm:$0xff] %v12559_v19  ;;  %15996 = vst [vmem:[#allocation192_spill] sm:$0xff] %v12565_v7  ;;  %v12567_v23 = vpop.eup %9147  ;;  %v12571_v63 = vsel %vm2018_vm11, %v12565_v7, -inf }
 0x7e2   : > { %15997 = vst [vmem:[#allocation193_spill] sm:$0xff] %v12571_v63  ;;  %v3394_v35 = vsel %vm2018_vm11, %v12567_v23, 0.0 }
 0x7e3   : > { %v12582_v21 = vadd.f32 %v12561_v5, %v3394_v35  ;;  %v12584_v29 = vpop.f32.mrb[92].mxu1  ;;  %v16012_v35 = vld [vmem:[#allocation13_spill] sm:$0xff] }
 0x7e4   : > { %15999 = vst [vmem:[#allocation195_spill] sm:$0xff] %v12584_v29  ;;  %v2608_v51 = vpop.f32.mrb[93].mxu1 }
 0x7e5   : > { %15998 = vst [vmem:[#allocation194_spill] sm:$0xff] %v12582_v21  ;;  %v12586_v7 = vpop.f32.mrb[188].mxu0  ;;  %v12588_v43 = vpop.f32.mrb[94].mxu1 }
 0x7e6   : > { %16000 = vst [vmem:[#allocation196_spill] sm:$0xff] %v12586_v7  ;;  %16001 = vst [vmem:[#allocation197_spill] sm:$0xff] %v12588_v43  ;;  %v12590_v13 = vpop.f32.mrb[189].mxu0  ;;  %v2611_v22 = vpop.f32.mrb[95].mxu1  ;;  %v16007_v43 = vld [vmem:[#allocation102_spill] sm:$0xff] }
 0x7e7   : > { %16002 = vst [vmem:[#allocation198_spill] sm:$0xff] %v12590_v13  ;;  %v12594_v60 = vsel %vm2018_vm11, %v12590_v13, -inf  ;;  %v12596_v19 = vpop.f32.mrb[190].mxu0  ;;  %v16008_v22 = vld [vmem:[#allocation104_spill] sm:$0xff] }
 0x7e8   : > { %16003 = vst [vmem:[#allocation199_spill] sm:$0xff] %v12594_v60  ;;  %16004 = vst [vmem:[#allocation200_spill] sm:$0xff] %v12596_v19  ;;  %v12600_v21 = vpop.f32.mrb[191].mxu0  ;;  %v16009_v63 = vmax.f32 %v16007_v43, %v16008_v22  ;;  %v16013_v60 = vld [vmem:[#allocation58_spill] sm:$0xff]  ;;  %v16014_v22 = vld [vmem:[#allocation57_spill] sm:$0xff] }
 0x7e9   : > { %16005 = vst [vmem:[#allocation201_spill] sm:$0xff] %v12600_v21  ;;  %v12604_v51 = vsel %vm2018_vm11, %v12600_v21, -inf  ;;  %v3174_v21 = vsub.f32 %v11390_v52, %v12341_v47  ;;  %v3175_v7 = vsub.f32 %v16013_v60, %v12341_v47 }
 0x7ea   : > { %16006 = vst [vmem:[#allocation202_spill] sm:$0xff] %v12604_v51 }
 0x7eb   : > { %4090 = vmax.xlane.f32.xlu0 %v16009_v63  ;;  %v12611_v13 = vpop.f32.mrb[96].mxu1  ;;  %v3246_v29 = vmul.f32 1.442695, %v3174_v21  ;;  %v3248_v51 = vmul.f32 1.442695, %v3175_v7  ;;  %v4449_v7 = vpop.permute.xlu0 %4448 }
 0x7ec   : > { %16010 = vst [vmem:[#allocation102_spill] sm:$0xff] %v12611_v13  ;;  %v2616_v49 = vpop.f32.mrb[97].mxu1 }
 0x7ed   : > { %v12613_v56 = vpop.f32.mrb[98].mxu1  ;;  %9149 = vpow2.f32 %v3246_v29 }
 0x7ee   : > { %16011 = vst [vmem:[#allocation104_spill] sm:$0xff] %v12613_v56  ;;  %v2619_v26 = vpop.f32.mrb[99].mxu1  ;;  %9151 = vpow2.f32 %v3248_v51 }
 0x7ef   : > { %4460 = vrot.lane.b32.xlu1 %v16012_v35, %s9744_s1 }
 0x7f5   : > { %v3094_v19 = vpop.xlane.xlu1 %3093 }
 0x7f6   : > { %v3172_v63 = vsub.f32 %v11378_v28, %v3094_v19  ;;  %v3173_v13 = vsub.f32 %v16014_v22, %v3094_v19 }
 0x7f7   : > { %v12628_v28 = vpop.eup %9149 }
 0x7f8   : > { %v3242_v49 = vmul.f32 1.442695, %v3172_v63  ;;  %v3244_v56 = vmul.f32 1.442695, %v3173_v13  ;;  %16016 = vst [vmem:[#allocation58_spill] sm:$0xff] %v12628_v28  ;;  %v12630_v13 = vpop.eup %9151 }
 0x7f9   : > { %v3134_v26 = vpop.xlane.xlu1 %3133  ;;  %16017 = vst [vmem:[#allocation57_spill] sm:$0xff] %v12630_v13 }
 0x7fa   : > { %9153 = vpow2.f32 %v3242_v49  ;;  %v3192_v35 = vsub.f32 %v15902_v2, %v3134_v26  ;;  %v3193_v52 = vsub.f32 %v16015_v9, %v3134_v26  ;;  %v4453_v2 = vpop.permute.xlu0 %4452  ;;  %v16019_v26 = vpack.c.bf16 %v12416_v8, %v12401_v38 }
 0x7fb   : > { %9155 = vpow2.f32 %v3244_v56 }
 0x7fc   : > { %v3282_v57 = vmul.f32 1.442695, %v3192_v35  ;;  %v3284_v47 = vmul.f32 1.442695, %v3193_v52 }
 0x7fd   : > { %v4447_v21 = vpop.permute.xlu1 %4446 }
 0x7fe   : > { %9157 = vpow2.f32 %v3282_v57  ;;  %4527 = vmatpush1.bf16.msra.mxu1 %v4447_v21  ;;  %v4455_v49 = vpop.permute.xlu0 %4454 }
 0x7ff   : > { %9159 = vpow2.f32 %v3284_v47  ;;  %4528 = vmatprep.subr.bf16.mxu1 %v15655_v20 }
 0x801   : > { %4466 = vrot.lane.b32.xlu0 %v15745_v17, %s9744_s1  ;;  %v4451_v19 = vpop.permute.xlu1 %4450 }
 0x802   : > { %4529 = vmatpush1.bf16.msra.mxu1 %v4449_v7 }
 0x803   : > { %4530 = vmatprep.subr.bf16.mxu1 %v15655_v20 }
 0x804   : > { %v9154_v9 = vpop.eup %9153 }
 0x805   : > { %v9156_v56 = vpop.eup %9155  ;;  %v3413_v57 = vpack.c.bf16 %v12628_v28, %v9154_v9 }
 0x806   : > { %4531 = vmatpush1.bf16.msra.mxu1 %v4451_v19  ;;  %v3414_v29 = vpack.c.bf16 %v12630_v13, %v9156_v56  ;;  %v3342_v60 = vsel %vm2018_vm11, %v9156_v56, 0.0  ;;  %v16024_v19 = vld [vmem:[#allocation99_spill] sm:$0xff] }
 0x807   : > { %4532 = vmatprep.subr.bf16.mxu1 %v15655_v20  ;;  %v12637_v35 = vadd.f32 %v9154_v9, %v3342_v60  ;;  %v16028_v60 = vpack.c.bf16 %v12484_v31, %v12466_v30 }
 0x808   : > { %v9158_v51 = vpop.eup %9157  ;;  %7931 = vmatprep.mubr.msk.bf16.mxu1 %vm2018_vm11, %v3414_v29 }
 0x809   : > { %16018 = vst [vmem:[#allocation78_spill] sm:$0xff] %v12637_v35  ;;  %v9160_v63 = vpop.eup %9159  ;;  %3582 = vmatmul.mubr.bf16.gmra.mrb[124].mxu1 %v3413_v57  ;;  %v3423_v22 = vpack.c.bf16 %v12530_v15, %v9158_v51  ;;  %v16021_v15 = vld [vmem:[#allocation91_spill] sm:$0xff]  ;;  %v16025_v57 = vld [vmem:[#allocation101_spill] sm:$0xff] }
 0x80a   : > { %7932 = vmatprep.mubr.msk.bf16.mxu1 %vm2018_vm11, %v16019_v26  ;;  %4533 = vmatpush1.bf16.msra.mxu1 %v4453_v2  ;;  %v3424_v52 = vpack.c.bf16 %v12532_v54, %v9160_v63  ;;  %v3382_v47 = vsel %vm2018_vm11, %v9160_v63, 0.0  ;;  %v16022_v2 = vpack.c.bf16 %v12414_v62, %v12397_v10  ;;  %v16023_v54 = vpack.c.bf16 %v12446_v27, %v12433_v53  ;;  %v16033_v26 = vld [vmem:[#allocation108_spill] sm:$0xff]  ;;  %v16070_v63 = vld [vmem:[#allocation42_spill] sm:$0xff] }
 0x80b   : > { %4534 = vmatprep.subr.bf16.mxu1 %v15655_v20  ;;  %v12648_v21 = vadd.f32 %v9158_v51, %v3382_v47  ;;  %v16026_v29 = vmax.f32 %v16024_v19, %v16025_v57  ;;  %v16034_v47 = vld [vmem:[#allocation109_spill] sm:$0xff] }
 0x80d   : > { %16020 = vst [vmem:[#allocation203_spill] sm:$0xff] %v12648_v21 }
 0x80e   : > { %v4071_v7 = vpop.xlane.xlu0 %4070  ;;  %4535 = vmatpush1.bf16.msra.mxu1 %v4455_v49 }
 0x80f   : > { %v4169_v9 = vsub.f32 %v15921_v12, %v4071_v7  ;;  %v4170_v56 = vsub.f32 %v16021_v15, %v4071_v7  ;;  %4536 = vmatprep.subr.bf16.mxu1 %v15655_v20  ;;  %v16027_v12 = vpack.c.bf16 %v12444_v4, %v12428_v45  ;;  %v16035_v7 = vmax.f32 %v16033_v26, %v16034_v47 }
 0x810   : > { %v16044_v47 = vpack.c.bf16 %v12567_v23, %v12541_v58 }
 0x811   : > { %v4219_v38 = vmul.f32 1.442695, %v4169_v9  ;;  %v4221_v8 = vmul.f32 1.442695, %v4170_v56  ;;  %3590 = vmatmul.mubr.bf16.gmra.mrb[128].mxu1 %v16022_v2  ;;  %v16037_v56 = vpack.c.bf16 %v12480_v48, %v12461_v41 }
 0x812   : > { %7933 = vmatprep.mubr.msk.bf16.mxu1 %vm2018_vm11, %v16023_v54 }
 0x813   : > { %9161 = vpow2.f32 %v4219_v38  ;;  %4086 = vmax.xlane.f32.xlu1 %v16026_v29 }
 0x814   : > { %9163 = vpow2.f32 %v4221_v8  ;;  %v16038_v8 = vpack.c.bf16 %v12519_v3, %v12505_v40 }
 0x819   : > { %3598 = vmatmul.mubr.bf16.gmra.mrb[132].mxu1 %v16027_v12 }
 0x81a   : > { %7934 = vmatprep.mubr.msk.bf16.mxu1 %vm2018_vm11, %v16028_v60  ;;  %v12670_v10 = vpop.f32.mrb[192].mxu0  ;;  %v16069_v60 = vld [vmem:[#allocation131_spill] sm:$0xff] }
 0x81b   : > { %16029 = vst [vmem:[#allocation91_spill] sm:$0xff] %v12670_v10  ;;  %v12672_v62 = vpop.f32.mrb[193].mxu0 }
 0x81c   : > { %16030 = vst [vmem:[#allocation99_spill] sm:$0xff] %v12672_v62  ;;  %v12676_v53 = vsel %vm2018_vm11, %v12672_v62, -inf  ;;  %v12678_v27 = vpop.f32.mrb[194].mxu0  ;;  %v16077_v62 = vld [vmem:[#allocation16_spill] sm:$0xff] }
 0x81d   : > { %16031 = vst [vmem:[#allocation101_spill] sm:$0xff] %v12676_v53  ;;  %v12680_v51 = vpop.eup %9161  ;;  %v12684_v4 = vpop.f32.mrb[195].mxu0 }
 0x81e   : > { %16032 = vst [vmem:[#allocation204_spill] sm:$0xff] %v12684_v4  ;;  %v12686_v31 = vpop.eup %9163  ;;  %v12690_v30 = vsel %vm2018_vm11, %v12684_v4, -inf  ;;  %v16110_v4 = vld [vmem:[#allocation133_spill] sm:$0xff] }
 0x81f   : > { %v4319_v49 = vsel %vm2018_vm11, %v12686_v31, 0.0 }
 0x820   : > { %4098 = vmax.xlane.f32.xlu0 %v16035_v7  ;;  %v12700_v9 = vadd.f32 %v12680_v51, %v4319_v49  ;;  %v16043_v49 = vpack.c.bf16 %v12514_v50, %v12501_v55 }
 0x821   : > { %v12702_v15 = vpop.f32.mrb[100].mxu1  ;;  %3606 = vmatmul.mubr.bf16.gmra.mrb[136].mxu1 %v16037_v56  ;;  %v16045_v56 = vld [vmem:[#allocation23_spill] sm:$0xff] }
 0x822   : > { %16036 = vst [vmem:[#allocation108_spill] sm:$0xff] %v12702_v15  ;;  %v2624_v38 = vpop.f32.mrb[101].mxu1  ;;  %7935 = vmatprep.mubr.msk.bf16.mxu1 %vm2018_vm11, %v16038_v8  ;;  %v12711_v2 = vpop.f32.mrb[196].mxu0  ;;  %v16046_v8 = vld [vmem:[#allocation88_spill] sm:$0xff] }
 0x823   : > { %16039 = vst [vmem:[#allocation109_spill] sm:$0xff] %v12711_v2  ;;  %v2625_v54 = vpop.f32.mrb[102].mxu1  ;;  %v12713_v57 = vpop.f32.mrb[197].mxu0 }
 0x824   : > { %16040 = vst [vmem:[#allocation205_spill] sm:$0xff] %v12713_v57  ;;  %v2626_v29 = vpop.f32.mrb[103].mxu1  ;;  %v12717_v12 = vsel %vm2018_vm11, %v12713_v57, -inf  ;;  %4464 = vrot.lane.b32.xlu1 %v15763_v34, %s9744_s1  ;;  %v12721_v48 = vpop.f32.mrb[198].mxu0 }
 0x825   : > { %16041 = vst [vmem:[#allocation206_spill] sm:$0xff] %v12717_v12  ;;  %v12725_v40 = vpop.f32.mrb[199].mxu0 }
 0x826   : > { %16042 = vst [vmem:[#allocation207_spill] sm:$0xff] %v12725_v40  ;;  %v12729_v3 = vsel %vm2018_vm11, %v12725_v40, -inf }
 0x829   : > { %3614 = vmatmul.mubr.bf16.gmra.mrb[140].mxu1 %v16043_v49  ;;  %v16048_v49 = vpack.c.bf16 %v12561_v5, %v12539_v14 }
 0x82a   : > { %7936 = vmatprep.mubr.msk.bf16.mxu1 %vm2018_vm11, %v3424_v52 }
 0x831   : > { %3622 = vmatmul.mubr.bf16.gmra.mrb[144].mxu1 %v3423_v22  ;;  %v16047_v22 = vld [vmem:[#allocation24_spill] sm:$0xff] }
 0x832   : > { %7937 = vmatprep.mubr.msk.bf16.mxu1 %vm2018_vm11, %v16044_v47  ;;  %v3151_v7 = vpop.xlane.xlu1 %3150 }
 0x833   : > { %v3200_v38 = vsub.f32 %v16045_v56, %v3151_v7  ;;  %v3201_v54 = vsub.f32 %v16046_v8, %v3151_v7  ;;  %v4459_v7 = vpop.permute.xlu0 %4458 }
 0x835   : > { %v3298_v29 = vmul.f32 1.442695, %v3200_v38  ;;  %v3300_v41 = vmul.f32 1.442695, %v3201_v54 }
 0x836   : > { %4470 = vrot.lane.b32.xlu0 %v15818_v33, %s9744_s1  ;;  %v4075_v55 = vpop.xlane.xlu1 %4074 }
 0x837   : > { %9165 = vpow2.f32 %v3298_v29  ;;  %v4171_v50 = vsub.f32 %v15942_v1, %v4075_v55  ;;  %v4172_v52 = vsub.f32 %v16047_v22, %v4075_v55  ;;  %v16049_v29 = vld [vmem:[#allocation96_spill] sm:$0xff] }
 0x838   : > { %9167 = vpow2.f32 %v3300_v41 }
 0x839   : > { %v4223_v23 = vmul.f32 1.442695, %v4171_v50  ;;  %v4225_v58 = vmul.f32 1.442695, %v4172_v52  ;;  %3630 = vmatmul.mubr.bf16.gmra.mrb[148].mxu1 %v16048_v49  ;;  %v16071_v49 = vmax.f32 %v16069_v60, %v16070_v63  ;;  %v16079_v63 = vld [vmem:[#allocation38_spill] sm:$0xff] }
 0x83a   : > { %v4457_v47 = vpop.permute.xlu1 %4456 }
 0x83b   : > { %9169 = vpow2.f32 %v4223_v23  ;;  %4537 = vmatpush1.bf16.msra.mxu1 %v4457_v47 }
 0x83c   : > { %9171 = vpow2.f32 %v4225_v58  ;;  %4538 = vmatprep.subr.bf16.mxu1 %v15655_v20 }
 0x83f   : > { %4539 = vmatpush1.bf16.msra.mxu1 %v4459_v7 }
 0x840   : > { %4540 = vmatprep.subr.bf16.mxu1 %v15655_v20 }
 0x841   : > { %v9166_v1 = vpop.eup %9165 }
 0x842   : > { %v9168_v56 = vpop.eup %9167  ;;  %v3427_v38 = vpack.c.bf16 %v9166_v1, %v9166_v1  ;;  %v3398_v41 = vsel %vm1850_vm8, %v9166_v1, 0.0  ;;  %v16052_v1 = vld [vmem:[#allocation107_spill] sm:$0xff] }
 0x843   : > { %v4083_v8 = vpop.xlane.xlu0 %4082  ;;  %v3428_v54 = vpack.c.bf16 %v9168_v56, %v9168_v56  ;;  %v3399_v5 = vsel %vm2116_vm12, %v9168_v56, 0.0 }
 0x844   : > { %v4175_v14 = vsub.f32 %v15957_v32, %v4083_v8  ;;  %v4176_v55 = vsub.f32 %v16049_v29, %v4083_v8  ;;  %v12756_v50 = vadd.f32 %v3399_v5, %v3398_v41  ;;  %v16051_v32 = vld [vmem:[#allocation105_spill] sm:$0xff]  ;;  %v16056_v5 = vld [vmem:[#allocation112_spill] sm:$0xff] }
 0x845   : > { %v12758_v22 = vpop.eup %9169  ;;  %7938 = vmatprep.mubr.msk.bf16.mxu1 %vm2018_vm11, %v3428_v54  ;;  %v16053_v56 = vmax.f32 %v16051_v32, %v16052_v1  ;;  %v16055_v54 = vld [vmem:[#allocation110_spill] sm:$0xff]  ;;  %v16065_v1 = vld [vmem:[#allocation125_spill] sm:$0xff] }
 0x846   : > { %16050 = vst [vmem:[#allocation23_spill] sm:$0xff] %v12756_v50  ;;  %v9172_v52 = vpop.eup %9171  ;;  %v4231_v23 = vmul.f32 1.442695, %v4175_v14  ;;  %v4233_v58 = vmul.f32 1.442695, %v4176_v55  ;;  %3638 = vmatmul.mubr.bf16.gmra.mrb[152].mxu1 %v3427_v38  ;;  %v16057_v14 = vmax.f32 %v16055_v54, %v16056_v5  ;;  %v16059_v55 = vld [vmem:[#allocation121_spill] sm:$0xff] }
 0x847   : > { %v4421_v47 = vpack.c.bf16 %v9172_v52, %v12686_v31  ;;  %v4323_v7 = vsel %vm2018_vm11, %v9172_v52, 0.0  ;;  %v16060_v52 = vld [vmem:[#allocation123_spill] sm:$0xff] }
 0x848   : > { %9173 = vpow2.f32 %v4231_v23  ;;  %4094 = vmax.xlane.f32.xlu1 %v16053_v56  ;;  %v12769_v41 = vadd.f32 %v12758_v22, %v4323_v7  ;;  %v16061_v23 = vmax.f32 %v16059_v55, %v16060_v52  ;;  %v16066_v56 = vld [vmem:[#allocation127_spill] sm:$0xff] }
 0x849   : > { %9175 = vpow2.f32 %v4233_v58  ;;  %7953 = vmatprep.mubr.msk.bf16.mxu1 %vm2018_vm11, %v4421_v47  ;;  %v16067_v5 = vmax.f32 %v16065_v1, %v16066_v56  ;;  %v16072_v56 = vld [vmem:[#allocation22_spill] sm:$0xff] }
 0x84a   : > { %16054 = vst [vmem:[#allocation88_spill] sm:$0xff] %v12769_v41 }
 0x852   : > { %v12772_v8 = vpop.eup %9173 }
 0x853   : > { %v12774_v38 = vpop.eup %9175 }
 0x854   : > { %v4331_v31 = vsel %vm2018_vm11, %v12774_v38, 0.0 }
 0x855   : > { %4106 = vmax.xlane.f32.xlu0 %v16057_v14  ;;  %v12782_v29 = vadd.f32 %v12772_v8, %v4331_v31  ;;  %v16075_v14 = vmax.f32 %v11952_v46, %v11962_v61  ;;  %v16082_v61 = vld [vmem:[#allocation139_spill] sm:$0xff] }
 0x857   : > { %16058 = vst [vmem:[#allocation24_spill] sm:$0xff] %v12782_v29 }
 0x859   : > { %4468 = vrot.lane.b32.xlu1 %v15811_v39, %s9744_s1  ;;  %4122 = vmax.xlane.f32.xlu0 %v16061_v23 }
 0x85b   : > { %v12789_v58 = vpop.f32.mrb[200].mxu0 }
 0x85c   : > { %16062 = vst [vmem:[#allocation96_spill] sm:$0xff] %v12789_v58  ;;  %v12791_v47 = vpop.f32.mrb[201].mxu0 }
 0x85d   : > { %16063 = vst [vmem:[#allocation105_spill] sm:$0xff] %v12791_v47  ;;  %v12795_v7 = vsel %vm2018_vm11, %v12791_v47, -inf  ;;  %4130 = vmax.xlane.f32.xlu0 %v16067_v5  ;;  %v12800_v31 = vpop.f32.mrb[202].mxu0  ;;  %v16073_v5 = vld [vmem:[#allocation135_spill] sm:$0xff] }
 0x85e   : > { %16064 = vst [vmem:[#allocation107_spill] sm:$0xff] %v12795_v7  ;;  %v12804_v45 = vpop.f32.mrb[203].mxu0  ;;  %v16074_v15 = vmax.f32 %v16072_v56, %v16073_v5 }
 0x85f   : > { %16068 = vst [vmem:[#allocation110_spill] sm:$0xff] %v12804_v45  ;;  %v12808_v52 = vsel %vm2018_vm11, %v12804_v45, -inf }
 0x861   : > { %4138 = vmax.xlane.f32.xlu0 %v16071_v49  ;;  %v16080_v49 = vld [vmem:[#allocation138_spill] sm:$0xff] }
 0x862   : > { %v16081_v45 = vmax.f32 %v16079_v63, %v16080_v49 }
 0x865   : > { %4146 = vmax.xlane.f32.xlu0 %v16074_v15 }
 0x869   : > { %4154 = vmax.xlane.f32.xlu0 %v16075_v14 }
 0x86a   : > { %v12821_v50 = vpop.f32.mrb[104].mxu1 }
 0x86b   : > { %16076 = vst [vmem:[#allocation112_spill] sm:$0xff] %v12821_v50  ;;  %v3545_v21 = vpop.f32.mrb[105].mxu1  ;;  %v4079_v47 = vpop.xlane.xlu1 %4078  ;;  %v16097_v50 = vld [vmem:[#allocation118_spill] sm:$0xff] }
 0x86c   : > { %v4173_v57 = vsub.f32 %v15989_v0, %v4079_v47  ;;  %v4174_v23 = vsub.f32 %v16077_v62, %v4079_v47  ;;  %v12825_v35 = vpop.f32.mrb[106].mxu1  ;;  %v16083_v21 = vld [vmem:[#allocation141_spill] sm:$0xff]  ;;  %v4463_v62 = vpop.permute.xlu0 %4462 }
 0x86d   : > { %16078 = vst [vmem:[#allocation121_spill] sm:$0xff] %v12825_v35  ;;  %4158 = vmax.xlane.f32.xlu0 %v16081_v45  ;;  %v3548_v5 = vpop.f32.mrb[107].mxu1  ;;  %v16084_v14 = vmax.f32 %v16082_v61, %v16083_v21 }
 0x86e   : > { %v4227_v15 = vmul.f32 1.442695, %v4173_v57  ;;  %v4229_v28 = vmul.f32 1.442695, %v4174_v23 }
 0x86f   : > { %v4461_v40 = vpop.permute.xlu1 %4460 }
 0x870   : > { %9177 = vpow2.f32 %v4227_v15  ;;  %4541 = vmatpush1.bf16.msra.mxu1 %v4461_v40 }
 0x871   : > { %9179 = vpow2.f32 %v4229_v28  ;;  %4162 = vmax.xlane.f32.xlu0 %v16084_v14  ;;  %4542 = vmatprep.subr.bf16.mxu1 %v15655_v20  ;;  %v16087_v28 = vld [vmem:[#allocation103_spill] sm:$0xff] }
 0x872   : > { %v12834_v0 = vpop.f32.mrb[108].mxu1 }
 0x873   : > { %16085 = vst [vmem:[#allocation123_spill] sm:$0xff] %v12834_v0  ;;  %v3553_v47 = vpop.f32.mrb[109].mxu1 }
 0x874   : > { %v12836_v35 = vpop.f32.mrb[110].mxu1  ;;  %4543 = vmatpush1.bf16.msra.mxu1 %v4463_v62 }
 0x875   : > { %16086 = vst [vmem:[#allocation125_spill] sm:$0xff] %v12836_v35  ;;  %v3556_v45 = vpop.f32.mrb[111].mxu1  ;;  %4544 = vmatprep.subr.bf16.mxu1 %v15655_v20 }
 0x878   : > { %v4091_v57 = vpop.xlane.xlu0 %4090 }
 0x879   : > { %v4179_v40 = vsub.f32 %v16007_v43, %v4091_v57  ;;  %v4180_v23 = vsub.f32 %v16087_v28, %v4091_v57  ;;  %v16090_v57 = vld [vmem:[#allocation18_spill] sm:$0xff]  ;;  %v16091_v28 = vld [vmem:[#allocation12_spill] sm:$0xff] }
 0x87a   : > { %v12841_v49 = vpop.eup %9177  ;;  %v12843_v5 = vpop.f32.mrb[112].mxu1 }
 0x87b   : > { %16088 = vst [vmem:[#allocation127_spill] sm:$0xff] %v12843_v5  ;;  %v12845_v15 = vpop.eup %9179  ;;  %v4239_v21 = vmul.f32 1.442695, %v4179_v40  ;;  %v4241_v14 = vmul.f32 1.442695, %v4180_v23  ;;  %v3561_v47 = vpop.f32.mrb[113].mxu1  ;;  %v16092_v5 = vmax.f32 %v16090_v57, %v16091_v28 }
 0x87c   : > { %v12849_v45 = vpop.f32.mrb[114].mxu1  ;;  %v4327_v43 = vsel %vm2018_vm11, %v12845_v15, 0.0  ;;  %v16093_v23 = vld [vmem:[#allocation113_spill] sm:$0xff]  ;;  %v16094_v47 = vld [vmem:[#allocation115_spill] sm:$0xff] }
 0x87d   : > { %16089 = vst [vmem:[#allocation131_spill] sm:$0xff] %v12849_v45  ;;  %9181 = vpow2.f32 %v4239_v21  ;;  %4102 = vmax.xlane.f32.xlu1 %v16092_v5  ;;  %v3564_v0 = vpop.f32.mrb[115].mxu1  ;;  %v12859_v40 = vadd.f32 %v12841_v49, %v4327_v43  ;;  %v16095_v62 = vmax.f32 %v16093_v23, %v16094_v47  ;;  %v16096_v45 = vld [vmem:[#allocation116_spill] sm:$0xff]  ;;  %v16107_v47 = vld [vmem:[#allocation130_spill] sm:$0xff] }
 0x87e   : > { %9183 = vpow2.f32 %v4241_v14  ;;  %v16098_v35 = vmax.f32 %v16096_v45, %v16097_v50  ;;  %v16099_v0 = vld [vmem:[#allocation45_spill] sm:$0xff]  ;;  %v16100_v21 = vld [vmem:[#allocation120_spill] sm:$0xff] }
 0x87f   : > { %v16101_v43 = vmax.f32 %v16099_v0, %v16100_v21  ;;  %v16104_v50 = vld [vmem:[#allocation124_spill] sm:$0xff] }
 0x881   : > { %4110 = vmax.xlane.f32.xlu1 %v16095_v62 }
 0x885   : > { %4114 = vmax.xlane.f32.xlu1 %v16098_v35  ;;  %v16103_v35 = vld [vmem:[#allocation34_spill] sm:$0xff] }
 0x886   : > { %v16105_v28 = vmax.f32 %v16103_v35, %v16104_v50  ;;  %v16114_v50 = vld [vmem:[#allocation136_spill] sm:$0xff] }
 0x887   : > { %v12867_v13 = vpop.eup %9181  ;;  %5465 = vrot.lane.b32.xlu0 %v10472_v44, %s9745_s21  ;;  %v16106_v44 = vld [vmem:[#allocation128_spill] sm:$0xff] }
 0x888   : > { %v12871_v5 = vpop.eup %9183  ;;  %v16108_v21 = vmax.f32 %v16106_v44, %v16107_v47 }
 0x889   : > { %4118 = vmax.xlane.f32.xlu1 %v16101_v43  ;;  %v4339_v14 = vsel %vm2018_vm11, %v12871_v5, 0.0  ;;  %v16109_v43 = vld [vmem:[#allocation17_spill] sm:$0xff] }
 0x88a   : > { %v12879_v62 = vadd.f32 %v12867_v13, %v4339_v14  ;;  %v16111_v29 = vmax.f32 %v16109_v43, %v16110_v4 }
 0x88b   : > { %5469 = vrot.lane.b32.xlu0 %v10491_v11, %s9745_s21 }
 0x88c   : > { %16102 = vst [vmem:[#allocation42_spill] sm:$0xff] %v12879_v62  ;;  %v16113_v62 = vld [vmem:[#allocation30_spill] sm:$0xff] }
 0x88d   : > { %4126 = vmax.xlane.f32.xlu1 %v16105_v28  ;;  %v16115_v28 = vmax.f32 %v16113_v62, %v16114_v50 }
 0x88f   : > { %5471 = vrot.lane.b32.xlu0 %v10501_v6, %s9745_s21 }
 0x891   : > { %4134 = vmax.xlane.f32.xlu1 %v16108_v21 }
 0x895   : > { %4142 = vmax.xlane.f32.xlu1 %v16111_v29 }
 0x898   : > { %v12894_v14 = vpop.f32.mrb[204].mxu0 }
 0x899   : > { %16112 = vst [vmem:[#allocation22_spill] sm:$0xff] %v12894_v14  ;;  %v12898_v11 = vsel %vm1850_vm8, %v12894_v14, -inf  ;;  %4150 = vmax.xlane.f32.xlu1 %v16115_v28  ;;  %v12903_v41 = vpop.f32.mrb[205].mxu0  ;;  %v16116_v14 = vld [vmem:[#allocation100_spill] sm:$0xff] }
 0x89a   : > { %v12907_v6 = vsel %vm2116_vm12, %v12903_v41, -inf  ;;  %v5082_v47 = vpop.f32.mrb[206].mxu0 }
 0x89b   : > { %v5083_v29 = vpop.f32.mrb[207].mxu0 }
 0x89c   : > { %v4467_v29 = vpop.permute.xlu0 %4466 }
 0x8a0   : > { %v4087_v21 = vpop.xlane.xlu1 %4086 }
 0x8a1   : > { %v4177_v7 = vsub.f32 %v16024_v19, %v4087_v21  ;;  %v4178_v58 = vsub.f32 %v16116_v14, %v4087_v21 }
 0x8a3   : > { %v4235_v12 = vmul.f32 1.442695, %v4177_v7  ;;  %v4237_v2 = vmul.f32 1.442695, %v4178_v58  ;;  %v12913_v50 = vpop.f32.mrb[116].mxu1 }
 0x8a4   : > { %16117 = vst [vmem:[#allocation135_spill] sm:$0xff] %v12913_v50  ;;  %v3569_v28 = vpop.f32.mrb[117].mxu1  ;;  %v4465_v53 = vpop.permute.xlu1 %4464  ;;  %v16168_v50 = vld [vmem:[#allocation114_spill] sm:$0xff] }
 0x8a5   : > { %9185 = vpow2.f32 %v4235_v12  ;;  %v12915_v10 = vpop.f32.mrb[118].mxu1  ;;  %4545 = vmatpush1.bf16.msra.mxu1 %v4465_v53  ;;  %v16121_v53 = vld [vmem:[#allocation15_spill] sm:$0xff]  ;;  %v16122_v28 = vmax.f32 %v12027_v16, %v12041_v59 }
 0x8a6   : > { %16118 = vst [vmem:[#allocation16_spill] sm:$0xff] %v12915_v10  ;;  %9187 = vpow2.f32 %v4237_v2  ;;  %v3572_v47 = vpop.f32.mrb[119].mxu1  ;;  %4546 = vmatprep.subr.bf16.mxu1 %v15655_v20 }
 0x8a9   : > { %4547 = vmatpush1.bf16.msra.mxu1 %v4467_v29 }
 0x8aa   : > { %5463 = vrot.lane.b32.xlu1 %v15917_v42, %s9745_s21  ;;  %4548 = vmatprep.subr.bf16.mxu1 %v15655_v20 }
 0x8ab   : > { %v12921_v19 = vpop.f32.mrb[120].mxu1 }
 0x8ac   : > { %16119 = vst [vmem:[#allocation38_spill] sm:$0xff] %v12921_v19  ;;  %v3577_v58 = vpop.f32.mrb[121].mxu1 }
 0x8ad   : > { %v12923_v7 = vpop.f32.mrb[122].mxu1  ;;  %v4099_v12 = vpop.xlane.xlu0 %4098 }
 0x8ae   : > { %16120 = vst [vmem:[#allocation138_spill] sm:$0xff] %v12923_v7  ;;  %v4183_v14 = vsub.f32 %v16033_v26, %v4099_v12  ;;  %v4184_v2 = vsub.f32 %v16121_v53, %v4099_v12  ;;  %v3580_v21 = vpop.f32.mrb[123].mxu1  ;;  %5087 = vmax.xlane.f32.xlu0 %v16122_v28  ;;  %5467 = vrot.lane.b32.xlu1 %v15920_v25, %s9745_s21 }
 0x8af   : > { %v12932_v42 = vpop.eup %9185 }
 0x8b0   : > { %v12934_v47 = vpop.eup %9187  ;;  %v4247_v29 = vmul.f32 1.442695, %v4183_v14  ;;  %v4249_v58 = vmul.f32 1.442695, %v4184_v2 }
 0x8b1   : > { %v4425_v26 = vpack.c.bf16 %v12871_v5, %v12934_v47  ;;  %v4335_v12 = vsel %vm2018_vm11, %v12934_v47, 0.0  ;;  %v16123_v5 = vmax.f32 %v12005_v37, %v12012_v36  ;;  %v16124_v47 = vld [vmem:[#allocation106_spill] sm:$0xff]  ;;  %v4471_v19 = vpop.permute.xlu0 %4470 }
 0x8b2   : > { %9189 = vpow2.f32 %v4247_v29  ;;  %v12943_v59 = vadd.f32 %v12932_v42, %v4335_v12  ;;  %v4524_v37 = vsel %vm2488_vm10, %v4471_v19, 0  ;;  %v16131_v19 = vld [vmem:[#allocation111_spill] sm:$0xff] }
 0x8b3   : > { %9191 = vpow2.f32 %v4249_v58  ;;  %v16125_v58 = vld [vmem:[#allocation150_spill] sm:$0xff] }
 0x8b4   : > { %v16126_v12 = vmax.f32 %v12043_v18, %v16125_v58  ;;  %v16133_v58 = vld [vmem:[#allocation156_spill] sm:$0xff] }
 0x8bc   : > { %v12945_v25 = vpop.eup %9189 }
 0x8bd   : > { %v12947_v53 = vpop.eup %9191 }
 0x8be   : > { %v4347_v14 = vsel %vm2018_vm11, %v12947_v53, 0.0 }
 0x8bf   : > { %v12952_v2 = vadd.f32 %v12945_v25, %v4347_v14 }
 0x8c4   : > { %5475 = vrot.lane.b32.xlu0 %v15768_v24, %s9745_s21 }
 0x8d2   : > { %4167 = vmax.xlane.f32.xlu1 %v16123_v5 }
 0x8d5   : > { %v4095_v21 = vpop.xlane.xlu1 %4094 }
 0x8d6   : > { %v4181_v28 = vsub.f32 %v16051_v32, %v4095_v21  ;;  %v4182_v29 = vsub.f32 %v16124_v47, %v4095_v21  ;;  %5091 = vmax.xlane.f32.xlu1 %v16126_v12  ;;  %v16129_v21 = vpack.c.bf16 %v12758_v22, %v12680_v51 }
 0x8d8   : > { %v4243_v4 = vmul.f32 1.442695, %v4181_v28  ;;  %v4245_v7 = vmul.f32 1.442695, %v4182_v29  ;;  %v16132_v29 = vld [vmem:[#allocation154_spill] sm:$0xff] }
 0x8d9   : > { %v4469_v14 = vpop.permute.xlu1 %4468  ;;  %v16134_v12 = vmax.f32 %v16132_v29, %v16133_v58 }
 0x8da   : > { %9193 = vpow2.f32 %v4243_v4  ;;  %4549 = vmatpush1.bf16.msra.mxu1 %v4469_v14 }
 0x8db   : > { %9195 = vpow2.f32 %v4245_v7  ;;  %4550 = vmatprep.subr.bf16.mxu1 %v15655_v20  ;;  %v16130_v7 = vpack.c.bf16 %v12774_v38, %v12845_v15 }
 0x8dc   : > { %v12965_v24 = vpop.f32.mrb[124].mxu1 }
 0x8dd   : > { %16127 = vst [vmem:[#allocation139_spill] sm:$0xff] %v12965_v24  ;;  %v3585_v36 = vpop.f32.mrb[125].mxu1 }
 0x8de   : > { %v12968_v32 = vpop.f32.mrb[126].mxu1  ;;  %4551 = vmatpush1.bf16.msra.mxu1 %v4524_v37 }
 0x8df   : > { %16128 = vst [vmem:[#allocation141_spill] sm:$0xff] %v12968_v32  ;;  %v3588_v5 = vpop.f32.mrb[127].mxu1  ;;  %5543 = vmatprep.subr.bf16.mxu1 %v15655_v20 }
 0x8e1   : > { %4559 = vmatmul.mubr.bf16.vlgmr.msra.gmra.mrb[156].mxu1 %v16129_v21 }
 0x8e2   : > { %v4107_v4 = vpop.xlane.xlu0 %4106  ;;  %7954 = vmatprep.mubr.msk.bf16.mxu1 %vm2018_vm11, %v16130_v7 }
 0x8e3   : > { %v4187_v28 = vsub.f32 %v16055_v54, %v4107_v4  ;;  %v4188_v47 = vsub.f32 %v16131_v19, %v4107_v4  ;;  %5099 = vmax.xlane.f32.xlu0 %v16134_v12  ;;  %v16137_v19 = vld [vmem:[#allocation122_spill] sm:$0xff] }
 0x8e4   : > { %v12983_v14 = vpop.eup %9193  ;;  %v12985_v37 = vpop.f32.mrb[128].mxu1 }
 0x8e5   : > { %16135 = vst [vmem:[#allocation103_spill] sm:$0xff] %v12985_v37  ;;  %v9196_v51 = vpop.eup %9195  ;;  %v4255_v22 = vmul.f32 1.442695, %v4187_v28  ;;  %v4257_v36 = vmul.f32 1.442695, %v4188_v47  ;;  %v3593_v5 = vpop.f32.mrb[129].mxu1 }
 0x8e6   : > { %v12989_v15 = vpop.f32.mrb[130].mxu1  ;;  %v4123_v54 = vpop.xlane.xlu0 %4122  ;;  %v4427_v21 = vpack.c.bf16 %v12947_v53, %v9196_v51  ;;  %v4343_v4 = vsel %vm2018_vm11, %v9196_v51, 0.0  ;;  %v16138_v28 = vld [vmem:[#allocation11_spill] sm:$0xff]  ;;  %v16139_v53 = vpack.c.bf16 %v12772_v8, %v12841_v49  ;;  %v16143_v49 = vld [vmem:[#allocation36_spill] sm:$0xff] }
 0x8e7   : > { %16136 = vst [vmem:[#allocation18_spill] sm:$0xff] %v12989_v15  ;;  %9197 = vpow2.f32 %v4255_v22  ;;  %v4195_v7 = vsub.f32 %v16059_v55, %v4123_v54  ;;  %v4196_v58 = vsub.f32 %v16137_v19, %v4123_v54  ;;  %v3596_v12 = vpop.f32.mrb[131].mxu1  ;;  %5473 = vrot.lane.b32.xlu1 %v16138_v28, %s9745_s21  ;;  %v12998_v47 = vadd.f32 %v12983_v14, %v4343_v4  ;;  %v16140_v22 = vld [vmem:[#allocation126_spill] sm:$0xff]  ;;  %v16163_v15 = vld [vmem:[#allocation153_spill] sm:$0xff] }
 0x8e8   : > { %9199 = vpow2.f32 %v4257_v36 }
 0x8e9   : > { %v4271_v5 = vmul.f32 1.442695, %v4195_v7  ;;  %v4273_v38 = vmul.f32 1.442695, %v4196_v58  ;;  %4567 = vmatmul.mubr.bf16.gmra.mrb[160].mxu1 %v16139_v53 }
 0x8ea   : > { %v4131_v51 = vpop.xlane.xlu0 %4130  ;;  %7955 = vmatprep.mubr.msk.bf16.mxu1 %vm2018_vm11, %v4425_v26 }
 0x8eb   : > { %9201 = vpow2.f32 %v4271_v5  ;;  %v4199_v55 = vsub.f32 %v16065_v1, %v4131_v51  ;;  %v4200_v54 = vsub.f32 %v16140_v22, %v4131_v51  ;;  %v16145_v22 = vld [vmem:[#allocation134_spill] sm:$0xff] }
 0x8ec   : > { %9203 = vpow2.f32 %v4273_v38  ;;  %v13006_v19 = vpop.f32.mrb[132].mxu1  ;;  %v16144_v38 = vpack.c.bf16 %v12867_v13, %v12932_v42 }
 0x8ed   : > { %16141 = vst [vmem:[#allocation12_spill] sm:$0xff] %v13006_v19  ;;  %v4279_v4 = vmul.f32 1.442695, %v4199_v55  ;;  %v4281_v12 = vmul.f32 1.442695, %v4200_v54  ;;  %v3601_v36 = vpop.f32.mrb[133].mxu1 }
 0x8ee   : > { %v13008_v7 = vpop.f32.mrb[134].mxu1  ;;  %v4139_v58 = vpop.xlane.xlu0 %4138  ;;  %v16162_v19 = vld [vmem:[#allocation151_spill] sm:$0xff] }
 0x8ef   : > { %16142 = vst [vmem:[#allocation113_spill] sm:$0xff] %v13008_v7  ;;  %9205 = vpow2.f32 %v4279_v4  ;;  %v4203_v8 = vsub.f32 %v16069_v60, %v4139_v58  ;;  %v4204_v28 = vsub.f32 %v16143_v49, %v4139_v58  ;;  %v3604_v26 = vpop.f32.mrb[135].mxu1  ;;  %v16161_v7 = vld [vmem:[#allocation20_spill] sm:$0xff]  ;;  %v16164_v37 = vmax.f32 %v16162_v19, %v16163_v15 }
 0x8f0   : > { %9207 = vpow2.f32 %v4281_v12  ;;  %v16148_v26 = vld [vmem:[#allocation39_spill] sm:$0xff] }
 0x8f1   : > { %v13012_v5 = vpop.eup %9197  ;;  %v4287_v1 = vmul.f32 1.442695, %v4203_v8  ;;  %v4289_v53 = vmul.f32 1.442695, %v4204_v28  ;;  %4575 = vmatmul.mubr.bf16.gmra.mrb[164].mxu1 %v16144_v38 }
 0x8f2   : > { %v13017_v51 = vpop.eup %9199  ;;  %v4147_v55 = vpop.xlane.xlu0 %4146  ;;  %7956 = vmatprep.mubr.msk.bf16.mxu1 %vm2018_vm11, %v4427_v21 }
 0x8f3   : > { %9209 = vpow2.f32 %v4287_v1  ;;  %v4207_v60 = vsub.f32 %v16072_v56, %v4147_v55  ;;  %v4208_v54 = vsub.f32 %v16145_v22, %v4147_v55  ;;  %v4355_v4 = vsel %vm2018_vm11, %v13017_v51, 0.0 }
 0x8f4   : > { %9211 = vpow2.f32 %v4289_v53  ;;  %v13024_v12 = vpop.f32.mrb[136].mxu1  ;;  %v13027_v36 = vadd.f32 %v13012_v5, %v4355_v4  ;;  %v16149_v4 = vld [vmem:[#allocation14_spill] sm:$0xff] }
 0x8f5   : > { %16146 = vst [vmem:[#allocation115_spill] sm:$0xff] %v13024_v12  ;;  %v13029_v13 = vpop.eup %9201  ;;  %v4295_v42 = vmul.f32 1.442695, %v4207_v60  ;;  %v4297_v58 = vmul.f32 1.442695, %v4208_v54  ;;  %v3609_v8 = vpop.f32.mrb[137].mxu1 }
 0x8f6   : > { %v13031_v21 = vpop.eup %9203  ;;  %v13033_v49 = vpop.f32.mrb[138].mxu1 }
 0x8f7   : > { %16147 = vst [vmem:[#allocation116_spill] sm:$0xff] %v13033_v49  ;;  %v4155_v56 = vpop.xlane.xlu0 %4154  ;;  %9213 = vpow2.f32 %v4295_v42  ;;  %v3612_v53 = vpop.f32.mrb[139].mxu1  ;;  %v4371_v38 = vsel %vm2018_vm11, %v13031_v21, 0.0 }
 0x8f8   : > { %v4211_v28 = vsub.f32 %v11952_v46, %v4155_v56  ;;  %v4212_v1 = vsub.f32 %v16148_v26, %v4155_v56  ;;  %9215 = vpow2.f32 %v4297_v58  ;;  %v13040_v55 = vadd.f32 %v13029_v13, %v4371_v38  ;;  %v16151_v56 = vld [vmem:[#allocation137_spill] sm:$0xff] }
 0x8f9   : > { %v13042_v60 = vpop.eup %9205  ;;  %5479 = vrot.lane.b32.xlu0 %v16149_v4, %s9745_s21  ;;  %v16150_v46 = vpack.c.bf16 %v12945_v25, %v12983_v14 }
 0x8fa   : > { %v4303_v22 = vmul.f32 1.442695, %v4211_v28  ;;  %v4305_v54 = vmul.f32 1.442695, %v4212_v1  ;;  %v13049_v42 = vpop.eup %9207 }
 0x8fb   : > { %4583 = vmatmul.mubr.bf16.gmra.mrb[168].mxu1 %v16150_v46  ;;  %v4159_v8 = vpop.xlane.xlu0 %4158  ;;  %v4379_v53 = vsel %vm2018_vm11, %v13049_v42, 0.0 }
 0x8fc   : > { %9217 = vpow2.f32 %v4303_v22  ;;  %v4213_v58 = vsub.f32 %v16079_v63, %v4159_v8  ;;  %v4214_v26 = vsub.f32 %v16151_v56, %v4159_v8  ;;  %v13055_v28 = vpop.f32.mrb[140].mxu1  ;;  %v13058_v1 = vadd.f32 %v13042_v60, %v4379_v53  ;;  %v16155_v56 = vld [vmem:[#allocation140_spill] sm:$0xff] }
 0x8fd   : > { %9219 = vpow2.f32 %v4305_v54  ;;  %16152 = vst [vmem:[#allocation118_spill] sm:$0xff] %v13055_v28  ;;  %v13060_v38 = vpop.eup %9209  ;;  %v3617_v4 = vpop.f32.mrb[141].mxu1 }
 0x8fe   : > { %16153 = vst [vmem:[#allocation45_spill] sm:$0xff] %v13058_v1  ;;  %v4307_v25 = vmul.f32 1.442695, %v4213_v58  ;;  %v4309_v14 = vmul.f32 1.442695, %v4214_v26  ;;  %v13062_v46 = vpop.eup %9211  ;;  %v13064_v22 = vpop.f32.mrb[142].mxu1 }
 0x8ff   : > { %16154 = vst [vmem:[#allocation120_spill] sm:$0xff] %v13064_v22  ;;  %v4163_v63 = vpop.xlane.xlu0 %4162  ;;  %v3620_v49 = vpop.f32.mrb[143].mxu1  ;;  %v4387_v53 = vsel %vm2018_vm11, %v13062_v46, 0.0 }
 0x900   : > { %9221 = vpow2.f32 %v4307_v25  ;;  %v4215_v8 = vsub.f32 %v16082_v61, %v4163_v63  ;;  %v4216_v54 = vsub.f32 %v16155_v56, %v4163_v63  ;;  %v13071_v28 = vadd.f32 %v13060_v38, %v4387_v53 }
 0x901   : > { %9223 = vpow2.f32 %v4309_v14  ;;  %v13073_v58 = vpop.eup %9213 }
 0x902   : > { %16156 = vst [vmem:[#allocation34_spill] sm:$0xff] %v13071_v28  ;;  %v4311_v26 = vmul.f32 1.442695, %v4215_v8  ;;  %v4313_v4 = vmul.f32 1.442695, %v4216_v54  ;;  %v13075_v12 = vpop.eup %9215 }
 0x903   : > { %v4395_v61 = vsel %vm2018_vm11, %v13075_v12, 0.0 }
 0x904   : > { %9225 = vpow2.f32 %v4311_v26  ;;  %v13079_v25 = vpop.f32.mrb[144].mxu1  ;;  %v13082_v49 = vadd.f32 %v13073_v58, %v4395_v61 }
 0x905   : > { %9227 = vpow2.f32 %v4313_v4  ;;  %16157 = vst [vmem:[#allocation124_spill] sm:$0xff] %v13079_v25  ;;  %v3625_v63 = vpop.f32.mrb[145].mxu1 }
 0x906   : > { %16158 = vst [vmem:[#allocation128_spill] sm:$0xff] %v13082_v49  ;;  %v13084_v14 = vpop.eup %9217  ;;  %v13088_v53 = vpop.f32.mrb[146].mxu1 }
 0x907   : > { %v13086_v56 = vpop.eup %9219  ;;  %16159 = vst [vmem:[#allocation130_spill] sm:$0xff] %v13088_v53  ;;  %v3628_v8 = vpop.f32.mrb[147].mxu1 }
 0x908   : > { %v4403_v54 = vsel %vm2018_vm11, %v13086_v56, 0.0 }
 0x909   : > { %v13093_v26 = vadd.f32 %v13084_v14, %v4403_v54 }
 0x90a   : > { %v13095_v4 = vpop.eup %9221  ;;  %v4103_v61 = vpop.xlane.xlu1 %4102 }
 0x90b   : > { %16160 = vst [vmem:[#allocation17_spill] sm:$0xff] %v13093_v26  ;;  %v13097_v25 = vpop.eup %9223  ;;  %v4185_v22 = vsub.f32 %v16090_v57, %v4103_v61  ;;  %v4186_v63 = vsub.f32 %v16161_v7, %v4103_v61  ;;  %5095 = vmax.xlane.f32.xlu1 %v16164_v37 }
 0x90c   : > { %v4407_v8 = vsel %vm2018_vm11, %v13097_v25, 0.0  ;;  %v13106_v53 = vpop.f32.mrb[148].mxu1 }
 0x90d   : > { %16165 = vst [vmem:[#allocation133_spill] sm:$0xff] %v13106_v53  ;;  %v13109_v54 = vadd.f32 %v13095_v4, %v4407_v8  ;;  %v4251_v24 = vmul.f32 1.442695, %v4185_v22  ;;  %v4253_v26 = vmul.f32 1.442695, %v4186_v63  ;;  %v3633_v10 = vpop.f32.mrb[149].mxu1 }
 0x90e   : > { %v13111_v32 = vpop.eup %9225  ;;  %v13115_v7 = vpop.f32.mrb[150].mxu1 }
 0x90f   : > { %16166 = vst [vmem:[#allocation30_spill] sm:$0xff] %v13109_v54  ;;  %v13113_v57 = vpop.eup %9227  ;;  %16167 = vst [vmem:[#allocation136_spill] sm:$0xff] %v13115_v7  ;;  %v4111_v61 = vpop.xlane.xlu1 %4110  ;;  %9229 = vpow2.f32 %v4251_v24  ;;  %v16171_v54 = vld [vmem:[#allocation119_spill] sm:$0xff] }
 0x910   : > { %v3636_v15 = vpop.f32.mrb[151].mxu1  ;;  %v4189_v53 = vsub.f32 %v16093_v23, %v4111_v61  ;;  %v4190_v8 = vsub.f32 %v16168_v50, %v4111_v61  ;;  %9231 = vpow2.f32 %v4253_v26  ;;  %v4411_v10 = vsel %vm2018_vm11, %v13113_v57, 0.0 }
 0x911   : > { %v13126_v7 = vadd.f32 %v13111_v32, %v4411_v10  ;;  %v16170_v15 = vld [vmem:[#allocation117_spill] sm:$0xff] }
 0x912   : > { %v4259_v22 = vmul.f32 1.442695, %v4189_v53  ;;  %v4261_v63 = vmul.f32 1.442695, %v4190_v8  ;;  %v16172_v53 = vld [vmem:[#allocation159_spill] sm:$0xff]  ;;  %v16173_v8 = vld [vmem:[#allocation161_spill] sm:$0xff] }
 0x913   : > { %16169 = vst [vmem:[#allocation100_spill] sm:$0xff] %v13126_v7  ;;  %v4115_v49 = vpop.xlane.xlu1 %4114  ;;  %v16174_v10 = vmax.f32 %v16172_v53, %v16173_v8 }
 0x914   : > { %9233 = vpow2.f32 %v4259_v22  ;;  %v4191_v24 = vsub.f32 %v16096_v45, %v4115_v49  ;;  %v4192_v23 = vsub.f32 %v16170_v15, %v4115_v49 }
 0x915   : > { %9235 = vpow2.f32 %v4261_v63 }
 0x916   : > { %v4263_v50 = vmul.f32 1.442695, %v4191_v24  ;;  %v4265_v61 = vmul.f32 1.442695, %v4192_v23 }
 0x917   : > { %v4119_v37 = vpop.xlane.xlu1 %4118 }
 0x918   : > { %9237 = vpow2.f32 %v4263_v50  ;;  %v4193_v26 = vsub.f32 %v16099_v0, %v4119_v37  ;;  %v4194_v28 = vsub.f32 %v16171_v54, %v4119_v37  ;;  %5107 = vmax.xlane.f32.xlu0 %v16174_v10  ;;  %v16176_v54 = vld [vmem:[#allocation35_spill] sm:$0xff] }
 0x919   : > { %9239 = vpow2.f32 %v4265_v61  ;;  %v9230_v7 = vpop.eup %9229  ;;  %v13135_v45 = vpop.f32.mrb[152].mxu1 }
 0x91a   : > { %v4267_v22 = vmul.f32 1.442695, %v4193_v26  ;;  %v4269_v1 = vmul.f32 1.442695, %v4194_v28  ;;  %16175 = vst [vmem:[#allocation15_spill] sm:$0xff] %v13135_v45  ;;  %v9232_v49 = vpop.eup %9231  ;;  %v3641_v63 = vpop.f32.mrb[153].mxu1  ;;  %v4428_v15 = vpack.c.bf16 %v13012_v5, %v9230_v7 }
 0x91b   : > { %v4127_v24 = vpop.xlane.xlu1 %4126  ;;  %v3642_v23 = vpop.f32.mrb[154].mxu1  ;;  %v4429_v50 = vpack.c.bf16 %v13017_v51, %v9232_v49  ;;  %v16177_v26 = vld [vmem:[#allocation13_spill] sm:$0xff]  ;;  %v4351_v28 = vsel %vm2018_vm11, %v9232_v49, 0.0 }
 0x91c   : > { %9241 = vpow2.f32 %v4267_v22  ;;  %v4197_v0 = vsub.f32 %v16103_v35, %v4127_v24  ;;  %v4198_v37 = vsub.f32 %v16176_v54, %v4127_v24  ;;  %v3643_v61 = vpop.f32.mrb[155].mxu1  ;;  %5477 = vrot.lane.b32.xlu1 %v16177_v26, %s9745_s21  ;;  %v13145_v5 = vadd.f32 %v9230_v7, %v4351_v28  ;;  %v16179_v26 = vld [vmem:[#allocation47_spill] sm:$0xff] }
 0x91d   : > { %9243 = vpow2.f32 %v4269_v1  ;;  %7957 = vmatprep.mubr.msk.bf16.mxu1 %vm2018_vm11, %v4429_v50  ;;  %v16178_v1 = vld [vmem:[#allocation129_spill] sm:$0xff] }
 0x91e   : > { %v9234_v8 = vpop.eup %9233  ;;  %v4275_v10 = vmul.f32 1.442695, %v4197_v0  ;;  %v4277_v63 = vmul.f32 1.442695, %v4198_v37  ;;  %4591 = vmatmul.mubr.bf16.gmra.mrb[172].mxu1 %v4428_v15 }
 0x91f   : > { %v9236_v22 = vpop.eup %9235  ;;  %v4135_v35 = vpop.xlane.xlu1 %4134 }
 0x920   : > { %9245 = vpow2.f32 %v4275_v10  ;;  %v4201_v51 = vsub.f32 %v16106_v44, %v4135_v35  ;;  %v4202_v24 = vsub.f32 %v16178_v1, %v4135_v35  ;;  %v4359_v23 = vsel %vm2018_vm11, %v9236_v22, 0.0 }
 0x921   : > { %9247 = vpow2.f32 %v4277_v63  ;;  %v13150_v54 = vadd.f32 %v9234_v8, %v4359_v23 }
 0x922   : > { %v9238_v49 = vpop.eup %9237  ;;  %v4283_v0 = vmul.f32 1.442695, %v4201_v51  ;;  %v4285_v37 = vmul.f32 1.442695, %v4202_v24 }
 0x923   : > { %v9240_v61 = vpop.eup %9239  ;;  %v4143_v50 = vpop.xlane.xlu1 %4142  ;;  %v4430_v7 = vpack.c.bf16 %v9238_v49, %v9234_v8 }
 0x924   : > { %9249 = vpow2.f32 %v4283_v0  ;;  %v4205_v15 = vsub.f32 %v16109_v43, %v4143_v50  ;;  %v4206_v28 = vsub.f32 %v16179_v26, %v4143_v50  ;;  %v4431_v10 = vpack.c.bf16 %v9240_v61, %v9236_v22  ;;  %v16180_v0 = vld [vmem:[#allocation31_spill] sm:$0xff] }
 0x925   : > { %9251 = vpow2.f32 %v4285_v37  ;;  %v4363_v44 = vsel %vm2018_vm11, %v9240_v61, 0.0 }
 0x926   : > { %v9242_v35 = vpop.eup %9241  ;;  %v4291_v1 = vmul.f32 1.442695, %v4205_v15  ;;  %v4293_v63 = vmul.f32 1.442695, %v4206_v28  ;;  %7958 = vmatprep.mubr.msk.bf16.mxu1 %vm2018_vm11, %v4431_v10  ;;  %v13156_v23 = vadd.f32 %v9238_v49, %v4363_v44  ;;  %v5466_v10 = vpop.permute.xlu0 %5465 }
 0x927   : > { %v9244_v51 = vpop.eup %9243  ;;  %4599 = vmatmul.mubr.bf16.gmra.mrb[176].mxu1 %v4430_v7  ;;  %v4151_v24 = vpop.xlane.xlu1 %4150  ;;  %v4432_v8 = vpack.c.bf16 %v13029_v13, %v9242_v35 }
 0x928   : > { %9253 = vpow2.f32 %v4291_v1  ;;  %v4209_v43 = vsub.f32 %v16113_v62, %v4151_v24  ;;  %v4210_v22 = vsub.f32 %v16180_v0, %v4151_v24  ;;  %v4433_v37 = vpack.c.bf16 %v13031_v21, %v9244_v51 }
 0x929   : > { %9255 = vpow2.f32 %v4293_v63  ;;  %v4367_v61 = vsel %vm2018_vm11, %v9244_v51, 0.0 }
 0x92a   : > { %v9246_v50 = vpop.eup %9245  ;;  %v4299_v15 = vmul.f32 1.442695, %v4209_v43  ;;  %v4301_v26 = vmul.f32 1.442695, %v4210_v22  ;;  %7959 = vmatprep.mubr.msk.bf16.mxu1 %vm2018_vm11, %v4433_v37  ;;  %v13164_v49 = vadd.f32 %v9242_v35, %v4367_v61  ;;  %v5470_v43 = vpop.permute.xlu0 %5469 }
 0x92b   : > { %v9248_v7 = vpop.eup %9247  ;;  %v5464_v28 = vpop.permute.xlu1 %5463  ;;  %v4434_v13 = vpack.c.bf16 %v13042_v60, %v9246_v50 }
 0x92c   : > { %9257 = vpow2.f32 %v4299_v15  ;;  %5544 = vmatpush1.bf16.msra.mxu1 %v5464_v28  ;;  %v4435_v62 = vpack.c.bf16 %v13049_v42, %v9248_v7  ;;  %v4375_v21 = vsel %vm2018_vm11, %v9248_v7, 0.0 }
 0x92d   : > { %9259 = vpow2.f32 %v4301_v26  ;;  %5545 = vmatprep.subr.bf16.mxu1 %v15655_v20  ;;  %v13170_v44 = vadd.f32 %v9246_v50, %v4375_v21  ;;  %v16185_v21 = vld [vmem:[#allocation158_spill] sm:$0xff] }
 0x92e   : > { %v9250_v1 = vpop.eup %9249  ;;  %5483 = vrot.lane.b32.xlu0 %v15745_v17, %s9745_s21  ;;  %v5472_v15 = vpop.permute.xlu0 %5471 }
 0x92f   : > { %v9252_v63 = vpop.eup %9251  ;;  %4607 = vmatmul.mubr.bf16.gmra.mrb[180].mxu1 %v4432_v8  ;;  %v4436_v60 = vpack.c.bf16 %v13060_v38, %v9250_v1  ;;  %v5468_v8 = vpop.permute.xlu1 %5467 }
 0x930   : > { %7960 = vmatprep.mubr.msk.bf16.mxu1 %vm2018_vm11, %v4435_v62  ;;  %5546 = vmatpush1.bf16.msra.mxu1 %v5466_v10  ;;  %v4437_v42 = vpack.c.bf16 %v13062_v46, %v9252_v63  ;;  %v4383_v35 = vsel %vm2018_vm11, %v9252_v63, 0.0  ;;  %v16183_v10 = vld [vmem:[#allocation148_spill] sm:$0xff] }
 0x931   : > { %5547 = vmatprep.subr.bf16.mxu1 %v15655_v20  ;;  %v13179_v51 = vadd.f32 %v9250_v1, %v4383_v35  ;;  %v16187_v35 = vld [vmem:[#allocation165_spill] sm:$0xff] }
 0x932   : > { %v9254_v24 = vpop.eup %9253 }
 0x933   : > { %v9256_v0 = vpop.eup %9255  ;;  %v4438_v22 = vpack.c.bf16 %v13073_v58, %v9254_v24 }
 0x934   : > { %5548 = vmatpush1.bf16.msra.mxu1 %v5468_v8  ;;  %v4439_v17 = vpack.c.bf16 %v13075_v12, %v9256_v0  ;;  %v4391_v38 = vsel %vm2018_vm11, %v9256_v0, 0.0  ;;  %v16190_v0 = vpack.c.bf16 %v13113_v57, %v13097_v25  ;;  %v16191_v8 = vpack.c.bf16 %v13111_v32, %v13095_v4 }
 0x935   : > { %5549 = vmatprep.subr.bf16.mxu1 %v15655_v20  ;;  %v13185_v46 = vadd.f32 %v9254_v24, %v4391_v38  ;;  %v16188_v24 = vld [vmem:[#allocation167_spill] sm:$0xff] }
 0x936   : > { %v9258_v37 = vpop.eup %9257 }
 0x937   : > { %16181 = vst [vmem:[#allocation106_spill] sm:$0xff] %v13185_v46  ;;  %v9260_v61 = vpop.eup %9259  ;;  %4615 = vmatmul.mubr.bf16.gmra.mrb[184].mxu1 %v4434_v13  ;;  %v4440_v50 = vpack.c.bf16 %v13084_v14, %v9258_v37 }
 0x938   : > { %7961 = vmatprep.mubr.msk.bf16.mxu1 %vm2018_vm11, %v4437_v42  ;;  %5550 = vmatpush1.bf16.msra.mxu1 %v5470_v43  ;;  %v4441_v58 = vpack.c.bf16 %v13086_v56, %v9260_v61  ;;  %v4399_v26 = vsel %vm2018_vm11, %v9260_v61, 0.0  ;;  %v16184_v56 = vld [vmem:[#allocation157_spill] sm:$0xff]  ;;  %v16189_v43 = vmax.f32 %v16187_v35, %v16188_v24 }
 0x939   : > { %5551 = vmatprep.subr.bf16.mxu1 %v15655_v20  ;;  %v13192_v12 = vadd.f32 %v9258_v37, %v4399_v26  ;;  %v16186_v1 = vmax.f32 %v16184_v56, %v16185_v21  ;;  %v16193_v37 = vld [vmem:[#allocation145_spill] sm:$0xff] }
 0x93b   : > { %16182 = vst [vmem:[#allocation150_spill] sm:$0xff] %v13192_v12  ;;  %v5088_v7 = vpop.xlane.xlu0 %5087 }
 0x93c   : > { %5552 = vmatpush1.bf16.msra.mxu1 %v5472_v15  ;;  %v5186_v28 = vsub.f32 %v12027_v16, %v5088_v7  ;;  %v5187_v13 = vsub.f32 %v16183_v10, %v5088_v7 }
 0x93d   : > { %5553 = vmatprep.subr.bf16.mxu1 %v15655_v20 }
 0x93e   : > { %v5236_v14 = vmul.f32 1.442695, %v5186_v28  ;;  %v5238_v62 = vmul.f32 1.442695, %v5187_v13 }
 0x93f   : > { %4623 = vmatmul.mubr.bf16.gmra.mrb[188].mxu1 %v4436_v60  ;;  %v5476_v7 = vpop.permute.xlu0 %5475 }
 0x940   : > { %7962 = vmatprep.mubr.msk.bf16.mxu1 %vm2018_vm11, %v4439_v17  ;;  %9261 = vpow2.f32 %v5236_v14  ;;  %5103 = vmax.xlane.f32.xlu1 %v16186_v1  ;;  %v16192_v17 = vld [vmem:[#allocation144_spill] sm:$0xff]  ;;  %v16195_v1 = vld [vmem:[#allocation155_spill] sm:$0xff] }
 0x941   : > { %9263 = vpow2.f32 %v5238_v62 }
 0x947   : > { %4631 = vmatmul.mubr.bf16.gmra.mrb[192].mxu1 %v4438_v22 }
 0x948   : > { %7963 = vmatprep.mubr.msk.bf16.mxu1 %vm2018_vm11, %v4441_v58 }
 0x94a   : > { %v13202_v63 = vpop.eup %9261 }
 0x94b   : > { %v9264_v16 = vpop.eup %9263 }
 0x94c   : > { %v5336_v42 = vsel %vm2018_vm11, %v9264_v16, 0.0 }
 0x94d   : > { %5115 = vmax.xlane.f32.xlu0 %v16189_v43  ;;  %v13209_v60 = vadd.f32 %v13202_v63, %v5336_v42 }
 0x94f   : > { %4639 = vmatmul.mubr.bf16.gmra.mrb[196].mxu1 %v4440_v50  ;;  %v16194_v50 = vld [vmem:[#allocation149_spill] sm:$0xff] }
 0x950   : > { %7964 = vmatprep.mubr.msk.bf16.mxu1 %vm2018_vm11, %v16190_v0 }
 0x951   : > { %5481 = vrot.lane.b32.xlu1 %v15763_v34, %s9745_s21 }
 0x957   : > { %4647 = vmatmul.mubr.bf16.gmra.mrb[200].mxu1 %v16191_v8 }
 0x95f   : > { %v4168_v22 = vpop.xlane.xlu1 %4167 }
 0x960   : > { %v4217_v38 = vsub.f32 %v16192_v17, %v4168_v22  ;;  %v4218_v61 = vsub.f32 %v16193_v37, %v4168_v22 }
 0x962   : > { %v4315_v15 = vmul.f32 1.442695, %v4217_v38  ;;  %v4317_v58 = vmul.f32 1.442695, %v4218_v61  ;;  %v16198_v61 = vld [vmem:[#allocation164_spill] sm:$0xff] }
 0x963   : > { %5487 = vrot.lane.b32.xlu0 %v15818_v33, %s9745_s21  ;;  %v5092_v25 = vpop.xlane.xlu1 %5091 }
 0x964   : > { %9265 = vpow2.f32 %v4315_v15  ;;  %v5188_v57 = vsub.f32 %v12043_v18, %v5092_v25  ;;  %v5189_v34 = vsub.f32 %v16194_v50, %v5092_v25  ;;  %v16200_v50 = vld [vmem:[#allocation175_spill] sm:$0xff] }
 0x965   : > { %9267 = vpow2.f32 %v4317_v58 }
 0x966   : > { %v5240_v26 = vmul.f32 1.442695, %v5188_v57  ;;  %v5242_v32 = vmul.f32 1.442695, %v5189_v34  ;;  %v16201_v34 = vld [vmem:[#allocation178_spill] sm:$0xff] }
 0x967   : > { %v5474_v4 = vpop.permute.xlu1 %5473 }
 0x968   : > { %9269 = vpow2.f32 %v5240_v26  ;;  %5554 = vmatpush1.bf16.msra.mxu1 %v5474_v4  ;;  %v16202_v26 = vmax.f32 %v16200_v50, %v16201_v34  ;;  %v16203_v4 = vld [vmem:[#allocation93_spill] sm:$0xff]  ;;  %v16218_v34 = vld [vmem:[#allocation160_spill] sm:$0xff] }
 0x969   : > { %9271 = vpow2.f32 %v5242_v32  ;;  %5555 = vmatprep.subr.bf16.mxu1 %v15655_v20 }
 0x96c   : > { %5556 = vmatpush1.bf16.msra.mxu1 %v5476_v7  ;;  %v16204_v7 = vld [vmem:[#allocation185_spill] sm:$0xff] }
 0x96d   : > { %5557 = vmatprep.subr.bf16.mxu1 %v15655_v20 }
 0x96e   : > { %v9266_v33 = vpop.eup %9265 }
 0x96f   : > { %v9268_v28 = vpop.eup %9267  ;;  %v4444_v10 = vpack.c.bf16 %v9266_v33, %v9266_v33  ;;  %v4415_v18 = vsel %vm1850_vm8, %v9266_v33, 0.0  ;;  %v16205_v33 = vmax.f32 %v16203_v4, %v16204_v7 }
 0x970   : > { %v5100_v13 = vpop.xlane.xlu0 %5099  ;;  %v4445_v14 = vpack.c.bf16 %v9268_v28, %v9268_v28  ;;  %v4416_v62 = vsel %vm2116_vm12, %v9268_v28, 0.0  ;;  %v16206_v28 = vld [vmem:[#allocation190_spill] sm:$0xff] }
 0x971   : > { %v5192_v21 = vsub.f32 %v16132_v29, %v5100_v13  ;;  %v5193_v42 = vsub.f32 %v16195_v1, %v5100_v13  ;;  %v13232_v24 = vadd.f32 %v4416_v62, %v4415_v18  ;;  %v16197_v29 = vld [vmem:[#allocation162_spill] sm:$0xff]  ;;  %v16209_v13 = vld [vmem:[#allocation200_spill] sm:$0xff]  ;;  %v16213_v1 = vmax.f32 %v12721_v48, %v12729_v3 }
 0x972   : > { %v13234_v43 = vpop.eup %9269  ;;  %7965 = vmatprep.mubr.msk.bf16.mxu1 %vm2018_vm11, %v4445_v14  ;;  %v16199_v15 = vmax.f32 %v16197_v29, %v16198_v61  ;;  %v16210_v14 = vld [vmem:[#allocation202_spill] sm:$0xff] }
 0x973   : > { %16196 = vst [vmem:[#allocation111_spill] sm:$0xff] %v13232_v24  ;;  %v9272_v0 = vpop.eup %9271  ;;  %v5248_v8 = vmul.f32 1.442695, %v5192_v21  ;;  %v5250_v22 = vmul.f32 1.442695, %v5193_v42  ;;  %4655 = vmatmul.mubr.bf16.gmra.mrb[204].mxu1 %v4444_v10  ;;  %v16207_v10 = vld [vmem:[#allocation193_spill] sm:$0xff]  ;;  %v16211_v62 = vmax.f32 %v16209_v13, %v16210_v14  ;;  %v16212_v21 = vmax.f32 %v12678_v27, %v12690_v30 }
 0x974   : > { %v5438_v38 = vpack.c.bf16 %v9272_v0, %v9264_v16  ;;  %v5340_v37 = vsel %vm2018_vm11, %v9272_v0, 0.0  ;;  %v16208_v18 = vmax.f32 %v16206_v28, %v16207_v10  ;;  %v16216_v30 = vld [vmem:[#allocation49_spill] sm:$0xff]  ;;  %v5480_v3 = vpop.permute.xlu0 %5479  ;;  %v16219_v14 = vld [vmem:[#allocation92_spill] sm:$0xff] }
 0x975   : > { %9273 = vpow2.f32 %v5248_v8  ;;  %5111 = vmax.xlane.f32.xlu1 %v16199_v15  ;;  %v13244_v58 = vadd.f32 %v13234_v43, %v5340_v37  ;;  %v16217_v15 = vld [vmem:[#allocation28_spill] sm:$0xff] }
 0x976   : > { %9275 = vpow2.f32 %v5250_v22  ;;  %7980 = vmatprep.mubr.msk.bf16.mxu1 %vm2018_vm11, %v5438_v38  ;;  %v16215_v22 = vmax.f32 %v12800_v31, %v12808_v52  ;;  %v3310_v52 = vsel %vm2018_vm11, %v16217_v15, 0.0 }
 0x97f   : > { %v13247_v25 = vpop.eup %9273 }
 0x980   : > { %v13249_v57 = vpop.eup %9275 }
 0x981   : > { %v5348_v16 = vsel %vm2018_vm11, %v13249_v57, 0.0 }
 0x982   : > { %5123 = vmax.xlane.f32.xlu0 %v16202_v26  ;;  %v13257_v32 = vadd.f32 %v13247_v25, %v5348_v16 }
 0x986   : > { %5139 = vmax.xlane.f32.xlu0 %v16205_v33  ;;  %5485 = vrot.lane.b32.xlu1 %v15811_v39, %s9745_s21  ;;  %v16214_v39 = vld [vmem:[#allocation152_spill] sm:$0xff] }
 0x98a   : > { %5147 = vmax.xlane.f32.xlu0 %v16208_v18 }
 0x98e   : > { %5155 = vmax.xlane.f32.xlu0 %v16211_v62 }
 0x992   : > { %5163 = vmax.xlane.f32.xlu0 %v16212_v21 }
 0x996   : > { %5171 = vmax.xlane.f32.xlu0 %v16213_v1  ;;  %v16220_v1 = vld [vmem:[#allocation44_spill] sm:$0xff] }
 0x998   : > { %v5096_v42 = vpop.xlane.xlu1 %5095 }
 0x999   : > { %v5190_v0 = vsub.f32 %v16162_v19, %v5096_v42  ;;  %v5191_v8 = vsub.f32 %v16214_v39, %v5096_v42  ;;  %v16223_v39 = vld [vmem:[#allocation37_spill] sm:$0xff] }
 0x99a   : > { %5179 = vmax.xlane.f32.xlu0 %v16215_v22 }
 0x99b   : > { %v5244_v38 = vmul.f32 1.442695, %v5190_v0  ;;  %v5246_v37 = vmul.f32 1.442695, %v5191_v8  ;;  %v16224_v8 = vld [vmem:[#allocation52_spill] sm:$0xff] }
 0x99c   : > { %v5478_v61 = vpop.permute.xlu1 %5477  ;;  %v16225_v22 = vmax.f32 %v16223_v39, %v16224_v8  ;;  %v16236_v8 = vld [vmem:[#allocation196_spill] sm:$0xff] }
 0x99d   : > { %9277 = vpow2.f32 %v5244_v38  ;;  %5558 = vmatpush1.bf16.msra.mxu1 %v5478_v61  ;;  %v16226_v38 = vld [vmem:[#allocation182_spill] sm:$0xff] }
 0x99e   : > { %9279 = vpow2.f32 %v5246_v37  ;;  %3304 = vadd.xlane.f32.xlu0 %v16216_v30  ;;  %5559 = vmatprep.subr.bf16.mxu1 %v15655_v20  ;;  %v16227_v37 = vld [vmem:[#allocation184_spill] sm:$0xff] }
 0x99f   : > { %v16228_v61 = vmax.f32 %v16226_v38, %v16227_v37 }
 0x9a1   : > { %5560 = vmatpush1.bf16.msra.mxu1 %v5480_v3 }
 0x9a2   : > { %4321 = vadd.xlane.f32.xlu0 %v12700_v9  ;;  %5561 = vmatprep.subr.bf16.mxu1 %v15655_v20  ;;  %v3311_v9 = vadd.f32 %v16219_v14, %v3310_v52  ;;  %v16229_v52 = vld [vmem:[#allocation87_spill] sm:$0xff] }
 0x9a5   : > { %v5108_v19 = vpop.xlane.xlu0 %5107 }
 0x9a6   : > { %v5196_v16 = vsub.f32 %v16172_v53, %v5108_v19  ;;  %v5197_v26 = vsub.f32 %v16218_v34, %v5108_v19  ;;  %5338 = vadd.xlane.f32.xlu0 %v13209_v60  ;;  %v16221_v60 = vld [vmem:[#allocation174_spill] sm:$0xff]  ;;  %v16245_v53 = vld [vmem:[#allocation96_spill] sm:$0xff] }
 0x9a7   : > { %v13290_v7 = vpop.eup %9277  ;;  %v16222_v42 = vmax.f32 %v16220_v1, %v16221_v60 }
 0x9a8   : > { %v13292_v33 = vpop.eup %9279  ;;  %v5256_v10 = vmul.f32 1.442695, %v5196_v16  ;;  %v5258_v18 = vmul.f32 1.442695, %v5197_v26  ;;  %v16230_v16 = vld [vmem:[#allocation21_spill] sm:$0xff] }
 0x9a9   : > { %v5344_v21 = vsel %vm2018_vm11, %v13292_v33, 0.0  ;;  %v16231_v34 = vmax.f32 %v16229_v52, %v16230_v16  ;;  %v16239_v16 = vld [vmem:[#allocation91_spill] sm:$0xff] }
 0x9aa   : > { %9281 = vpow2.f32 %v5256_v10  ;;  %5119 = vmax.xlane.f32.xlu1 %v16222_v42  ;;  %3312 = vadd.xlane.f32.xlu0 %v3311_v9  ;;  %v5345_v0 = vadd.f32 %v13290_v7, %v5344_v21  ;;  %v16232_v10 = vld [vmem:[#allocation180_spill] sm:$0xff]  ;;  %v16233_v9 = vld [vmem:[#allocation189_spill] sm:$0xff]  ;;  %v16234_v21 = vld [vmem:[#allocation94_spill] sm:$0xff] }
 0x9ab   : > { %9283 = vpow2.f32 %v5258_v18  ;;  %v16235_v60 = vmax.f32 %v16233_v9, %v16234_v21  ;;  %v16242_v21 = vld [vmem:[#allocation109_spill] sm:$0xff] }
 0x9ae   : > { %5127 = vmax.xlane.f32.xlu1 %v16225_v22  ;;  %4329 = vadd.xlane.f32.xlu0 %v12859_v40  ;;  %v16237_v22 = vld [vmem:[#allocation199_spill] sm:$0xff] }
 0x9af   : > { %v16238_v37 = vmax.f32 %v16236_v8, %v16237_v22  ;;  %v16246_v22 = vld [vmem:[#allocation107_spill] sm:$0xff] }
 0x9b2   : > { %5131 = vmax.xlane.f32.xlu1 %v16228_v61  ;;  %5346 = vadd.xlane.f32.xlu0 %v5345_v0 }
 0x9b4   : > { %v13312_v30 = vpop.eup %9281  ;;  %v13314_v3 = vpop.f32.mrb[156].mxu1 }
 0x9b5   : > { %v13316_v19 = vpop.eup %9283  ;;  %v4562_v15 = vpop.f32.mrb[157].mxu1 }
 0x9b6   : > { %5135 = vmax.xlane.f32.xlu1 %v16231_v34  ;;  %v13321_v26 = vpop.f32.mrb[158].mxu1  ;;  %3320 = vadd.xlane.f32.xlu0 %v16232_v10  ;;  %v5356_v40 = vsel %vm2018_vm11, %v13316_v19, 0.0  ;;  %v16240_v34 = vld [vmem:[#allocation101_spill] sm:$0xff] }
 0x9b7   : > { %v4565_v18 = vpop.f32.mrb[159].mxu1  ;;  %v13327_v14 = vadd.f32 %v13312_v30, %v5356_v40  ;;  %v16241_v10 = vmax.f32 %v16239_v16, %v16240_v34 }
 0x9ba   : > { %5143 = vmax.xlane.f32.xlu1 %v16235_v60  ;;  %4337 = vadd.xlane.f32.xlu0 %v12943_v59  ;;  %v16243_v60 = vld [vmem:[#allocation206_spill] sm:$0xff] }
 0x9bb   : > { %v16244_v59 = vmax.f32 %v16242_v21, %v16243_v60 }
 0x9bc   : > { %v13333_v42 = vpop.f32.mrb[160].mxu1 }
 0x9bd   : > { %v4570_v0 = vpop.f32.mrb[161].mxu1 }
 0x9be   : > { %5151 = vmax.xlane.f32.xlu1 %v16238_v37  ;;  %v13338_v61 = vpop.f32.mrb[162].mxu1  ;;  %v16247_v37 = vmax.f32 %v16245_v53, %v16246_v22  ;;  %v16250_v22 = vld [vmem:[#allocation29_spill] sm:$0xff] }
 0x9bf   : > { %v4573_v15 = vpop.f32.mrb[163].mxu1 }
 0x9c2   : > { %5159 = vmax.xlane.f32.xlu1 %v16241_v10  ;;  %v16248_v10 = vld [vmem:[#allocation26_spill] sm:$0xff] }
 0x9c4   : > { %v13343_v40 = vpop.f32.mrb[164].mxu1 }
 0x9c5   : > { %v4578_v18 = vpop.f32.mrb[165].mxu1 }
 0x9c6   : > { %5167 = vmax.xlane.f32.xlu1 %v16244_v59  ;;  %v13348_v62 = vpop.f32.mrb[166].mxu1  ;;  %v16249_v18 = vmax.f32 %v12898_v11, %v12907_v6 }
 0x9c7   : > { %v4581_v0 = vpop.f32.mrb[167].mxu1 }
 0x9ca   : > { %5175 = vmax.xlane.f32.xlu1 %v16247_v37  ;;  %v16251_v37 = vld [vmem:[#allocation88_spill] sm:$0xff] }
 0x9cd   : > { %v5104_v45 = vpop.xlane.xlu1 %5103 }
 0x9ce   : > { %v13353_v17 = vpop.f32.mrb[168].mxu1  ;;  %v5194_v34 = vsub.f32 %v16184_v56, %v5104_v45  ;;  %v5195_v24 = vsub.f32 %v16248_v10, %v5104_v45  ;;  %5184 = vmax.xlane.f32.xlu1 %v16249_v18  ;;  %v5484_v56 = vpop.permute.xlu0 %5483  ;;  %v16252_v45 = vld [vmem:[#allocation166_spill] sm:$0xff] }
 0x9cf   : > { %v4586_v15 = vpop.f32.mrb[169].mxu1  ;;  %v16253_v18 = vld [vmem:[#allocation46_spill] sm:$0xff] }
 0x9d0   : > { %v13360_v60 = vpop.f32.mrb[170].mxu1  ;;  %v5252_v0 = vmul.f32 1.442695, %v5194_v34  ;;  %v5254_v12 = vmul.f32 1.442695, %v5195_v24 }
 0x9d1   : > { %v4589_v59 = vpop.f32.mrb[171].mxu1  ;;  %v5482_v46 = vpop.permute.xlu1 %5481 }
 0x9d2   : > { %9285 = vpow2.f32 %v5252_v0  ;;  %3308 = vadd.xlane.f32.xlu1 %v16250_v22  ;;  %5562 = vmatpush1.bf16.msra.mxu1 %v5482_v46  ;;  %v16254_v0 = vld [vmem:[#allocation54_spill] sm:$0xff] }
 0x9d3   : > { %9287 = vpow2.f32 %v5254_v12  ;;  %5563 = vmatprep.subr.bf16.mxu1 %v15655_v20  ;;  %v3326_v22 = vsel %vm2018_vm11, %v16254_v0, 0.0 }
 0x9d6   : > { %4325 = vadd.xlane.f32.xlu1 %v16251_v37  ;;  %5564 = vmatpush1.bf16.msra.mxu1 %v5484_v56  ;;  %v16255_v56 = vld [vmem:[#allocation24_spill] sm:$0xff]  ;;  %v16256_v37 = vld [vmem:[#allocation50_spill] sm:$0xff] }
 0x9d7   : > { %5565 = vmatprep.subr.bf16.mxu1 %v15655_v20 }
 0x9da   : > { %v5116_v11 = vpop.xlane.xlu0 %5115  ;;  %5342 = vadd.xlane.f32.xlu1 %v13244_v58 }
 0x9db   : > { %v5200_v6 = vsub.f32 %v16187_v35, %v5116_v11  ;;  %v5201_v24 = vsub.f32 %v16252_v45, %v5116_v11  ;;  %v3327_v11 = vadd.f32 %v16256_v37, %v3326_v22 }
 0x9dc   : > { %v13369_v15 = vpop.eup %9285 }
 0x9dd   : > { %v13371_v34 = vpop.eup %9287  ;;  %v5264_v46 = vmul.f32 1.442695, %v5200_v6  ;;  %v5266_v12 = vmul.f32 1.442695, %v5201_v24  ;;  %v16257_v24 = vld [vmem:[#allocation10_spill] sm:$0xff] }
 0x9de   : > { %3316 = vadd.xlane.f32.xlu1 %v16253_v18  ;;  %v5352_v59 = vsel %vm2018_vm11, %v13371_v34, 0.0  ;;  %v16258_v18 = vld [vmem:[#allocation42_spill] sm:$0xff] }
 0x9df   : > { %9289 = vpow2.f32 %v5264_v46  ;;  %v5353_v35 = vadd.f32 %v13369_v15, %v5352_v59 }
 0x9e0   : > { %9291 = vpow2.f32 %v5266_v12 }
 0x9e1   : > { %5354 = vadd.xlane.f32.xlu0 %v5353_v35 }
 0x9e2   : > { %4333 = vadd.xlane.f32.xlu1 %v16255_v56 }
 0x9e5   : > { %3328 = vadd.xlane.f32.xlu0 %v3327_v11 }
 0x9e6   : > { %5350 = vadd.xlane.f32.xlu1 %v13257_v32 }
 0x9e9   : > { %v13386_v6 = vpop.eup %9289  ;;  %4345 = vadd.xlane.f32.xlu0 %v12998_v47  ;;  %v16259_v47 = vld [vmem:[#allocation74_spill] sm:$0xff] }
 0x9ea   : > { %v13389_v45 = vpop.eup %9291  ;;  %3324 = vadd.xlane.f32.xlu1 %v16257_v24 }
 0x9eb   : > { %v5364_v46 = vsel %vm2018_vm11, %v13389_v45, 0.0 }
 0x9ec   : > { %v5365_v12 = vadd.f32 %v13386_v6, %v5364_v46 }
 0x9ee   : > { %4341 = vadd.xlane.f32.xlu1 %v16258_v18  ;;  %v16261_v18 = vld [vmem:[#allocation83_spill] sm:$0xff] }
 0x9f1   : > { %v13396_v59 = vpop.f32.mrb[172].mxu1 }
 0x9f2   : > { %v4594_v35 = vpop.f32.mrb[173].mxu1  ;;  %5358 = vadd.xlane.f32.xlu1 %v13327_v14 }
 0x9f3   : > { %v13399_v32 = vpop.f32.mrb[174].mxu1 }
 0x9f4   : > { %v4597_v0 = vpop.f32.mrb[175].mxu1 }
 0x9f6   : > { %3332 = vadd.xlane.f32.xlu1 %v16259_v47  ;;  %v16262_v47 = vld [vmem:[#allocation163_spill] sm:$0xff] }
 0x9fa   : > { %v13402_v22 = vpop.f32.mrb[176].mxu1  ;;  %4349 = vadd.xlane.f32.xlu1 %v12952_v2 }
 0x9fb   : > { %16260 = vst [vmem:[#allocation154_spill] sm:$0xff] %v13402_v22  ;;  %v4602_v56 = vpop.f32.mrb[177].mxu1 }
 0x9fc   : > { %v13405_v37 = vpop.f32.mrb[178].mxu1 }
 0x9fd   : > { %v4605_v11 = vpop.f32.mrb[179].mxu1 }
 0x9fe   : > { %5366 = vadd.xlane.f32.xlu1 %v5365_v12  ;;  %v5488_v11 = vpop.permute.xlu0 %5487 }
 0xa02   : > { %v13407_v24 = vpop.f32.mrb[180].mxu1  ;;  %3340 = vadd.xlane.f32.xlu1 %v16261_v18  ;;  %v5112_v14 = vpop.xlane.xlu1 %5111 }
 0xa03   : > { %v4610_v46 = vpop.f32.mrb[181].mxu1  ;;  %v5198_v0 = vsub.f32 %v16197_v29, %v5112_v14  ;;  %v5199_v10 = vsub.f32 %v16262_v47, %v5112_v14  ;;  %v16265_v14 = vmov 0.0  }
 0xa04   : > { %v13410_v35 = vpop.f32.mrb[182].mxu1  ;;  %v5541_v46 = vsel %vm2488_vm10, %v5488_v11, 0 }
 0xa05   : > { %v4613_v58 = vpop.f32.mrb[183].mxu1  ;;  %v5260_v56 = vmul.f32 1.442695, %v5198_v0  ;;  %v5262_v22 = vmul.f32 1.442695, %v5199_v10  ;;  %v16268_v0 = vld [vmem:[#allocation176_spill] sm:$0xff] }
 0xa06   : > { %4357 = vadd.xlane.f32.xlu1 %v13027_v36  ;;  %v5486_v2 = vpop.permute.xlu1 %5485  ;;  %v16266_v36 = vpack.c.bf16 %v13234_v43, %v13202_v63  ;;  %v16272_v63 = vpack.c.bf16 %v13247_v25, %v13290_v7 }
 0xa07   : > { %9293 = vpow2.f32 %v5260_v56  ;;  %5566 = vmatpush1.bf16.msra.mxu1 %v5486_v2 }
 0xa08   : > { %9295 = vpow2.f32 %v5262_v22  ;;  %5567 = vmatprep.subr.bf16.mxu1 %v15655_v20  ;;  %v16267_v22 = vpack.c.bf16 %v13249_v57, %v13292_v33 }
 0xa0a   : > { %v13416_v12 = vpop.f32.mrb[184].mxu1 }
 0xa0b   : > { %16263 = vst [vmem:[#allocation156_spill] sm:$0xff] %v13416_v12  ;;  %v4618_v18 = vpop.f32.mrb[185].mxu1  ;;  %5568 = vmatpush1.bf16.msra.mxu1 %v5541_v46 }
 0xa0c   : > { %v13419_v29 = vpop.f32.mrb[186].mxu1  ;;  %8292 = vmatprep.subr.bf16.mxu1 %v16265_v14 }
 0xa0d   : > { %16264 = vst [vmem:[#allocation122_spill] sm:$0xff] %v13419_v29  ;;  %v4621_v58 = vpop.f32.mrb[187].mxu1 }
 0xa0e   : > { %5576 = vmatmul.mubr.bf16.vlgmr.msra.gmra.mrb[208].mxu1 %v16266_v36 }
 0xa0f   : > { %v5124_v10 = vpop.xlane.xlu0 %5123  ;;  %7981 = vmatprep.mubr.msk.bf16.mxu1 %vm2018_vm11, %v16267_v22 }
 0xa10   : > { %v5204_v20 = vsub.f32 %v16200_v50, %v5124_v10  ;;  %v5205_v47 = vsub.f32 %v16268_v0, %v5124_v10  ;;  %v16271_v10 = vld [vmem:[#allocation61_spill] sm:$0xff] }
 0xa11   : > { %v13431_v56 = vpop.eup %9293 }
 0xa12   : > { %v13433_v2 = vpop.f32.mrb[188].mxu1  ;;  %v9296_v11 = vpop.eup %9295  ;;  %v5272_v46 = vmul.f32 1.442695, %v5204_v20  ;;  %v5274_v18 = vmul.f32 1.442695, %v5205_v47 }
 0xa13   : > { %16269 = vst [vmem:[#allocation11_spill] sm:$0xff] %v13433_v2  ;;  %v4626_v58 = vpop.f32.mrb[189].mxu1  ;;  %v5140_v57 = vpop.xlane.xlu0 %5139  ;;  %v5360_v33 = vsel %vm2018_vm11, %v9296_v11, 0.0  ;;  %v5444_v50 = vpack.c.bf16 %v13389_v45, %v9296_v11  ;;  %v16273_v45 = vpack.c.bf16 %v13316_v19, %v13371_v34  ;;  %v16274_v11 = vld [vmem:[#allocation192_spill] sm:$0xff]  ;;  %v16278_v34 = vld [vmem:[#allocation201_spill] sm:$0xff] }
 0xa14   : > { %v13437_v43 = vpop.f32.mrb[190].mxu1  ;;  %9297 = vpow2.f32 %v5272_v46  ;;  %v5212_v36 = vsub.f32 %v16203_v4, %v5140_v57  ;;  %v5213_v22 = vsub.f32 %v16271_v10, %v5140_v57  ;;  %v5361_v20 = vadd.f32 %v13431_v56, %v5360_v33  ;;  %v16276_v10 = vld [vmem:[#allocation65_spill] sm:$0xff] }
 0xa15   : > { %16270 = vst [vmem:[#allocation126_spill] sm:$0xff] %v13437_v43  ;;  %v4629_v0 = vpop.f32.mrb[191].mxu1  ;;  %9299 = vpow2.f32 %v5274_v18 }
 0xa16   : > { %v5288_v47 = vmul.f32 1.442695, %v5212_v36  ;;  %v5290_v58 = vmul.f32 1.442695, %v5213_v22  ;;  %5362 = vadd.xlane.f32.xlu0 %v5361_v20  ;;  %5584 = vmatmul.mubr.bf16.gmra.mrb[212].mxu1 %v16272_v63  ;;  %v16279_v20 = vpack.c.bf16 %v13312_v30, %v13369_v15 }
 0xa17   : > { %v5148_v43 = vpop.xlane.xlu0 %5147  ;;  %7982 = vmatprep.mubr.msk.bf16.mxu1 %vm2018_vm11, %v16273_v45  ;;  %v16280_v45 = vld [vmem:[#allocation204_spill] sm:$0xff] }
 0xa18   : > { %9301 = vpow2.f32 %v5288_v47  ;;  %v5216_v4 = vsub.f32 %v16206_v28, %v5148_v43  ;;  %v5217_v46 = vsub.f32 %v16274_v11, %v5148_v43 }
 0xa19   : > { %9303 = vpow2.f32 %v5290_v58 }
 0xa1a   : > { %v13453_v18 = vpop.f32.mrb[192].mxu1  ;;  %v5296_v57 = vmul.f32 1.442695, %v5216_v4  ;;  %v5298_v33 = vmul.f32 1.442695, %v5217_v46  ;;  %3336 = vadd.xlane.f32.xlu0 %v16276_v10 }
 0xa1b   : > { %16275 = vst [vmem:[#allocation36_spill] sm:$0xff] %v13453_v18  ;;  %v4634_v36 = vpop.f32.mrb[193].mxu1  ;;  %v5156_v7 = vpop.xlane.xlu0 %5155 }
 0xa1c   : > { %v13456_v25 = vpop.f32.mrb[194].mxu1  ;;  %9305 = vpow2.f32 %v5296_v57  ;;  %v5220_v19 = vsub.f32 %v16209_v13, %v5156_v7  ;;  %v5221_v63 = vsub.f32 %v16278_v34, %v5156_v7  ;;  %v16282_v36 = vld [vmem:[#allocation57_spill] sm:$0xff]  ;;  %v16284_v34 = vld [vmem:[#allocation207_spill] sm:$0xff] }
 0xa1d   : > { %16277 = vst [vmem:[#allocation134_spill] sm:$0xff] %v13456_v25  ;;  %v4637_v22 = vpop.f32.mrb[195].mxu1  ;;  %9307 = vpow2.f32 %v5298_v33 }
 0xa1e   : > { %v13460_v28 = vpop.eup %9297  ;;  %v5304_v43 = vmul.f32 1.442695, %v5220_v19  ;;  %v5306_v0 = vmul.f32 1.442695, %v5221_v63  ;;  %4353 = vadd.xlane.f32.xlu0 %v13145_v5  ;;  %5592 = vmatmul.mubr.bf16.gmra.mrb[216].mxu1 %v16279_v20 }
 0xa1f   : > { %v13466_v47 = vpop.eup %9299  ;;  %v5164_v58 = vpop.xlane.xlu0 %5163  ;;  %7983 = vmatprep.mubr.msk.bf16.mxu1 %vm2018_vm11, %v5444_v50  ;;  %v3346_v50 = vsel %vm2018_vm11, %v16282_v36, 0.0 }
 0xa20   : > { %9309 = vpow2.f32 %v5304_v43  ;;  %v5224_v13 = vsub.f32 %v12678_v27, %v5164_v58  ;;  %v5225_v4 = vsub.f32 %v16280_v45, %v5164_v58  ;;  %v5372_v11 = vsel %vm2018_vm11, %v13466_v47, 0.0 }
 0xa21   : > { %9311 = vpow2.f32 %v5306_v0  ;;  %v5373_v5 = vadd.f32 %v13460_v28, %v5372_v11  ;;  %v16285_v0 = vld [vmem:[#allocation58_spill] sm:$0xff]  ;;  %v16286_v11 = vpack.c.bf16 %v13386_v6, %v13431_v56 }
 0xa22   : > { %v13473_v46 = vpop.f32.mrb[196].mxu1  ;;  %v13476_v30 = vpop.eup %9301  ;;  %v5312_v15 = vmul.f32 1.442695, %v5224_v13  ;;  %v5314_v57 = vmul.f32 1.442695, %v5225_v4  ;;  %v3347_v20 = vadd.f32 %v16285_v0, %v3346_v50 }
 0xa23   : > { %16281 = vst [vmem:[#allocation39_spill] sm:$0xff] %v13473_v46  ;;  %v4642_v33 = vpop.f32.mrb[197].mxu1  ;;  %v13480_v10 = vpop.eup %9303  ;;  %5374 = vadd.xlane.f32.xlu1 %v5373_v5  ;;  %v16291_v46 = vld [vmem:[#allocation33_spill] sm:$0xff] }
 0xa24   : > { %v13482_v27 = vpop.f32.mrb[198].mxu1  ;;  %v5172_v7 = vpop.xlane.xlu0 %5171  ;;  %9313 = vpow2.f32 %v5312_v15  ;;  %v5388_v43 = vsel %vm2018_vm11, %v13480_v10, 0.0 }
 0xa25   : > { %16283 = vst [vmem:[#allocation14_spill] sm:$0xff] %v13482_v27  ;;  %v5228_v19 = vsub.f32 %v12721_v48, %v5172_v7  ;;  %v5229_v63 = vsub.f32 %v16284_v34, %v5172_v7  ;;  %v4645_v22 = vpop.f32.mrb[199].mxu1  ;;  %9315 = vpow2.f32 %v5314_v57  ;;  %v13490_v58 = vadd.f32 %v13476_v30, %v5388_v43  ;;  %v16287_v57 = vld [vmem:[#allocation110_spill] sm:$0xff] }
 0xa26   : > { %v13492_v13 = vpop.eup %9305  ;;  %5600 = vmatmul.mubr.bf16.gmra.mrb[220].mxu1 %v16286_v11 }
 0xa27   : > { %v5320_v45 = vmul.f32 1.442695, %v5228_v19  ;;  %v5322_v4 = vmul.f32 1.442695, %v5229_v63  ;;  %v13497_v48 = vpop.eup %9307  ;;  %3348 = vadd.xlane.f32.xlu1 %v3347_v20 }
 0xa28   : > { %v5180_v5 = vpop.xlane.xlu0 %5179  ;;  %v5396_v36 = vsel %vm2018_vm11, %v13497_v48, 0.0 }
 0xa29   : > { %9317 = vpow2.f32 %v5320_v45  ;;  %v5232_v15 = vsub.f32 %v12800_v31, %v5180_v5  ;;  %v5233_v33 = vsub.f32 %v16287_v57, %v5180_v5  ;;  %v13506_v7 = vadd.f32 %v13492_v13, %v5396_v36 }
 0xa2a   : > { %9319 = vpow2.f32 %v5322_v4  ;;  %v13503_v50 = vpop.f32.mrb[200].mxu1  ;;  %v13508_v6 = vpop.eup %9309 }
 0xa2b   : > { %16288 = vst [vmem:[#allocation137_spill] sm:$0xff] %v13503_v50  ;;  %v5328_v56 = vmul.f32 1.442695, %v5232_v15  ;;  %v5330_v19 = vmul.f32 1.442695, %v5233_v33  ;;  %v4650_v34 = vpop.f32.mrb[201].mxu1  ;;  %v13510_v63 = vpop.eup %9311  ;;  %4365 = vadd.xlane.f32.xlu1 %v13156_v23 }
 0xa2c   : > { %v13512_v22 = vpop.f32.mrb[202].mxu1  ;;  %v5404_v43 = vsel %vm2018_vm11, %v13510_v63, 0.0  ;;  %v16290_v34 = vld [vmem:[#allocation76_spill] sm:$0xff] }
 0xa2d   : > { %16289 = vst [vmem:[#allocation140_spill] sm:$0xff] %v13512_v22  ;;  %9321 = vpow2.f32 %v5328_v56  ;;  %v4653_v31 = vpop.f32.mrb[203].mxu1  ;;  %v13518_v0 = vadd.f32 %v13508_v6, %v5404_v43 }
 0xa2e   : > { %9323 = vpow2.f32 %v5330_v19  ;;  %v13520_v20 = vpop.eup %9313 }
 0xa2f   : > { %v13522_v45 = vpop.eup %9315 }
 0xa30   : > { %v5412_v4 = vsel %vm2018_vm11, %v13522_v45, 0.0 }
 0xa31   : > { %v13527_v11 = vadd.f32 %v13520_v20, %v5412_v4 }
 0xa33   : > { %v13529_v23 = vpop.eup %9317 }
 0xa34   : > { %v13531_v5 = vpop.eup %9319 }
 0xa35   : > { %v5420_v15 = vsel %vm2018_vm11, %v13531_v5, 0.0 }
 0xa36   : > { %v13536_v57 = vadd.f32 %v13529_v23, %v5420_v15 }
 0xa37   : > { %v13538_v33 = vpop.eup %9321  ;;  %v5120_v56 = vpop.xlane.xlu1 %5119 }
 0xa38   : > { %v13540_v36 = vpop.eup %9323  ;;  %v5202_v19 = vsub.f32 %v16220_v1, %v5120_v56  ;;  %v5203_v31 = vsub.f32 %v16290_v34, %v5120_v56  ;;  %v16292_v34 = vld [vmem:[#allocation183_spill] sm:$0xff] }
 0xa39   : > { %v5428_v43 = vsel %vm2018_vm11, %v13540_v36, 0.0 }
 0xa3a   : > { %v13547_v4 = vadd.f32 %v13538_v33, %v5428_v43  ;;  %v5268_v22 = vmul.f32 1.442695, %v5202_v19  ;;  %v5270_v50 = vmul.f32 1.442695, %v5203_v31  ;;  %v16293_v31 = vld [vmem:[#allocation89_spill] sm:$0xff] }
 0xa3b   : > { %v5128_v27 = vpop.xlane.xlu1 %5127 }
 0xa3c   : > { %9325 = vpow2.f32 %v5268_v22  ;;  %v5206_v15 = vsub.f32 %v16223_v39, %v5128_v27  ;;  %v5207_v25 = vsub.f32 %v16291_v46, %v5128_v27 }
 0xa3d   : > { %9327 = vpow2.f32 %v5270_v50 }
 0xa3e   : > { %v5276_v18 = vmul.f32 1.442695, %v5206_v15  ;;  %v5278_v2 = vmul.f32 1.442695, %v5207_v25 }
 0xa3f   : > { %v5132_v1 = vpop.xlane.xlu1 %5131 }
 0xa40   : > { %9329 = vpow2.f32 %v5276_v18  ;;  %v5208_v56 = vsub.f32 %v16226_v38, %v5132_v1  ;;  %v5209_v29 = vsub.f32 %v16292_v34, %v5132_v1 }
 0xa41   : > { %9331 = vpow2.f32 %v5278_v2 }
 0xa42   : > { %v5280_v43 = vmul.f32 1.442695, %v5208_v56  ;;  %v5282_v12 = vmul.f32 1.442695, %v5209_v29 }
 0xa43   : > { %v5136_v19 = vpop.xlane.xlu1 %5135 }
 0xa44   : > { %9333 = vpow2.f32 %v5280_v43  ;;  %v5210_v22 = vsub.f32 %v16229_v52, %v5136_v19  ;;  %v5211_v39 = vsub.f32 %v16293_v31, %v5136_v19  ;;  %v13562_v31 = vpop.xlane.xlu0 %3304 }
 0xa45   : > { %9335 = vpow2.f32 %v5282_v12  ;;  %v16295_v12 = vld [vmem:[#allocation27_spill] sm:$0xff] }
 0xa46   : > { %v9326_v46 = vpop.eup %9325  ;;  %v5284_v27 = vmul.f32 1.442695, %v5210_v22  ;;  %v5286_v50 = vmul.f32 1.442695, %v5211_v39  ;;  %v13555_v25 = vpop.f32.mrb[204].mxu1 }
 0xa47   : > { %16294 = vst [vmem:[#allocation20_spill] sm:$0xff] %v13555_v25  ;;  %v9328_v18 = vpop.eup %9327  ;;  %v4658_v15 = vpop.f32.mrb[205].mxu1  ;;  %v5445_v38 = vpack.c.bf16 %v13460_v28, %v9326_v46 }
 0xa48   : > { %9337 = vpow2.f32 %v5284_v27  ;;  %v4659_v2 = vpop.f32.mrb[206].mxu1  ;;  %v5144_v1 = vpop.xlane.xlu1 %5143  ;;  %v5446_v29 = vpack.c.bf16 %v13466_v47, %v9328_v18  ;;  %v5368_v56 = vsel %vm2018_vm11, %v9328_v18, 0.0 }
 0xa49   : > { %9339 = vpow2.f32 %v5286_v50  ;;  %v5214_v52 = vsub.f32 %v16233_v9, %v5144_v1  ;;  %v5215_v34 = vsub.f32 %v16295_v12, %v5144_v1  ;;  %v4660_v43 = vpop.f32.mrb[207].mxu1  ;;  %v5369_v19 = vadd.f32 %v9326_v46, %v5368_v56  ;;  %v16296_v50 = vld [vmem:[#allocation198_spill] sm:$0xff] }
 0xa4a   : > { %v9330_v22 = vpop.eup %9329  ;;  %7984 = vmatprep.mubr.msk.bf16.mxu1 %vm2018_vm11, %v5446_v29  ;;  %v16297_v29 = vld [vmem:[#allocation78_spill] sm:$0xff] }
 0xa4b   : > { %v9332_v28 = vpop.eup %9331  ;;  %v5292_v39 = vmul.f32 1.442695, %v5214_v52  ;;  %v5294_v27 = vmul.f32 1.442695, %v5215_v34  ;;  %5608 = vmatmul.mubr.bf16.gmra.mrb[224].mxu1 %v5445_v38  ;;  %5370 = vadd.xlane.f32.xlu0 %v5369_v19  ;;  %v13569_v34 = vpop.xlane.xlu0 %4321 }
 0xa4c   : > { %v5152_v47 = vpop.xlane.xlu1 %5151  ;;  %v5376_v18 = vsel %vm2018_vm11, %v9332_v28, 0.0 }
 0xa4d   : > { %9341 = vpow2.f32 %v5292_v39  ;;  %v5218_v9 = vsub.f32 %v16236_v8, %v5152_v47  ;;  %v5219_v15 = vsub.f32 %v16296_v50, %v5152_v47  ;;  %v5377_v2 = vadd.f32 %v9330_v22, %v5376_v18  ;;  %v16298_v39 = vld [vmem:[#allocation99_spill] sm:$0xff] }
 0xa4e   : > { %v9334_v46 = vpop.eup %9333  ;;  %9343 = vpow2.f32 %v5294_v27 }
 0xa4f   : > { %v9336_v1 = vpop.eup %9335  ;;  %v5300_v56 = vmul.f32 1.442695, %v5218_v9  ;;  %v5302_v12 = vmul.f32 1.442695, %v5219_v15  ;;  %3344 = vadd.xlane.f32.xlu0 %v16297_v29  ;;  %v5447_v52 = vpack.c.bf16 %v9334_v46, %v9330_v22 }
 0xa50   : > { %v5160_v38 = vpop.xlane.xlu1 %5159  ;;  %v5448_v43 = vpack.c.bf16 %v9336_v1, %v9332_v28  ;;  %v5380_v19 = vsel %vm2018_vm11, %v9336_v1, 0.0 }
 0xa51   : > { %9345 = vpow2.f32 %v5300_v56  ;;  %v5222_v8 = vsub.f32 %v16239_v16, %v5160_v38  ;;  %v5223_v47 = vsub.f32 %v16298_v39, %v5160_v38  ;;  %v5381_v18 = vadd.f32 %v9334_v46, %v5380_v19  ;;  %v16299_v56 = vld [vmem:[#allocation205_spill] sm:$0xff]  ;;  %v13581_v38 = vpop.xlane.xlu0 %5338  ;;  %v16300_v19 = vld [vmem:[#allocation48_spill] sm:$0xff] }
 0xa52   : > { %v9338_v50 = vpop.eup %9337  ;;  %9347 = vpow2.f32 %v5302_v12  ;;  %7985 = vmatprep.mubr.msk.bf16.mxu1 %vm2018_vm11, %v5448_v43  ;;  %v16301_v39 = vld [vmem:[#allocation105_spill] sm:$0xff] }
 0xa53   : > { %v9340_v27 = vpop.eup %9339  ;;  %v5308_v9 = vmul.f32 1.442695, %v5222_v8  ;;  %v5310_v15 = vmul.f32 1.442695, %v5223_v47  ;;  %4361 = vadd.xlane.f32.xlu0 %v13150_v54  ;;  %5616 = vmatmul.mubr.bf16.gmra.mrb[228].mxu1 %v5447_v52  ;;  %v5449_v22 = vpack.c.bf16 %v13476_v30, %v9338_v50 }
 0xa54   : > { %5382 = vadd.xlane.f32.xlu1 %v5381_v18  ;;  %v5168_v28 = vpop.xlane.xlu1 %5167  ;;  %v5450_v1 = vpack.c.bf16 %v13480_v10, %v9340_v27  ;;  %v5384_v16 = vsel %vm2018_vm11, %v9340_v27, 0.0 }
 0xa55   : > { %9349 = vpow2.f32 %v5308_v9  ;;  %v5226_v46 = vsub.f32 %v16242_v21, %v5168_v28  ;;  %v5227_v12 = vsub.f32 %v16299_v56, %v5168_v28  ;;  %v5385_v29 = vadd.f32 %v9338_v50, %v5384_v16  ;;  %v16303_v16 = vld [vmem:[#allocation22_spill] sm:$0xff] }
 0xa56   : > { %9351 = vpow2.f32 %v5310_v15  ;;  %7986 = vmatprep.mubr.msk.bf16.mxu1 %vm2018_vm11, %v5450_v1  ;;  %v16302_v15 = vld [vmem:[#allocation97_spill] sm:$0xff]  ;;  %v3313_v1 = vpop.xlane.xlu0 %3312 }
 0xa57   : > { %v9342_v54 = vpop.eup %9341  ;;  %v5316_v52 = vmul.f32 1.442695, %v5226_v46  ;;  %v5318_v30 = vmul.f32 1.442695, %v5227_v12  ;;  %5378 = vadd.xlane.f32.xlu0 %v5377_v2 }
 0xa58   : > { %v9344_v43 = vpop.eup %9343  ;;  %3356 = vadd.xlane.f32.xlu1 %v16300_v19  ;;  %v5176_v10 = vpop.xlane.xlu1 %5175  ;;  %v5451_v8 = vpack.c.bf16 %v13492_v13, %v9342_v54 }
 0xa59   : > { %9353 = vpow2.f32 %v5316_v52  ;;  %v5230_v21 = vsub.f32 %v16245_v53, %v5176_v10  ;;  %v5231_v47 = vsub.f32 %v16301_v39, %v5176_v10  ;;  %v5452_v18 = vpack.c.bf16 %v13497_v48, %v9344_v43 }
 0xa5a   : > { %9355 = vpow2.f32 %v5318_v30  ;;  %v5392_v50 = vsel %vm2018_vm11, %v9344_v43, 0.0  ;;  %v4330_v19 = vpop.xlane.xlu0 %4329 }
 0xa5b   : > { %v13590_v27 = vpop.eup %9345  ;;  %v5324_v9 = vmul.f32 1.442695, %v5230_v21  ;;  %v5326_v2 = vmul.f32 1.442695, %v5231_v47  ;;  %3352 = vadd.xlane.f32.xlu0 %v16302_v15  ;;  %5624 = vmatmul.mubr.bf16.gmra.mrb[232].mxu1 %v5449_v22  ;;  %v13593_v28 = vadd.f32 %v9342_v54, %v5392_v50 }
 0xa5c   : > { %v9348_v13 = vpop.eup %9347  ;;  %4373 = vadd.xlane.f32.xlu1 %v13040_v55  ;;  %7987 = vmatprep.mubr.msk.bf16.mxu1 %vm2018_vm11, %v5452_v18  ;;  %v5185_v53 = vpop.xlane.xlu1 %5184  ;;  %v5453_v48 = vpack.c.bf16 %v13508_v6, %v13590_v27 }
 0xa5d   : > { %9357 = vpow2.f32 %v5324_v9  ;;  %v5234_v46 = vsub.f32 %v16303_v16, %v5185_v53  ;;  %v5235_v56 = vsub.f32 %v12903_v41, %v5185_v53  ;;  %v5454_v12 = vpack.c.bf16 %v13510_v63, %v9348_v13 }
 0xa5e   : > { %9359 = vpow2.f32 %v5326_v2  ;;  %v5400_v22 = vsel %vm2018_vm11, %v9348_v13, 0.0  ;;  %v13633_v50 = vpop.xlane.xlu0 %5346 }
 0xa5f   : > { %v13603_v54 = vpop.eup %9349  ;;  %9361 = vrcp.f32 %v13562_v31  ;;  %v5332_v55 = vmul.f32 1.442695, %v5234_v46  ;;  %v5334_v52 = vmul.f32 1.442695, %v5235_v56  ;;  %4369 = vadd.xlane.f32.xlu0 %v13164_v49  ;;  %v13608_v6 = vadd.f32 %v13590_v27, %v5400_v22  ;;  %v16306_v27 = vld [vmem:[#allocation45_spill] sm:$0xff] }
 0xa60   : > { %v9352_v30 = vpop.eup %9351  ;;  %9363 = vrcp.f32 %v13569_v34  ;;  %5390 = vadd.xlane.f32.xlu1 %v13490_v58  ;;  %v3309_v41 = vpop.xlane.xlu1 %3308  ;;  %v5455_v63 = vpack.c.bf16 %v13520_v20, %v13603_v54  ;;  %v16304_v34 = vld [vmem:[#allocation71_spill] sm:$0xff] }
 0xa61   : > { %9365 = vpow2.f32 %v5332_v55  ;;  %v5456_v43 = vpack.c.bf16 %v13522_v45, %v9352_v30  ;;  %v5408_v31 = vsel %vm2018_vm11, %v9352_v30, 0.0 }
 0xa62   : > { %9367 = vpow2.f32 %v5334_v52  ;;  %v13617_v49 = vadd.f32 %v13603_v54, %v5408_v31  ;;  %v3321_v52 = vpop.xlane.xlu0 %3320 }
 0xa63   : > { %v13619_v10 = vpop.eup %9353  ;;  %9369 = vrcp.f32 %v3309_v41  ;;  %5386 = vadd.xlane.f32.xlu0 %v5385_v29  ;;  %5632 = vmatmul.mubr.bf16.gmra.mrb[236].mxu1 %v5451_v8  ;;  %v16305_v29 = vld [vmem:[#allocation69_spill] sm:$0xff] }
 0xa64   : > { %v9356_v58 = vpop.eup %9355  ;;  %3364 = vadd.xlane.f32.xlu1 %v16304_v34  ;;  %7988 = vmatprep.mubr.msk.bf16.mxu1 %vm2018_vm11, %v5454_v12  ;;  %v4326_v20 = vpop.xlane.xlu1 %4325  ;;  %v5457_v45 = vpack.c.bf16 %v13529_v23, %v13619_v10  ;;  %v16307_v12 = vld [vmem:[#allocation59_spill] sm:$0xff] }
 0xa65   : > { %9371 = vrcp.f32 %v4326_v20  ;;  %v5458_v21 = vpack.c.bf16 %v13531_v5, %v9356_v58  ;;  %v5416_v39 = vsel %vm2018_vm11, %v9356_v58, 0.0 }
 0xa66   : > { %v13628_v47 = vadd.f32 %v13619_v10, %v5416_v39  ;;  %9373 = vrcp.f32 %v3313_v1  ;;  %v16308_v1 = vld [vmem:[#allocation112_spill] sm:$0xff] }
 0xa67   : > { %v13630_v18 = vpop.eup %9357  ;;  %3360 = vadd.xlane.f32.xlu0 %v16305_v29 }
 0xa68   : > { %v9360_v8 = vpop.eup %9359  ;;  %4381 = vadd.xlane.f32.xlu1 %v16306_v27  ;;  %v13636_v9 = vpop.xlane.xlu1 %5342  ;;  %v5459_v2 = vpack.c.bf16 %v13538_v33, %v13630_v18  ;;  %v16312_v27 = vld [vmem:[#allocation73_spill] sm:$0xff] }
 0xa69   : > { %v9362_v5 = vpop.eup %9361  ;;  %v5460_v15 = vpack.c.bf16 %v13540_v36, %v9360_v8  ;;  %v5424_v13 = vsel %vm2018_vm11, %v9360_v8, 0.0  ;;  %v16311_v8 = vld [vmem:[#allocation80_spill] sm:$0xff]  ;;  %v16321_v33 = vld [vmem:[#allocation85_spill] sm:$0xff] }
 0xa6a   : > { %v9364_v53 = vpop.eup %9363  ;;  %v13643_v16 = vadd.f32 %v13630_v18, %v5424_v13  ;;  %v13657_v30 = vmul.f32 %v9362_v5, %v16308_v1  ;;  %v16313_v13 = vld [vmem:[#allocation34_spill] sm:$0xff]  ;;  %v16322_v18 = vld [vmem:[#allocation128_spill] sm:$0xff] }
 0xa6b   : > { %v13645_v46 = vpop.eup %9365  ;;  %4377 = vadd.xlane.f32.xlu0 %v13170_v44  ;;  %5640 = vmatmul.mubr.bf16.gmra.mrb[240].mxu1 %v5453_v48  ;;  %v16309_v44 = vld [vmem:[#allocation121_spill] sm:$0xff]  ;;  %v13667_v34 = vmul.f32 %v9364_v53, %v13314_v3 }
 0xa6c   : > { %v13648_v56 = vpop.eup %9367  ;;  %2277 = vadd.xlane.f32.xlu1 %v16307_v12  ;;  %7989 = vmatprep.mubr.msk.bf16.mxu1 %vm2018_vm11, %v5456_v43  ;;  %v3317_v22 = vpop.xlane.xlu1 %3316  ;;  %v5432_v36 = vsel %vm1850_vm8, %v13645_v46, 0.0  ;;  %v16310_v43 = vld [vmem:[#allocation56_spill] sm:$0xff]  ;;  %v16314_v12 = vld [vmem:[#allocation123_spill] sm:$0xff] }
 0xa6d   : > { %v9370_v54 = vpop.eup %9369  ;;  %9375 = vrcp.f32 %v3317_v22  ;;  %v5433_v55 = vsel %vm2116_vm12, %v13648_v56, 0.0 }
 0xa6e   : > { %v13660_v48 = vmul.f32 %v9370_v54, %v16309_v44  ;;  %v13662_v41 = vadd.f32 %v5433_v55, %v5432_v36  ;;  %9377 = vrcp.f32 %v4330_v19  ;;  %v4338_v19 = vpop.xlane.xlu0 %4337  ;;  %v16316_v55 = vld [vmem:[#allocation63_spill] sm:$0xff] }
 0xa6f   : > { %v9372_v31 = vpop.eup %9371  ;;  %2273 = vadd.xlane.f32.xlu0 %v16310_v43  ;;  %v16317_v43 = vld [vmem:[#allocation60_spill] sm:$0xff] }
 0xa70   : > { %5398 = vadd.xlane.f32.xlu1 %v13506_v7  ;;  %v4334_v58 = vpop.xlane.xlu1 %4333  ;;  %v13670_v20 = vmul.f32 %v9372_v31, %v13321_v26  ;;  %v8721_v39 = vpack.i.bf16 %v13660_v48, %v13657_v30  ;;  %v9374_v7 = vpop.eup %9373 }
 0xa71   : > { %9379 = vrcp.f32 %v4334_v58  ;;  %v16319_v58 = vld [vmem:[#allocation127_spill] sm:$0xff] }
 0xa72   : > { %v8726_v29 = vpack.i.bf16 %v13670_v20, %v13667_v34  ;;  %9381 = vrcp.f32 %v3321_v52  ;;  %v13682_v5 = vpop.xlane.xlu0 %5354 }
 0xa73   : > { %5394 = vadd.xlane.f32.xlu0 %v13593_v28  ;;  %5648 = vmatmul.mubr.bf16.gmra.mrb[244].mxu1 %v5455_v63  ;;  %v13686_v28 = vmul.f32 %v9374_v7, %v16314_v12  ;;  %v16315_v63 = vld [vmem:[#allocation125_spill] sm:$0xff] }
 0xa74   : > { %3372 = vadd.xlane.f32.xlu1 %v16311_v8  ;;  %7990 = vmatprep.mubr.msk.bf16.mxu1 %vm2018_vm11, %v5458_v21  ;;  %v13679_v3 = vpop.xlane.xlu1 %5350  ;;  %v16320_v8 = vld [vmem:[#allocation131_spill] sm:$0xff]  ;;  %v16362_v21 = vld [vmem:[#allocation118_spill] sm:$0xff] }
 0xa76   : > { %v3329_v31 = vpop.xlane.xlu0 %3328 }
 0xa77   : > { %v9376_v26 = vpop.eup %9375  ;;  %3368 = vadd.xlane.f32.xlu0 %v16312_v27 }
 0xa78   : > { %4389 = vadd.xlane.f32.xlu1 %v16313_v13  ;;  %v3325_v53 = vpop.xlane.xlu1 %3324  ;;  %v13689_v22 = vmul.f32 %v9376_v26, %v16315_v63  ;;  %v9378_v36 = vpop.eup %9377  ;;  %v16323_v63 = vld [vmem:[#allocation106_spill] sm:$0xff] }
 0xa79   : > { %9383 = vrcp.f32 %v3325_v53  ;;  %v13700_v1 = vmul.f32 %v9378_v36, %v13333_v42  ;;  %v5461_v53 = vpack.c.bf16 %v13645_v46, %v13645_v46  ;;  %v16324_v36 = vld [vmem:[#allocation67_spill] sm:$0xff] }
 0xa7a   : > { %9385 = vrcp.f32 %v4338_v19 }
 0xa7b   : > { %v9380_v54 = vpop.eup %9379  ;;  %4385 = vadd.xlane.f32.xlu0 %v13179_v51  ;;  %5656 = vmatmul.mubr.bf16.gmra.mrb[248].mxu1 %v5457_v45  ;;  %v5462_v45 = vpack.c.bf16 %v13648_v56, %v13648_v56 }
 0xa7c   : > { %2285 = vadd.xlane.f32.xlu1 %v16316_v55  ;;  %7991 = vmatprep.mubr.msk.bf16.mxu1 %vm2018_vm11, %v5460_v15  ;;  %v4342_v52 = vpop.xlane.xlu1 %4341  ;;  %v13703_v44 = vmul.f32 %v9380_v54, %v13338_v61  ;;  %v9382_v10 = vpop.eup %9381  ;;  %v16318_v15 = vld [vmem:[#allocation187_spill] sm:$0xff]  ;;  %v16325_v55 = vld [vmem:[#allocation64_spill] sm:$0xff] }
 0xa7d   : > { %9387 = vrcp.f32 %v4342_v52  ;;  %v4346_v61 = vpop.xlane.xlu0 %4345  ;;  %v13720_v19 = vmul.f32 %v9382_v10, %v16319_v58  ;;  %v16327_v52 = vld [vmem:[#allocation16_spill] sm:$0xff]  ;;  %v16330_v58 = vld [vmem:[#allocation17_spill] sm:$0xff] }
 0xa7e   : > { %v8741_v51 = vpack.i.bf16 %v13703_v44, %v13700_v1  ;;  %9389 = vrcp.f32 %v3329_v31  ;;  %v16349_v44 = vld [vmem:[#allocation122_spill] sm:$0xff] }
 0xa7f   : > { %2281 = vadd.xlane.f32.xlu0 %v16317_v43 }
 0xa80   : > { %5406 = vadd.xlane.f32.xlu1 %v13518_v0  ;;  %v13709_v23 = vpop.xlane.xlu1 %5358 }
 0xa83   : > { %v9384_v42 = vpop.eup %9383  ;;  %5402 = vadd.xlane.f32.xlu0 %v13608_v6  ;;  %5664 = vmatmul.mubr.bf16.gmra.mrb[252].mxu1 %v5459_v2 }
 0xa84   : > { %3380 = vadd.xlane.f32.xlu1 %v16318_v15  ;;  %7992 = vmatprep.mubr.msk.bf16.mxu1 %vm2018_vm11, %v5462_v45  ;;  %v3333_v0 = vpop.xlane.xlu1 %3332  ;;  %v13723_v7 = vmul.f32 %v9384_v42, %v16320_v8  ;;  %v9386_v56 = vpop.eup %9385  ;;  %v16328_v42 = vld [vmem:[#allocation188_spill] sm:$0xff] }
 0xa85   : > { %9391 = vrcp.f32 %v3333_v0  ;;  %v13730_v27 = vmul.f32 %v9386_v56, %v13343_v40  ;;  %v16329_v0 = vld [vmem:[#allocation203_spill] sm:$0xff]  ;;  %v16331_v56 = vld [vmem:[#allocation150_spill] sm:$0xff] }
 0xa86   : > { %9393 = vrcp.f32 %v4346_v61 }
 0xa87   : > { %v9388_v26 = vpop.eup %9387  ;;  %3376 = vadd.xlane.f32.xlu0 %v16321_v33 }
 0xa88   : > { %4397 = vadd.xlane.f32.xlu1 %v16322_v18  ;;  %v4350_v2 = vpop.xlane.xlu1 %4349  ;;  %v13733_v13 = vmul.f32 %v9388_v26, %v13348_v62  ;;  %v9390_v40 = vpop.eup %9389  ;;  %v16326_v62 = vld [vmem:[#allocation135_spill] sm:$0xff]  ;;  %v16333_v26 = vld [vmem:[#allocation68_spill] sm:$0xff] }
 0xa89   : > { %9395 = vrcp.f32 %v4350_v2  ;;  %v13746_v46 = vmul.f32 %v9390_v40, %v16326_v62  ;;  %v16335_v40 = vld [vmem:[#allocation138_spill] sm:$0xff] }
 0xa8b   : > { %4393 = vadd.xlane.f32.xlu0 %v16323_v63  ;;  %5672 = vmatmul.mubr.bf16.gmra.mrb[0].mxu1 %v5461_v53  ;;  %v16334_v63 = vld [vmem:[#allocation38_spill] sm:$0xff] }
 0xa8c   : > { %2293 = vadd.xlane.f32.xlu1 %v16324_v36  ;;  %8296 = vmatprep.mubr.msk.bf16.mxu1 %vm9733_vm7, %v16265_v14  ;;  %v13765_v8 = vpop.xlane.xlu1 %5366 }
 0xa8f   : > { %v9392_v54 = vpop.eup %9391  ;;  %2289 = vadd.xlane.f32.xlu0 %v16325_v55 }
 0xa90   : > { %5414 = vadd.xlane.f32.xlu1 %v13527_v11  ;;  %v13749_v31 = vmul.f32 %v9392_v54, %v16327_v52  ;;  %v9394_v43 = vpop.eup %9393 }
 0xa91   : > { %v13756_v61 = vmul.f32 %v9394_v43, %v13353_v17  ;;  %v3341_v17 = vpop.xlane.xlu1 %3340 }
 0xa92   : > { %9397 = vrcp.f32 %v3341_v17 }
 0xa93   : > { %v9396_v45 = vpop.eup %9395  ;;  %5410 = vadd.xlane.f32.xlu0 %v13617_v49  ;;  %v16332_v49 = vld [vmem:[#allocation70_spill] sm:$0xff] }
 0xa94   : > { %3388 = vadd.xlane.f32.xlu1 %v16328_v42  ;;  %v13759_v11 = vmul.f32 %v9396_v45, %v13360_v60  ;;  %v16336_v45 = vld [vmem:[#allocation191_spill] sm:$0xff]  ;;  %v8904_v42 = vld [vmem:[%s9896_s19 + $0x8] sm:$0xff]  }
 0xa95   : > { %v4358_v33 = vpop.xlane.xlu1 %4357 }
 0xa97   : > { %3384 = vadd.xlane.f32.xlu0 %v16329_v0  ;;  %v16338_v0 = vld [vmem:[#allocation100_spill] sm:$0xff] }
 0xa98   : > { %4405 = vadd.xlane.f32.xlu1 %v16330_v58 }
 0xa9b   : > { %4401 = vadd.xlane.f32.xlu0 %v16331_v56 }
 0xa9c   : > { %2301 = vadd.xlane.f32.xlu1 %v16332_v49  ;;  %v9398_v53 = vpop.eup %9397 }
 0xa9f   : > { %2297 = vadd.xlane.f32.xlu0 %v16333_v26 }
 0xaa0   : > { %5422 = vadd.xlane.f32.xlu1 %v13536_v57 }
 0xaa3   : > { %v13771_v60 = vpop.xlane.xlu0 %5362  ;;  %5418 = vadd.xlane.f32.xlu0 %v13628_v47  ;;  %v13782_v47 = vmul.f32 %v9398_v53, %v16335_v40 }
 0xaa7   : > { %v3337_v18 = vpop.xlane.xlu0 %3336 }
 0xaa8   : > { %9399 = vrcp.f32 %v3337_v18 }
 0xaa9   : > { %9401 = vrcp.f32 %v4358_v33 }
 0xaab   : > { %v4354_v2 = vpop.xlane.xlu0 %4353 }
 0xaac   : > { %9403 = vrcp.f32 %v4354_v2  ;;  %v16339_v2 = vld [vmem:[#allocation75_spill] sm:$0xff] }
 0xaad   : > { %9405 = vrcp.f32 %v13581_v38 }
 0xaae   : > { %9407 = vrcp.f32 %v13636_v9 }
 0xab0   : > { %v13798_v20 = vpop.xlane.xlu1 %5374 }
 0xab1   : > { %8727 = vrot.lane.b32.xlu1 %v8726_v29, %s9746_s2 }
 0xab2   : > { %v9400_v57 = vpop.eup %9399 }
 0xab3   : > { %v13779_v36 = vmul.f32 %v9400_v57, %v16334_v63  ;;  %v9402_v54 = vpop.eup %9401 }
 0xab4   : > { %v13790_v43 = vmul.f32 %v9402_v54, %v13399_v32  ;;  %v3349_v29 = vpop.xlane.xlu1 %3348  ;;  %v8903_v32 = vld [vmem:[%s9896_s19] sm:$0xff]   ;;  %s9748_s19 = smov 24  }
 0xab5   : > { %9409 = vrcp.f32 %v3349_v29  ;;  %8237 = vmatpush3.bf16.msra.mxu0 %v8903_v32  ;;  %v16340_v29 = vld [vmem:[#allocation139_spill] sm:$0xff]  ;;  %v16341_v32 = vld [vmem:[#allocation141_spill] sm:$0xff] }
 0xab6   : > { %v9404_v62 = vpop.eup %9403  ;;  %8238 = vmatprep.subr.bf16.mxu0 %v16265_v14 }
 0xab7   : > { %v13787_v52 = vmul.f32 %v9404_v62, %v13396_v59  ;;  %v9406_v56 = vpop.eup %9405 }
 0xab8   : > { %v4366_v30 = vpop.xlane.xlu1 %4365  ;;  %v9408_v26 = vpop.eup %9407 }
 0xab9   : > { %8722 = vrot.lane.b32.xlu0 %v8721_v39, %s9747_s15  ;;  %v16337_v39 = vld [vmem:[#allocation30_spill] sm:$0xff]  ;;  %8239 = vmatpush3.bf16.msra.mxu0 %v8904_v42 }
 0xaba   : > { %8348 = vmatprep.subr.bf16.mxu0 %v16265_v14 }
 0xabf   : > { %v9410_v53 = vpop.eup %9409 }
 0xad8   : > { %v13801_v59 = vpop.xlane.xlu0 %5370  ;;  %3392 = vadd.xlane.f32.xlu0 %v16336_v45 }
 0xadc   : > { %v3345_v48 = vpop.xlane.xlu0 %3344  ;;  %4409 = vadd.xlane.f32.xlu0 %v16337_v39 }
 0xadd   : > { %9411 = vrcp.f32 %v3345_v48 }
 0xade   : > { %9413 = vrcp.f32 %v13633_v50 }
 0xadf   : > { %9415 = vrcp.f32 %v4366_v30  ;;  %v13826_v30 = vmul.f32 %v9410_v53, %v16341_v32 }
 0xae0   : > { %9417 = vrcp.f32 %v13679_v3  ;;  %v4362_v38 = vpop.xlane.xlu0 %4361  ;;  %4413 = vadd.xlane.f32.xlu0 %v16338_v0 }
 0xae1   : > { %9419 = vrcp.f32 %v4362_v38  ;;  %v13812_v9 = vpop.xlane.xlu1 %5382  ;;  %v5577_v58 = vpop.f32.mrb[208].mxu1 }
 0xae2   : > { %v5579_v49 = vpop.f32.mrb[209].mxu1  ;;  %v5704_v33 = vmul.f32 %v9406_v56, %v5577_v58  ;;  %9421 = vrcp.f32 %v13682_v5 }
 0xae3   : > { %v5580_v17 = vpop.f32.mrb[210].mxu1 }
 0xae4   : > { %v5705_v50 = vmul.f32 %v9408_v26, %v5580_v17  ;;  %v13815_v18 = vpop.xlane.xlu0 %5378  ;;  %2309 = vadd.xlane.f32.xlu0 %v16339_v2  ;;  %v5582_v3 = vpop.f32.mrb[211].mxu1  ;;  %v16342_v17 = vld [vmem:[#allocation154_spill] sm:$0xff] }
 0xae5   : > { %v3357_v57 = vpop.xlane.xlu1 %3356  ;;  %v16357_v3 = vld [vmem:[#allocation11_spill] sm:$0xff] }
 0xae6   : > { %v8731_v63 = vpack.i.bf16 %v5705_v50, %v5704_v33  ;;  %9423 = vrcp.f32 %v3357_v57 }
 0xae7   : > { %v9412_v40 = vpop.eup %9411  ;;  %9425 = vrcp.f32 %v13709_v23 }
 0xae8   : > { %v9414_v54 = vpop.eup %9413  ;;  %v3353_v62 = vpop.xlane.xlu0 %3352  ;;  %5430 = vadd.xlane.f32.xlu0 %v13547_v4  ;;  %8732 = vrot.lane.b32.xlu1 %v8731_v63, %s9748_s19  ;;  %v13823_v45 = vmul.f32 %v9412_v40, %v16340_v29 }
 0xae9   : > { %v9416_v48 = vpop.eup %9415  ;;  %9427 = vrcp.f32 %v3353_v62  ;;  %v4374_v5 = vpop.xlane.xlu1 %4373 }
 0xaea   : > { %v5585_v39 = vpop.f32.mrb[212].mxu1  ;;  %v9418_v42 = vpop.eup %9417  ;;  %9429 = vrcp.f32 %v4374_v5  ;;  %v13838_v50 = vmul.f32 %v9416_v48, %v13405_v37 }
 0xaeb   : > { %v5587_v38 = vpop.f32.mrb[213].mxu1  ;;  %v9420_v0 = vpop.eup %9419  ;;  %v13830_v58 = vmul.f32 %v9414_v54, %v5585_v39 }
 0xaec   : > { %v5588_v4 = vpop.f32.mrb[214].mxu1  ;;  %v4370_v49 = vpop.xlane.xlu0 %4369  ;;  %v13835_v33 = vmul.f32 %v9420_v0, %v16342_v17  ;;  %v16343_v0 = vld [vmem:[#allocation103_spill] sm:$0xff] }
 0xaed   : > { %v13832_v56 = vmul.f32 %v9418_v42, %v5588_v4  ;;  %v5590_v26 = vpop.f32.mrb[215].mxu1  ;;  %9431 = vrcp.f32 %v4370_v49  ;;  %v13840_v2 = vpop.xlane.xlu1 %5390  ;;  %v16344_v4 = vld [vmem:[#allocation18_spill] sm:$0xff] }
 0xaee   : > { %v9422_v57 = vpop.eup %9421  ;;  %9433 = vrcp.f32 %v13765_v8 }
 0xaef   : > { %9435 = vrcp.f32 %v13771_v60 }
 0xaf0   : > { %v13847_v63 = vpop.xlane.xlu0 %5386  ;;  %v9424_v40 = vpop.eup %9423 }
 0xaf1   : > { %v3365_v54 = vpop.xlane.xlu1 %3364  ;;  %v5593_v37 = vpop.f32.mrb[216].mxu1  ;;  %v13858_v49 = vmul.f32 %v9424_v40, %v16344_v4 }
 0xaf2   : > { %v9426_v62 = vpop.eup %9425  ;;  %v5595_v29 = vpop.f32.mrb[217].mxu1  ;;  %9437 = vrcp.f32 %v3365_v54  ;;  %v13850_v5 = vmul.f32 %v9422_v57, %v5593_v37 }
 0xaf3   : > { %v9428_v32 = vpop.eup %9427  ;;  %v5596_v48 = vpop.f32.mrb[218].mxu1 }
 0xaf4   : > { %v13852_v39 = vmul.f32 %v9426_v62, %v5596_v48  ;;  %v3361_v42 = vpop.xlane.xlu0 %3360  ;;  %v5598_v38 = vpop.f32.mrb[219].mxu1  ;;  %v13855_v8 = vmul.f32 %v9428_v32, %v16343_v0 }
 0xaf5   : > { %v9430_v60 = vpop.eup %9429  ;;  %9439 = vrcp.f32 %v3361_v42  ;;  %v4382_v26 = vpop.xlane.xlu1 %4381 }
 0xaf6   : > { %9441 = vrcp.f32 %v4382_v26  ;;  %v13868_v29 = vmul.f32 %v9430_v60, %v13410_v35 }
 0xaf7   : > { %v9432_v54 = vpop.eup %9431 }
 0xaf8   : > { %v4378_v37 = vpop.xlane.xlu0 %4377  ;;  %v13865_v62 = vmul.f32 %v9432_v54, %v13407_v24  ;;  %v9434_v48 = vpop.eup %9433 }
 0xaf9   : > { %9443 = vrcp.f32 %v4378_v37  ;;  %v13870_v40 = vpop.xlane.xlu1 %2277  ;;  %v5601_v32 = vpop.f32.mrb[220].mxu1  ;;  %v16347_v37 = vld [vmem:[#allocation156_spill] sm:$0xff] }
 0xafa   : > { %v5603_v42 = vpop.f32.mrb[221].mxu1  ;;  %v9436_v0 = vpop.eup %9435 }
 0xafb   : > { %v5604_v4 = vpop.f32.mrb[222].mxu1  ;;  %v13874_v57 = vmul.f32 %v9436_v0, %v5601_v32  ;;  %v16345_v32 = vld [vmem:[#allocation12_spill] sm:$0xff]  ;;  %v16346_v0 = vld [vmem:[#allocation113_spill] sm:$0xff] }
 0xafc   : > { %v13876_v26 = vmul.f32 %v9434_v48, %v5604_v4  ;;  %v13878_v24 = vpop.xlane.xlu0 %2273  ;;  %v5606_v54 = vpop.f32.mrb[223].mxu1 }
 0xafd   : > { %v9438_v35 = vpop.eup %9437  ;;  %v13880_v60 = vpop.xlane.xlu1 %5398 }
 0xafe   : > { %8742 = vrot.lane.b32.xlu0 %v8741_v51, %s9746_s2  ;;  %v13894_v4 = vmul.f32 %v9438_v35, %v16346_v0 }
 0xaff   : > { %v9440_v42 = vpop.eup %9439 }
 0xb00   : > { %v13888_v38 = vpop.xlane.xlu0 %5394  ;;  %v13891_v48 = vmul.f32 %v9440_v42, %v16345_v32  ;;  %v9442_v54 = vpop.eup %9441 }
 0xb01   : > { %v3373_v53 = vpop.xlane.xlu1 %3372  ;;  %v13902_v51 = vmul.f32 %v9442_v54, %v16349_v44  ;;  %v16353_v44 = vld [vmem:[#allocation115_spill] sm:$0xff] }
 0xb02   : > { %9445 = vrcp.f32 %v3373_v53  ;;  %v16351_v53 = vld [vmem:[#allocation194_spill] sm:$0xff] }
 0xb03   : > { %v9444_v34 = vpop.eup %9443  ;;  %16350 = vst [vmem:[#allocation153_spill] sm:$0xff] %v13902_v51 }
 0xb04   : > { %v3369_v55 = vpop.xlane.xlu0 %3368  ;;  %v13899_v1 = vmul.f32 %v9444_v34, %v16347_v37 }
 0xb05   : > { %9447 = vrcp.f32 %v3369_v55  ;;  %v4390_v42 = vpop.xlane.xlu1 %4389  ;;  %v16352_v55 = vld [vmem:[#allocation72_spill] sm:$0xff] }
 0xb06   : > { %16348 = vst [vmem:[#allocation151_spill] sm:$0xff] %v13899_v1  ;;  %9449 = vrcp.f32 %v4390_v42  ;;  %v16355_v42 = vld [vmem:[#allocation116_spill] sm:$0xff]  ;;  %v16364_v1 = vld [vmem:[#allocation23_spill] sm:$0xff] }
 0xb08   : > { %v4386_v32 = vpop.xlane.xlu0 %4385 }
 0xb09   : > { %9451 = vrcp.f32 %v4386_v32  ;;  %v13906_v0 = vpop.xlane.xlu1 %2285 }
 0xb0c   : > { %v13908_v23 = vpop.xlane.xlu0 %2281  ;;  %3396 = vadd.xlane.f32.xlu1 %v16351_v53  ;;  %v9446_v15 = vpop.eup %9445 }
 0xb0d   : > { %v13911_v34 = vpop.xlane.xlu1 %5406  ;;  %v13920_v35 = vmul.f32 %v9446_v15, %v16355_v42 }
 0xb0f   : > { %v9448_v37 = vpop.eup %9447  ;;  %16356 = vst [vmem:[#allocation117_spill] sm:$0xff] %v13920_v35 }
 0xb10   : > { %v13913_v54 = vpop.xlane.xlu0 %5402  ;;  %2305 = vadd.xlane.f32.xlu1 %v16352_v55  ;;  %v13917_v10 = vmul.f32 %v9448_v37, %v16353_v44  ;;  %v9450_v32 = vpop.eup %9449  ;;  %v16359_v37 = vld [vmem:[#allocation126_spill] sm:$0xff] }
 0xb11   : > { %v3381_v12 = vpop.xlane.xlu1 %3380  ;;  %v13930_v44 = vmul.f32 %v9450_v32, %v16359_v37  ;;  %v16361_v32 = vld [vmem:[#allocation81_spill] sm:$0xff] }
 0xb12   : > { %16354 = vst [vmem:[#allocation114_spill] sm:$0xff] %v13917_v10  ;;  %9453 = vrcp.f32 %v3381_v12 }
 0xb13   : > { %v9452_v53 = vpop.eup %9451  ;;  %9455 = vrcp.f32 %v13798_v20  ;;  %16360 = vst [vmem:[#allocation159_spill] sm:$0xff] %v13930_v44 }
 0xb14   : > { %v3377_v6 = vpop.xlane.xlu0 %3376  ;;  %5426 = vadd.xlane.f32.xlu1 %v13643_v16  ;;  %v13927_v55 = vmul.f32 %v9452_v53, %v16357_v3 }
 0xb15   : > { %9457 = vrcp.f32 %v3377_v6  ;;  %v4398_v15 = vpop.xlane.xlu1 %4397 }
 0xb16   : > { %16358 = vst [vmem:[#allocation119_spill] sm:$0xff] %v13927_v55  ;;  %9459 = vrcp.f32 %v13801_v59  ;;  %v16363_v55 = vld [vmem:[#allocation120_spill] sm:$0xff] }
 0xb17   : > { %9461 = vrcp.f32 %v4398_v15 }
 0xb18   : > { %v4394_v12 = vpop.xlane.xlu0 %4393 }
 0xb19   : > { %9463 = vrcp.f32 %v4394_v12  ;;  %v13935_v20 = vpop.xlane.xlu1 %2293 }
 0xb1a   : > { %9465 = vrcp.f32 %v13812_v9 }
 0xb1b   : > { %9467 = vrcp.f32 %v13815_v18 }
 0xb1c   : > { %v13937_v17 = vpop.xlane.xlu0 %2289  ;;  %v9454_v16 = vpop.eup %9453 }
 0xb1d   : > { %v13940_v3 = vpop.xlane.xlu1 %5414  ;;  %2317 = vadd.xlane.f32.xlu0 %v16361_v32  ;;  %v9456_v6 = vpop.eup %9455  ;;  %v13950_v44 = vmul.f32 %v9454_v16, %v16363_v55  ;;  %v16365_v16 = vld [vmem:[#allocation36_spill] sm:$0xff] }
 0xb1e   : > { %v5609_v59 = vpop.f32.mrb[224].mxu1 }
 0xb1f   : > { %v9458_v53 = vpop.eup %9457  ;;  %v5611_v37 = vpop.f32.mrb[225].mxu1 }
 0xb20   : > { %v9460_v15 = vpop.eup %9459  ;;  %v5612_v42 = vpop.f32.mrb[226].mxu1  ;;  %v13947_v25 = vmul.f32 %v9458_v53, %v16362_v21  ;;  %v16374_v21 = vld [vmem:[#allocation39_spill] sm:$0xff] }
 0xb21   : > { %v13944_v12 = vpop.xlane.xlu0 %5410  ;;  %v9462_v9 = vpop.eup %9461  ;;  %v13952_v10 = vmul.f32 %v9460_v15, %v5609_v59  ;;  %v13954_v32 = vmul.f32 %v9456_v6, %v5612_v42  ;;  %3401 = vadd.xlane.f32.xlu0 %v16364_v1  ;;  %v16367_v42 = vld [vmem:[#allocation134_spill] sm:$0xff]  ;;  %v16368_v1 = vpack.i.bf16 %v13689_v22, %v13686_v28  ;;  %v16369_v28 = vpack.i.bf16 %v13832_v56, %v13830_v58 }
 0xb22   : > { %v3389_v35 = vpop.xlane.xlu1 %3388  ;;  %v5614_v18 = vpop.f32.mrb[227].mxu1  ;;  %v13966_v6 = vmul.f32 %v9462_v9, %v16367_v42 }
 0xb23   : > { %v9464_v51 = vpop.eup %9463  ;;  %9469 = vrcp.f32 %v3389_v35 }
 0xb24   : > { %9471 = vrcp.f32 %v13840_v2  ;;  %v13963_v59 = vmul.f32 %v9464_v51, %v16365_v16  ;;  %v9466_v35 = vpop.eup %9465 }
 0xb25   : > { %v3385_v55 = vpop.xlane.xlu0 %3384  ;;  %8737 = vrot.lane.b32.xlu1 %v16368_v1, %s9747_s15  ;;  %v9468_v18 = vpop.eup %9467 }
 0xb26   : > { %16366 = vst [vmem:[#allocation161_spill] sm:$0xff] %v13963_v59  ;;  %9473 = vrcp.f32 %v3385_v55  ;;  %v4406_v53 = vpop.xlane.xlu1 %4405  ;;  %v5617_v15 = vpop.f32.mrb[228].mxu1 }
 0xb27   : > { %9475 = vrcp.f32 %v13847_v63  ;;  %v5619_v51 = vpop.f32.mrb[229].mxu1  ;;  %v13975_v42 = vmul.f32 %v9468_v18, %v5617_v15 }
 0xb28   : > { %9477 = vrcp.f32 %v4406_v53  ;;  %v5620_v16 = vpop.f32.mrb[230].mxu1 }
 0xb29   : > { %v4402_v9 = vpop.xlane.xlu0 %4401  ;;  %v13977_v55 = vmul.f32 %v9466_v35, %v5620_v16  ;;  %v5622_v37 = vpop.f32.mrb[231].mxu1  ;;  %8747 = vrot.lane.b32.xlu1 %v16369_v28, %s9748_s19 }
 0xb2a   : > { %9479 = vrcp.f32 %v4402_v9  ;;  %v16370_v37 = vld [vmem:[#allocation124_spill] sm:$0xff]  ;;  %v16372_v9 = vld [vmem:[#allocation130_spill] sm:$0xff] }
 0xb2b   : > { %9481 = vrcp.f32 %v13880_v60 }
 0xb2c   : > { %9483 = vrcp.f32 %v13888_v38 }
 0xb2d   : > { %v9470_v63 = vpop.eup %9469  ;;  %9485 = vrcp.f32 %v13911_v34 }
 0xb2e   : > { %v9472_v53 = vpop.eup %9471  ;;  %v5625_v1 = vpop.f32.mrb[232].mxu1  ;;  %v13991_v58 = vmul.f32 %v9470_v63, %v16372_v9  ;;  %9487 = vrcp.f32 %v13913_v54 }
 0xb2f   : > { %v5627_v35 = vpop.f32.mrb[233].mxu1  ;;  %9489 = vrcp.f32 %v13940_v3 }
 0xb30   : > { %v9474_v15 = vpop.eup %9473  ;;  %v5628_v18 = vpop.f32.mrb[234].mxu1  ;;  %16373 = vst [vmem:[#allocation13_spill] sm:$0xff] %v13991_v58  ;;  %9491 = vrcp.f32 %v13944_v12 }
 0xb31   : > { %v9476_v51 = vpop.eup %9475  ;;  %v13988_v16 = vmul.f32 %v9474_v15, %v16370_v37  ;;  %v13995_v2 = vmul.f32 %v9472_v53, %v5628_v18  ;;  %v5630_v60 = vpop.f32.mrb[235].mxu1  ;;  %v16376_v15 = vld [vmem:[#allocation14_spill] sm:$0xff]  ;;  %v16378_v18 = vpack.i.bf16 %v13723_v7, %v13720_v19 }
 0xb32   : > { %v9478_v56 = vpop.eup %9477  ;;  %v13993_v28 = vmul.f32 %v9476_v51, %v5625_v1  ;;  %v16379_v60 = vpack.i.bf16 %v13852_v39, %v13850_v5  ;;  %v14028_v19 = vpop.xlane.xlu0 %2297 }
 0xb33   : > { %16371 = vst [vmem:[#allocation35_spill] sm:$0xff] %v13988_v16  ;;  %v14005_v37 = vmul.f32 %v9478_v56, %v16376_v15  ;;  %v14025_v15 = vpop.xlane.xlu1 %2301 }
 0xb34   : > { %v9480_v22 = vpop.eup %9479 }
 0xb35   : > { %v14002_v59 = vmul.f32 %v9480_v22, %v16374_v21  ;;  %16377 = vst [vmem:[#allocation47_spill] sm:$0xff] %v14005_v37  ;;  %v9482_v1 = vpop.eup %9481 }
 0xb36   : > { %v5633_v63 = vpop.f32.mrb[236].mxu1  ;;  %v9484_v21 = vpop.eup %9483 }
 0xb37   : > { %16375 = vst [vmem:[#allocation129_spill] sm:$0xff] %v14002_v59  ;;  %v5635_v51 = vpop.f32.mrb[237].mxu1  ;;  %8752 = vrot.lane.b32.xlu0 %v16378_v18, %s9747_s15  ;;  %v14015_v9 = vmul.f32 %v9484_v21, %v5633_v63  ;;  %v9486_v63 = vpop.eup %9485 }
 0xb38   : > { %v5636_v22 = vpop.f32.mrb[238].mxu1  ;;  %v9488_v51 = vpop.eup %9487 }
 0xb39   : > { %v14017_v56 = vmul.f32 %v9482_v1, %v5636_v22  ;;  %v5638_v34 = vpop.f32.mrb[239].mxu1  ;;  %v5423_v5 = vpop.xlane.xlu1 %5422 }
 0xb3a   : > { %v5419_v39 = vpop.xlane.xlu0 %5418  ;;  %9493 = vrcp.f32 %v5423_v5  ;;  %v9490_v53 = vpop.eup %9489 }
 0xb3b   : > { %8762 = vrot.lane.b32.xlu0 %v16379_v60, %s9748_s19  ;;  %9495 = vrcp.f32 %v5419_v39  ;;  %v9492_v38 = vpop.eup %9491 }
 0xb3c   : > { %9497 = vrcp.f32 %v13870_v40 }
 0xb3d   : > { %9499 = vrcp.f32 %v13878_v24 }
 0xb3e   : > { %v5641_v7 = vpop.f32.mrb[240].mxu1 }
 0xb3f   : > { %v5643_v1 = vpop.f32.mrb[241].mxu1  ;;  %v14031_v21 = vmul.f32 %v9488_v51, %v5641_v7 }
 0xb40   : > { %v5644_v18 = vpop.f32.mrb[242].mxu1 }
 0xb41   : > { %v14033_v22 = vmul.f32 %v9486_v63, %v5644_v18  ;;  %v5646_v34 = vpop.f32.mrb[243].mxu1  ;;  %v16381_v18 = vld [vmem:[#allocation77_spill] sm:$0xff] }
 0xb44   : > { %v9494_v5 = vpop.eup %9493 }
 0xb46   : > { %v5649_v3 = vpop.f32.mrb[244].mxu1 }
 0xb47   : > { %v5651_v12 = vpop.f32.mrb[245].mxu1  ;;  %v14038_v1 = vmul.f32 %v9492_v38, %v5649_v3 }
 0xb48   : > { %v5652_v54 = vpop.f32.mrb[246].mxu1  ;;  %v9496_v12 = vpop.eup %9495 }
 0xb49   : > { %16380 = vst [vmem:[#allocation31_spill] sm:$0xff] %v14038_v1  ;;  %v14040_v7 = vmul.f32 %v9490_v53, %v5652_v54  ;;  %v5654_v63 = vpop.f32.mrb[247].mxu1  ;;  %v16384_v53 = vld [vmem:[#allocation111_spill] sm:$0xff]  ;;  %v8723_v54 = vpop.permute.xlu0 %8722 }
 0xb4a   : > { %v9498_v3 = vpop.eup %9497  ;;  %v8725_v51 = vunpack.i.h.bf16 %v8723_v54 }
 0xb4b   : > { %v9500_v63 = vpop.eup %9499 }
 0xb4d   : > { %2313 = vadd.xlane.f32.xlu1 %v16381_v18  ;;  %v8724_v18 = vunpack.i.l.bf16 %v8723_v54  ;;  %v16387_v54 = vld [vmem:[#allocation84_spill] sm:$0xff] }
 0xb4e   : > { %v5657_v34 = vpop.f32.mrb[248].mxu1 }
 0xb4f   : > { %v5659_v39 = vpop.f32.mrb[249].mxu1  ;;  %v14046_v35 = vmul.f32 %v9496_v12, %v5657_v34  ;;  %v16385_v34 = vld [vmem:[#allocation51_spill] sm:$0xff] }
 0xb50   : > { %v5660_v60 = vpop.f32.mrb[250].mxu1  ;;  %v8728_v39 = vpop.permute.xlu1 %8727  ;;  %v2653_v12 = vmul.f32 %v9500_v63, %v16385_v34 }
 0xb51   : > { %16382 = vst [vmem:[#allocation148_spill] sm:$0xff] %v14046_v35  ;;  %v14048_v40 = vmul.f32 %v9494_v5, %v5660_v60  ;;  %v5662_v38 = vpop.f32.mrb[251].mxu1  ;;  %4418 = vadd.xlane.f32.xlu1 %v16384_v53  ;;  %v16386_v60 = vld [vmem:[#allocation53_spill] sm:$0xff]  ;;  %v8730_v24 = vunpack.i.h.bf16 %v8728_v39  ;;  %v8729_v35 = vunpack.i.l.bf16 %v8728_v39 }
 0xb52   : > { %v2654_v5 = vmul.f32 %v9498_v3, %v16386_v60  ;;  %v6029_v53 = vsel %vm1810_vm9, %v2653_v12, %v8724_v18 }
 0xb53   : > { %16383 = vst [vmem:[#allocation157_spill] sm:$0xff] %v14048_v40  ;;  %v6055_v63 = vsel %vm6054_vm13, %v6029_v53, %v8729_v35 }
 0xb54   : > { %v6030_v16 = vsel %vm1810_vm9, %v2654_v5, %v8725_v51 }
 0xb55   : > { %5435 = vadd.xlane.f32.xlu1 %v13662_v41  ;;  %v6056_v3 = vsel %vm6054_vm13, %v6030_v16, %v8730_v24  ;;  %v16388_v16 = vpack.i.bf16 %v13733_v13, %v13730_v27  ;;  %v16391_v27 = vld [vmem:[#allocation140_spill] sm:$0xff] }
 0xb56   : > { %v14054_v59 = vpop.f32.mrb[252].mxu1 }
 0xb57   : > { %v5667_v38 = vpop.f32.mrb[253].mxu1 }
 0xb58   : > { %v5668_v37 = vpop.f32.mrb[254].mxu1 }
 0xb59   : > { %v5670_v58 = vpop.f32.mrb[255].mxu1 }
 0xb5a   : > { %2325 = vadd.xlane.f32.xlu0 %v16387_v54  ;;  %v8733_v41 = vpop.permute.xlu1 %8732 }
 0xb5b   : > { %v8735_v40 = vunpack.i.h.bf16 %v8733_v41  ;;  %v8734_v1 = vunpack.i.l.bf16 %v8733_v41  ;;  %v16390_v41 = vld [vmem:[#allocation137_spill] sm:$0xff] }
 0xb5d   : > { %v6081_v34 = vsel %vm6080_vm14, %v6055_v63, %v8734_v1  ;;  %v6082_v18 = vsel %vm6080_vm14, %v6056_v3, %v8735_v40  ;;  %v16389_v40 = vpack.i.bf16 %v13749_v31, %v13746_v46 }
 0xb5e   : > { %v6106_v12 = vpack.c.bf16 %v6082_v18, %v6081_v34  ;;  %v14065_v51 = vpop.f32.mrb[0].mxu1  ;;  %v16392_v18 = vld [vmem:[#allocation173_spill] sm:$0xff] }
 0xb5f   : > { %v5675_v58 = vpop.f32.mrb[1].mxu1 }
 0xb60   : > { %v5676_v60 = vpop.f32.mrb[2].mxu1  ;;  %8241 = vmatmul.mubr.msk.bf16.vlgmr.msra.gmra.mrb[208].mxu0 %vm1030_vm5, %v6106_v12  ;;  %v16393_v58 = vld [vmem:[#allocation82_spill] sm:$0xff] }
 0xb61   : > { %v5677_v39 = vpop.f32.mrb[3].mxu1  ;;  %8244 = vmatprep.mubr.msk.bf16.mxu0 %vm9733_vm7, %v16265_v14  ;;  %v16394_v60 = vld [vmem:[#allocation86_spill] sm:$0xff] }
 0xb65   : > { %v3393_v5 = vpop.xlane.xlu0 %3392 }
 0xb66   : > { %8757 = vrot.lane.b32.xlu1 %v16388_v16, %s9746_s2  ;;  %v16395_v16 = vpack.i.bf16 %v13759_v11, %v13756_v61  ;;  %v16398_v11 = vld [vmem:[#allocation133_spill] sm:$0xff] }
 0xb69   : > { %v4410_v35 = vpop.xlane.xlu0 %4409 }
 0xb6a   : > { %9501 = vrcp.f32 %v4410_v35 }
 0xb6d   : > { %v4414_v1 = vpop.xlane.xlu0 %4413 }
 0xb6e   : > { %9503 = vrcp.f32 %v4414_v1 }
 0xb70   : > { %8767 = vrot.lane.b32.xlu0 %v16389_v40, %s9747_s15 }
 0xb71   : > { %v2310_v24 = vpop.xlane.xlu0 %2309 }
 0xb72   : > { %9505 = vrcp.f32 %v2310_v24  ;;  %v16397_v24 = vpack.i.bf16 %v13782_v47, %v13779_v36 }
 0xb74   : > { %v9502_v53 = vpop.eup %9501 }
 0xb75   : > { %v5431_v38 = vpop.xlane.xlu0 %5430  ;;  %v14079_v63 = vmul.f32 %v9502_v53, %v16390_v41  ;;  %v16399_v53 = vld [vmem:[#allocation136_spill] sm:$0xff] }
 0xb76   : > { %9507 = vrcp.f32 %v5431_v38 }
 0xb77   : > { %9509 = vrcp.f32 %v13906_v0 }
 0xb78   : > { %v9504_v54 = vpop.eup %9503  ;;  %9511 = vrcp.f32 %v3393_v5 }
 0xb79   : > { %v14082_v13 = vmul.f32 %v9504_v54, %v16391_v27  ;;  %9513 = vrcp.f32 %v13908_v23  ;;  %v16401_v27 = vld [vmem:[#allocation19_spill] sm:$0xff] }
 0xb7b   : > { %v8891_v3 = vpack.i.bf16 %v14082_v13, %v14079_v63 }
 0xb7c   : > { %v9506_v34 = vpop.eup %9505 }
 0xb7d   : > { %v14087_v12 = vmul.f32 %v9506_v34, %v16392_v18 }
 0xb80   : > { %v9508_v46 = vpop.eup %9507 }
 0xb81   : > { %v14089_v31 = vmul.f32 %v9508_v46, %v5668_v37  ;;  %v16396_v37 = vpack.i.bf16 %v13876_v26, %v13874_v57  ;;  %v9510_v1 = vpop.eup %9509  ;;  %v8743_v57 = vpop.permute.xlu0 %8742  ;;  %v16400_v26 = vld [vmem:[#allocation55_spill] sm:$0xff] }
 0xb82   : > { %v9512_v0 = vpop.eup %9511  ;;  %v2656_v34 = vmul.f32 %v9510_v1, %v16401_v27 }
 0xb83   : > { %v9514_v5 = vpop.eup %9513  ;;  %v14110_v38 = vmul.f32 %v9512_v0, %v16398_v11 }
 0xb84   : > { %v2655_v41 = vmul.f32 %v9514_v5, %v16400_v26 }
 0xb8a   : > { %2321 = vadd.xlane.f32.xlu1 %v16393_v58 }
 0xb8f   : > { %2329 = vadd.xlane.f32.xlu0 %v16394_v60  ;;  %v8745_v60 = vunpack.i.h.bf16 %v8743_v57 }
 0xb99   : > { %v3397_v39 = vpop.xlane.xlu1 %3396 }
 0xb9a   : > { %9515 = vrcp.f32 %v3397_v39  ;;  %v8744_v39 = vunpack.i.l.bf16 %v8743_v57 }
 0xb9b   : > { %8772 = vrot.lane.b32.xlu1 %v16395_v16, %s9746_s2  ;;  %v16402_v16 = vpack.i.bf16 %v13954_v32, %v13952_v10 }
 0xb9d   : > { %v14099_v35 = vpop.xlane.xlu1 %2305 }
 0xb9f   : > { %8777 = vrot.lane.b32.xlu1 %v16396_v37, %s9748_s19 }
 0xba1   : > { %v5427_v40 = vpop.xlane.xlu1 %5426 }
 0xba2   : > { %9517 = vrcp.f32 %v5427_v40 }
 0xba4   : > { %v9516_v23 = vpop.eup %9515 }
 0xba5   : > { %8782 = vrot.lane.b32.xlu0 %v16397_v24, %s9747_s15  ;;  %v8738_v61 = vpop.permute.xlu1 %8737  ;;  %v14113_v54 = vmul.f32 %v9516_v23, %v16399_v53 }
 0xba6   : > { %v8740_v18 = vunpack.i.h.bf16 %v8738_v61  ;;  %v8739_v46 = vunpack.i.l.bf16 %v8738_v61 }
 0xba7   : > { %v8886_v58 = vpack.i.bf16 %v14113_v54, %v14110_v38  ;;  %v9665_v54 = vld [vmem:[#allocation2 + $0x8] sm:$0xff] }
 0xba8   : > { %v6032_v36 = vsel %vm1810_vm9, %v2656_v34, %v8740_v18  ;;  %v6031_v47 = vsel %vm1810_vm9, %v2655_v41, %v8739_v46  ;;  %v16403_v41 = vld [vmem:[#allocation177_spill] sm:$0xff]  ;;  %v16404_v18 = vld [vmem:[#allocation15_spill] sm:$0xff] }
 0xba9   : > { %8792 = vrot.lane.b32.xlu0 %v16402_v16, %s9748_s19  ;;  %v8748_v37 = vpop.permute.xlu1 %8747  ;;  %v6057_v5 = vsel %vm6054_vm13, %v6031_v47, %v8744_v39  ;;  %v6058_v23 = vsel %vm6054_vm13, %v6032_v36, %v8745_v60  ;;  %v16406_v36 = vld [vmem:[#allocation43_spill] sm:$0xff]  ;;  %v16407_v47 = vpack.i.bf16 %v13790_v43, %v13787_v52  ;;  %v16408_v16 = vpack.i.bf16 %v13826_v30, %v13823_v45 }
 0xbaa   : > { %v2318_v40 = vpop.xlane.xlu0 %2317  ;;  %v8750_v0 = vunpack.i.h.bf16 %v8748_v37  ;;  %v8749_v1 = vunpack.i.l.bf16 %v8748_v37 }
 0xbab   : > { %9519 = vrcp.f32 %v2318_v40 }
 0xbac   : > { %v9518_v24 = vpop.eup %9517  ;;  %v6083_v61 = vsel %vm6080_vm14, %v6057_v5, %v8749_v1  ;;  %v6084_v11 = vsel %vm6080_vm14, %v6058_v23, %v8750_v0 }
 0xbad   : > { %v6107_v53 = vpack.c.bf16 %v6084_v11, %v6083_v61  ;;  %v14130_v57 = vmul.f32 %v9518_v24, %v14054_v59  ;;  %v16405_v59 = vld [vmem:[#allocation25_spill] sm:$0xff] }
 0xbae   : > { %v3402_v10 = vpop.xlane.xlu0 %3401 }
 0xbaf   : > { %9521 = vrcp.f32 %v3402_v10  ;;  %8245 = vmatmul.mubr.msk.bf16.gmra.mrb[212].mxu0 %vm1030_vm5, %v6107_v53  ;;  %v8896_v32 = vpack.i.bf16 %v14089_v31, %v14130_v57 }
 0xbb0   : > { %8248 = vmatprep.mubr.msk.bf16.mxu0 %vm9733_vm7, %v16265_v14  ;;  %9523 = vrcp.f32 %v13937_v17  ;;  %v16409_v17 = vld [vmem:[#allocation168_spill] sm:$0xff] }
 0xbb1   : > { %9525 = vrcp.f32 %v13935_v20  ;;  %v16410_v20 = vld [vmem:[#allocation169_spill] sm:$0xff] }
 0xbb2   : > { %v8753_v39 = vpop.permute.xlu0 %8752 }
 0xbb3   : > { %v8754_v52 = vunpack.i.l.bf16 %v8753_v39  ;;  %v8755_v5 = vunpack.i.h.bf16 %v8753_v39 }
 0xbb5   : > { %v9520_v26 = vpop.eup %9519 }
 0xbb6   : > { %v14138_v27 = vmul.f32 %v9520_v26, %v16403_v41  ;;  %v8763_v43 = vpop.permute.xlu0 %8762 }
 0xbb7   : > { %v8765_v26 = vunpack.i.h.bf16 %v8763_v43  ;;  %v8764_v41 = vunpack.i.l.bf16 %v8763_v43  ;;  %v16414_v43 = vpack.i.bf16 %v13838_v50, %v13835_v33 }
 0xbb9   : > { %v9522_v34 = vpop.eup %9521 }
 0xbba   : > { %v14141_v46 = vmul.f32 %v9522_v34, %v16404_v18  ;;  %v9524_v40 = vpop.eup %9523 }
 0xbbb   : > { %v9526_v1 = vpop.eup %9525  ;;  %v2657_v23 = vmul.f32 %v9524_v40, %v16409_v17  ;;  %v16416_v17 = vpack.i.bf16 %v13858_v49, %v13855_v8  ;;  %v16419_v49 = vld [vmem:[#allocation171_spill] sm:$0xff] }
 0xbbc   : > { %v2658_v24 = vmul.f32 %v9526_v1, %v16410_v20  ;;  %v16412_v1 = vld [vmem:[#allocation90_spill] sm:$0xff] }
 0xbbd   : > { %v6033_v11 = vsel %vm1810_vm9, %v2657_v23, %v8754_v52  ;;  %v16413_v52 = vld [vmem:[#allocation32_spill] sm:$0xff]  ;;  %v16417_v23 = vpack.i.bf16 %v13995_v2, %v13993_v28 }
 0xbbe   : > { %v6034_v30 = vsel %vm1810_vm9, %v2658_v24, %v8755_v5  ;;  %v16415_v5 = vpack.i.bf16 %v13977_v55, %v13975_v42 }
 0xbc3   : > { %2333 = vadd.xlane.f32.xlu1 %v16405_v59 }
 0xbc8   : > { %2341 = vadd.xlane.f32.xlu0 %v16406_v36 }
 0xbd4   : > { %8787 = vrot.lane.b32.xlu1 %v16407_v47, %s9746_s2 }
 0xbda   : > { %v14151_v60 = vpop.xlane.xlu1 %2313 }
 0xbde   : > { %8797 = vrot.lane.b32.xlu0 %v16408_v16, %s9747_s15  ;;  %v14157_v37 = vpop.xlane.xlu1 %4418  ;;  %v16411_v16 = vld [vmem:[#allocation181_spill] sm:$0xff] }
 0xbe2   : > { %v14159_v0 = vpop.xlane.xlu1 %5435 }
 0xbe6   : > { %v8758_v61 = vpop.permute.xlu1 %8757 }
 0xbe7   : > { %v2326_v53 = vpop.xlane.xlu0 %2325  ;;  %v8760_v10 = vunpack.i.h.bf16 %v8758_v61  ;;  %v8759_v45 = vunpack.i.l.bf16 %v8758_v61 }
 0xbe8   : > { %9527 = vrcp.f32 %v2326_v53  ;;  %v16418_v53 = vld [vmem:[#allocation170_spill] sm:$0xff] }
 0xbe9   : > { %v6060_v34 = vsel %vm6054_vm13, %v6034_v30, %v8760_v10  ;;  %v6059_v18 = vsel %vm6054_vm13, %v6033_v11, %v8759_v45  ;;  %9529 = vrcp.f32 %v14025_v15 }
 0xbea   : > { %v6085_v59 = vsel %vm6080_vm14, %v6059_v18, %v8764_v41  ;;  %v6086_v36 = vsel %vm6080_vm14, %v6060_v34, %v8765_v26  ;;  %9531 = vrcp.f32 %v14028_v19 }
 0xbeb   : > { %v6108_v47 = vpack.c.bf16 %v6086_v36, %v6085_v59  ;;  %v8768_v50 = vpop.permute.xlu0 %8767 }
 0xbec   : > { %v8770_v24 = vunpack.i.h.bf16 %v8768_v50  ;;  %v8769_v15 = vunpack.i.l.bf16 %v8768_v50  ;;  %v16423_v50 = vpack.i.bf16 %v13868_v29, %v13865_v62 }
 0xbed   : > { %8249 = vmatmul.mubr.msk.bf16.gmra.mrb[216].mxu0 %vm1030_vm5, %v6108_v47 }
 0xbee   : > { %8252 = vmatprep.mubr.msk.bf16.mxu0 %vm9733_vm7, %v16265_v14 }
 0xbf2   : > { %v9528_v39 = vpop.eup %9527 }
 0xbf3   : > { %v14173_v40 = vmul.f32 %v9528_v39, %v16411_v16  ;;  %v9530_v20 = vpop.eup %9529  ;;  %v16420_v39 = vld [vmem:[#allocation41_spill] sm:$0xff] }
 0xbf4   : > { %v9532_v42 = vpop.eup %9531  ;;  %v2660_v10 = vmul.f32 %v9530_v20, %v16419_v49 }
 0xbf5   : > { %v2659_v8 = vmul.f32 %v9532_v42, %v16418_v53  ;;  %v16424_v42 = vpack.i.bf16 %v13894_v4, %v13891_v48 }
 0xbf6   : > { %v6036_v28 = vsel %vm1810_vm9, %v2660_v10, %v8770_v24 }
 0xbf7   : > { %v6035_v2 = vsel %vm1810_vm9, %v2659_v8, %v8769_v15 }
 0xbf8   : > { %2337 = vadd.xlane.f32.xlu1 %v16412_v1  ;;  %v16421_v1 = vld [vmem:[#allocation98_spill] sm:$0xff] }
 0xbfd   : > { %2345 = vadd.xlane.f32.xlu0 %v16413_v52 }
 0xc09   : > { %8802 = vrot.lane.b32.xlu1 %v16414_v43, %s9746_s2 }
 0xc0d   : > { %8807 = vrot.lane.b32.xlu1 %v16415_v5, %s9748_s19 }
 0xc13   : > { %8812 = vrot.lane.b32.xlu0 %v16416_v17, %s9747_s15  ;;  %v16422_v17 = vld [vmem:[#allocation146_spill] sm:$0xff] }
 0xc17   : > { %8822 = vrot.lane.b32.xlu0 %v16417_v23, %s9748_s19  ;;  %v14195_v33 = vpop.xlane.xlu1 %2321 }
 0xc1b   : > { %v8773_v55 = vpop.permute.xlu1 %8772 }
 0xc1c   : > { %v2330_v61 = vpop.xlane.xlu0 %2329  ;;  %v8775_v19 = vunpack.i.h.bf16 %v8773_v55  ;;  %v8774_v11 = vunpack.i.l.bf16 %v8773_v55 }
 0xc1d   : > { %9533 = vrcp.f32 %v2330_v61 }
 0xc1e   : > { %v6062_v41 = vsel %vm6054_vm13, %v6036_v28, %v8775_v19  ;;  %v6061_v34 = vsel %vm6054_vm13, %v6035_v2, %v8774_v11  ;;  %9535 = vrcp.f32 %v14099_v35  ;;  %v16425_v11 = vld [vmem:[#allocation172_spill] sm:$0xff] }
 0xc1f   : > { %v8778_v45 = vpop.permute.xlu1 %8777 }
 0xc20   : > { %v8780_v30 = vunpack.i.h.bf16 %v8778_v45  ;;  %v8779_v26 = vunpack.i.l.bf16 %v8778_v45  ;;  %v8783_v20 = vpop.permute.xlu0 %8782 }
 0xc21   : > { %v8785_v15 = vunpack.i.h.bf16 %v8783_v20  ;;  %v8784_v19 = vunpack.i.l.bf16 %v8783_v20 }
 0xc22   : > { %v6087_v18 = vsel %vm6080_vm14, %v6061_v34, %v8779_v26  ;;  %v6088_v59 = vsel %vm6080_vm14, %v6062_v41, %v8780_v30 }
 0xc23   : > { %v6109_v36 = vpack.c.bf16 %v6088_v59, %v6087_v18  ;;  %v6038_v62 = vsel %vm1810_vm9, %v14087_v12, %v8785_v15  ;;  %v16426_v12 = vld [vmem:[#allocation9_spill] sm:$0xff]  ;;  %v16427_v59 = vld [vmem:[#allocation143_spill] sm:$0xff] }
 0xc24   : > { %v8793_v61 = vpop.permute.xlu0 %8792 }
 0xc25   : > { %8253 = vmatmul.mubr.msk.bf16.gmra.mrb[220].mxu0 %vm1030_vm5, %v6109_v36  ;;  %v8795_v45 = vunpack.i.h.bf16 %v8793_v61  ;;  %v8794_v48 = vunpack.i.l.bf16 %v8793_v61  ;;  %v2351_v36 = vsel %vm2018_vm11, %v16427_v59, 0.0 }
 0xc26   : > { %8256 = vmatprep.mubr.msk.bf16.mxu0 %vm9733_vm7, %v16265_v14 }
 0xc27   : > { %v9534_v47 = vpop.eup %9533 }
 0xc28   : > { %v14209_v16 = vmul.f32 %v9534_v47, %v16420_v39  ;;  %v9536_v24 = vpop.eup %9535  ;;  %v16428_v47 = vld [vmem:[#allocation186_spill] sm:$0xff] }
 0xc29   : > { %v2661_v53 = vmul.f32 %v9536_v24, %v16425_v11  ;;  %v16436_v24 = vld [vmem:[#allocation114_spill] sm:$0xff] }
 0xc2b   : > { %v6037_v10 = vsel %vm1810_vm9, %v2661_v53, %v8784_v19  ;;  %v16438_v53 = vpack.i.bf16 %v14033_v22, %v14031_v21 }
 0xc31   : > { %2349 = vadd.xlane.f32.xlu1 %v16421_v1  ;;  %v16429_v1 = vld [vmem:[#allocation142_spill] sm:$0xff] }
 0xc33   : > { %v14212_v52 = vpop.f32.mrb[208].mxu0 }
 0xc34   : > { %v8242_v43 = vpop.f32.mrb[209].mxu0 }
 0xc35   : > { %v14214_v5 = vpop.f32.mrb[210].mxu0  ;;  %v2352_v43 = vadd.f32 %v16429_v1, %v2351_v36 }
 0xc36   : > { %2357 = vadd.xlane.f32.xlu0 %v16422_v17  ;;  %v8243_v23 = vpop.f32.mrb[211].mxu0  ;;  %v16430_v17 = vld [vmem:[#allocation132_spill] sm:$0xff] }
 0xc37   : > { %v16431_v23 = vld [vmem:[#allocation153_spill] sm:$0xff] }
 0xc42   : > { %8817 = vrot.lane.b32.xlu1 %v16423_v50, %s9746_s2  ;;  %v16432_v50 = vld [vmem:[#allocation151_spill] sm:$0xff] }
 0xc43   : > { %v16433_v20 = vpack.i.bf16 %v16431_v23, %v16432_v50  ;;  %v16442_v23 = vld [vmem:[#allocation147_spill] sm:$0xff]  ;;  %v16443_v50 = vld [vmem:[#allocation40_spill] sm:$0xff] }
 0xc4c   : > { %8827 = vrot.lane.b32.xlu0 %v16424_v42, %s9747_s15  ;;  %v16434_v42 = vpack.i.bf16 %v14017_v56, %v14015_v9 }
 0xc50   : > { %v2334_v55 = vpop.xlane.xlu1 %2333 }
 0xc51   : > { %9537 = vrcp.f32 %v2334_v55  ;;  %v16435_v55 = vld [vmem:[#allocation117_spill] sm:$0xff] }
 0xc52   : > { %v16437_v15 = vpack.i.bf16 %v16435_v55, %v16436_v24  ;;  %v16447_v24 = vpack.i.bf16 %v13950_v44, %v13947_v25 }
 0xc54   : > { %v8788_v8 = vpop.permute.xlu1 %8787 }
 0xc55   : > { %v2342_v29 = vpop.xlane.xlu0 %2341  ;;  %v8790_v35 = vunpack.i.h.bf16 %v8788_v8  ;;  %v8789_v49 = vunpack.i.l.bf16 %v8788_v8 }
 0xc56   : > { %9539 = vrcp.f32 %v2342_v29 }
 0xc57   : > { %v6064_v4 = vsel %vm6054_vm13, %v6038_v62, %v8790_v35  ;;  %v6063_v2 = vsel %vm6054_vm13, %v6037_v10, %v8789_v49  ;;  %9541 = vrcp.f32 %v14151_v60 }
 0xc58   : > { %v6089_v28 = vsel %vm6080_vm14, %v6063_v2, %v8794_v48  ;;  %v6090_v30 = vsel %vm6080_vm14, %v6064_v4, %v8795_v45  ;;  %v16439_v48 = vld [vmem:[#allocation79_spill] sm:$0xff] }
 0xc59   : > { %v6110_v26 = vpack.c.bf16 %v6090_v30, %v6089_v28  ;;  %v8798_v56 = vpop.permute.xlu0 %8797 }
 0xc5a   : > { %v8800_v29 = vunpack.i.h.bf16 %v8798_v56  ;;  %v8799_v35 = vunpack.i.l.bf16 %v8798_v56 }
 0xc5b   : > { %v9538_v41 = vpop.eup %9537  ;;  %8257 = vmatmul.mubr.msk.bf16.gmra.mrb[224].mxu0 %vm1030_vm5, %v6110_v26 }
 0xc5c   : > { %8260 = vmatprep.mubr.msk.bf16.mxu0 %vm9733_vm7, %v16265_v14  ;;  %v14238_v34 = vmul.f32 %v9538_v41, %v16426_v12  ;;  %v6040_v28 = vsel %vm1810_vm9, %v14138_v27, %v8800_v29  ;;  %v16453_v29 = vld [vmem:[#allocation35_spill] sm:$0xff] }
 0xc60   : > { %v9540_v18 = vpop.eup %9539 }
 0xc61   : > { %v14243_v39 = vmul.f32 %v9540_v18, %v16428_v47  ;;  %v9542_v60 = vpop.eup %9541  ;;  %v16440_v47 = vld [vmem:[#allocation62_spill] sm:$0xff] }
 0xc62   : > { %v2663_v4 = vmul.f32 %v9542_v60, %v16439_v48 }
 0xc64   : > { %v6039_v21 = vsel %vm1810_vm9, %v2663_v4, %v8799_v35 }
 0xc66   : > { %2353 = vadd.xlane.f32.xlu1 %v2352_v43  ;;  %v16441_v43 = vld [vmem:[#allocation66_spill] sm:$0xff] }
 0xc6b   : > { %2361 = vadd.xlane.f32.xlu0 %v16430_v17 }
 0xc77   : > { %8832 = vrot.lane.b32.xlu1 %v16433_v20, %s9746_s2  ;;  %v16444_v20 = vld [vmem:[#allocation159_spill] sm:$0xff] }
 0xc7b   : > { %8837 = vrot.lane.b32.xlu1 %v16434_v42, %s9748_s19  ;;  %v16445_v42 = vld [vmem:[#allocation119_spill] sm:$0xff] }
 0xc7c   : > { %v16446_v55 = vpack.i.bf16 %v16444_v20, %v16445_v42  ;;  %v16462_v42 = vld [vmem:[#allocation95_spill] sm:$0xff] }
 0xc81   : > { %8842 = vrot.lane.b32.xlu0 %v16437_v15, %s9747_s15  ;;  %v16448_v15 = vld [vmem:[#allocation161_spill] sm:$0xff] }
 0xc82   : > { %v14260_v61 = vpop.f32.mrb[212].mxu0 }
 0xc83   : > { %v8246_v19 = vpop.f32.mrb[213].mxu0 }
 0xc84   : > { %v14262_v11 = vpop.f32.mrb[214].mxu0  ;;  %v16449_v19 = vpack.i.bf16 %v13966_v6, %v16448_v15  ;;  %v16464_v15 = vld [vmem:[#allocation197_spill] sm:$0xff] }
 0xc85   : > { %8852 = vrot.lane.b32.xlu0 %v16438_v53, %s9748_s19  ;;  %v2338_v8 = vpop.xlane.xlu1 %2337  ;;  %v8247_v9 = vpop.f32.mrb[215].mxu0 }
 0xc86   : > { %9543 = vrcp.f32 %v2338_v8  ;;  %v16450_v8 = vld [vmem:[#allocation31_spill] sm:$0xff] }
 0xc87   : > { %v16451_v9 = vpack.i.bf16 %v14040_v7, %v16450_v8  ;;  %v16465_v8 = vld [vmem:[#allocation20_spill] sm:$0xff] }
 0xc89   : > { %v8803_v62 = vpop.permute.xlu1 %8802 }
 0xc8a   : > { %v2346_v49 = vpop.xlane.xlu0 %2345  ;;  %v8805_v10 = vunpack.i.h.bf16 %v8803_v62  ;;  %v8804_v45 = vunpack.i.l.bf16 %v8803_v62  ;;  %v16452_v62 = vld [vmem:[#allocation13_spill] sm:$0xff] }
 0xc8b   : > { %9545 = vrcp.f32 %v2346_v49  ;;  %v16454_v6 = vpack.i.bf16 %v16452_v62, %v16453_v29 }
 0xc8c   : > { %v6066_v26 = vsel %vm6054_vm13, %v6040_v28, %v8805_v10  ;;  %v6065_v41 = vsel %vm6054_vm13, %v6039_v21, %v8804_v45  ;;  %9547 = vrcp.f32 %v14195_v33  ;;  %v16455_v10 = vld [vmem:[#allocation179_spill] sm:$0xff] }
 0xc8d   : > { %v8808_v2 = vpop.permute.xlu1 %8807 }
 0xc8e   : > { %v8810_v22 = vunpack.i.h.bf16 %v8808_v2  ;;  %v8809_v30 = vunpack.i.l.bf16 %v8808_v2  ;;  %v8813_v53 = vpop.permute.xlu0 %8812 }
 0xc8f   : > { %v8815_v25 = vunpack.i.h.bf16 %v8813_v53  ;;  %v8814_v33 = vunpack.i.l.bf16 %v8813_v53 }
 0xc90   : > { %v9544_v12 = vpop.eup %9543  ;;  %v6091_v18 = vsel %vm6080_vm14, %v6065_v41, %v8809_v30  ;;  %v6092_v59 = vsel %vm6080_vm14, %v6066_v26, %v8810_v22  ;;  %v16456_v41 = vld [vmem:[#allocation47_spill] sm:$0xff] }
 0xc91   : > { %v6111_v36 = vpack.c.bf16 %v6092_v59, %v6091_v18  ;;  %v14277_v1 = vmul.f32 %v9544_v12, %v16440_v47  ;;  %v6042_v7 = vsel %vm1810_vm9, %v14173_v40, %v8815_v25  ;;  %v16457_v12 = vld [vmem:[#allocation129_spill] sm:$0xff] }
 0xc92   : > { %v8823_v44 = vpop.permute.xlu0 %8822  ;;  %v16458_v18 = vpack.i.bf16 %v16456_v41, %v16457_v12 }
 0xc93   : > { %8261 = vmatmul.mubr.msk.bf16.gmra.mrb[228].mxu0 %vm1030_vm5, %v6111_v36  ;;  %v8825_v30 = vunpack.i.h.bf16 %v8823_v44  ;;  %v8824_v26 = vunpack.i.l.bf16 %v8823_v44 }
 0xc94   : > { %8264 = vmatprep.mubr.msk.bf16.mxu0 %vm9733_vm7, %v16265_v14 }
 0xc95   : > { %v9546_v27 = vpop.eup %9545 }
 0xc96   : > { %v14283_v17 = vmul.f32 %v9546_v27, %v16441_v43  ;;  %v9548_v60 = vpop.eup %9547  ;;  %v16459_v43 = vld [vmem:[#allocation157_spill] sm:$0xff] }
 0xc9f   : > { %2365 = vadd.xlane.f32.xlu1 %v16442_v23  ;;  %v16460_v23 = vld [vmem:[#allocation148_spill] sm:$0xff] }
 0xca4   : > { %2370 = vadd.xlane.f32.xlu0 %v16443_v50  ;;  %v16461_v50 = vpack.i.bf16 %v16459_v43, %v16460_v23  ;;  %v9670_v23 = vld [vmem:[#allocation2 + $0x18] sm:$0xff] }
 0xcb0   : > { %8847 = vrot.lane.b32.xlu1 %v16446_v55, %s9746_s2 }
 0xcb4   : > { %8857 = vrot.lane.b32.xlu1 %v16447_v24, %s9747_s15 }
 0xcb8   : > { %8862 = vrot.lane.b32.xlu1 %v16449_v19, %s9746_s2 }
 0xcba   : > { %5802 = vrot.lane.b32.xlu0 %v14141_v46, %s9747_s15  ;;  %v2665_v46 = vmul.f32 %v9548_v60, %v16455_v10  ;;  %v9667_v10 = vld [vmem:[#allocation2] sm:$0xff] }
 0xcbc   : > { %8867 = vrot.lane.b32.xlu1 %v16451_v9, %s9748_s19  ;;  %v6041_v22 = vsel %vm1810_vm9, %v2665_v46, %v8814_v33 }
 0xcbe   : > { %v2350_v56 = vpop.xlane.xlu1 %2349 }
 0xcbf   : > { %9549 = vrcp.f32 %v2350_v56 }
 0xcc0   : > { %8872 = vrot.lane.b32.xlu1 %v16454_v6, %s9747_s15  ;;  %v6231_v35 = vpop.f32.mrb[216].mxu0 }
 0xcc1   : > { %v8250_v49 = vpop.f32.mrb[217].mxu0 }
 0xcc2   : > { %v8818_v45 = vpop.permute.xlu1 %8817  ;;  %v14311_v48 = vpop.f32.mrb[218].mxu0 }
 0xcc3   : > { %v2358_v4 = vpop.xlane.xlu0 %2357  ;;  %v8820_v2 = vunpack.i.h.bf16 %v8818_v45  ;;  %v8819_v28 = vunpack.i.l.bf16 %v8818_v45  ;;  %v8251_v21 = vpop.f32.mrb[219].mxu0 }
 0xcc4   : > { %9551 = vrcp.f32 %v2358_v4  ;;  %8877 = vrot.lane.b32.xlu1 %v16458_v18, %s9746_s2 }
 0xcc5   : > { %v6068_v59 = vsel %vm6054_vm13, %v6042_v7, %v8820_v2  ;;  %v6067_v36 = vsel %vm6054_vm13, %v6041_v22, %v8819_v28  ;;  %9553 = vrcp.f32 %v14157_v37  ;;  %v14345_v37 = vld [vmem:[%s16463_s27] ss:$0 sm:$0xff]  ;;  %v9668_v7 = vld [vmem:[#allocation2 + $0x30] sm:$0xff] }
 0xcc6   : > { %v6093_v40 = vsel %vm6080_vm14, %v6067_v36, %v8824_v26  ;;  %v6094_v47 = vsel %vm6080_vm14, %v6068_v59, %v8825_v30  ;;  %9555 = vrcp.f32 %v14159_v0  ;;  %v6219_v53 = vadd.f32 %v14345_v37, %v14214_v5  ;;  %v9666_v5 = vld [vmem:[#allocation2 + $0x20] sm:$0xff]  ;;  %v9669_v36 = vld [vmem:[#allocation2 + $0x10] sm:$0xff] }
 0xcc7   : > { %v6112_v27 = vpack.c.bf16 %v6094_v47, %v6093_v40  ;;  %v6232_v0 = vadd.f32 %v14345_v37, %v6231_v35  ;;  %v8828_v57 = vpop.permute.xlu0 %8827  ;;  %v6224_v45 = vadd.f32 %v14345_v37, %v14260_v61 }
 0xcc8   : > { %8882 = vrot.lane.b32.xlu1 %v16461_v50, %s9748_s19  ;;  %v8830_v44 = vunpack.i.h.bf16 %v8828_v57  ;;  %v8829_v33 = vunpack.i.l.bf16 %v8828_v57 }
 0xcc9   : > { %v9550_v20 = vpop.eup %9549  ;;  %8265 = vmatmul.mubr.msk.bf16.gmra.mrb[232].mxu0 %vm1030_vm5, %v6112_v27  ;;  %v14364_v60 = vadd.f32 %v9666_v5, %v6232_v0  ;;  %v16466_v27 = vld [vmem:[#allocation195_spill] sm:$0xff] }
 0xcca   : > { %8268 = vmatprep.mubr.msk.bf16.mxu0 %vm9733_vm7, %v16265_v14  ;;  %v14333_v55 = vmul.f32 %v9550_v20, %v16462_v42  ;;  %v6043_v28 = vsel %vm1810_vm9, %v14209_v16, %v8829_v33  ;;  %v6044_v21 = vsel %vm1810_vm9, %v14238_v34, %v8830_v44  ;;  %v14392_v16 = vadd.f32 %v9669_v36, %v6224_v45  ;;  %v9671_v42 = vld [vmem:[#allocation2 + $0x28] sm:$0xff]  ;;  %v9673_v44 = vld [vmem:[#allocation2 + $0x40] sm:$0xff] }
 0xccb   : > { %v6227_v34 = vadd.f32 %v14345_v37, %v14262_v11  ;;  %v6235_v20 = vadd.f32 %v14345_v37, %v14311_v48 }
 0xccc   : > { %8887 = vrot.lane.b32.xlu1 %v8886_v58, %s9747_s15  ;;  %v14356_v58 = vadd.f32 %v9665_v54, %v6219_v53  ;;  %v6350_v11 = vsel %vm1030_vm5, %v14392_v16, 0.0 }
 0xccd   : > { %v14404_v50 = vadd.f32 %v9670_v23, %v6227_v34 }
 0xcce   : > { %v9552_v24 = vpop.eup %9551  ;;  %v6347_v63 = vsel %vm1030_vm5, %v14356_v58, 0.0 }
 0xccf   : > { %v14348_v19 = vmul.f32 %v9552_v24, %v16464_v15  ;;  %v9554_v38 = vpop.eup %9553  ;;  %v14410_v24 = vadd.f32 %v9671_v42, %v6235_v20  ;;  %v6353_v53 = vsel %vm1030_vm5, %v14404_v50, 0.0 }
 0xcd0   : > { %8892 = vrot.lane.b32.xlu1 %v8891_v3, %s9746_s2  ;;  %v4711_v9 = vmul.f32 %v9554_v38, %v16465_v8  ;;  %v9556_v56 = vpop.eup %9555  ;;  %v6356_v3 = vsel %vm1030_vm5, %v14364_v60, 0.0  ;;  %v9672_v38 = vld [vmem:[#allocation2 + $0x38] sm:$0xff] }
 0xcd1   : > { %v5728_v13 = vmul.f32 %v9556_v56, %v14065_v51  ;;  %v6359_v0 = vsel %vm1030_vm5, %v14410_v24, 0.0 }
 0xcd4   : > { %8897 = vrot.lane.b32.xlu1 %v8896_v32, %s9748_s19  ;;  %v6216_v32 = vadd.f32 %v14345_v37, %v14212_v52 }
 0xcd6   : > { %v14376_v46 = vadd.f32 %v9667_v10, %v6216_v32 }
 0xcd8   : > { %5902 = vrot.lane.b32.xlu1 %v4711_v9, %s9746_s2  ;;  %v6344_v47 = vsel %vm1030_vm5, %v14376_v46, 0.0 }
 0xcd9   : > { %6348 = vadd.xlane.f32.xlu0 %v6347_v63 }
 0xcdc   : > { %6002 = vrot.lane.b32.xlu1 %v5728_v13, %s9748_s19 }
 0xcdd   : > { %6357 = vadd.xlane.f32.xlu0 %v6356_v3 }
 0xcf3   : > { %v2354_v31 = vpop.xlane.xlu1 %2353 }
 0xcf4   : > { %9557 = vrcp.f32 %v2354_v31 }
 0xcf7   : > { %v8833_v25 = vpop.permute.xlu1 %8832 }
 0xcf8   : > { %v6239_v62 = vpop.f32.mrb[220].mxu0  ;;  %v8835_v29 = vunpack.i.h.bf16 %v8833_v25  ;;  %v8834_v6 = vunpack.i.l.bf16 %v8833_v25  ;;  %v2362_v8 = vpop.xlane.xlu0 %2361 }
 0xcf9   : > { %v6240_v51 = vadd.f32 %v14345_v37, %v6239_v62  ;;  %v8254_v35 = vpop.f32.mrb[221].mxu0  ;;  %9559 = vrcp.f32 %v2362_v8 }
 0xcfa   : > { %v6242_v49 = vpop.f32.mrb[222].mxu0  ;;  %v6070_v26 = vsel %vm6054_vm13, %v6044_v21, %v8835_v29  ;;  %v6069_v41 = vsel %vm6054_vm13, %v6043_v28, %v8834_v6 }
 0xcfb   : > { %v14380_v4 = vadd.f32 %v9668_v7, %v6240_v51  ;;  %v8838_v52 = vpop.permute.xlu1 %8837  ;;  %v8255_v2 = vpop.f32.mrb[223].mxu0  ;;  %v6243_v15 = vadd.f32 %v14345_v37, %v6242_v49 }
 0xcfc   : > { %v8840_v22 = vunpack.i.h.bf16 %v8838_v52  ;;  %v8839_v30 = vunpack.i.l.bf16 %v8838_v52  ;;  %v8843_v9 = vpop.permute.xlu0 %8842  ;;  %v9674_v2 = vld [vmem:[#allocation2 + $0x48] sm:$0xff] }
 0xcfd   : > { %v6362_v61 = vsel %vm1030_vm5, %v14380_v4, 0.0  ;;  %v14415_v54 = vadd.f32 %v9672_v38, %v6243_v15  ;;  %v8845_v5 = vunpack.i.h.bf16 %v8843_v9  ;;  %v8844_v63 = vunpack.i.l.bf16 %v8843_v9 }
 0xcfe   : > { %v9558_v12 = vpop.eup %9557  ;;  %v6095_v18 = vsel %vm6080_vm14, %v6069_v41, %v8839_v30  ;;  %v6096_v59 = vsel %vm6080_vm14, %v6070_v26, %v8840_v22  ;;  %6363 = vadd.xlane.f32.xlu0 %v6362_v61 }
 0xcff   : > { %v6113_v40 = vpack.c.bf16 %v6096_v59, %v6095_v18  ;;  %v14399_v43 = vmul.f32 %v9558_v12, %v16466_v27  ;;  %v6365_v48 = vsel %vm1030_vm5, %v14415_v54, 0.0  ;;  %v6046_v35 = vsel %vm1810_vm9, %v14243_v39, %v8845_v5 }
 0xd00   : > { %6345 = vadd.xlane.f32.xlu1 %v6344_v47  ;;  %v8853_v3 = vpop.permute.xlu0 %8852  ;;  %v6045_v49 = vsel %vm1810_vm9, %v14277_v1, %v8844_v63 }
 0xd01   : > { %8269 = vmatmul.mubr.msk.bf16.gmra.mrb[236].mxu0 %vm1030_vm5, %v6113_v40  ;;  %v8855_v10 = vunpack.i.h.bf16 %v8853_v3  ;;  %v8854_v45 = vunpack.i.l.bf16 %v8853_v3 }
 0xd02   : > { %8272 = vmatprep.mubr.msk.bf16.mxu0 %vm9733_vm7, %v16265_v14 }
 0xd04   : > { %6351 = vadd.xlane.f32.xlu1 %v6350_v11 }
 0xd08   : > { %6354 = vadd.xlane.f32.xlu1 %v6353_v53 }
 0xd0c   : > { %6360 = vadd.xlane.f32.xlu1 %v6359_v0 }
 0xd10   : > { %6366 = vadd.xlane.f32.xlu1 %v6365_v48 }
 0xd2c   : > { %v2366_v56 = vpop.xlane.xlu1 %2365 }
 0xd2d   : > { %9561 = vrcp.f32 %v2366_v56 }
 0xd2e   : > { %v6247_v13 = vpop.f32.mrb[224].mxu0 }
 0xd2f   : > { %v6248_v31 = vadd.f32 %v14345_v37, %v6247_v13  ;;  %v8258_v57 = vpop.f32.mrb[225].mxu0 }
 0xd30   : > { %v8848_v32 = vpop.permute.xlu1 %8847  ;;  %v6250_v25 = vpop.f32.mrb[226].mxu0 }
 0xd31   : > { %v14422_v33 = vadd.f32 %v9673_v44, %v6248_v31  ;;  %v8850_v62 = vunpack.i.h.bf16 %v8848_v32  ;;  %v8849_v29 = vunpack.i.l.bf16 %v8848_v32  ;;  %v6251_v6 = vadd.f32 %v14345_v37, %v6250_v25  ;;  %v8259_v51 = vpop.f32.mrb[227].mxu0  ;;  %v2371_v9 = vpop.xlane.xlu0 %2370 }
 0xd32   : > { %9563 = vrcp.f32 %v2371_v9 }
 0xd33   : > { %v6072_v7 = vsel %vm6054_vm13, %v6046_v35, %v8850_v62  ;;  %v6071_v52 = vsel %vm6054_vm13, %v6045_v49, %v8849_v29  ;;  %v14431_v28 = vadd.f32 %v9674_v2, %v6251_v6  ;;  %v6368_v21 = vsel %vm1030_vm5, %v14422_v33, 0.0  ;;  %v9560_v62 = vpop.eup %9559  ;;  %v16467_v49 = vld [vmem:[#allocation102_spill] sm:$0xff] }
 0xd34   : > { %v8858_v22 = vpop.permute.xlu1 %8857  ;;  %6369 = vadd.xlane.f32.xlu0 %v6368_v21  ;;  %v6097_v30 = vsel %vm6080_vm14, %v6071_v52, %v8854_v45  ;;  %v6098_v39 = vsel %vm6080_vm14, %v6072_v7, %v8855_v10  ;;  %v2675_v10 = vmul.f32 %v9560_v62, %v16467_v49  ;;  %v16468_v45 = vld [vmem:[#allocation104_spill] sm:$0xff]  ;;  %v9679_v49 = vld [vmem:[#allocation2 + $0x70] sm:$0xff] }
 0xd35   : > { %v6371_v1 = vsel %vm1030_vm5, %v14431_v28, 0.0  ;;  %v6114_v26 = vpack.c.bf16 %v6098_v39, %v6097_v30  ;;  %v8860_v61 = vunpack.i.h.bf16 %v8858_v22  ;;  %v8859_v12 = vunpack.i.l.bf16 %v8858_v22 }
 0xd36   : > { %6372 = vadd.xlane.f32.xlu1 %v6371_v1 }
 0xd37   : > { %8273 = vmatmul.mubr.msk.bf16.gmra.mrb[240].mxu0 %vm1030_vm5, %v6114_v26  ;;  %v6048_v34 = vsel %vm1810_vm9, %v14333_v55, %v8860_v61  ;;  %v6047_v40 = vsel %vm1810_vm9, %v14283_v17, %v8859_v12 }
 0xd38   : > { %v8863_v41 = vpop.permute.xlu1 %8862  ;;  %8276 = vmatprep.mubr.msk.bf16.mxu0 %vm9733_vm7, %v16265_v14 }
 0xd39   : > { %v8865_v18 = vunpack.i.h.bf16 %v8863_v41  ;;  %v8864_v59 = vunpack.i.l.bf16 %v8863_v41  ;;  %v16469_v41 = vld [vmem:[#allocation108_spill] sm:$0xff] }
 0xd3b   : > { %v6073_v23 = vsel %vm6054_vm13, %v6047_v40, %v8864_v59  ;;  %v6074_v20 = vsel %vm6054_vm13, %v6048_v34, %v8865_v18  ;;  %v5803_v34 = vpop.permute.xlu0 %5802 }
 0xd3c   : > { %v8868_v36 = vpop.permute.xlu1 %8867 }
 0xd3d   : > { %v8870_v47 = vunpack.i.h.bf16 %v8868_v36  ;;  %v8869_v27 = vunpack.i.l.bf16 %v8868_v36 }
 0xd3f   : > { %v6099_v11 = vsel %vm6080_vm14, %v6073_v23, %v8869_v27  ;;  %v6100_v42 = vsel %vm6080_vm14, %v6074_v20, %v8870_v47 }
 0xd40   : > { %v6115_v15 = vpack.c.bf16 %v6100_v42, %v6099_v11  ;;  %v8873_v53 = vpop.permute.xlu1 %8872 }
 0xd41   : > { %v8875_v17 = vunpack.i.h.bf16 %v8873_v53  ;;  %v8874_v38 = vunpack.i.l.bf16 %v8873_v53 }
 0xd42   : > { %8277 = vmatmul.mubr.msk.bf16.gmra.mrb[244].mxu0 %vm1030_vm5, %v6115_v15 }
 0xd43   : > { %8280 = vmatprep.mubr.msk.bf16.mxu0 %vm9733_vm7, %v16265_v14  ;;  %v6050_v63 = vsel %vm1810_vm9, %v14348_v19, %v8875_v17  ;;  %v6049_v13 = vsel %vm1810_vm9, %v14399_v43, %v8874_v38  ;;  %v9562_v19 = vpop.eup %9561 }
 0xd44   : > { %v8878_v55 = vpop.permute.xlu1 %8877  ;;  %v2676_v7 = vmul.f32 %v9562_v19, %v16468_v45  ;;  %v9564_v52 = vpop.eup %9563 }
 0xd45   : > { %v8880_v0 = vunpack.i.h.bf16 %v8878_v55  ;;  %v8879_v48 = vunpack.i.l.bf16 %v8878_v55  ;;  %v2677_v61 = vmul.f32 %v9564_v52, %v16469_v41  ;;  %v9675_v55 = vld [vmem:[#allocation2 + $0x50] sm:$0xff]  ;;  %v9680_v52 = vld [vmem:[#allocation2 + $0x78] sm:$0xff]  ;;  %v9681_v41 = vld [vmem:[#allocation2 + $0x80] sm:$0xff] }
 0xd47   : > { %v6075_v57 = vsel %vm6054_vm13, %v6049_v13, %v8879_v48  ;;  %v6076_v8 = vsel %vm6054_vm13, %v6050_v63, %v8880_v0  ;;  %v6053_v40 = vsel %vm1810_vm9, %v2677_v61, %v5803_v34  ;;  %v9676_v48 = vld [vmem:[#allocation2 + $0x58] sm:$0xff] }
 0xd48   : > { %v8883_v5 = vpop.permute.xlu1 %8882 }
 0xd49   : > { %v8885_v3 = vunpack.i.h.bf16 %v8883_v5  ;;  %v8884_v31 = vunpack.i.l.bf16 %v8883_v5 }
 0xd4b   : > { %v6101_v32 = vsel %vm6080_vm14, %v6075_v57, %v8884_v31  ;;  %v6102_v56 = vsel %vm6080_vm14, %v6076_v8, %v8885_v3  ;;  %v9677_v8 = vld [vmem:[#allocation2 + $0x60] sm:$0xff] }
 0xd4c   : > { %v6116_v25 = vpack.c.bf16 %v6102_v56, %v6101_v32  ;;  %v8888_v44 = vpop.permute.xlu1 %8887 }
 0xd4d   : > { %v8890_v29 = vunpack.i.h.bf16 %v8888_v44  ;;  %v8889_v6 = vunpack.i.l.bf16 %v8888_v44  ;;  %v9678_v44 = vld [vmem:[#allocation2 + $0x68] sm:$0xff] }
 0xd4e   : > { %8281 = vmatmul.mubr.msk.bf16.gmra.mrb[248].mxu0 %vm1030_vm5, %v6116_v25 }
 0xd4f   : > { %8284 = vmatprep.mubr.msk.bf16.mxu0 %vm9733_vm7, %v16265_v14  ;;  %v6052_v21 = vsel %vm1810_vm9, %v2676_v7, %v8890_v29  ;;  %v6051_v22 = vsel %vm1810_vm9, %v2675_v10, %v8889_v6 }
 0xd50   : > { %v8893_v43 = vpop.permute.xlu1 %8892 }
 0xd51   : > { %v8895_v51 = vunpack.i.h.bf16 %v8893_v43  ;;  %v8894_v35 = vunpack.i.l.bf16 %v8893_v43 }
 0xd53   : > { %v6077_v1 = vsel %vm6054_vm13, %v6051_v22, %v8894_v35  ;;  %v6078_v26 = vsel %vm6054_vm13, %v6052_v21, %v8895_v51 }
 0xd54   : > { %v8898_v2 = vpop.permute.xlu1 %8897 }
 0xd55   : > { %v8900_v30 = vunpack.i.h.bf16 %v8898_v2  ;;  %v8899_v39 = vunpack.i.l.bf16 %v8898_v2 }
 0xd57   : > { %v6103_v12 = vsel %vm6080_vm14, %v6077_v1, %v8899_v39  ;;  %v6104_v18 = vsel %vm6080_vm14, %v6078_v26, %v8900_v30 }
 0xd58   : > { %v6117_v59 = vpack.c.bf16 %v6104_v18, %v6103_v12  ;;  %v5903_v36 = vpop.permute.xlu1 %5902 }
 0xd59   : > { %v6079_v47 = vsel %vm6054_vm13, %v6053_v40, %v5903_v36  ;;  %v9682_v36 = vld [vmem:[#allocation2 + $0x88] sm:$0xff] }
 0xd5a   : > { %8285 = vmatmul.mubr.msk.bf16.gmra.mrb[252].mxu0 %vm1030_vm5, %v6117_v59 }
 0xd5b   : > { %8288 = vmatprep.mubr.msk.bf16.mxu0 %vm9733_vm7, %v16265_v14 }
 0xd5c   : > { %v6003_v27 = vpop.permute.xlu1 %6002 }
 0xd5d   : > { %v6105_v23 = vsel %vm6080_vm14, %v6079_v47, %v6003_v27 }
 0xd5e   : > { %v6118_v20 = vpack.c.bf16 %v6105_v23, %v6105_v23 }
 0xd62   : > { %8289 = vmatmul.mubr.msk.bf16.gmra.mrb[0].mxu0 %vm1030_vm5, %v6118_v20 }
 0xd63   : > { %8364 = vmatprep.mubr.msk.bf16.mxu0 %vm9733_vm7, %v16265_v14 }
 0xd66   : > { %v6255_v11 = vpop.f32.mrb[228].mxu0  ;;  %v6349_v47 = vpop.xlane.xlu0 %6348 }
 0xd67   : > { %v6256_v42 = vadd.f32 %v14345_v37, %v6255_v11  ;;  %v8262_v15 = vpop.f32.mrb[229].mxu0  ;;  %v6420_v20 = vmul.f32 0.03125, %v6349_v47 }
 0xd68   : > { %v6258_v53 = vpop.f32.mrb[230].mxu0 }
 0xd69   : > { %v14483_v17 = vadd.f32 %v9675_v55, %v6256_v42  ;;  %v6259_v38 = vadd.f32 %v14345_v37, %v6258_v53  ;;  %v8263_v0 = vpop.f32.mrb[231].mxu0 }
 0xd6a   : > { %v14527_v0 = vsub.f32 %v14356_v58, %v6420_v20 }
 0xd6b   : > { %v14486_v9 = vadd.f32 %v9676_v48, %v6259_v38  ;;  %v6374_v5 = vsel %vm1030_vm5, %v14483_v17, 0.0  ;;  %v9683_v48 = vld [vmem:[#allocation2 + $0x90] sm:$0xff] }
 0xd6c   : > { %6375 = vadd.xlane.f32.xlu0 %v6374_v5 }
 0xd6d   : > { %v6377_v63 = vsel %vm1030_vm5, %v14486_v9, 0.0 }
 0xd6e   : > { %6378 = vadd.xlane.f32.xlu1 %v6377_v63 }
 0xd8d   : > { %v6346_v59 = vpop.xlane.xlu1 %6345 }
 0xd8e   : > { %v6419_v23 = vmul.f32 0.03125, %v6346_v59 }
 0xd90   : > { %v14523_v42 = vsub.f32 %v14376_v46, %v6419_v23 }
 0xd91   : > { %v6352_v55 = vpop.xlane.xlu1 %6351 }
 0xd9c   : > { %v6263_v13 = vpop.f32.mrb[232].mxu0 }
 0xd9d   : > { %v6264_v3 = vadd.f32 %v14345_v37, %v6263_v13  ;;  %v8266_v31 = vpop.f32.mrb[233].mxu0 }
 0xd9e   : > { %v6266_v57 = vpop.f32.mrb[234].mxu0 }
 0xd9f   : > { %v14493_v32 = vadd.f32 %v9677_v8, %v6264_v3  ;;  %v6267_v56 = vadd.f32 %v14345_v37, %v6266_v57  ;;  %v8267_v25 = vpop.f32.mrb[235].mxu0  ;;  %v9684_v3 = vld [vmem:[#allocation2 + $0x98] sm:$0xff]  ;;  %v6469_v8 = vmul.f32 %v14523_v42, %v14523_v42 }
 0xda0   : > { %v6470_v25 = vmul.f32 %v14527_v0, %v14527_v0 }
 0xda1   : > { %v14496_v62 = vadd.f32 %v9678_v44, %v6267_v56  ;;  %v6380_v19 = vsel %vm1030_vm5, %v14493_v32, 0.0  ;;  %v6355_v44 = vpop.xlane.xlu1 %6354 }
 0xda2   : > { %6381 = vadd.xlane.f32.xlu0 %v6380_v19  ;;  %v6421_v19 = vmul.f32 0.03125, %v6352_v55 }
 0xda3   : > { %v6383_v43 = vsel %vm1030_vm5, %v14496_v62, 0.0 }
 0xda4   : > { %6384 = vadd.xlane.f32.xlu1 %v6383_v43  ;;  %v6494_v43 = vsel %vm1030_vm5, %v6469_v8, 0.0 }
 0xdd4   : > { %v6271_v29 = vpop.f32.mrb[236].mxu0 }
 0xdd5   : > { %v6272_v6 = vadd.f32 %v14345_v37, %v6271_v29  ;;  %v8270_v51 = vpop.f32.mrb[237].mxu0  ;;  %v6422_v29 = vmul.f32 0.03125, %v6355_v44 }
 0xdd6   : > { %v6274_v35 = vpop.f32.mrb[238].mxu0 }
 0xdd7   : > { %v14503_v10 = vadd.f32 %v9679_v49, %v6272_v6  ;;  %v6275_v45 = vadd.f32 %v14345_v37, %v6274_v35  ;;  %v8271_v7 = vpop.f32.mrb[239].mxu0  ;;  %v6497_v6 = vsel %vm1030_vm5, %v6470_v25, 0.0  ;;  %v14545_v35 = vsub.f32 %v14392_v16, %v6421_v19 }
 0xdd9   : > { %v14506_v2 = vadd.f32 %v9680_v52, %v6275_v45  ;;  %v6386_v21 = vsel %vm1030_vm5, %v14503_v10, 0.0  ;;  %v14549_v52 = vsub.f32 %v14404_v50, %v6422_v29 }
 0xdda   : > { %6387 = vadd.xlane.f32.xlu0 %v6386_v21  ;;  %v9685_v21 = vld [vmem:[#allocation2 + $0xa0] sm:$0xff] }
 0xddb   : > { %v6389_v22 = vsel %vm1030_vm5, %v14506_v2, 0.0 }
 0xddc   : > { %6390 = vadd.xlane.f32.xlu1 %v6389_v22 }
 0xe0a   : > { %v6279_v30 = vpop.f32.mrb[240].mxu0 }
 0xe0b   : > { %v6280_v39 = vadd.f32 %v14345_v37, %v6279_v30  ;;  %v8274_v1 = vpop.f32.mrb[241].mxu0 }
 0xe0c   : > { %v6282_v26 = vpop.f32.mrb[242].mxu0  ;;  %v9686_v1 = vld [vmem:[#allocation2 + $0xa8] sm:$0xff] }
 0xe0d   : > { %v14513_v61 = vadd.f32 %v9681_v41, %v6280_v39  ;;  %v6283_v12 = vadd.f32 %v14345_v37, %v6282_v26  ;;  %v8275_v18 = vpop.f32.mrb[243].mxu0 }
 0xe0e   : > { %v6358_v18 = vpop.xlane.xlu0 %6357 }
 0xe0f   : > { %v14516_v34 = vadd.f32 %v9682_v36, %v6283_v12  ;;  %v6392_v40 = vsel %vm1030_vm5, %v14513_v61, 0.0  ;;  %v6471_v12 = vmul.f32 %v14545_v35, %v14545_v35  ;;  %v6472_v36 = vmul.f32 %v14549_v52, %v14549_v52 }
 0xe10   : > { %6393 = vadd.xlane.f32.xlu0 %v6392_v40  ;;  %v6361_v40 = vpop.xlane.xlu1 %6360  ;;  %v6423_v47 = vmul.f32 0.03125, %v6358_v18 }
 0xe11   : > { %v6395_v27 = vsel %vm1030_vm5, %v14516_v34, 0.0  ;;  %v6424_v20 = vmul.f32 0.03125, %v6361_v40 }
 0xe12   : > { %6396 = vadd.xlane.f32.xlu1 %v6395_v27  ;;  %v6500_v27 = vsel %vm1030_vm5, %v6471_v12, 0.0  ;;  %v6364_v23 = vpop.xlane.xlu0 %6363 }
 0xe15   : > { %v6287_v11 = vpop.f32.mrb[244].mxu0 }
 0xe16   : > { %v6288_v15 = vadd.f32 %v14345_v37, %v6287_v11  ;;  %v8278_v53 = vpop.f32.mrb[245].mxu0  ;;  %v6503_v11 = vsel %vm1030_vm5, %v6472_v36, 0.0  ;;  %v6370_v44 = vpop.xlane.xlu0 %6369 }
 0xe17   : > { %v6290_v38 = vpop.f32.mrb[246].mxu0  ;;  %v14567_v53 = vsub.f32 %v14364_v60, %v6423_v47 }
 0xe18   : > { %v14529_v5 = vadd.f32 %v9683_v48, %v6288_v15  ;;  %v6291_v63 = vadd.f32 %v14345_v37, %v6290_v38  ;;  %v8279_v13 = vpop.f32.mrb[247].mxu0  ;;  %v6425_v48 = vmul.f32 0.03125, %v6364_v23 }
 0xe1a   : > { %v14532_v31 = vadd.f32 %v9684_v3, %v6291_v63  ;;  %v6398_v57 = vsel %vm1030_vm5, %v14529_v5, 0.0  ;;  %v6367_v63 = vpop.xlane.xlu1 %6366  ;;  %v14571_v3 = vsub.f32 %v14410_v24, %v6424_v20 }
 0xe1b   : > { %6399 = vadd.xlane.f32.xlu0 %v6398_v57  ;;  %v9687_v57 = vld [vmem:[#allocation2 + $0xb0] sm:$0xff]  ;;  %v6426_v19 = vmul.f32 0.03125, %v6367_v63 }
 0xe1c   : > { %v6401_v56 = vsel %vm1030_vm5, %v14532_v31, 0.0 }
 0xe1d   : > { %6402 = vadd.xlane.f32.xlu1 %v6401_v56 }
 0xe1f   : > { %6495 = vadd.xlane.f32.xlu0 %v6494_v43  ;;  %v9688_v43 = vld [vmem:[#allocation2 + $0xb8] sm:$0xff] }
 0xe21   : > { %6498 = vadd.xlane.f32.xlu1 %v6497_v6  ;;  %v6295_v51 = vpop.f32.mrb[248].mxu0 }
 0xe22   : > { %v6296_v49 = vadd.f32 %v14345_v37, %v6295_v51  ;;  %v8282_v45 = vpop.f32.mrb[249].mxu0  ;;  %v6473_v51 = vmul.f32 %v14567_v53, %v14567_v53 }
 0xe23   : > { %v6298_v7 = vpop.f32.mrb[250].mxu0  ;;  %v6373_v45 = vpop.xlane.xlu1 %6372 }
 0xe24   : > { %v14551_v22 = vadd.f32 %v9685_v21, %v6296_v49  ;;  %v6299_v30 = vadd.f32 %v14345_v37, %v6298_v7  ;;  %v8283_v39 = vpop.f32.mrb[251].mxu0  ;;  %v14583_v49 = vsub.f32 %v14380_v4, %v6425_v48  ;;  %v6427_v7 = vmul.f32 0.03125, %v6370_v44 }
 0xe25   : > { %v6376_v39 = vpop.xlane.xlu0 %6375  ;;  %v6428_v12 = vmul.f32 0.03125, %v6373_v45  ;;  %v6506_v36 = vsel %vm1030_vm5, %v6473_v51, 0.0 }
 0xe26   : > { %v14554_v26 = vadd.f32 %v9686_v1, %v6299_v30  ;;  %v6404_v41 = vsel %vm1030_vm5, %v14551_v22, 0.0  ;;  %v6474_v30 = vmul.f32 %v14571_v3, %v14571_v3  ;;  %v14597_v23 = vsub.f32 %v14422_v33, %v6427_v7 }
 0xe27   : > { %6405 = vadd.xlane.f32.xlu0 %v6404_v41  ;;  %v14590_v41 = vsub.f32 %v14415_v54, %v6426_v19  ;;  %v6379_v40 = vpop.xlane.xlu1 %6378  ;;  %v6429_v20 = vmul.f32 0.03125, %v6376_v39  ;;  %v14603_v48 = vsub.f32 %v14431_v28, %v6428_v12 }
 0xe28   : > { %v6407_v59 = vsel %vm1030_vm5, %v14554_v26, 0.0  ;;  %v6430_v63 = vmul.f32 0.03125, %v6379_v40 }
 0xe29   : > { %6408 = vadd.xlane.f32.xlu1 %v6407_v59  ;;  %v6478_v7 = vmul.f32 %v14603_v48, %v14603_v48 }
 0xe2b   : > { %6501 = vadd.xlane.f32.xlu0 %v6500_v27  ;;  %v6475_v27 = vmul.f32 %v14583_v49, %v14583_v49 }
 0xe2d   : > { %6504 = vadd.xlane.f32.xlu1 %v6503_v11  ;;  %v6303_v15 = vpop.f32.mrb[252].mxu0  ;;  %v9689_v11 = vld [vmem:[#allocation2 + $0xc0] sm:$0xf]  ;;  %v6512_v19 = vsel %vm1030_vm5, %v6475_v27, 0.0 }
 0xe2e   : > { %v6304_v55 = vadd.f32 %v14345_v37, %v6303_v15  ;;  %v8286_v38 = vpop.f32.mrb[253].mxu0 }
 0xe2f   : > { %v6306_v13 = vpop.f32.mrb[254].mxu0  ;;  %v6509_v38 = vsel %vm1030_vm5, %v6474_v30, 0.0 }
 0xe30   : > { %v14573_v8 = vadd.f32 %v9687_v57, %v6304_v55  ;;  %v6307_v56 = vadd.f32 %v14345_v37, %v6306_v13  ;;  %v8287_v25 = vpop.f32.mrb[255].mxu0  ;;  %v6476_v57 = vmul.f32 %v14590_v41, %v14590_v41 }
 0xe31   : > { %v14610_v25 = vsub.f32 %v14483_v17, %v6429_v20 }
 0xe32   : > { %16470 = vst [vmem:[#allocation158_spill] sm:$0xff] %v14573_v8  ;;  %v14576_v29 = vadd.f32 %v9688_v43, %v6307_v56  ;;  %v6410_v6 = vsel %vm1030_vm5, %v14573_v8, 0.0  ;;  %v6385_v56 = vpop.xlane.xlu1 %6384  ;;  %v6477_v43 = vmul.f32 %v14597_v23, %v14597_v23  ;;  %v6515_v45 = vsel %vm1030_vm5, %v6476_v57, 0.0 }
 0xe33   : > { %6411 = vadd.xlane.f32.xlu0 %v6410_v6  ;;  %v14616_v6 = vsub.f32 %v14486_v9, %v6430_v63  ;;  %v6432_v51 = vmul.f32 0.03125, %v6385_v56  ;;  %v6479_v39 = vmul.f32 %v14610_v25, %v14610_v25 }
 0xe34   : > { %16471 = vst [vmem:[#allocation165_spill] sm:$0xff] %v14576_v29  ;;  %v6413_v21 = vsel %vm1030_vm5, %v14576_v29, 0.0  ;;  %v6518_v30 = vsel %vm1030_vm5, %v6477_v43, 0.0 }
 0xe35   : > { %6414 = vadd.xlane.f32.xlu1 %v6413_v21  ;;  %v6311_v1 = vpop.f32.mrb[0].mxu0  ;;  %v14629_v12 = vsub.f32 %v14496_v62, %v6432_v51 }
 0xe36   : > { %v6312_v18 = vadd.f32 %v14345_v37, %v6311_v1  ;;  %v8290_v59 = vpop.f32.mrb[1].mxu0  ;;  %v6382_v37 = vpop.xlane.xlu0 %6381  ;;  %v8905_v1 = vld [vmem:[%s9913_s22] sm:$0xff]  }
 0xe37   : > { %6507 = vadd.xlane.f32.xlu0 %v6506_v36  ;;  %v6314_v47 = vpop.f32.mrb[2].mxu0  ;;  %v6431_v44 = vmul.f32 0.03125, %v6382_v37  ;;  %v6480_v59 = vmul.f32 %v14616_v6, %v14616_v6  ;;  %8293 = vmatpush3.bf16.msra.mxu1 %v8905_v1  ;;  %v6524_v36 = vsel %vm1030_vm5, %v6479_v39, 0.0  ;;  %v6482_v20 = vmul.f32 %v14629_v12, %v14629_v12 }
 0xe38   : > { %v14599_v15 = vadd.f32 %v9689_v11, %v6312_v18  ;;  %v8291_v55 = vpop.f32.mrb[3].mxu0  ;;  %v6521_v18 = vsel %vm1030_vm5, %v6478_v7, 0.0  ;;  %8294 = vmatprep.subr.bf16.mxu1 %v16265_v14  ;;  %v8906_v47 = vld [vmem:[%s9913_s22 + $0x8] sm:$0xff]  }
 0xe39   : > { %6510 = vadd.xlane.f32.xlu1 %v6509_v38  ;;  %v14622_v21 = vsub.f32 %v14493_v32, %v6431_v44  ;;  %v6527_v27 = vsel %vm1030_vm5, %v6480_v59, 0.0  ;;  %v6533_v55 = vsel %vm1030_vm5, %v6482_v20, 0.0 }
 0xe3a   : > { %16472 = vst [vmem:[#allocation167_spill] sm:$0xff] %v14599_v15  ;;  %v6416_v13 = vsel %vm1103_vm6, %v14599_v15, 0.0 }
 0xe3b   : > { %6417 = vadd.xlane.f32.xlu0 %v6416_v13  ;;  %v6481_v40 = vmul.f32 %v14622_v21, %v14622_v21  ;;  %8295 = vmatpush3.bf16.msra.mxu1 %v8906_v47 }
 0xe3d   : > { %6513 = vadd.xlane.f32.xlu1 %v6512_v19  ;;  %v6530_v11 = vsel %vm1030_vm5, %v6481_v40, 0.0 }
 0xe3f   : > { %6516 = vadd.xlane.f32.xlu0 %v6515_v45 }
 0xe41   : > { %6519 = vadd.xlane.f32.xlu1 %v6518_v30 }
 0xe43   : > { %6522 = vadd.xlane.f32.xlu0 %v6521_v18 }
 0xe45   : > { %6525 = vadd.xlane.f32.xlu1 %v6524_v36 }
 0xe47   : > { %6528 = vadd.xlane.f32.xlu0 %v6527_v27 }
 0xe49   : > { %6531 = vadd.xlane.f32.xlu1 %v6530_v11 }
 0xe4b   : > { %6534 = vadd.xlane.f32.xlu0 %v6533_v55 }
 0xe67   : > { %v6388_v38 = vpop.xlane.xlu0 %6387 }
 0xe68   : > { %v6433_v37 = vmul.f32 0.03125, %v6388_v38 }
 0xe69   : > { %v6391_v63 = vpop.xlane.xlu1 %6390 }
 0xe6a   : > { %v14645_v13 = vsub.f32 %v14503_v10, %v6433_v37  ;;  %v6434_v57 = vmul.f32 0.03125, %v6391_v63 }
 0xe6c   : > { %v14648_v56 = vsub.f32 %v14506_v2, %v6434_v57  ;;  %v6483_v44 = vmul.f32 %v14645_v13, %v14645_v13 }
 0xe6e   : > { %v6536_v19 = vsel %vm1030_vm5, %v6483_v44, 0.0  ;;  %v6484_v43 = vmul.f32 %v14648_v56, %v14648_v56 }
 0xe6f   : > { %6537 = vadd.xlane.f32.xlu1 %v6536_v19 }
 0xe70   : > { %v6539_v51 = vsel %vm1030_vm5, %v6484_v43, 0.0 }
 0xe71   : > { %6540 = vadd.xlane.f32.xlu0 %v6539_v51 }
 0xe9d   : > { %v6394_v45 = vpop.xlane.xlu0 %6393 }
 0xe9e   : > { %v6435_v7 = vmul.f32 0.03125, %v6394_v45 }
 0xe9f   : > { %v6397_v30 = vpop.xlane.xlu1 %6396 }
 0xea0   : > { %v14657_v39 = vsub.f32 %v14513_v61, %v6435_v7  ;;  %v6436_v1 = vmul.f32 0.03125, %v6397_v30 }
 0xea2   : > { %v14660_v18 = vsub.f32 %v14516_v34, %v6436_v1  ;;  %v6485_v59 = vmul.f32 %v14657_v39, %v14657_v39 }
 0xea4   : > { %v6542_v36 = vsel %vm1030_vm5, %v6485_v59, 0.0  ;;  %v6486_v40 = vmul.f32 %v14660_v18, %v14660_v18 }
 0xea5   : > { %6543 = vadd.xlane.f32.xlu1 %v6542_v36 }
 0xea6   : > { %v6545_v47 = vsel %vm1030_vm5, %v6486_v40, 0.0 }
 0xea7   : > { %6546 = vadd.xlane.f32.xlu0 %v6545_v47 }
 0xea8   : > { %v6400_v27 = vpop.xlane.xlu0 %6399 }
 0xea9   : > { %v6437_v20 = vmul.f32 0.03125, %v6400_v27 }
 0xeaa   : > { %v6403_v11 = vpop.xlane.xlu1 %6402 }
 0xeab   : > { %v14669_v55 = vsub.f32 %v14529_v5, %v6437_v20  ;;  %v6438_v38 = vmul.f32 0.03125, %v6403_v11 }
 0xeac   : > { %v6496_v37 = vpop.xlane.xlu0 %6495 }
 0xead   : > { %v14672_v63 = vsub.f32 %v14532_v31, %v6438_v38  ;;  %v6569_v57 = vmul.f32 0.03125, %v6496_v37  ;;  %v6487_v44 = vmul.f32 %v14669_v55, %v14669_v55 }
 0xeae   : > { %v6499_v19 = vpop.xlane.xlu1 %6498 }
 0xeaf   : > { %v6594_v43 = vadd.f32 1e-06, %v6569_v57  ;;  %v6570_v51 = vmul.f32 0.03125, %v6499_v19  ;;  %v6548_v45 = vsel %vm1030_vm5, %v6487_v44, 0.0  ;;  %v6488_v7 = vmul.f32 %v14672_v63, %v14672_v63  ;;  %v14693_v19 = vld [vmem:[%s16473_s11] ss:$0 sm:$0xff] }
 0xeb0   : > { %6549 = vadd.xlane.f32.xlu1 %v6548_v45 }
 0xeb1   : > { %9565 = vrsqrt.f32 %v6594_v43  ;;  %v6595_v30 = vadd.f32 1e-06, %v6570_v51  ;;  %v6551_v1 = vsel %vm1030_vm5, %v6488_v7, 0.0 }
 0xeb2   : > { %6552 = vadd.xlane.f32.xlu0 %v6551_v1 }
 0xeb3   : > { %9567 = vrsqrt.f32 %v6595_v30 }
 0xeb4   : > { %v6406_v59 = vpop.xlane.xlu0 %6405 }
 0xeb5   : > { %v6439_v36 = vmul.f32 0.03125, %v6406_v59 }
 0xeb6   : > { %v6409_v40 = vpop.xlane.xlu1 %6408 }
 0xeb7   : > { %v14681_v47 = vsub.f32 %v14551_v22, %v6439_v36  ;;  %v6440_v27 = vmul.f32 0.03125, %v6409_v40 }
 0xeb8   : > { %v6502_v20 = vpop.xlane.xlu0 %6501 }
 0xeb9   : > { %v14684_v11 = vsub.f32 %v14554_v26, %v6440_v27  ;;  %v6571_v38 = vmul.f32 0.03125, %v6502_v20  ;;  %v6489_v37 = vmul.f32 %v14681_v47, %v14681_v47  ;;  %v14707_v20 = vld [vmem:[%s16474_s16] ss:$0 sm:$0xff] }
 0xeba   : > { %v6505_v57 = vpop.xlane.xlu1 %6504 }
 0xebb   : > { %v9566_v44 = vpop.eup %9565  ;;  %v6596_v43 = vadd.f32 1e-06, %v6571_v38  ;;  %v6572_v51 = vmul.f32 0.03125, %v6505_v57  ;;  %v6554_v45 = vsel %vm1030_vm5, %v6489_v37, 0.0  ;;  %v6490_v7 = vmul.f32 %v14684_v11, %v14684_v11 }
 0xebc   : > { %v6644_v30 = vmul.f32 %v9566_v44, %v14523_v42  ;;  %6555 = vadd.xlane.f32.xlu1 %v6554_v45 }
 0xebd   : > { %v9568_v1 = vpop.eup %9567  ;;  %9569 = vrsqrt.f32 %v6596_v43  ;;  %v6597_v59 = vadd.f32 1e-06, %v6572_v51  ;;  %v6557_v36 = vsel %vm1030_vm5, %v6490_v7, 0.0 }
 0xebe   : > { %v6675_v40 = vmul.f32 %v14693_v19, %v6644_v30  ;;  %v6645_v27 = vmul.f32 %v9568_v1, %v14527_v0  ;;  %6558 = vadd.xlane.f32.xlu0 %v6557_v36 }
 0xebf   : > { %9571 = vrsqrt.f32 %v6597_v59 }
 0xec0   : > { %v6676_v42 = vmul.f32 %v14693_v19, %v6645_v27  ;;  %v6412_v38 = vpop.xlane.xlu0 %6411  ;;  %v6706_v57 = vadd.f32 %v14707_v20, %v6675_v40 }
 0xec1   : > { %v6441_v37 = vmul.f32 0.03125, %v6412_v38 }
 0xec2   : > { %v6707_v44 = vadd.f32 %v14707_v20, %v6676_v42  ;;  %v6415_v43 = vpop.xlane.xlu1 %6414 }
 0xec3   : > { %v14713_v51 = vsub.f32 %v14573_v8, %v6441_v37  ;;  %v6442_v0 = vmul.f32 0.03125, %v6415_v43 }
 0xec4   : > { %v6731_v45 = vpack.c.bf16 %v6707_v44, %v6706_v57  ;;  %v6508_v7 = vpop.xlane.xlu0 %6507 }
 0xec5   : > { %v14716_v30 = vsub.f32 %v14576_v29, %v6442_v0  ;;  %v6573_v1 = vmul.f32 0.03125, %v6508_v7  ;;  %v6491_v59 = vmul.f32 %v14713_v51, %v14713_v51 }
 0xec6   : > { %8297 = vmatmul.mubr.msk.bf16.vlgmr.msra.gmra.mrb[4].mxu1 %vm1030_vm5, %v6731_v45  ;;  %v6511_v36 = vpop.xlane.xlu1 %6510 }
 0xec7   : > { %v9570_v40 = vpop.eup %9569  ;;  %v6598_v27 = vadd.f32 1e-06, %v6573_v1  ;;  %v6574_v42 = vmul.f32 0.03125, %v6511_v36  ;;  %v6560_v38 = vsel %vm1030_vm5, %v6491_v59, 0.0  ;;  %v6492_v37 = vmul.f32 %v14716_v30, %v14716_v30  ;;  %8300 = vmatprep.mubr.msk.bf16.mxu1 %vm9733_vm7, %v16265_v14 }
 0xec8   : > { %v6646_v57 = vmul.f32 %v9570_v40, %v14545_v35  ;;  %6561 = vadd.xlane.f32.xlu1 %v6560_v38  ;;  %v6418_v44 = vpop.xlane.xlu0 %6417 }
 0xec9   : > { %v9572_v43 = vpop.eup %9571  ;;  %9573 = vrsqrt.f32 %v6598_v27  ;;  %v6599_v0 = vadd.f32 1e-06, %v6574_v42  ;;  %v6443_v45 = vmul.f32 0.03125, %v6418_v44  ;;  %v6563_v7 = vsel %vm1030_vm5, %v6492_v37, 0.0 }
 0xeca   : > { %v6677_v1 = vmul.f32 %v14693_v19, %v6646_v57  ;;  %v6647_v59 = vmul.f32 %v9572_v43, %v14549_v52  ;;  %v6514_v36 = vpop.xlane.xlu1 %6513  ;;  %6564 = vadd.xlane.f32.xlu0 %v6563_v7 }
 0xecb   : > { %9575 = vrsqrt.f32 %v6599_v0  ;;  %v14731_v29 = vsub.f32 %v14599_v15, %v6443_v45  ;;  %v6575_v8 = vmul.f32 0.03125, %v6514_v36 }
 0xecc   : > { %v6678_v35 = vmul.f32 %v14693_v19, %v6647_v59  ;;  %v6517_v40 = vpop.xlane.xlu0 %6516  ;;  %v6708_v37 = vadd.f32 %v14707_v20, %v6677_v1 }
 0xecd   : > { %v6600_v38 = vadd.f32 1e-06, %v6575_v8  ;;  %v6576_v27 = vmul.f32 0.03125, %v6517_v40  ;;  %v6493_v42 = vmul.f32 %v14731_v29, %v14731_v29 }
 0xece   : > { %v6709_v57 = vadd.f32 %v14707_v20, %v6678_v35  ;;  %v6520_v52 = vpop.xlane.xlu1 %6519 }
 0xecf   : > { %9577 = vrsqrt.f32 %v6600_v38  ;;  %v6601_v44 = vadd.f32 1e-06, %v6576_v27  ;;  %v6577_v43 = vmul.f32 0.03125, %v6520_v52  ;;  %v6566_v0 = vsel %vm1103_vm6, %v6493_v42, 0.0 }
 0xed0   : > { %v6732_v45 = vpack.c.bf16 %v6709_v57, %v6708_v37  ;;  %6567 = vadd.xlane.f32.xlu1 %v6566_v0  ;;  %v6523_v7 = vpop.xlane.xlu0 %6522 }
 0xed1   : > { %9579 = vrsqrt.f32 %v6601_v44  ;;  %v6602_v59 = vadd.f32 1e-06, %v6577_v43  ;;  %v6578_v8 = vmul.f32 0.03125, %v6523_v7 }
 0xed2   : > { %8301 = vmatmul.mubr.msk.bf16.gmra.mrb[8].mxu1 %vm1030_vm5, %v6732_v45  ;;  %v6526_v36 = vpop.xlane.xlu1 %6525 }
 0xed3   : > { %v9574_v40 = vpop.eup %9573  ;;  %v6603_v15 = vadd.f32 1e-06, %v6578_v8  ;;  %8304 = vmatprep.mubr.msk.bf16.mxu1 %vm9733_vm7, %v16265_v14  ;;  %9581 = vrsqrt.f32 %v6602_v59  ;;  %v6579_v27 = vmul.f32 0.03125, %v6526_v36 }
 0xed4   : > { %v6648_v1 = vmul.f32 %v9574_v40, %v14567_v53  ;;  %v6529_v35 = vpop.xlane.xlu0 %6528 }
 0xed5   : > { %v9576_v38 = vpop.eup %9575  ;;  %9583 = vrsqrt.f32 %v6603_v15  ;;  %v6580_v42 = vmul.f32 0.03125, %v6529_v35  ;;  %v6604_v45 = vadd.f32 1e-06, %v6579_v27 }
 0xed6   : > { %v6679_v37 = vmul.f32 %v14693_v19, %v6648_v1  ;;  %v6649_v57 = vmul.f32 %v9576_v38, %v14571_v3  ;;  %v6532_v8 = vpop.xlane.xlu1 %6531 }
 0xed7   : > { %v6605_v52 = vadd.f32 1e-06, %v6580_v42  ;;  %v6581_v3 = vmul.f32 0.03125, %v6532_v8 }
 0xed8   : > { %v6680_v44 = vmul.f32 %v14693_v19, %v6649_v57  ;;  %v6535_v43 = vpop.xlane.xlu0 %6534  ;;  %v6710_v7 = vadd.f32 %v14707_v20, %v6679_v37 }
 0xed9   : > { %v9578_v0 = vpop.eup %9577  ;;  %9585 = vrsqrt.f32 %v6605_v52  ;;  %v6582_v36 = vmul.f32 0.03125, %v6535_v43  ;;  %v6606_v52 = vadd.f32 1e-06, %v6581_v3 }
 0xeda   : > { %v6711_v53 = vadd.f32 %v14707_v20, %v6680_v44  ;;  %v6650_v59 = vmul.f32 %v9578_v0, %v14583_v49  ;;  %9587 = vrsqrt.f32 %v6604_v45 }
 0xedb   : > { %v9580_v15 = vpop.eup %9579  ;;  %v6607_v37 = vadd.f32 1e-06, %v6582_v36 }
 0xedc   : > { %v6733_v40 = vpack.c.bf16 %v6711_v53, %v6710_v7  ;;  %v6651_v1 = vmul.f32 %v9580_v15, %v14590_v41  ;;  %v6681_v38 = vmul.f32 %v14693_v19, %v6650_v59 }
 0xedd   : > { %v9582_v35 = vpop.eup %9581  ;;  %9589 = vrsqrt.f32 %v6607_v37 }
 0xede   : > { %v6682_v27 = vmul.f32 %v14693_v19, %v6651_v1  ;;  %8305 = vmatmul.mubr.msk.bf16.gmra.mrb[12].mxu1 %vm1030_vm5, %v6733_v40  ;;  %v6712_v41 = vadd.f32 %v14707_v20, %v6681_v38  ;;  %v6652_v44 = vmul.f32 %v9582_v35, %v14597_v23  ;;  %9591 = vrsqrt.f32 %v6606_v52 }
 0xedf   : > { %v9584_v42 = vpop.eup %9583  ;;  %8308 = vmatprep.mubr.msk.bf16.mxu1 %vm9733_vm7, %v16265_v14 }
 0xee0   : > { %v6713_v49 = vadd.f32 %v14707_v20, %v6682_v27  ;;  %v6653_v57 = vmul.f32 %v9584_v42, %v14603_v48  ;;  %v6683_v7 = vmul.f32 %v14693_v19, %v6652_v44 }
 0xee2   : > { %v6734_v43 = vpack.c.bf16 %v6713_v49, %v6712_v41  ;;  %v6684_v0 = vmul.f32 %v14693_v19, %v6653_v57  ;;  %v6714_v23 = vadd.f32 %v14707_v20, %v6683_v7 }
 0xee3   : > { %v9586_v45 = vpop.eup %9585 }
 0xee4   : > { %v9588_v53 = vpop.eup %9587  ;;  %v6715_v48 = vadd.f32 %v14707_v20, %v6684_v0  ;;  %v6655_v59 = vmul.f32 %v9586_v45, %v14616_v6 }
 0xee5   : > { %v6654_v8 = vmul.f32 %v9588_v53, %v14610_v25 }
 0xee6   : > { %8309 = vmatmul.mubr.msk.bf16.gmra.mrb[16].mxu1 %vm1030_vm5, %v6734_v43  ;;  %v6735_v15 = vpack.c.bf16 %v6715_v48, %v6714_v23  ;;  %v6686_v36 = vmul.f32 %v14693_v19, %v6655_v59 }
 0xee7   : > { %8312 = vmatprep.mubr.msk.bf16.mxu1 %vm9733_vm7, %v16265_v14  ;;  %v9590_v40 = vpop.eup %9589  ;;  %v6685_v1 = vmul.f32 %v14693_v19, %v6654_v8 }
 0xee8   : > { %v9592_v3 = vpop.eup %9591  ;;  %v6717_v35 = vadd.f32 %v14707_v20, %v6686_v36  ;;  %v6657_v6 = vmul.f32 %v9590_v40, %v14629_v12  ;;  %v8909_v40 = vld [vmem:[%s9927_s29 + $0x10] sm:$0xff]  }
 0xee9   : > { %v6716_v38 = vadd.f32 %v14707_v20, %v6685_v1  ;;  %v6656_v25 = vmul.f32 %v9592_v3, %v14622_v21  ;;  %v8910_v1 = vld [vmem:[%s9927_s29 + $0x18] sm:$0xff]   ;;  %v8911_v3 = vld [vmem:[%s9927_s29 + $0x20] sm:$0xff]  }
 0xeea   : > { %v6688_v42 = vmul.f32 %v14693_v19, %v6657_v6 }
 0xeeb   : > { %v6736_v27 = vpack.c.bf16 %v6717_v35, %v6716_v38  ;;  %v6687_v37 = vmul.f32 %v14693_v19, %v6656_v25  ;;  %v8912_v35 = vld [vmem:[%s9927_s29 + $0x28] sm:$0xff]  }
 0xeec   : > { %v6719_v49 = vadd.f32 %v14707_v20, %v6688_v42 }
 0xeed   : > { %v6718_v57 = vadd.f32 %v14707_v20, %v6687_v37  ;;  %v8913_v37 = vld [vmem:[%s9927_s29 + $0x30] sm:$0xff]  }
 0xeee   : > { %8313 = vmatmul.mubr.msk.bf16.gmra.mrb[20].mxu1 %vm1030_vm5, %v6735_v15 }
 0xeef   : > { %8316 = vmatprep.mubr.msk.bf16.mxu1 %vm9733_vm7, %v16265_v14  ;;  %v6737_v52 = vpack.c.bf16 %v6719_v49, %v6718_v57  ;;  %v8914_v57 = vld [vmem:[%s9927_s29 + $0x38] sm:$0xff]  }
 0xef6   : > { %8317 = vmatmul.mubr.msk.bf16.gmra.mrb[24].mxu1 %vm1030_vm5, %v6736_v27 }
 0xef7   : > { %8320 = vmatprep.mubr.msk.bf16.mxu1 %vm9733_vm7, %v16265_v14 }
 0xefc   : > { %v6538_v12 = vpop.xlane.xlu1 %6537 }
 0xefd   : > { %v6583_v41 = vmul.f32 0.03125, %v6538_v12 }
 0xefe   : > { %8321 = vmatmul.mubr.msk.bf16.gmra.mrb[28].mxu1 %vm1030_vm5, %v6737_v52  ;;  %v6541_v21 = vpop.xlane.xlu0 %6540 }
 0xeff   : > { %v6608_v44 = vadd.f32 1e-06, %v6583_v41  ;;  %v6584_v43 = vmul.f32 0.03125, %v6541_v21  ;;  %8324 = vmatprep.mubr.msk.bf16.mxu1 %vm9733_vm7, %v16265_v14 }
 0xf01   : > { %9593 = vrsqrt.f32 %v6608_v44  ;;  %v6609_v0 = vadd.f32 1e-06, %v6584_v43 }
 0xf03   : > { %9595 = vrsqrt.f32 %v6609_v0 }
 0xf0b   : > { %v9594_v45 = vpop.eup %9593 }
 0xf0c   : > { %v6658_v7 = vmul.f32 %v9594_v45, %v14645_v13  ;;  %v8907_v13 = vld [vmem:[%s9927_s29] sm:$0xff]  }
 0xf0d   : > { %v9596_v53 = vpop.eup %9595  ;;  %8349 = vmatpush3.bf16.msra.mxu0 %v8907_v13 }
 0xf0e   : > { %v6689_v48 = vmul.f32 %v14693_v19, %v6658_v7  ;;  %v6659_v59 = vmul.f32 %v9596_v53, %v14648_v56  ;;  %8350 = vmatprep.subr.bf16.mxu0 %v16265_v14  ;;  %v8908_v56 = vld [vmem:[%s9927_s29 + $0x8] sm:$0xff]  }
 0xf10   : > { %v6690_v23 = vmul.f32 %v14693_v19, %v6659_v59  ;;  %v6720_v8 = vadd.f32 %v14707_v20, %v6689_v48 }
 0xf11   : > { %8351 = vmatpush3.bf16.msra.mxu0 %v8908_v56 }
 0xf12   : > { %v6721_v15 = vadd.f32 %v14707_v20, %v6690_v23  ;;  %8352 = vmatprep.subr.bf16.mxu0 %v16265_v14 }
 0xf14   : > { %v6738_v36 = vpack.c.bf16 %v6721_v15, %v6720_v8 }
 0xf15   : > { %8353 = vmatpush3.bf16.msra.mxu0 %v8909_v40 }
 0xf16   : > { %8325 = vmatmul.mubr.msk.bf16.gmra.mrb[32].mxu1 %vm1030_vm5, %v6738_v36  ;;  %8354 = vmatprep.subr.bf16.mxu0 %v16265_v14 }
 0xf17   : > { %8328 = vmatprep.mubr.msk.bf16.mxu1 %vm9733_vm7, %v16265_v14 }
 0xf19   : > { %8355 = vmatpush3.bf16.msra.mxu0 %v8910_v1 }
 0xf1a   : > { %8356 = vmatprep.subr.bf16.mxu0 %v16265_v14 }
 0xf1d   : > { %8357 = vmatpush3.bf16.msra.mxu0 %v8911_v3 }
 0xf1e   : > { %8358 = vmatprep.subr.bf16.mxu0 %v16265_v14 }
 0xf21   : > { %8359 = vmatpush3.bf16.msra.mxu0 %v8912_v35 }
 0xf22   : > { %8360 = vmatprep.subr.bf16.mxu0 %v16265_v14 }
 0xf25   : > { %8361 = vmatpush3.bf16.msra.mxu0 %v8913_v37 }
 0xf26   : > { %8362 = vmatprep.subr.bf16.mxu0 %v16265_v14 }
 0xf29   : > { %8363 = vmatpush3.bf16.msra.mxu0 %v8914_v57 }
 0xf32   : > { %v6544_v6 = vpop.xlane.xlu1 %6543 }
 0xf33   : > { %v6585_v38 = vmul.f32 0.03125, %v6544_v6 }
 0xf34   : > { %v6547_v25 = vpop.xlane.xlu0 %6546 }
 0xf35   : > { %v6610_v27 = vadd.f32 1e-06, %v6585_v38  ;;  %v6586_v42 = vmul.f32 0.03125, %v6547_v25 }
 0xf37   : > { %9597 = vrsqrt.f32 %v6610_v27  ;;  %v6611_v49 = vadd.f32 1e-06, %v6586_v42 }
 0xf39   : > { %9599 = vrsqrt.f32 %v6611_v49 }
 0xf3d   : > { %v6550_v52 = vpop.xlane.xlu1 %6549 }
 0xf3e   : > { %v6587_v12 = vmul.f32 0.03125, %v6550_v52 }
 0xf3f   : > { %v6553_v41 = vpop.xlane.xlu0 %6552 }
 0xf40   : > { %v6612_v21 = vadd.f32 1e-06, %v6587_v12  ;;  %v6588_v44 = vmul.f32 0.03125, %v6553_v41 }
 0xf41   : > { %v9598_v43 = vpop.eup %9597 }
 0xf42   : > { %v6660_v0 = vmul.f32 %v9598_v43, %v14657_v39  ;;  %9601 = vrsqrt.f32 %v6612_v21  ;;  %v6613_v45 = vadd.f32 1e-06, %v6588_v44 }
 0xf43   : > { %v9600_v7 = vpop.eup %9599 }
 0xf44   : > { %v6691_v53 = vmul.f32 %v14693_v19, %v6660_v0  ;;  %v6661_v48 = vmul.f32 %v9600_v7, %v14660_v18  ;;  %9603 = vrsqrt.f32 %v6613_v45 }
 0xf46   : > { %v6692_v59 = vmul.f32 %v14693_v19, %v6661_v48  ;;  %v6722_v23 = vadd.f32 %v14707_v20, %v6691_v53 }
 0xf48   : > { %v6723_v8 = vadd.f32 %v14707_v20, %v6692_v59 }
 0xf49   : > { %v6556_v15 = vpop.xlane.xlu1 %6555 }
 0xf4a   : > { %v6739_v36 = vpack.c.bf16 %v6723_v8, %v6722_v23  ;;  %v6589_v13 = vmul.f32 0.03125, %v6556_v15 }
 0xf4b   : > { %v6559_v56 = vpop.xlane.xlu0 %6558 }
 0xf4c   : > { %v9602_v40 = vpop.eup %9601  ;;  %v6614_v39 = vadd.f32 1e-06, %v6589_v13  ;;  %v6590_v1 = vmul.f32 0.03125, %v6559_v56  ;;  %8329 = vmatmul.mubr.msk.bf16.gmra.mrb[36].mxu1 %vm1030_vm5, %v6739_v36 }
 0xf4d   : > { %v6662_v3 = vmul.f32 %v9602_v40, %v14669_v55  ;;  %8332 = vmatprep.mubr.msk.bf16.mxu1 %vm9733_vm7, %v16265_v14 }
 0xf4e   : > { %v9604_v18 = vpop.eup %9603  ;;  %9605 = vrsqrt.f32 %v6614_v39  ;;  %v6615_v35 = vadd.f32 1e-06, %v6590_v1 }
 0xf4f   : > { %v6693_v6 = vmul.f32 %v14693_v19, %v6662_v3  ;;  %v6663_v38 = vmul.f32 %v9604_v18, %v14672_v63 }
 0xf50   : > { %9607 = vrsqrt.f32 %v6615_v35 }
 0xf51   : > { %v6694_v25 = vmul.f32 %v14693_v19, %v6663_v38  ;;  %v6724_v27 = vadd.f32 %v14707_v20, %v6693_v6  ;;  %v14856_v6 = vld [vmem:[%s720_s0] ss:$0 sm:$0xff] }
 0xf53   : > { %v6725_v42 = vadd.f32 %v14707_v20, %v6694_v25 }
 0xf55   : > { %v6740_v37 = vpack.c.bf16 %v6725_v42, %v6724_v27  ;;  %v6562_v49 = vpop.xlane.xlu1 %6561 }
 0xf56   : > { %v6591_v55 = vmul.f32 0.03125, %v6562_v49 }
 0xf57   : > { %8333 = vmatmul.mubr.msk.bf16.gmra.mrb[40].mxu1 %vm1030_vm5, %v6740_v37  ;;  %v6565_v57 = vpop.xlane.xlu0 %6564 }
 0xf58   : > { %v9606_v52 = vpop.eup %9605  ;;  %v6616_v12 = vadd.f32 1e-06, %v6591_v55  ;;  %v6592_v41 = vmul.f32 0.03125, %v6565_v57  ;;  %8336 = vmatprep.mubr.msk.bf16.mxu1 %vm9733_vm7, %v16265_v14 }
 0xf59   : > { %v6664_v63 = vmul.f32 %v9606_v52, %v14681_v47 }
 0xf5a   : > { %v9608_v21 = vpop.eup %9607  ;;  %9609 = vrsqrt.f32 %v6616_v12  ;;  %v6617_v44 = vadd.f32 1e-06, %v6592_v41 }
 0xf5b   : > { %v6695_v43 = vmul.f32 %v14693_v19, %v6664_v63  ;;  %v6665_v0 = vmul.f32 %v9608_v21, %v14684_v11 }
 0xf5c   : > { %9611 = vrsqrt.f32 %v6617_v44 }
 0xf5d   : > { %v6696_v45 = vmul.f32 %v14693_v19, %v6665_v0  ;;  %v6568_v7 = vpop.xlane.xlu1 %6567  ;;  %v6726_v48 = vadd.f32 %v14707_v20, %v6695_v43 }
 0xf5e   : > { %v6593_v53 = vmul.f32 0.03125, %v6568_v7 }
 0xf5f   : > { %v6727_v59 = vadd.f32 %v14707_v20, %v6696_v45 }
 0xf60   : > { %v6618_v23 = vadd.f32 1e-06, %v6593_v53 }
 0xf61   : > { %v6741_v8 = vpack.c.bf16 %v6727_v59, %v6726_v48 }
 0xf62   : > { %9613 = vrsqrt.f32 %v6618_v23 }
 0xf63   : > { %8337 = vmatmul.mubr.msk.bf16.gmra.mrb[44].mxu1 %vm1030_vm5, %v6741_v8 }
 0xf64   : > { %v9610_v47 = vpop.eup %9609  ;;  %8340 = vmatprep.mubr.msk.bf16.mxu1 %vm9733_vm7, %v16265_v14 }
 0xf65   : > { %v6666_v11 = vmul.f32 %v9610_v47, %v14713_v51 }
 0xf66   : > { %v9612_v15 = vpop.eup %9611 }
 0xf67   : > { %v6697_v36 = vmul.f32 %v14693_v19, %v6666_v11  ;;  %v6667_v13 = vmul.f32 %v9612_v15, %v14716_v30 }
 0xf69   : > { %v6698_v56 = vmul.f32 %v14693_v19, %v6667_v13  ;;  %v6728_v40 = vadd.f32 %v14707_v20, %v6697_v36 }
 0xf6b   : > { %v6729_v39 = vadd.f32 %v14707_v20, %v6698_v56 }
 0xf6c   : > { %v9614_v1 = vpop.eup %9613 }
 0xf6d   : > { %v6742_v3 = vpack.c.bf16 %v6729_v39, %v6728_v40  ;;  %v6668_v18 = vmul.f32 %v9614_v1, %v14731_v29 }
 0xf6f   : > { %v6699_v35 = vmul.f32 %v14693_v19, %v6668_v18  ;;  %8341 = vmatmul.mubr.msk.bf16.gmra.mrb[48].mxu1 %vm1030_vm5, %v6742_v3 }
 0xf70   : > { %8344 = vmatprep.mubr.msk.bf16.mxu1 %vm9733_vm7, %v16265_v14 }
 0xf71   : > { %v6730_v51 = vadd.f32 %v14707_v20, %v6699_v35 }
 0xf73   : > { %v6743_v30 = vpack.c.bf16 %v6730_v51, %v6730_v51 }
 0xf77   : > { %8345 = vmatmul.mubr.msk.bf16.gmra.mrb[52].mxu1 %vm1030_vm5, %v6743_v30 }
 0xf99   : > { %v6840_v38 = vpop.f32.mrb[4].mxu1 }
 0xf9a   : > { %v6841_v29 = vadd.f32 %v14856_v6, %v6840_v38  ;;  %v8298_v19 = vpop.f32.mrb[5].mxu1 }
 0xf9b   : > { %v6843_v25 = vpop.f32.mrb[6].mxu1 }
 0xf9c   : > { %v6942_v27 = vmul.f32 %v6841_v29, %v6841_v29  ;;  %v6844_v42 = vadd.f32 %v14856_v6, %v6843_v25  ;;  %v8299_v37 = vpop.f32.mrb[7].mxu1 }
 0xf9e   : > { %v6967_v49 = vmul.f32 %v6942_v27, %v6841_v29  ;;  %v6943_v20 = vmul.f32 %v6844_v42, %v6844_v42 }
 0xfa0   : > { %v6992_v55 = vmul.f32 0.044715, %v6967_v49  ;;  %v6968_v57 = vmul.f32 %v6943_v20, %v6844_v42 }
 0xfa2   : > { %v7017_v52 = vadd.f32 %v6992_v55, %v6841_v29  ;;  %v6993_v12 = vmul.f32 0.044715, %v6968_v57 }
 0xfa4   : > { %v7042_v41 = vmul.f32 0.7978846, %v7017_v52  ;;  %v7018_v63 = vadd.f32 %v6993_v12, %v6844_v42 }
 0xfa5   : > { %v6848_v21 = vpop.f32.mrb[8].mxu1 }
 0xfa6   : > { %9615 = vtanh.f32 %v7042_v41  ;;  %v7043_v44 = vmul.f32 0.7978846, %v7018_v63  ;;  %v14861_v43 = vadd.f32 %v14856_v6, %v6848_v21  ;;  %v8302_v0 = vpop.f32.mrb[9].mxu1 }
 0xfa7   : > { %v6851_v45 = vpop.f32.mrb[10].mxu1 }
 0xfa8   : > { %9617 = vtanh.f32 %v7043_v44  ;;  %v6944_v7 = vmul.f32 %v14861_v43, %v14861_v43  ;;  %v14866_v53 = vadd.f32 %v14856_v6, %v6851_v45  ;;  %v8303_v48 = vpop.f32.mrb[11].mxu1 }
 0xfaa   : > { %v6969_v59 = vmul.f32 %v6944_v7, %v14861_v43  ;;  %v6945_v23 = vmul.f32 %v14866_v53, %v14866_v53 }
 0xfac   : > { %v6994_v8 = vmul.f32 0.044715, %v6969_v59  ;;  %v6970_v47 = vmul.f32 %v6945_v23, %v14866_v53 }
 0xfae   : > { %v7019_v11 = vadd.f32 %v6994_v8, %v14861_v43  ;;  %v6995_v15 = vmul.f32 0.044715, %v6970_v47 }
 0xfb0   : > { %v9616_v36 = vpop.eup %9615  ;;  %v7044_v13 = vmul.f32 0.7978846, %v7019_v11  ;;  %v7020_v56 = vadd.f32 %v6995_v15, %v14866_v53 }
 0xfb1   : > { %v7092_v40 = vadd.f32 1.0, %v9616_v36  ;;  %v6856_v39 = vpop.f32.mrb[12].mxu1 }
 0xfb2   : > { %v9618_v1 = vpop.eup %9617  ;;  %9619 = vtanh.f32 %v7044_v13  ;;  %v7045_v3 = vmul.f32 0.7978846, %v7020_v56  ;;  %v14875_v18 = vadd.f32 %v14856_v6, %v6856_v39  ;;  %v8306_v35 = vpop.f32.mrb[13].mxu1 }
 0xfb3   : > { %v7117_v51 = vmul.f32 0.5, %v7092_v40  ;;  %v7093_v30 = vadd.f32 1.0, %v9618_v1  ;;  %v6859_v38 = vpop.f32.mrb[14].mxu1 }
 0xfb4   : > { %9621 = vtanh.f32 %v7045_v3  ;;  %v6946_v19 = vmul.f32 %v14875_v18, %v14875_v18  ;;  %v14880_v25 = vadd.f32 %v14856_v6, %v6859_v38  ;;  %v8307_v27 = vpop.f32.mrb[15].mxu1 }
 0xfb5   : > { %v7118_v37 = vmul.f32 0.5, %v7093_v30  ;;  %v7142_v55 = vmul.f32 %v7117_v51, %v6841_v29 }
 0xfb6   : > { %v6971_v49 = vmul.f32 %v6946_v19, %v14875_v18  ;;  %v6947_v20 = vmul.f32 %v14880_v25, %v14880_v25 }
 0xfb7   : > { %v7143_v57 = vmul.f32 %v7118_v37, %v6844_v42 }
 0xfb8   : > { %v6996_v52 = vmul.f32 0.044715, %v6971_v49  ;;  %v6972_v12 = vmul.f32 %v6947_v20, %v14880_v25 }
 0xfb9   : > { %v7167_v41 = vpack.c.bf16 %v7143_v57, %v7142_v55  ;;  %v6864_v63 = vpop.f32.mrb[16].mxu1 }
 0xfba   : > { %v7021_v21 = vadd.f32 %v6996_v52, %v14875_v18  ;;  %v6997_v44 = vmul.f32 0.044715, %v6972_v12  ;;  %v14888_v0 = vadd.f32 %v14856_v6, %v6864_v63  ;;  %v8310_v45 = vpop.f32.mrb[17].mxu1 }
 0xfbb   : > { %v6867_v7 = vpop.f32.mrb[18].mxu1  ;;  %8365 = vmatmul.mubr.bf16.vlgmr.msra.gmra.mrb[4].mxu0 %v7167_v41 }
 0xfbc   : > { %v9620_v48 = vpop.eup %9619  ;;  %v7046_v59 = vmul.f32 0.7978846, %v7021_v21  ;;  %v7022_v23 = vadd.f32 %v6997_v44, %v14880_v25  ;;  %v6948_v29 = vmul.f32 %v14888_v0, %v14888_v0  ;;  %v14894_v42 = vadd.f32 %v14856_v6, %v6867_v7  ;;  %v8311_v8 = vpop.f32.mrb[19].mxu1  ;;  %8368 = vmatprep.mubr.msk.bf16.mxu0 %vm9733_vm7, %v16265_v14 }
 0xfbd   : > { %v7094_v47 = vadd.f32 1.0, %v9620_v48 }
 0xfbe   : > { %v9622_v11 = vpop.eup %9621  ;;  %9623 = vtanh.f32 %v7046_v59  ;;  %v7047_v15 = vmul.f32 0.7978846, %v7022_v23  ;;  %v6973_v36 = vmul.f32 %v6948_v29, %v14888_v0  ;;  %v6949_v13 = vmul.f32 %v14894_v42, %v14894_v42 }
 0xfbf   : > { %v7119_v56 = vmul.f32 0.5, %v7094_v47  ;;  %v7095_v40 = vadd.f32 1.0, %v9622_v11 }
 0xfc0   : > { %9625 = vtanh.f32 %v7047_v15  ;;  %v6998_v39 = vmul.f32 0.044715, %v6973_v36  ;;  %v6974_v1 = vmul.f32 %v6949_v13, %v14894_v42 }
 0xfc1   : > { %v7120_v3 = vmul.f32 0.5, %v7095_v40  ;;  %v6872_v35 = vpop.f32.mrb[20].mxu1  ;;  %v7144_v27 = vmul.f32 %v7119_v56, %v14861_v43 }
 0xfc2   : > { %v7023_v51 = vadd.f32 %v6998_v39, %v14888_v0  ;;  %v6999_v30 = vmul.f32 0.044715, %v6974_v1  ;;  %v14904_v38 = vadd.f32 %v14856_v6, %v6872_v35  ;;  %v8314_v19 = vpop.f32.mrb[21].mxu1 }
 0xfc3   : > { %v7145_v37 = vmul.f32 %v7120_v3, %v14866_v53  ;;  %v6875_v49 = vpop.f32.mrb[22].mxu1 }
 0xfc4   : > { %v7048_v20 = vmul.f32 0.7978846, %v7023_v51  ;;  %v7024_v55 = vadd.f32 %v6999_v30, %v14894_v42  ;;  %v6950_v57 = vmul.f32 %v14904_v38, %v14904_v38  ;;  %v14912_v52 = vadd.f32 %v14856_v6, %v6875_v49  ;;  %v8315_v12 = vpop.f32.mrb[23].mxu1 }
 0xfc5   : > { %v7168_v41 = vpack.c.bf16 %v7145_v37, %v7144_v27 }
 0xfc6   : > { %9627 = vtanh.f32 %v7048_v20  ;;  %v7049_v63 = vmul.f32 0.7978846, %v7024_v55  ;;  %v6975_v21 = vmul.f32 %v6950_v57, %v14904_v38  ;;  %v6951_v43 = vmul.f32 %v14912_v52, %v14912_v52 }
 0xfc7   : > { %8369 = vmatmul.mubr.bf16.gmra.mrb[8].mxu0 %v7168_v41 }
 0xfc8   : > { %v9624_v53 = vpop.eup %9623  ;;  %9629 = vtanh.f32 %v7049_v63  ;;  %v7000_v44 = vmul.f32 0.044715, %v6975_v21  ;;  %v6976_v45 = vmul.f32 %v6951_v43, %v14912_v52  ;;  %8372 = vmatprep.mubr.msk.bf16.mxu0 %vm9733_vm7, %v16265_v14 }
 0xfc9   : > { %v7096_v7 = vadd.f32 1.0, %v9624_v53  ;;  %v6880_v48 = vpop.f32.mrb[24].mxu1 }
 0xfca   : > { %v9626_v59 = vpop.eup %9625  ;;  %v7025_v23 = vadd.f32 %v7000_v44, %v14904_v38  ;;  %v7001_v29 = vmul.f32 0.044715, %v6976_v45  ;;  %v14922_v8 = vadd.f32 %v14856_v6, %v6880_v48  ;;  %v8318_v47 = vpop.f32.mrb[25].mxu1 }
 0xfcb   : > { %v7121_v11 = vmul.f32 0.5, %v7096_v7  ;;  %v7097_v15 = vadd.f32 1.0, %v9626_v59  ;;  %v6883_v36 = vpop.f32.mrb[26].mxu1 }
 0xfcc   : > { %v7050_v13 = vmul.f32 0.7978846, %v7025_v23  ;;  %v7026_v56 = vadd.f32 %v7001_v29, %v14912_v52  ;;  %v6952_v40 = vmul.f32 %v14922_v8, %v14922_v8  ;;  %v14928_v39 = vadd.f32 %v14856_v6, %v6883_v36  ;;  %v8319_v1 = vpop.f32.mrb[27].mxu1 }
 0xfcd   : > { %v7122_v3 = vmul.f32 0.5, %v7097_v15  ;;  %v7146_v19 = vmul.f32 %v7121_v11, %v14875_v18 }
 0xfce   : > { %9631 = vtanh.f32 %v7050_v13  ;;  %v7051_v35 = vmul.f32 0.7978846, %v7026_v56  ;;  %v6977_v51 = vmul.f32 %v6952_v40, %v14922_v8  ;;  %v6953_v30 = vmul.f32 %v14928_v39, %v14928_v39 }
 0xfcf   : > { %v7147_v27 = vmul.f32 %v7122_v3, %v14880_v25 }
 0xfd0   : > { %v9628_v37 = vpop.eup %9627  ;;  %9633 = vtanh.f32 %v7051_v35  ;;  %v7002_v49 = vmul.f32 0.044715, %v6977_v51  ;;  %v6978_v20 = vmul.f32 %v6953_v30, %v14928_v39 }
 0xfd1   : > { %v7169_v55 = vpack.c.bf16 %v7147_v27, %v7146_v19  ;;  %v7098_v57 = vadd.f32 1.0, %v9628_v37  ;;  %v6888_v12 = vpop.f32.mrb[28].mxu1 }
 0xfd2   : > { %v9630_v41 = vpop.eup %9629  ;;  %v7027_v63 = vadd.f32 %v7002_v49, %v14922_v8  ;;  %v7003_v21 = vmul.f32 0.044715, %v6978_v20  ;;  %v14938_v43 = vadd.f32 %v14856_v6, %v6888_v12  ;;  %v8322_v53 = vpop.f32.mrb[29].mxu1 }
 0xfd3   : > { %v7123_v44 = vmul.f32 0.5, %v7098_v57  ;;  %v7099_v18 = vadd.f32 1.0, %v9630_v41  ;;  %v6891_v45 = vpop.f32.mrb[30].mxu1  ;;  %8373 = vmatmul.mubr.bf16.gmra.mrb[12].mxu0 %v7169_v55 }
 0xfd4   : > { %v7052_v25 = vmul.f32 0.7978846, %v7027_v63  ;;  %v7028_v7 = vadd.f32 %v7003_v21, %v14928_v39  ;;  %v6954_v48 = vmul.f32 %v14938_v43, %v14938_v43  ;;  %v6892_v59 = vadd.f32 %v14856_v6, %v6891_v45  ;;  %v8323_v23 = vpop.f32.mrb[31].mxu1  ;;  %8376 = vmatprep.mubr.msk.bf16.mxu0 %vm9733_vm7, %v16265_v14 }
 0xfd5   : > { %v7124_v29 = vmul.f32 0.5, %v7099_v18  ;;  %v7148_v36 = vmul.f32 %v7123_v44, %v14888_v0 }
 0xfd6   : > { %9635 = vtanh.f32 %v7052_v25  ;;  %v7053_v47 = vmul.f32 0.7978846, %v7028_v7  ;;  %v6979_v11 = vmul.f32 %v6954_v48, %v14938_v43  ;;  %v6955_v15 = vmul.f32 %v6892_v59, %v6892_v59 }
 0xfd7   : > { %v7149_v13 = vmul.f32 %v7124_v29, %v14894_v42 }
 0xfd8   : > { %v9632_v56 = vpop.eup %9631  ;;  %9637 = vtanh.f32 %v7053_v47  ;;  %v7004_v40 = vmul.f32 0.044715, %v6979_v11  ;;  %v6980_v1 = vmul.f32 %v6955_v15, %v6892_v59 }
 0xfd9   : > { %v7170_v3 = vpack.c.bf16 %v7149_v13, %v7148_v36  ;;  %v7100_v35 = vadd.f32 1.0, %v9632_v56 }
 0xfda   : > { %v9634_v51 = vpop.eup %9633  ;;  %v7029_v30 = vadd.f32 %v7004_v40, %v14938_v43  ;;  %v7005_v19 = vmul.f32 0.044715, %v6980_v1 }
 0xfdb   : > { %v7125_v27 = vmul.f32 0.5, %v7100_v35  ;;  %v7101_v37 = vadd.f32 1.0, %v9634_v51  ;;  %8377 = vmatmul.mubr.bf16.gmra.mrb[16].mxu0 %v7170_v3 }
 0xfdc   : > { %v7054_v49 = vmul.f32 0.7978846, %v7029_v30  ;;  %v7030_v20 = vadd.f32 %v7005_v19, %v6892_v59  ;;  %8380 = vmatprep.mubr.msk.bf16.mxu0 %vm9733_vm7, %v16265_v14 }
 0xfdd   : > { %v7126_v0 = vmul.f32 0.5, %v7101_v37  ;;  %v7150_v55 = vmul.f32 %v7125_v27, %v14904_v38 }
 0xfde   : > { %9639 = vtanh.f32 %v7054_v49  ;;  %v7055_v42 = vmul.f32 0.7978846, %v7030_v20 }
 0xfdf   : > { %v7151_v57 = vmul.f32 %v7126_v0, %v14912_v52 }
 0xfe0   : > { %v9636_v12 = vpop.eup %9635  ;;  %9641 = vtanh.f32 %v7055_v42 }
 0xfe1   : > { %v7171_v41 = vpack.c.bf16 %v7151_v57, %v7150_v55  ;;  %v7102_v63 = vadd.f32 1.0, %v9636_v12 }
 0xfe2   : > { %v9638_v21 = vpop.eup %9637 }
 0xfe3   : > { %v7127_v53 = vmul.f32 0.5, %v7102_v63  ;;  %v7103_v44 = vadd.f32 1.0, %v9638_v21  ;;  %8381 = vmatmul.mubr.bf16.gmra.mrb[20].mxu0 %v7171_v41 }
 0xfe4   : > { %8384 = vmatprep.mubr.msk.bf16.mxu0 %vm9733_vm7, %v16265_v14 }
 0xfe5   : > { %v7128_v18 = vmul.f32 0.5, %v7103_v44  ;;  %v7152_v45 = vmul.f32 %v7127_v53, %v14922_v8 }
 0xfe7   : > { %v7153_v25 = vmul.f32 %v7128_v18, %v14928_v39 }
 0xfe8   : > { %v9640_v7 = vpop.eup %9639 }
 0xfe9   : > { %v7172_v38 = vpack.c.bf16 %v7153_v25, %v7152_v45  ;;  %v7104_v48 = vadd.f32 1.0, %v9640_v7  ;;  %v6896_v52 = vpop.f32.mrb[32].mxu1 }
 0xfea   : > { %v9642_v23 = vpop.eup %9641  ;;  %v6897_v29 = vadd.f32 %v14856_v6, %v6896_v52  ;;  %v8326_v47 = vpop.f32.mrb[33].mxu1 }
 0xfeb   : > { %v7129_v11 = vmul.f32 0.5, %v7104_v48  ;;  %v7105_v15 = vadd.f32 1.0, %v9642_v23  ;;  %v6899_v36 = vpop.f32.mrb[34].mxu1  ;;  %8385 = vmatmul.mubr.bf16.gmra.mrb[24].mxu0 %v7172_v38 }
 0xfec   : > { %v6956_v13 = vmul.f32 %v6897_v29, %v6897_v29  ;;  %v6900_v56 = vadd.f32 %v14856_v6, %v6899_v36  ;;  %v8327_v40 = vpop.f32.mrb[35].mxu1  ;;  %8388 = vmatprep.mubr.msk.bf16.mxu0 %vm9733_vm7, %v16265_v14 }
 0xfed   : > { %v7130_v8 = vmul.f32 0.5, %v7105_v15  ;;  %v7154_v3 = vmul.f32 %v7129_v11, %v14938_v43 }
 0xfee   : > { %v6981_v39 = vmul.f32 %v6956_v13, %v6897_v29  ;;  %v6957_v1 = vmul.f32 %v6900_v56, %v6900_v56 }
 0xfef   : > { %v7155_v35 = vmul.f32 %v7130_v8, %v6892_v59 }
 0xff0   : > { %v7006_v51 = vmul.f32 0.044715, %v6981_v39  ;;  %v6982_v30 = vmul.f32 %v6957_v1, %v6900_v56 }
 0xff1   : > { %v7173_v19 = vpack.c.bf16 %v7155_v35, %v7154_v3 }
 0xff2   : > { %v7031_v27 = vadd.f32 %v7006_v51, %v6897_v29  ;;  %v7007_v37 = vmul.f32 0.044715, %v6982_v30 }
 0xff3   : > { %8389 = vmatmul.mubr.bf16.gmra.mrb[28].mxu0 %v7173_v19 }
 0xff4   : > { %v7056_v49 = vmul.f32 0.7978846, %v7031_v27  ;;  %v7032_v20 = vadd.f32 %v7007_v37, %v6900_v56  ;;  %8392 = vmatprep.mubr.msk.bf16.mxu0 %vm9733_vm7, %v16265_v14 }
 0xff6   : > { %9643 = vtanh.f32 %v7056_v49  ;;  %v7057_v0 = vmul.f32 0.7978846, %v7032_v20 }
 0xff8   : > { %9645 = vtanh.f32 %v7057_v0 }
0x1000   : > { %v9644_v42 = vpop.eup %9643 }
0x1001   : > { %v7106_v55 = vadd.f32 1.0, %v9644_v42 }
0x1002   : > { %v9646_v57 = vpop.eup %9645 }
0x1003   : > { %v7131_v12 = vmul.f32 0.5, %v7106_v55  ;;  %v7107_v43 = vadd.f32 1.0, %v9646_v57 }
0x1005   : > { %v7132_v59 = vmul.f32 0.5, %v7107_v43  ;;  %v7156_v41 = vmul.f32 %v7131_v12, %v6897_v29 }
0x1007   : > { %v7157_v63 = vmul.f32 %v7132_v59, %v6900_v56 }
0x1009   : > { %v7174_v21 = vpack.c.bf16 %v7157_v63, %v7156_v41 }
0x100b   : > { %8393 = vmatmul.mubr.bf16.gmra.mrb[32].mxu0 %v7174_v21 }
0x100c   : > { %8396 = vmatprep.mubr.msk.bf16.mxu0 %vm9733_vm7, %v16265_v14 }
0x101f   : > { %v6904_v53 = vpop.f32.mrb[36].mxu1 }
0x1020   : > { %v6905_v44 = vadd.f32 %v14856_v6, %v6904_v53  ;;  %v8330_v18 = vpop.f32.mrb[37].mxu1 }
0x1021   : > { %v6907_v45 = vpop.f32.mrb[38].mxu1 }
0x1022   : > { %v6958_v25 = vmul.f32 %v6905_v44, %v6905_v44  ;;  %v6908_v7 = vadd.f32 %v14856_v6, %v6907_v45  ;;  %v8331_v38 = vpop.f32.mrb[39].mxu1 }
0x1024   : > { %v6983_v48 = vmul.f32 %v6958_v25, %v6905_v44  ;;  %v6959_v52 = vmul.f32 %v6908_v7, %v6908_v7 }
0x1026   : > { %v7008_v23 = vmul.f32 0.044715, %v6983_v48  ;;  %v6984_v47 = vmul.f32 %v6959_v52, %v6908_v7 }
0x1028   : > { %v7033_v29 = vadd.f32 %v7008_v23, %v6905_v44  ;;  %v7009_v11 = vmul.f32 0.044715, %v6984_v47 }
0x102a   : > { %v7058_v15 = vmul.f32 0.7978846, %v7033_v29  ;;  %v7034_v36 = vadd.f32 %v7009_v11, %v6908_v7  ;;  %v6912_v13 = vpop.f32.mrb[40].mxu1 }
0x102b   : > { %v14970_v56 = vadd.f32 %v14856_v6, %v6912_v13  ;;  %v8334_v40 = vpop.f32.mrb[41].mxu1 }
0x102c   : > { %9647 = vtanh.f32 %v7058_v15  ;;  %v7059_v8 = vmul.f32 0.7978846, %v7034_v36  ;;  %v6915_v39 = vpop.f32.mrb[42].mxu1 }
0x102d   : > { %v6960_v1 = vmul.f32 %v14970_v56, %v14970_v56  ;;  %v6916_v3 = vadd.f32 %v14856_v6, %v6915_v39  ;;  %v8335_v35 = vpop.f32.mrb[43].mxu1 }
0x102e   : > { %9649 = vtanh.f32 %v7059_v8 }
0x102f   : > { %v6985_v51 = vmul.f32 %v6960_v1, %v14970_v56  ;;  %v6961_v30 = vmul.f32 %v6916_v3, %v6916_v3 }
0x1031   : > { %v7010_v19 = vmul.f32 0.044715, %v6985_v51  ;;  %v6986_v27 = vmul.f32 %v6961_v30, %v6916_v3 }
0x1033   : > { %v7035_v37 = vadd.f32 %v7010_v19, %v14970_v56  ;;  %v7011_v49 = vmul.f32 0.044715, %v6986_v27 }
0x1035   : > { %v7060_v20 = vmul.f32 0.7978846, %v7035_v37  ;;  %v7036_v0 = vadd.f32 %v7011_v49, %v6916_v3 }
0x1036   : > { %v9648_v42 = vpop.eup %9647  ;;  %v6920_v55 = vpop.f32.mrb[44].mxu1 }
0x1037   : > { %v7108_v57 = vadd.f32 1.0, %v9648_v42  ;;  %9651 = vtanh.f32 %v7060_v20  ;;  %v7061_v12 = vmul.f32 0.7978846, %v7036_v0  ;;  %v14978_v43 = vadd.f32 %v14856_v6, %v6920_v55  ;;  %v8338_v59 = vpop.f32.mrb[45].mxu1 }
0x1038   : > { %v9650_v41 = vpop.eup %9649  ;;  %v6923_v63 = vpop.f32.mrb[46].mxu1 }
0x1039   : > { %v7133_v21 = vmul.f32 0.5, %v7108_v57  ;;  %v7109_v53 = vadd.f32 1.0, %v9650_v41  ;;  %9653 = vtanh.f32 %v7061_v12  ;;  %v6962_v18 = vmul.f32 %v14978_v43, %v14978_v43  ;;  %v8339_v45 = vpop.f32.mrb[47].mxu1 }
0x103a   : > { %v14983_v25 = vadd.f32 %v14856_v6, %v6923_v63 }
0x103b   : > { %v7134_v38 = vmul.f32 0.5, %v7109_v53  ;;  %v6987_v48 = vmul.f32 %v6962_v18, %v14978_v43  ;;  %v7158_v23 = vmul.f32 %v7133_v21, %v6905_v44 }
0x103c   : > { %v6963_v52 = vmul.f32 %v14983_v25, %v14983_v25 }
0x103d   : > { %v7159_v47 = vmul.f32 %v7134_v38, %v6908_v7  ;;  %v7012_v29 = vmul.f32 0.044715, %v6987_v48 }
0x103e   : > { %v6988_v11 = vmul.f32 %v6963_v52, %v14983_v25 }
0x103f   : > { %v7175_v15 = vpack.c.bf16 %v7159_v47, %v7158_v23  ;;  %v7037_v36 = vadd.f32 %v7012_v29, %v14978_v43 }
0x1040   : > { %v7013_v13 = vmul.f32 0.044715, %v6988_v11 }
0x1041   : > { %v9652_v40 = vpop.eup %9651  ;;  %v7062_v8 = vmul.f32 0.7978846, %v7037_v36  ;;  %8397 = vmatmul.mubr.bf16.gmra.mrb[36].mxu0 %v7175_v15 }
0x1042   : > { %v7110_v39 = vadd.f32 1.0, %v9652_v40  ;;  %v7038_v1 = vadd.f32 %v7013_v13, %v14983_v25  ;;  %v6928_v35 = vpop.f32.mrb[48].mxu1  ;;  %8400 = vmatprep.mubr.msk.bf16.mxu0 %vm9733_vm7, %v16265_v14 }
0x1043   : > { %v9654_v51 = vpop.eup %9653  ;;  %9655 = vtanh.f32 %v7062_v8  ;;  %v6929_v44 = vadd.f32 %v14856_v6, %v6928_v35  ;;  %v8342_v7 = vpop.f32.mrb[49].mxu1 }
0x1044   : > { %v7135_v30 = vmul.f32 0.5, %v7110_v39  ;;  %v7111_v19 = vadd.f32 1.0, %v9654_v51  ;;  %v7063_v27 = vmul.f32 0.7978846, %v7038_v1  ;;  %v6931_v37 = vpop.f32.mrb[50].mxu1 }
0x1045   : > { %v6964_v49 = vmul.f32 %v6929_v44, %v6929_v44  ;;  %v6932_v20 = vadd.f32 %v14856_v6, %v6931_v37  ;;  %v8343_v0 = vpop.f32.mrb[51].mxu1 }
0x1046   : > { %v7136_v42 = vmul.f32 0.5, %v7111_v19  ;;  %9657 = vtanh.f32 %v7063_v27  ;;  %v7160_v12 = vmul.f32 %v7135_v30, %v14970_v56 }
0x1047   : > { %v6989_v55 = vmul.f32 %v6964_v49, %v6929_v44  ;;  %v6965_v57 = vmul.f32 %v6932_v20, %v6932_v20 }
0x1048   : > { %v7161_v59 = vmul.f32 %v7136_v42, %v6916_v3 }
0x1049   : > { %v7014_v41 = vmul.f32 0.044715, %v6989_v55  ;;  %v6990_v63 = vmul.f32 %v6965_v57, %v6932_v20 }
0x104a   : > { %v7176_v21 = vpack.c.bf16 %v7161_v59, %v7160_v12  ;;  %v6936_v53 = vpop.f32.mrb[52].mxu1 }
0x104b   : > { %v7039_v18 = vadd.f32 %v7014_v41, %v6929_v44  ;;  %v7015_v45 = vmul.f32 0.044715, %v6990_v63  ;;  %v6937_v38 = vadd.f32 %v14856_v6, %v6936_v53  ;;  %v8346_v48 = vpop.f32.mrb[53].mxu1  ;;  %v15010_v53 = vld [vmem:[%s728_s23] ss:$0 sm:$0xff] }
0x104c   : > { %v6939_v52 = vpop.f32.mrb[54].mxu1  ;;  %8401 = vmatmul.mubr.bf16.gmra.mrb[40].mxu0 %v7176_v21 }
0x104d   : > { %v9656_v23 = vpop.eup %9655  ;;  %v7064_v47 = vmul.f32 0.7978846, %v7039_v18  ;;  %v7040_v29 = vadd.f32 %v7015_v45, %v6932_v20  ;;  %v6966_v11 = vmul.f32 %v6937_v38, %v6937_v38  ;;  %v8347_v15 = vpop.f32.mrb[55].mxu1  ;;  %8404 = vmatprep.mubr.msk.bf16.mxu0 %vm9733_vm7, %v16265_v14 }
0x104e   : > { %v7112_v56 = vadd.f32 1.0, %v9656_v23 }
0x104f   : > { %9659 = vtanh.f32 %v7064_v47  ;;  %v7065_v3 = vmul.f32 0.7978846, %v7040_v29  ;;  %v6991_v36 = vmul.f32 %v6966_v11, %v6937_v38 }
0x1050   : > { %v9658_v13 = vpop.eup %9657  ;;  %v7137_v40 = vmul.f32 0.5, %v7112_v56 }
0x1051   : > { %v7113_v8 = vadd.f32 1.0, %v9658_v13  ;;  %9661 = vtanh.f32 %v7065_v3  ;;  %v7016_v6 = vmul.f32 0.044715, %v6991_v36 }
0x1052   : > { %v7162_v35 = vmul.f32 %v7137_v40, %v14978_v43 }
0x1053   : > { %v7138_v39 = vmul.f32 0.5, %v7113_v8  ;;  %v7041_v1 = vadd.f32 %v7016_v6, %v6937_v38 }
0x1055   : > { %v7163_v51 = vmul.f32 %v7138_v39, %v14983_v25  ;;  %v7066_v7 = vmul.f32 0.7978846, %v7041_v1 }
0x1057   : > { %v7177_v30 = vpack.c.bf16 %v7163_v51, %v7162_v35  ;;  %9663 = vtanh.f32 %v7066_v7 }
0x1059   : > { %v9660_v19 = vpop.eup %9659  ;;  %8405 = vmatmul.mubr.bf16.gmra.mrb[44].mxu0 %v7177_v30 }
0x105a   : > { %v7114_v27 = vadd.f32 1.0, %v9660_v19  ;;  %8408 = vmatprep.mubr.msk.bf16.mxu0 %vm9733_vm7, %v16265_v14 }
0x105b   : > { %v9662_v37 = vpop.eup %9661 }
0x105c   : > { %v7139_v49 = vmul.f32 0.5, %v7114_v27  ;;  %v7115_v0 = vadd.f32 1.0, %v9662_v37 }
0x105e   : > { %v7140_v42 = vmul.f32 0.5, %v7115_v0  ;;  %v7164_v55 = vmul.f32 %v7139_v49, %v6929_v44 }
0x1060   : > { %v7165_v57 = vmul.f32 %v7140_v42, %v6932_v20 }
0x1061   : > { %v9664_v12 = vpop.eup %9663 }
0x1062   : > { %v7178_v43 = vpack.c.bf16 %v7165_v57, %v7164_v55  ;;  %v7116_v59 = vadd.f32 1.0, %v9664_v12 }
0x1064   : > { %v7141_v25 = vmul.f32 0.5, %v7116_v59  ;;  %8409 = vmatmul.mubr.bf16.gmra.mrb[48].mxu0 %v7178_v43 }
0x1065   : > { %8412 = vmatprep.mubr.msk.bf16.mxu0 %vm9733_vm7, %v16265_v14 }
0x1066   : > { %v7166_v41 = vmul.f32 %v7141_v25, %v6937_v38 }
0x1068   : > { %v7179_v63 = vpack.c.bf16 %v7166_v41, %v7166_v41 }
0x106c   : > { %8413 = vmatmul.mubr.bf16.gmra.mrb[52].mxu0 %v7179_v63 }
0x108e   : > { %v7278_v21 = vpop.f32.mrb[4].mxu0 }
0x108f   : > { %v7380_v44 = vadd.f32 %v7278_v21, %v14376_v46  ;;  %v8366_v20 = vpop.f32.mrb[5].mxu0 }
0x1090   : > { %v7281_v18 = vpop.f32.mrb[6].mxu0 }
0x1091   : > { %v15014_v45 = vadd.f32 %v15010_v53, %v7380_v44  ;;  %v7381_v48 = vadd.f32 %v7281_v18, %v14356_v58  ;;  %v8367_v14 = vpop.f32.mrb[7].mxu0 }
0x1093   : > { %7437 = vst.msk [vmem:[#allocation2] sm:$0xff] %vm1030_vm5, %v15014_v45  ;;  %v15020_v38 = vadd.f32 %v15010_v53, %v7381_v48  ;;  %7466 = vxpose.xlu0.b32.start [1/16] (narrow) (!%p8036_p8), %v15014_v45, 32 }
0x1095   : > { %7438 = vst.msk [vmem:[#allocation2 + $0x8] sm:$0xff] %vm1030_vm5, %v15020_v38 }
0x1097   : > { %7467 = vxpose.xlu0.b32.cont [2/16] (narrow) (!%p8036_p8), %v15020_v38, 32 }
0x109a   : > { %v7286_v52 = vpop.f32.mrb[8].mxu0 }
0x109b   : > { %v7382_v46 = vadd.f32 %v7286_v52, %v14392_v16  ;;  %v8370_v23 = vpop.f32.mrb[9].mxu0 }
0x109c   : > { %v7289_v47 = vpop.f32.mrb[10].mxu0 }
0x109d   : > { %v15026_v29 = vadd.f32 %v15010_v53, %v7382_v46  ;;  %v7383_v58 = vadd.f32 %v7289_v47, %v14404_v50  ;;  %v8371_v11 = vpop.f32.mrb[11].mxu0 }
0x109f   : > { %7439 = vst.msk [vmem:[#allocation2 + $0x10] sm:$0xff] %vm1030_vm5, %v15026_v29  ;;  %v15032_v15 = vadd.f32 %v15010_v53, %v7383_v58  ;;  %7468 = vxpose.xlu0.b32.cont [3/16] (narrow) (!%p8036_p8), %v15026_v29, 32 }
0x10a1   : > { %7440 = vst.msk [vmem:[#allocation2 + $0x18] sm:$0xff] %vm1030_vm5, %v15032_v15 }
0x10a3   : > { %7469 = vxpose.xlu0.b32.cont [4/16] (narrow) (!%p8036_p8), %v15032_v15, 32 }
0x10a6   : > { %v7294_v56 = vpop.f32.mrb[12].mxu0 }
0x10a7   : > { %v7384_v16 = vadd.f32 %v7294_v56, %v14364_v60  ;;  %v8374_v3 = vpop.f32.mrb[13].mxu0 }
0x10a8   : > { %v7297_v36 = vpop.f32.mrb[14].mxu0 }
0x10a9   : > { %v15038_v13 = vadd.f32 %v15010_v53, %v7384_v16  ;;  %v7385_v50 = vadd.f32 %v7297_v36, %v14410_v24  ;;  %v8375_v40 = vpop.f32.mrb[15].mxu0 }
0x10ab   : > { %7441 = vst.msk [vmem:[#allocation2 + $0x20] sm:$0xff] %vm1030_vm5, %v15038_v13  ;;  %v15044_v8 = vadd.f32 %v15010_v53, %v7385_v50  ;;  %7470 = vxpose.xlu0.b32.cont [5/16] (narrow) (!%p8036_p8), %v15038_v13, 32 }
0x10ad   : > { %7442 = vst.msk [vmem:[#allocation2 + $0x28] sm:$0xff] %vm1030_vm5, %v15044_v8 }
0x10ae   : > { %v7302_v6 = vpop.f32.mrb[16].mxu0 }
0x10af   : > { %v7386_v60 = vadd.f32 %v7302_v6, %v14380_v4  ;;  %v8378_v39 = vpop.f32.mrb[17].mxu0  ;;  %7471 = vxpose.xlu0.b32.cont [6/16] (narrow) (!%p8036_p8), %v15044_v8, 32 }
0x10b0   : > { %v7305_v1 = vpop.f32.mrb[18].mxu0 }
0x10b1   : > { %v15050_v35 = vadd.f32 %v15010_v53, %v7386_v60  ;;  %v7387_v24 = vadd.f32 %v7305_v1, %v14415_v54  ;;  %v8379_v51 = vpop.f32.mrb[19].mxu0 }
0x10b3   : > { %7443 = vst.msk [vmem:[#allocation2 + $0x30] sm:$0xff] %vm1030_vm5, %v15050_v35  ;;  %v15056_v7 = vadd.f32 %v15010_v53, %v7387_v24  ;;  %7472 = vxpose.xlu0.b32.cont [7/16] (narrow) (!%p8036_p8), %v15050_v35, 32 }
0x10b5   : > { %7444 = vst.msk [vmem:[#allocation2 + $0x38] sm:$0xff] %vm1030_vm5, %v15056_v7 }
0x10b6   : > { %v7310_v30 = vpop.f32.mrb[20].mxu0 }
0x10b7   : > { %v7388_v4 = vadd.f32 %v7310_v30, %v14422_v33  ;;  %v8382_v19 = vpop.f32.mrb[21].mxu0  ;;  %7473 = vxpose.xlu0.b32.cont [8/16] (narrow) (!%p8036_p8), %v15056_v7, 32 }
0x10b8   : > { %v7313_v27 = vpop.f32.mrb[22].mxu0 }
0x10b9   : > { %v15062_v37 = vadd.f32 %v15010_v53, %v7388_v4  ;;  %v7389_v54 = vadd.f32 %v7313_v27, %v14431_v28  ;;  %v8383_v49 = vpop.f32.mrb[23].mxu0 }
0x10bb   : > { %7445 = vst.msk [vmem:[#allocation2 + $0x40] sm:$0xff] %vm1030_vm5, %v15062_v37  ;;  %v15068_v0 = vadd.f32 %v15010_v53, %v7389_v54  ;;  %v16475_v54 = vld [vmem:[#allocation158_spill] sm:$0xff]  ;;  %7474 = vxpose.xlu0.b32.cont [9/16] (narrow) (!%p8036_p8), %v15062_v37, 32 }
0x10bd   : > { %7446 = vst.msk [vmem:[#allocation2 + $0x48] sm:$0xff] %vm1030_vm5, %v15068_v0 }
0x10be   : > { %v7318_v42 = vpop.f32.mrb[24].mxu0 }
0x10bf   : > { %v7390_v33 = vadd.f32 %v7318_v42, %v14483_v17  ;;  %v8386_v55 = vpop.f32.mrb[25].mxu0  ;;  %7475 = vxpose.xlu0.b32.cont [10/16] (narrow) (!%p8036_p8), %v15068_v0, 32 }
0x10c0   : > { %v7321_v57 = vpop.f32.mrb[26].mxu0  ;;  %v16476_v55 = vld [vmem:[#allocation165_spill] sm:$0xff] }
0x10c1   : > { %v15074_v12 = vadd.f32 %v15010_v53, %v7390_v33  ;;  %v7391_v28 = vadd.f32 %v7321_v57, %v14486_v9  ;;  %v8387_v43 = vpop.f32.mrb[27].mxu0 }
0x10c3   : > { %7447 = vst.msk [vmem:[#allocation2 + $0x50] sm:$0xff] %vm1030_vm5, %v15074_v12  ;;  %v15080_v59 = vadd.f32 %v15010_v53, %v7391_v28  ;;  %7476 = vxpose.xlu0.b32.cont [11/16] (narrow) (!%p8036_p8), %v15074_v12, 32 }
0x10c5   : > { %7448 = vst.msk [vmem:[#allocation2 + $0x58] sm:$0xff] %vm1030_vm5, %v15080_v59 }
0x10c6   : > { %v7326_v25 = vpop.f32.mrb[28].mxu0 }
0x10c7   : > { %v7392_v17 = vadd.f32 %v7326_v25, %v14493_v32  ;;  %v8390_v41 = vpop.f32.mrb[29].mxu0  ;;  %v16477_v25 = vld [vmem:[#allocation167_spill] sm:$0xff]  ;;  %7477 = vxpose.xlu0.b32.cont [12/16] (narrow) (!%p8036_p8), %v15080_v59, 32 }
0x10c8   : > { %v7329_v63 = vpop.f32.mrb[30].mxu0 }
0x10c9   : > { %v15086_v21 = vadd.f32 %v15010_v53, %v7392_v17  ;;  %v7393_v9 = vadd.f32 %v7329_v63, %v14496_v62  ;;  %v8391_v44 = vpop.f32.mrb[31].mxu0 }
0x10cb   : > { %7449 = vst.msk [vmem:[#allocation2 + $0x60] sm:$0xff] %vm1030_vm5, %v15086_v21  ;;  %v15092_v20 = vadd.f32 %v15010_v53, %v7393_v9  ;;  %7478 = vxpose.xlu0.b32.cont [13/16] (narrow) (!%p8036_p8), %v15086_v21, 32 }
0x10cd   : > { %7450 = vst.msk [vmem:[#allocation2 + $0x68] sm:$0xff] %vm1030_vm5, %v15092_v20 }
0x10cf   : > { %7479 = vxpose.xlu0.b32.cont [14/16] (narrow) (!%p8036_p8), %v15092_v20, 32 }
0x10de   : > { %v7334_v18 = vpop.f32.mrb[32].mxu0 }
0x10df   : > { %v7394_v32 = vadd.f32 %v7334_v18, %v14503_v10  ;;  %v8394_v48 = vpop.f32.mrb[33].mxu0 }
0x10e0   : > { %v7337_v14 = vpop.f32.mrb[34].mxu0 }
0x10e1   : > { %v15098_v52 = vadd.f32 %v15010_v53, %v7394_v32  ;;  %v7395_v62 = vadd.f32 %v7337_v14, %v14506_v2  ;;  %v8395_v46 = vpop.f32.mrb[35].mxu0 }
0x10e3   : > { %7451 = vst.msk [vmem:[#allocation2 + $0x70] sm:$0xff] %vm1030_vm5, %v15098_v52  ;;  %v15104_v23 = vadd.f32 %v15010_v53, %v7395_v62  ;;  %7480 = vxpose.xlu0.b32.cont [15/16] (narrow) (!%p8036_p8), %v15098_v52, 32 }
0x10e5   : > { %7452 = vst.msk [vmem:[#allocation2 + $0x78] sm:$0xff] %vm1030_vm5, %v15104_v23 }
0x10e7   : > { %7481 = vxpose.xlu0.b32.end [16/16] (narrow) (!%p8036_p8), %v15104_v23, 32 }
0x1114   : > { %v7342_v47 = vpop.f32.mrb[36].mxu0 }
0x1115   : > { %v7396_v10 = vadd.f32 %v7342_v47, %v14513_v61  ;;  %v8398_v58 = vpop.f32.mrb[37].mxu0 }
0x1116   : > { %v7345_v11 = vpop.f32.mrb[38].mxu0 }
0x1117   : > { %v15110_v56 = vadd.f32 %v15010_v53, %v7396_v10  ;;  %v7397_v2 = vadd.f32 %v7345_v11, %v14516_v34  ;;  %v8399_v16 = vpop.f32.mrb[39].mxu0 }
0x1119   : > { %7453 = vst.msk [vmem:[#allocation2 + $0x80] sm:$0xff] %vm1030_vm5, %v15110_v56  ;;  %v15116_v3 = vadd.f32 %v15010_v53, %v7397_v2  ;;  %7498 = vxpose.xlu1.b32.start [1/9] (short) (narrow) (!%p8036_p8), %v15110_v56, 32 }
0x111b   : > { %7454 = vst.msk [vmem:[#allocation2 + $0x88] sm:$0xff] %vm1030_vm5, %v15116_v3 }
0x111d   : > { %7499 = vxpose.xlu1.b32.cont [2/9] (short) (narrow) (!%p8036_p8), %v15116_v3, 32 }
0x111f   : > { %v7350_v36 = vpop.f32.mrb[40].mxu0 }
0x1120   : > { %v7398_v61 = vadd.f32 %v7350_v36, %v14529_v5  ;;  %v8402_v50 = vpop.f32.mrb[41].mxu0 }
0x1121   : > { %v7353_v40 = vpop.f32.mrb[42].mxu0 }
0x1122   : > { %v15122_v6 = vadd.f32 %v15010_v53, %v7398_v61  ;;  %v7399_v34 = vadd.f32 %v7353_v40, %v14532_v31  ;;  %v8403_v60 = vpop.f32.mrb[43].mxu0 }
0x1124   : > { %7455 = vst.msk [vmem:[#allocation2 + $0x90] sm:$0xff] %vm1030_vm5, %v15122_v6  ;;  %v15128_v39 = vadd.f32 %v15010_v53, %v7399_v34  ;;  %7500 = vxpose.xlu1.b32.cont [3/9] (short) (narrow) (!%p8036_p8), %v15122_v6, 32 }
0x1126   : > { %7456 = vst.msk [vmem:[#allocation2 + $0x98] sm:$0xff] %vm1030_vm5, %v15128_v39 }
0x1128   : > { %7501 = vxpose.xlu1.b32.cont [4/9] (short) (narrow) (!%p8036_p8), %v15128_v39, 32 }
0x112b   : > { %v7482_v18 = vpop.trf.xlu0 (!%p8036_p8) }
0x112c   : > { %v7358_v1 = vpop.f32.mrb[44].mxu0  ;;  %7530 = vst [vmem:[%s9932_s4] sm:$0xff] (!%p8036_p8), %v7482_v18 }
0x112d   : > { %v7400_v5 = vadd.f32 %v7358_v1, %v14551_v22  ;;  %v8406_v24 = vpop.f32.mrb[45].mxu0 }
0x112e   : > { %v7361_v51 = vpop.f32.mrb[46].mxu0 }
0x112f   : > { %v15134_v30 = vadd.f32 %v15010_v53, %v7400_v5  ;;  %v7401_v31 = vadd.f32 %v7361_v51, %v14554_v26  ;;  %v8407_v4 = vpop.f32.mrb[47].mxu0  ;;  %v7483_v48 = vpop.trf.xlu0 (!%p8036_p8) }
0x1130   : > { %7532 = vst [vmem:[%s9932_s4 + $0x10] sm:$0xff] (!%p8036_p8), %v7483_v48 }
0x1131   : > { %7457 = vst.msk [vmem:[#allocation2 + $0xa0] sm:$0xff] %vm1030_vm5, %v15134_v30  ;;  %v15140_v19 = vadd.f32 %v15010_v53, %v7401_v31  ;;  %7502 = vxpose.xlu1.b32.cont [5/9] (short) (narrow) (!%p8036_p8), %v15134_v30, 32 }
0x1133   : > { %7458 = vst.msk [vmem:[#allocation2 + $0xa8] sm:$0xff] %vm1030_vm5, %v15140_v19  ;;  %v7484_v62 = vpop.trf.xlu0 (!%p8036_p8) }
0x1134   : > { %7534 = vst [vmem:[%s9932_s4 + $0x20] sm:$0xff] (!%p8036_p8), %v7484_v62 }
0x1135   : > { %7503 = vxpose.xlu1.b32.cont [6/9] (short) (narrow) (!%p8036_p8), %v15140_v19, 32 }
0x1137   : > { %v7366_v27 = vpop.f32.mrb[48].mxu0  ;;  %v7485_v47 = vpop.trf.xlu0 (!%p8036_p8) }
0x1138   : > { %v7402_v22 = vadd.f32 %v7366_v27, %v16475_v54  ;;  %v8410_v49 = vpop.f32.mrb[49].mxu0  ;;  %7536 = vst [vmem:[%s9932_s4 + $0x30] sm:$0xff] (!%p8036_p8), %v7485_v47 }
0x1139   : > { %v7369_v42 = vpop.f32.mrb[50].mxu0 }
0x113a   : > { %v15146_v33 = vadd.f32 %v15010_v53, %v7402_v22  ;;  %v7403_v26 = vadd.f32 %v7369_v42, %v16476_v55  ;;  %v8411_v57 = vpop.f32.mrb[51].mxu0 }
0x113c   : > { %7459 = vst.msk [vmem:[#allocation2 + $0xb0] sm:$0xff] %vm1030_vm5, %v15146_v33  ;;  %v15152_v28 = vadd.f32 %v15010_v53, %v7403_v26  ;;  %7504 = vxpose.xlu1.b32.cont [7/9] (short) (narrow) (!%p8036_p8), %v15146_v33, 32 }
0x113e   : > { %7460 = vst.msk [vmem:[#allocation2 + $0xb8] sm:$0xff] %vm1030_vm5, %v15152_v28  ;;  %7465 = sbr.rel (%p8036_p8) target bundleno = 4530 (0x11b2), region = 88 }
0x113f   : > { %v7374_v43 = vpop.f32.mrb[52].mxu0 }
0x1140   : > { %v7404_v17 = vadd.f32 %v7374_v43, %v16477_v25  ;;  %v8414_v41 = vpop.f32.mrb[53].mxu0  ;;  %7505 = vxpose.xlu1.b32.cont [8/9] (short) (narrow) (!%p8036_p8), %v15152_v28, 32 }
0x1141   : > { %v7377_v63 = vpop.f32.mrb[54].mxu0 }
0x1142   : > { %v15158_v9 = vadd.f32 %v15010_v53, %v7404_v17  ;;  %v8415_v44 = vpop.f32.mrb[55].mxu0 }
0x1144   : > { %7461 = vst.msk [vmem:[#allocation2 + $0xc0] sm:$0xf] %vm1103_vm6, %v15158_v9  ;;  %7506 = vxpose.xlu1.b32.end [9/9] (short) (narrow) (!%p8036_p8), %v15158_v9, 32 }
0x11a4   : > { %v7514_v53 = vpop.trf.xlu1 }
0x11a5   : > { %7531 = vst.msk [vmem:[%s9932_s4 + $0x8] sm:$0xff] %vm2018_vm11, %v7514_v53 }
0x11a8   : > { %v7515_v32 = vpop.trf.xlu1 }
0x11a9   : > { %7533 = vst.msk [vmem:[%s9932_s4 + $0x18] sm:$0xff] %vm2018_vm11, %v7515_v32 }
0x11ac   : > { %v7516_v14 = vpop.trf.xlu1 }
0x11ad   : > { %7535 = vst.msk [vmem:[%s9932_s4 + $0x28] sm:$0xff] %vm2018_vm11, %v7516_v14 }
0x11b0   : > { %v7517_v46 = vpop.trf.xlu1 }
0x11b1   : > { %7537 = vst.msk [vmem:[%s9932_s4 + $0x38] sm:$0xff] %vm2018_vm11, %v7517_v46 }
0x11b2 PF: > { %s16479_s23 = sld [smem:[#allocation3_spill]] }
0x11b8   : > { %p8037_p9 = scmp.ne.s32.totalorder %s16479_s23, 11 }
0x11b9   : > { %7574 = vxpose.xlu1.b32.start [1/9] (short) (narrow) (!%p8037_p9), %v15110_v56, 32  ;;  %7542 = vxpose.xlu0.b32.start [1/16] (narrow) (!%p8037_p9), %v15014_v45, 32 }
0x11ba   : > { %7541 = sbr.rel (%p8037_p9) target bundleno = 4679 (0x1247), region = 92 }
0x11bd   : > { %7575 = vxpose.xlu1.b32.cont [2/9] (short) (narrow) (!%p8037_p9), %v15116_v3, 32  ;;  %7543 = vxpose.xlu0.b32.cont [2/16] (narrow) (!%p8037_p9), %v15020_v38, 32 }
0x11c1   : > { %7576 = vxpose.xlu1.b32.cont [3/9] (short) (narrow) %v15122_v6, 32  ;;  %7544 = vxpose.xlu0.b32.cont [3/16] (narrow) %v15026_v29, 32 }
0x11c5   : > { %7577 = vxpose.xlu1.b32.cont [4/9] (short) (narrow) %v15128_v39, 32  ;;  %7545 = vxpose.xlu0.b32.cont [4/16] (narrow) %v15032_v15, 32 }
0x11c9   : > { %7578 = vxpose.xlu1.b32.cont [5/9] (short) (narrow) %v15134_v30, 32  ;;  %7546 = vxpose.xlu0.b32.cont [5/16] (narrow) %v15038_v13, 32 }
0x11cd   : > { %7579 = vxpose.xlu1.b32.cont [6/9] (short) (narrow) %v15140_v19, 32  ;;  %7547 = vxpose.xlu0.b32.cont [6/16] (narrow) %v15044_v8, 32 }
0x11d1   : > { %7580 = vxpose.xlu1.b32.cont [7/9] (short) (narrow) %v15146_v33, 32  ;;  %7548 = vxpose.xlu0.b32.cont [7/16] (narrow) %v15050_v35, 32 }
0x11d5   : > { %7581 = vxpose.xlu1.b32.cont [8/9] (short) (narrow) %v15152_v28, 32  ;;  %7549 = vxpose.xlu0.b32.cont [8/16] (narrow) %v15056_v7, 32 }
0x11d9   : > { %7582 = vxpose.xlu1.b32.end [9/9] (short) (narrow) %v15158_v9, 32  ;;  %7550 = vxpose.xlu0.b32.cont [9/16] (narrow) %v15062_v37, 32 }
0x11dd   : > { %7551 = vxpose.xlu0.b32.cont [10/16] (narrow) %v15068_v0, 32 }
0x11e1   : > { %7552 = vxpose.xlu0.b32.cont [11/16] (narrow) %v15074_v12, 32 }
0x11e5   : > { %7553 = vxpose.xlu0.b32.cont [12/16] (narrow) %v15080_v59, 32 }
0x11e9   : > { %7554 = vxpose.xlu0.b32.cont [13/16] (narrow) %v15086_v21, 32 }
0x11ed   : > { %7555 = vxpose.xlu0.b32.cont [14/16] (narrow) %v15092_v20, 32 }
0x11f1   : > { %7556 = vxpose.xlu0.b32.cont [15/16] (narrow) %v15098_v52, 32 }
0x11f5   : > { %7557 = vxpose.xlu0.b32.end [16/16] (narrow) %v15104_v23, 32 }
0x1239   : > { %v7590_v45 = vpop.trf.xlu1  ;;  %v7558_v38 = vpop.trf.xlu0 }
0x123a   : > { %7607 = vst.msk [vmem:[%s9937_s18 + $0x8] sm:$0xff] %vm2018_vm11, %v7590_v45  ;;  %7606 = vst [vmem:[%s9937_s18] sm:$0xff] %v7558_v38 }
0x123d   : > { %v7591_v29 = vpop.trf.xlu1  ;;  %v7559_v15 = vpop.trf.xlu0 }
0x123e   : > { %7609 = vst.msk [vmem:[%s9937_s18 + $0x18] sm:$0xff] %vm2018_vm11, %v7591_v29  ;;  %7608 = vst [vmem:[%s9937_s18 + $0x10] sm:$0xff] %v7559_v15 }
0x1241   : > { %v7592_v13 = vpop.trf.xlu1  ;;  %v7560_v8 = vpop.trf.xlu0 }
0x1242   : > { %7611 = vst.msk [vmem:[%s9937_s18 + $0x28] sm:$0xff] %vm2018_vm11, %v7592_v13  ;;  %7610 = vst [vmem:[%s9937_s18 + $0x20] sm:$0xff] %v7560_v8 }
0x1245   : > { %v7593_v35 = vpop.trf.xlu1  ;;  %v7561_v7 = vpop.trf.xlu0 }
0x1246   : > { %7613 = vst.msk [vmem:[%s9937_s18 + $0x38] sm:$0xff] %vm2018_vm11, %v7593_v35  ;;  %7612 = vst [vmem:[%s9937_s18 + $0x30] sm:$0xff] %v7561_v7 }
0x1247 PF: > { %s16480_s4 = sld [smem:[#allocation6_spill]]  ;;  %s16481_s21 = sld [smem:[#allocation4_spill]] }
0x1248   : > { %s16482_s22 = sld [smem:[#allocation5_spill]]  ;;  %s16483_s23 = sld [smem:[#allocation7_spill]] }
0x1249   : > { %s16484_s24 = sld [smem:[#allocation8_spill]] }
0x124d   : > { %s27_s25 = sadd.s32 1, %s16480_s4  }
0x124e   : > { %p24_p10 = scmp.ge.s32.totalorder %s27_s25, 26  }
0x1250   :  { %26 = sbr.rel (!%p24_p10) target bundleno = 10 (0xa), region = 170 }

</bundles_post_ra>
